<compile_context>
chip_gen: v7x
topology: tpu7x:2x2x1
jax: 0.10.0
libtpu: 0.0.40
codegen_flags: <defaults>
</compile_context>

<pallas_src>
import functools
import math

import jax
import jax.numpy as jnp
from jax.experimental import pallas as pl
from jax.experimental.pallas import tpu as pltpu

BN_EPS = 1e-5
DP = 128          # lane-dense padded feature width for all tree activations


# --------------------------------------------------------------------------
# small helpers
# --------------------------------------------------------------------------

def _act(y, alpha):
    """alpha==0 -> ReLU, 0<alpha<1 -> PReLU, alpha==1 -> identity (skipped)."""
    if alpha == 1.0:
        return y
    if alpha == 0.0:
        return jnp.maximum(y, 0.0)
    return jnp.where(y > 0, y, alpha * y)


def _dot(x, w):
    """MXU matmul with f32 accumulation; bf16 weights -> cast activations."""
    if w.dtype == jnp.bfloat16:
        x = x.astype(jnp.bfloat16)
    return jnp.dot(x, w, preferred_element_type=jnp.float32)


def _bit_reversal(n):
    """Static bit-reversal permutation so every tree level reduces contiguous halves."""
    bits = n.bit_length() - 1
    assert (1 << bits) == n, "N must be a power of two"
    rev = []
    for p in range(n):
        r = 0
        for i in range(bits):
            r |= ((p >> i) & 1) << (bits - 1 - i)
        rev.append(r)
    return tuple(rev)


def _pad_w(w, rows=DP, cols=DP):
    assert w.shape[0] <= rows and w.shape[1] <= cols, w.shape
    out = jnp.zeros((rows, cols), w.dtype)
    return out.at[:w.shape[0], :w.shape[1]].set(w)


def _pad_b(bvec, cols=DP):
    b = bvec.reshape(1, -1)
    assert b.shape[1] <= cols, b.shape
    out = jnp.zeros((1, cols), jnp.float32)
    return out.at[:, :b.shape[1]].set(b.astype(jnp.float32))


# --------------------------------------------------------------------------
# Deterministic parameter construction (shapes from the module's __init__),
# with eval-mode BatchNorm folded into the linear weights.
# --------------------------------------------------------------------------

def _init_linear(key, idim, odim, scale=None):
    if scale is None:
        scale = 0.5 / math.sqrt(idim)
    kw, kb = jax.random.split(key)
    w_t = jax.random.normal(kw, (idim, odim), jnp.float32) * scale  # stored transposed
    b = jax.random.normal(kb, (odim,), jnp.float32) * 0.05
    return w_t, b


def _init_bn_fold(key, dim):
    k1, k2, k3, k4 = jax.random.split(key, 4)
    gamma = 1.0 + 0.1 * jax.random.normal(k1, (dim,), jnp.float32)
    beta = 0.05 * jax.random.normal(k2, (dim,), jnp.float32)
    mean = 0.05 * jax.random.normal(k3, (dim,), jnp.float32)
    var = 1.0 + 0.1 * jnp.abs(jax.random.normal(k4, (dim,), jnp.float32))
    s = gamma / jnp.sqrt(var + BN_EPS)
    t = beta - mean * s
    return s, t


def make_fc(key, idim, odim, *, init, bn=True, dtype=jnp.float32):
    """FC: Linear -> BatchNorm1d (eval, folded) -> PReLU(init) / ReLU / identity."""
    k1, k2 = jax.random.split(key)
    w_t, b = _init_linear(k1, idim, odim)
    if bn:
        s, t = _init_bn_fold(k2, odim)
        w_t = w_t * s[None, :]
        b = b * s + t
    alpha = 1.0 if init is None else float(init)
    return dict(w_t=w_t.astype(dtype),
                b=b.reshape(1, odim).astype(jnp.float32),
                alpha=alpha)


def make_mlp(key, dims, init, last_relu=False, last_bn=True):
    n = len(dims) - 1
    keys = jax.random.split(key, n)
    layers = []
    for i in range(1, len(dims)):
        last = i == n
        use_relu = last_relu or not last
        use_bn = last_bn or not last
        layers.append(make_fc(keys[i - 1], dims[i - 1], dims[i],
                              init=init if use_relu else None, bn=use_bn))
    return layers


def combine_blockdiag(a_layers, b_layers):
    """Merge two parallel MLPs (same depth, same alphas) into one block-diagonal
    MLP so that mlp([x_a, x_b]) == concat(mlp_a(x_a), mlp_b(x_b))."""
    out = []
    for pa, pb in zip(a_layers, b_layers):
        assert pa['alpha'] == pb['alpha']
        wa, wb = pa['w_t'], pb['w_t']
        ia, oa = wa.shape
        ib, ob = wb.shape
        w = jnp.zeros((ia + ib, oa + ob), jnp.float32)
        w = w.at[:ia, :oa].set(wa).at[ia:, oa:].set(wb)
        b = jnp.concatenate([pa['b'], pb['b']], axis=-1)
        out.append(dict(w_t=w, b=b, alpha=pa['alpha']))
    return out


def make_alignment(key, k):
    """Alignment(k): conv1d(k->128->256->1024, ks=1) + fc(1024->512->256->k*k).
    conv1's input rows are padded to DP so the kernel can feed lane-dense
    (rows, DP) activations directly (padding rows are zero -> exact)."""
    ks = jax.random.split(key, 6)
    kk = k * k
    kk_pad = max(128, ((kk + 127) // 128) * 128)        # lane-dense fc3 output
    c1 = make_fc(ks[0], k, 128, init=0.0)                              # ReLU
    c1['w_t'] = _pad_w(c1['w_t'], rows=DP, cols=128)
    c2 = make_fc(ks[1], 128, 256, init=0.0, dtype=jnp.bfloat16)        # ReLU
    c3 = make_fc(ks[2], 256, 1024, init=None, dtype=jnp.bfloat16)      # BN only
    f1 = make_fc(ks[3], 1024, 512, init=0.0, dtype=jnp.bfloat16)       # ReLU
    f2 = make_fc(ks[4], 512, 256, init=0.0, dtype=jnp.bfloat16)        # ReLU
    w6, b6 = _init_linear(ks[5], 256, kk, scale=0.01)                  # plain fc
    b6 = b6 + jnp.eye(k, dtype=jnp.float32).reshape(-1)                # bias += eye(k)
    w6p = jnp.zeros((256, kk_pad), jnp.float32).at[:, :kk].set(w6)
    b6p = jnp.zeros((1, kk_pad), jnp.float32).at[:, :kk].set(b6[None, :])
    f3 = dict(w_t=w6p, b=b6p, alpha=1.0)
    return dict(k=k, kk_pad=kk_pad, layers=[c1, c2, c3, f1, f2, f3])


def build_encoder_params(key, N=8, num_layers=4, dim=32, relu_weight=0.25):
    """Synthetic balanced-binary-tree Encoder (sample_layers >= num_layers)."""
    keys = jax.random.split(key, num_layers + 1)
    params = {'align_pts': make_alignment(keys[0], 3)}
    edim = num_layers - 1
    feature_dim = 16
    dim_repeat = 3
    odims = [-1] * 100
    layers = []
    for li, i in enumerate(reversed(range(num_layers))):
        layer_type = 'leaf' if (i + 1 == num_layers) else 'unsampled'
        if layer_type != 'leaf':
            idim = feature_dim
            if odims[-dim_repeat] == feature_dim:
                feature_dim = min(feature_dim * 2, dim)
            odim = feature_dim
        else:
            idim = 3
            odim = feature_dim
        if odim > 64:
            dim_repeat = 1
        elif odim > 16:
            dim_repeat = 2
        odims.append(odim)
        lk = jax.random.split(keys[li + 1], 4)
        layer = dict(layer_type=layer_type, idim=idim, odim=odim,
                     num_nodes=N >> li)
        if layer_type == 'leaf':
            pd = int(0.6 * odim + 0.5)
            ed = odim - pd
            up_pt = make_mlp(lk[0], [3, pd * 2, pd], relu_weight)
            up_ex = make_mlp(lk[1], [edim, ed * 2, ed], relu_weight)
            layer['upload_comb'] = combine_blockdiag(up_pt, up_ex)
        else:
            layer['upload'] = make_mlp(lk[0], [idim, idim * 2, idim * 2], relu_weight)
            layer['save'] = make_mlp(lk[1], [idim * 2, odim], relu_weight)
            if li in (2, 4, 6):                          # same condition as EncoderLayer
                layer['alignment'] = make_alignment(lk[2], odim)
        layers.append(layer)
    params['layers'] = layers
    return params


def pack_encoder(params):
    """Flatten all (padded) weights into one list and build an index 'plan'
    (pure-Python structure) the fused kernel closes over."""
    flat = []

    def add(a):
        flat.append(a)
        return len(flat) - 1

    def pack_align(al):
        return dict(k=al['k'],
                    layers=[dict(w=add(q['w_t']), b=add(q['b']), alpha=q['alpha'])
                            for q in al['layers']])

    plan = {'align_pts': pack_align(params['align_pts'])}

    # Leaf block-diagonal MLP.  Layer 1 is split so the kernel can feed the
    # ALIGNED points (3 lanes) and the raw padded input (extra lanes) without
    # any lane concatenation:  h1 = act(aligned @ w1a + x @ w1b + b1).
    l1, l2 = params['layers'][0]['upload_comb']
    w1 = _pad_w(l1['w_t'])
    plan['leaf'] = dict(
        w1a=add(w1[:3, :]),                     # point rows only, (3, DP)
        w1b=add(w1.at[:3, :].set(0.0)),         # extra rows only, (DP, DP)
        b1=add(_pad_b(l1['b'])),
        alpha1=l1['alpha'],
        l2=dict(w=add(_pad_w(l2['w_t'])), b=add(_pad_b(l2['b'])), alpha=l2['alpha']))

    tree = []
    for layer in params['layers'][1:]:
        ent = dict(
            nn=layer['num_nodes'],
            up=[dict(w=add(_pad_w(q['w_t'])), b=add(_pad_b(q['b'])), alpha=q['alpha'])
                for q in layer['upload']],
            save=[dict(w=add(_pad_w(q['w_t'])), b=add(_pad_b(q['b'])), alpha=q['alpha'])
                  for q in layer['save']],
            align=pack_align(layer['alignment']) if 'alignment' in layer else None)
        tree.append(ent)
    plan['tree'] = tree
    plan['n_weights'] = len(flat)
    return flat, plan


# --------------------------------------------------------------------------
# The single fused Pallas kernel: whole Encoder forward for one batch element.
# --------------------------------------------------------------------------

def _encoder_kernel(line_ref, x_ref, *rest, plan):
    nw = plan['n_weights']
    w_refs = rest[:nw]
    out_ref = rest[nw]
    gbuf = rest[nw + 1]                         # (N, 1, DP) VMEM gather buffer

    def R(i):
        return w_refs[i][...]

    def fc(x, q):
        w = R(q['w'])
        if w.shape[0] != x.shape[1]:            # narrow (post-bmm) input: padded
            w = w[:x.shape[1], :]               # weight rows beyond it are zero
        return _act(_dot(x, w) + R(q['b']), q['alpha'])

    def run_alignment(xin, spec):
        """conv1->conv2->conv3 -> max over rows -> fc1->fc2->fc3, then the
        fused bmm  out[i, j] = sum_c xin[i, c] * mat[c, j]  without any
        (k, k) reshape (column-broadcast sum over the flat fc3 output)."""
        k = spec['k']
        h = xin
        for q in spec['layers'][:3]:
            h = fc(h, q)
        g = jnp.max(h, axis=0, keepdims=True)   # (1, 1024) global max-pool
        for q in spec['layers'][3:]:
            g = fc(g, q)                        # (1, kk_pad) flat matrix
        pts = xin[:, :k]
        out = pts[:, 0:1] * g[:, 0:k]
        for c in range(1, k):
            out = out + pts[:, c:c + 1] * g[:, c * k:(c + 1) * k]
        return out                              # (rows, k) == torch.bmm(pts, mat)

    b = pl.program_id(0)
    x = x_ref[...]                              # (N, DP): [pts(3) | extra | zeros]
    N = x.shape[0]

    # --- input alignment (Alignment(3)) fused with its bmm consumer ---------
    aligned = run_alignment(x, plan['align_pts'])          # (N, 3)

    # --- leaf layer: block-diagonal [upload_point | upload_extra] MLP -------
    lf = plan['leaf']
    h = _act(_dot(aligned, R(lf['w1a'])) + _dot(x, R(lf['w1b'])) + R(lf['b1']),
             lf['alpha1'])
    h = fc(h, lf['l2'])                                    # (N, DP)

    # --- leaf arrangement gather (indices scalar-prefetched into SMEM; the
    #     static bit-reversal is pre-composed into them outside the kernel) --
    for i in range(N):
        gbuf[i] = h[i:i + 1, :]
    h = jnp.concatenate([gbuf[line_ref[b, p]] for p in range(N)], axis=0)

    # --- tree reduction: shared 'up' on all child rows at once, pairwise max
    #     of contiguous halves, 'save'; optional mid-tree alignment ----------
    for L in plan['tree']:
        nn = L['nn']
        u = h
        for q in L['up']:
            u = fc(u, q)
        m = jnp.maximum(u[:nn], u[nn:2 * nn])
        for q in L['save']:
            m = fc(m, q)
        h = m                                              # (nn, DP)
        if L['align'] is not None:
            h = run_alignment(h, L['align'])               # (nn, k) narrow, exact

    if h.shape[1] != out_ref.shape[1]:                     # keep output lane-dense
        h = jnp.concatenate(
            [h, jnp.zeros((h.shape[0], out_ref.shape[1] - h.shape[1]), h.dtype)],
            axis=1)
    out_ref[...] = h                                       # (1, DP)


def _estimate_cost(flat, B, N):
    flops = 0
    bytes_accessed = B * N * DP * 4 + B * DP * 4
    for a in flat:
        bytes_accessed += int(a.size) * a.dtype.itemsize
        flops += 2 * N * int(a.size)            # upper bound (<= N rows per matmul)
    return int(B * flops), int(bytes_accessed)


def encoder_forward(flat, points, leaf_line, extra, *, plan, out_dim):
    """points: (B, N, 3), leaf_line: (B, N) int32, extra: (B, N, num_layers-1)."""
    B, N, _ = points.shape
    edim = extra.shape[-1]
    assert 3 + edim <= DP
    rev = _bit_reversal(N)
    # Pre-compose the static bit-reversal with the dynamic leaf arrangement.
    line_rev = jnp.take(leaf_line.astype(jnp.int32),
                        jnp.asarray(rev, jnp.int32), axis=1)
    # Lane-dense fused kernel input: [points | extra | zeros] -> (B, N, 128).
    x = jnp.concatenate(
        [points.astype(jnp.float32), extra.astype(jnp.float32),
         jnp.zeros((B, N, DP - 3 - edim), jnp.float32)], axis=-1)

    in_specs = [pl.BlockSpec((None, N, DP), lambda b, line: (b, 0, 0))]
    for a in flat:                              # weights: resident (constant index)
        in_specs.append(pl.BlockSpec(a.shape, lambda b, line, _n=a.ndim: (0,) * _n))

    grid_spec = pltpu.PrefetchScalarGridSpec(
        num_scalar_prefetch=1,                  # leaf_line index table -> SMEM
        grid=(B,),
        in_specs=in_specs,
        out_specs=pl.BlockSpec((None, 1, DP), lambda b, line: (b, 0, 0)),
        scratch_shapes=[pltpu.VMEM((N, 1, DP), jnp.float32)],
    )

    flops, bytes_accessed = _estimate_cost(flat, B, N)
    kern = functools.partial(_encoder_kernel, plan=plan)

    out = pl.pallas_call(
        kern,
        grid_spec=grid_spec,
        out_shape=jax.ShapeDtypeStruct((B, 1, DP), jnp.float32),
        compiler_params=pltpu.CompilerParams(
            dimension_semantics=("parallel",)),
        cost_estimate=pl.CostEstimate(
            flops=flops, transcendentals=0, bytes_accessed=bytes_accessed),
    )(line_rev, x, *flat)

    return out.reshape(B, DP)[:, :out_dim]


# --------------------------------------------------------------------------

if __name__ == "__main__":
    key = jax.random.PRNGKey(0)
    kp, kx, ke, kperm = jax.random.split(key, 4)

    B, N, num_layers, dim = 2, 8, 4, 32
    params = build_encoder_params(kp, N=N, num_layers=num_layers, dim=dim)
    flat, plan = pack_encoder(params)
    out_dim = params['layers'][-1]['odim']

    points = jax.random.normal(kx, (B, N, 3), jnp.float32)
    extra = jax.random.normal(ke, (B, N, num_layers - 1), jnp.float32)
    # deterministic leaf arrangement (the per-batch gather indices from `inputs`)
    leaf_line = jnp.stack(
        [jax.random.permutation(jax.random.fold_in(kperm, b), N) for b in range(B)]
    ).astype(jnp.int32)

    fwd = jax.jit(functools.partial(encoder_forward, plan=plan, out_dim=out_dim))
    out = fwd(flat, points, leaf_line, extra)
    out = jax.block_until_ready(out)

    assert out.shape == (B, dim), out.shape
    assert bool(jnp.all(jnp.isfinite(out)))
    print("KERNEL_OK")
</pallas_src>

<mosaic_0001>
module attributes {stable_mosaic.version = 11 : i64} {
  func.func @_encoder_kernel(%arg0: i32, %arg1: memref<2x8xi32, #tpu.memory_space<smem>>, %arg2: memref<1x8x128xf32, #tpu.memory_space<vmem>>, %arg3: memref<128x128xf32, #tpu.memory_space<vmem>>, %arg4: memref<1x128xf32, #tpu.memory_space<vmem>>, %arg5: memref<128x256xbf16, #tpu.memory_space<vmem>>, %arg6: memref<1x256xf32, #tpu.memory_space<vmem>>, %arg7: memref<256x1024xbf16, #tpu.memory_space<vmem>>, %arg8: memref<1x1024xf32, #tpu.memory_space<vmem>>, %arg9: memref<1024x512xbf16, #tpu.memory_space<vmem>>, %arg10: memref<1x512xf32, #tpu.memory_space<vmem>>, %arg11: memref<512x256xbf16, #tpu.memory_space<vmem>>, %arg12: memref<1x256xf32, #tpu.memory_space<vmem>>, %arg13: memref<256x128xf32, #tpu.memory_space<vmem>>, %arg14: memref<1x128xf32, #tpu.memory_space<vmem>>, %arg15: memref<3x128xf32, #tpu.memory_space<vmem>>, %arg16: memref<128x128xf32, #tpu.memory_space<vmem>>, %arg17: memref<1x128xf32, #tpu.memory_space<vmem>>, %arg18: memref<128x128xf32, #tpu.memory_space<vmem>>, %arg19: memref<1x128xf32, #tpu.memory_space<vmem>>, %arg20: memref<128x128xf32, #tpu.memory_space<vmem>>, %arg21: memref<1x128xf32, #tpu.memory_space<vmem>>, %arg22: memref<128x128xf32, #tpu.memory_space<vmem>>, %arg23: memref<1x128xf32, #tpu.memory_space<vmem>>, %arg24: memref<128x128xf32, #tpu.memory_space<vmem>>, %arg25: memref<1x128xf32, #tpu.memory_space<vmem>>, %arg26: memref<128x128xf32, #tpu.memory_space<vmem>>, %arg27: memref<1x128xf32, #tpu.memory_space<vmem>>, %arg28: memref<128x128xf32, #tpu.memory_space<vmem>>, %arg29: memref<1x128xf32, #tpu.memory_space<vmem>>, %arg30: memref<128x128xf32, #tpu.memory_space<vmem>>, %arg31: memref<1x128xf32, #tpu.memory_space<vmem>>, %arg32: memref<128x128xf32, #tpu.memory_space<vmem>>, %arg33: memref<1x128xf32, #tpu.memory_space<vmem>>, %arg34: memref<128x256xbf16, #tpu.memory_space<vmem>>, %arg35: memref<1x256xf32, #tpu.memory_space<vmem>>, %arg36: memref<256x1024xbf16, #tpu.memory_space<vmem>>, %arg37: memref<1x1024xf32, #tpu.memory_space<vmem>>, %arg38: memref<1024x512xbf16, #tpu.memory_space<vmem>>, %arg39: memref<1x512xf32, #tpu.memory_space<vmem>>, %arg40: memref<512x256xbf16, #tpu.memory_space<vmem>>, %arg41: memref<1x256xf32, #tpu.memory_space<vmem>>, %arg42: memref<256x256xf32, #tpu.memory_space<vmem>>, %arg43: memref<1x256xf32, #tpu.memory_space<vmem>>, %arg44: memref<128x128xf32, #tpu.memory_space<vmem>>, %arg45: memref<1x128xf32, #tpu.memory_space<vmem>>, %arg46: memref<128x128xf32, #tpu.memory_space<vmem>>, %arg47: memref<1x128xf32, #tpu.memory_space<vmem>>, %arg48: memref<128x128xf32, #tpu.memory_space<vmem>>, %arg49: memref<1x128xf32, #tpu.memory_space<vmem>>, %arg50: memref<1x1x128xf32, #tpu.memory_space<vmem>>, %arg51: memref<8x1x128xf32, #tpu.memory_space<vmem>>) attributes {dimension_semantics = [#tpu.dimension_semantics<parallel>], iteration_bounds = array<i64: 2>, scalar_prefetch = 1 : i64, scratch_operands = 1 : i64, tpu.core_type = #tpu.core_type<tc>, window_params = [{transform_indices = @transform_0, window_bounds = array<i64: 1, 8, 128>}, {pipeline_mode = #tpu.pipeline_mode<synchronous>, transform_indices = @transform_1, window_bounds = array<i64: 128, 128>}, {pipeline_mode = #tpu.pipeline_mode<synchronous>, transform_indices = @transform_2, window_bounds = array<i64: 1, 128>}, {pipeline_mode = #tpu.pipeline_mode<synchronous>, transform_indices = @transform_3, window_bounds = array<i64: 128, 256>}, {pipeline_mode = #tpu.pipeline_mode<synchronous>, transform_indices = @transform_4, window_bounds = array<i64: 1, 256>}, {pipeline_mode = #tpu.pipeline_mode<synchronous>, transform_indices = @transform_5, window_bounds = array<i64: 256, 1024>}, {pipeline_mode = #tpu.pipeline_mode<synchronous>, transform_indices = @transform_6, window_bounds = array<i64: 1, 1024>}, {pipeline_mode = #tpu.pipeline_mode<synchronous>, transform_indices = @transform_7, window_bounds = array<i64: 1024, 512>}, {pipeline_mode = #tpu.pipeline_mode<synchronous>, transform_indices = @transform_8, window_bounds = array<i64: 1, 512>}, {pipeline_mode = #tpu.pipeline_mode<synchronous>, transform_indices = @transform_9, window_bounds = array<i64: 512, 256>}, {pipeline_mode = #tpu.pipeline_mode<synchronous>, transform_indices = @transform_10, window_bounds = array<i64: 1, 256>}, {pipeline_mode = #tpu.pipeline_mode<synchronous>, transform_indices = @transform_11, window_bounds = array<i64: 256, 128>}, {pipeline_mode = #tpu.pipeline_mode<synchronous>, transform_indices = @transform_12, window_bounds = array<i64: 1, 128>}, {pipeline_mode = #tpu.pipeline_mode<synchronous>, transform_indices = @transform_13, window_bounds = array<i64: 3, 128>}, {pipeline_mode = #tpu.pipeline_mode<synchronous>, transform_indices = @transform_14, window_bounds = array<i64: 128, 128>}, {pipeline_mode = #tpu.pipeline_mode<synchronous>, transform_indices = @transform_15, window_bounds = array<i64: 1, 128>}, {pipeline_mode = #tpu.pipeline_mode<synchronous>, transform_indices = @transform_16, window_bounds = array<i64: 128, 128>}, {pipeline_mode = #tpu.pipeline_mode<synchronous>, transform_indices = @transform_17, window_bounds = array<i64: 1, 128>}, {pipeline_mode = #tpu.pipeline_mode<synchronous>, transform_indices = @transform_18, window_bounds = array<i64: 128, 128>}, {pipeline_mode = #tpu.pipeline_mode<synchronous>, transform_indices = @transform_19, window_bounds = array<i64: 1, 128>}, {pipeline_mode = #tpu.pipeline_mode<synchronous>, transform_indices = @transform_20, window_bounds = array<i64: 128, 128>}, {pipeline_mode = #tpu.pipeline_mode<synchronous>, transform_indices = @transform_21, window_bounds = array<i64: 1, 128>}, {pipeline_mode = #tpu.pipeline_mode<synchronous>, transform_indices = @transform_22, window_bounds = array<i64: 128, 128>}, {pipeline_mode = #tpu.pipeline_mode<synchronous>, transform_indices = @transform_23, window_bounds = array<i64: 1, 128>}, {pipeline_mode = #tpu.pipeline_mode<synchronous>, transform_indices = @transform_24, window_bounds = array<i64: 128, 128>}, {pipeline_mode = #tpu.pipeline_mode<synchronous>, transform_indices = @transform_25, window_bounds = array<i64: 1, 128>}, {pipeline_mode = #tpu.pipeline_mode<synchronous>, transform_indices = @transform_26, window_bounds = array<i64: 128, 128>}, {pipeline_mode = #tpu.pipeline_mode<synchronous>, transform_indices = @transform_27, window_bounds = array<i64: 1, 128>}, {pipeline_mode = #tpu.pipeline_mode<synchronous>, transform_indices = @transform_28, window_bounds = array<i64: 128, 128>}, {pipeline_mode = #tpu.pipeline_mode<synchronous>, transform_indices = @transform_29, window_bounds = array<i64: 1, 128>}, {pipeline_mode = #tpu.pipeline_mode<synchronous>, transform_indices = @transform_30, window_bounds = array<i64: 128, 128>}, {pipeline_mode = #tpu.pipeline_mode<synchronous>, transform_indices = @transform_31, window_bounds = array<i64: 1, 128>}, {pipeline_mode = #tpu.pipeline_mode<synchronous>, transform_indices = @transform_32, window_bounds = array<i64: 128, 256>}, {pipeline_mode = #tpu.pipeline_mode<synchronous>, transform_indices = @transform_33, window_bounds = array<i64: 1, 256>}, {pipeline_mode = #tpu.pipeline_mode<synchronous>, transform_indices = @transform_34, window_bounds = array<i64: 256, 1024>}, {pipeline_mode = #tpu.pipeline_mode<synchronous>, transform_indices = @transform_35, window_bounds = array<i64: 1, 1024>}, {pipeline_mode = #tpu.pipeline_mode<synchronous>, transform_indices = @transform_36, window_bounds = array<i64: 1024, 512>}, {pipeline_mode = #tpu.pipeline_mode<synchronous>, transform_indices = @transform_37, window_bounds = array<i64: 1, 512>}, {pipeline_mode = #tpu.pipeline_mode<synchronous>, transform_indices = @transform_38, window_bounds = array<i64: 512, 256>}, {pipeline_mode = #tpu.pipeline_mode<synchronous>, transform_indices = @transform_39, window_bounds = array<i64: 1, 256>}, {pipeline_mode = #tpu.pipeline_mode<synchronous>, transform_indices = @transform_40, window_bounds = array<i64: 256, 256>}, {pipeline_mode = #tpu.pipeline_mode<synchronous>, transform_indices = @transform_41, window_bounds = array<i64: 1, 256>}, {pipeline_mode = #tpu.pipeline_mode<synchronous>, transform_indices = @transform_42, window_bounds = array<i64: 128, 128>}, {pipeline_mode = #tpu.pipeline_mode<synchronous>, transform_indices = @transform_43, window_bounds = array<i64: 1, 128>}, {pipeline_mode = #tpu.pipeline_mode<synchronous>, transform_indices = @transform_44, window_bounds = array<i64: 128, 128>}, {pipeline_mode = #tpu.pipeline_mode<synchronous>, transform_indices = @transform_45, window_bounds = array<i64: 1, 128>}, {pipeline_mode = #tpu.pipeline_mode<synchronous>, transform_indices = @transform_46, window_bounds = array<i64: 128, 128>}, {pipeline_mode = #tpu.pipeline_mode<synchronous>, transform_indices = @transform_47, window_bounds = array<i64: 1, 128>}, {transform_indices = @transform_48, window_bounds = array<i64: 1, 1, 128>}]} {
    %c0 = arith.constant 0 : index
    %c0_0 = arith.constant 0 : index
    %c0_1 = arith.constant 0 : index
    %0 = vector.load %arg2[%c0, %c0_0, %c0_1] : memref<1x8x128xf32, #tpu.memory_space<vmem>>, vector<1x8x128xf32>
    %1 = vector.shape_cast %0 : vector<1x8x128xf32> to vector<8x128xf32>
    %c0_2 = arith.constant 0 : index
    %c0_3 = arith.constant 0 : index
    %2 = vector.load %arg3[%c0_2, %c0_3] : memref<128x128xf32, #tpu.memory_space<vmem>>, vector<128x128xf32>
    %cst = arith.constant dense<0.000000e+00> : vector<8x128xf32>
    %3 = tpu.matmul %1, %2, %cst {dimension_numbers = #tpu.dot_dimension_numbers<[1], [0], [0], [1], [0, 0, 1, 1], [], []>} : vector<8x128xf32>, vector<128x128xf32>, vector<8x128xf32> -> vector<8x128xf32>
    %c0_4 = arith.constant 0 : index
    %c0_5 = arith.constant 0 : index
    %4 = vector.load %arg4[%c0_4, %c0_5] : memref<1x128xf32, #tpu.memory_space<vmem>>, vector<1x128xf32>
    %5 = vector.broadcast %4 : vector<1x128xf32> to vector<8x128xf32>
    %6 = arith.addf %3, %5 : vector<8x128xf32>
    %cst_6 = arith.constant 0.000000e+00 : f32
    %7 = vector.broadcast %cst_6 : f32 to vector<8x128xf32>
    %8 = arith.maximumf %6, %7 : vector<8x128xf32>
    %c0_7 = arith.constant 0 : index
    %c0_8 = arith.constant 0 : index
    %9 = vector.load %arg5[%c0_7, %c0_8] : memref<128x256xbf16, #tpu.memory_space<vmem>>, vector<128x256xbf16>
    %10 = arith.truncf %8 : vector<8x128xf32> to vector<8x128xbf16>
    %cst_9 = arith.constant dense<0.000000e+00> : vector<8x256xf32>
    %11 = tpu.matmul %10, %9, %cst_9 {dimension_numbers = #tpu.dot_dimension_numbers<[1], [0], [0], [1], [0, 0, 1, 1], [], []>} : vector<8x128xbf16>, vector<128x256xbf16>, vector<8x256xf32> -> vector<8x256xf32>
    %c0_10 = arith.constant 0 : index
    %c0_11 = arith.constant 0 : index
    %12 = vector.load %arg6[%c0_10, %c0_11] : memref<1x256xf32, #tpu.memory_space<vmem>>, vector<1x256xf32>
    %13 = vector.broadcast %12 : vector<1x256xf32> to vector<8x256xf32>
    %14 = arith.addf %11, %13 : vector<8x256xf32>
    %cst_12 = arith.constant 0.000000e+00 : f32
    %15 = vector.broadcast %cst_12 : f32 to vector<8x256xf32>
    %16 = arith.maximumf %14, %15 : vector<8x256xf32>
    %c0_13 = arith.constant 0 : index
    %c0_14 = arith.constant 0 : index
    %17 = vector.load %arg7[%c0_13, %c0_14] : memref<256x1024xbf16, #tpu.memory_space<vmem>>, vector<256x1024xbf16>
    %18 = arith.truncf %16 : vector<8x256xf32> to vector<8x256xbf16>
    %cst_15 = arith.constant dense<0.000000e+00> : vector<8x1024xf32>
    %19 = tpu.matmul %18, %17, %cst_15 {dimension_numbers = #tpu.dot_dimension_numbers<[1], [0], [0], [1], [0, 0, 1, 1], [], []>} : vector<8x256xbf16>, vector<256x1024xbf16>, vector<8x1024xf32> -> vector<8x1024xf32>
    %c0_16 = arith.constant 0 : index
    %c0_17 = arith.constant 0 : index
    %20 = vector.load %arg8[%c0_16, %c0_17] : memref<1x1024xf32, #tpu.memory_space<vmem>>, vector<1x1024xf32>
    %21 = vector.broadcast %20 : vector<1x1024xf32> to vector<8x1024xf32>
    %22 = arith.addf %19, %21 : vector<8x1024xf32>
    %cst_18 = arith.constant dense<0xFF800000> : vector<1024xf32>
    %23 = vector.multi_reduction <maximumf>, %22, %cst_18 [0] : vector<8x1024xf32> to vector<1024xf32>
    %24 = vector.shape_cast %23 : vector<1024xf32> to vector<1x1024xf32>
    %c0_19 = arith.constant 0 : index
    %c0_20 = arith.constant 0 : index
    %25 = vector.load %arg9[%c0_19, %c0_20] : memref<1024x512xbf16, #tpu.memory_space<vmem>>, vector<1024x512xbf16>
    %26 = arith.truncf %24 : vector<1x1024xf32> to vector<1x1024xbf16>
    %cst_21 = arith.constant dense<0.000000e+00> : vector<1x512xf32>
    %27 = tpu.matmul %26, %25, %cst_21 {dimension_numbers = #tpu.dot_dimension_numbers<[1], [0], [0], [1], [0, 0, 1, 1], [], []>} : vector<1x1024xbf16>, vector<1024x512xbf16>, vector<1x512xf32> -> vector<1x512xf32>
    %c0_22 = arith.constant 0 : index
    %c0_23 = arith.constant 0 : index
    %28 = vector.load %arg10[%c0_22, %c0_23] : memref<1x512xf32, #tpu.memory_space<vmem>>, vector<1x512xf32>
    %29 = arith.addf %27, %28 : vector<1x512xf32>
    %cst_24 = arith.constant 0.000000e+00 : f32
    %30 = vector.broadcast %cst_24 : f32 to vector<1x512xf32>
    %31 = arith.maximumf %29, %30 : vector<1x512xf32>
    %c0_25 = arith.constant 0 : index
    %c0_26 = arith.constant 0 : index
    %32 = vector.load %arg11[%c0_25, %c0_26] : memref<512x256xbf16, #tpu.memory_space<vmem>>, vector<512x256xbf16>
    %33 = arith.truncf %31 : vector<1x512xf32> to vector<1x512xbf16>
    %cst_27 = arith.constant dense<0.000000e+00> : vector<1x256xf32>
    %34 = tpu.matmul %33, %32, %cst_27 {dimension_numbers = #tpu.dot_dimension_numbers<[1], [0], [0], [1], [0, 0, 1, 1], [], []>} : vector<1x512xbf16>, vector<512x256xbf16>, vector<1x256xf32> -> vector<1x256xf32>
    %c0_28 = arith.constant 0 : index
    %c0_29 = arith.constant 0 : index
    %35 = vector.load %arg12[%c0_28, %c0_29] : memref<1x256xf32, #tpu.memory_space<vmem>>, vector<1x256xf32>
    %36 = arith.addf %34, %35 : vector<1x256xf32>
    %cst_30 = arith.constant 0.000000e+00 : f32
    %37 = vector.broadcast %cst_30 : f32 to vector<1x256xf32>
    %38 = arith.maximumf %36, %37 : vector<1x256xf32>
    %c0_31 = arith.constant 0 : index
    %c0_32 = arith.constant 0 : index
    %39 = vector.load %arg13[%c0_31, %c0_32] : memref<256x128xf32, #tpu.memory_space<vmem>>, vector<256x128xf32>
    %cst_33 = arith.constant dense<0.000000e+00> : vector<1x128xf32>
    %40 = tpu.matmul %38, %39, %cst_33 {dimension_numbers = #tpu.dot_dimension_numbers<[1], [0], [0], [1], [0, 0, 1, 1], [], []>} : vector<1x256xf32>, vector<256x128xf32>, vector<1x128xf32> -> vector<1x128xf32>
    %c0_34 = arith.constant 0 : index
    %c0_35 = arith.constant 0 : index
    %41 = vector.load %arg14[%c0_34, %c0_35] : memref<1x128xf32, #tpu.memory_space<vmem>>, vector<1x128xf32>
    %42 = arith.addf %40, %41 : vector<1x128xf32>
    %43 = vector.extract_strided_slice %1 {offsets = [0, 0], sizes = [8, 3], strides = [1, 1]} : vector<8x128xf32> to vector<8x3xf32>
    %44 = vector.extract_strided_slice %43 {offsets = [0, 0], sizes = [8, 1], strides = [1, 1]} : vector<8x3xf32> to vector<8x1xf32>
    %45 = vector.extract_strided_slice %42 {offsets = [0, 0], sizes = [1, 3], strides = [1, 1]} : vector<1x128xf32> to vector<1x3xf32>
    %46 = vector.broadcast %44 : vector<8x1xf32> to vector<8x3xf32>
    %47 = vector.broadcast %45 : vector<1x3xf32> to vector<8x3xf32>
    %48 = arith.mulf %46, %47 : vector<8x3xf32>
    %49 = vector.extract_strided_slice %43 {offsets = [0, 1], sizes = [8, 1], strides = [1, 1]} : vector<8x3xf32> to vector<8x1xf32>
    %50 = vector.extract_strided_slice %42 {offsets = [0, 3], sizes = [1, 3], strides = [1, 1]} : vector<1x128xf32> to vector<1x3xf32>
    %51 = vector.broadcast %49 : vector<8x1xf32> to vector<8x3xf32>
    %52 = vector.broadcast %50 : vector<1x3xf32> to vector<8x3xf32>
    %53 = arith.mulf %51, %52 : vector<8x3xf32>
    %54 = arith.addf %48, %53 : vector<8x3xf32>
    %55 = vector.extract_strided_slice %43 {offsets = [0, 2], sizes = [8, 1], strides = [1, 1]} : vector<8x3xf32> to vector<8x1xf32>
    %56 = vector.extract_strided_slice %42 {offsets = [0, 6], sizes = [1, 3], strides = [1, 1]} : vector<1x128xf32> to vector<1x3xf32>
    %57 = vector.broadcast %55 : vector<8x1xf32> to vector<8x3xf32>
    %58 = vector.broadcast %56 : vector<1x3xf32> to vector<8x3xf32>
    %59 = arith.mulf %57, %58 : vector<8x3xf32>
    %60 = arith.addf %54, %59 : vector<8x3xf32>
    %c0_36 = arith.constant 0 : index
    %c0_37 = arith.constant 0 : index
    %61 = vector.load %arg15[%c0_36, %c0_37] : memref<3x128xf32, #tpu.memory_space<vmem>>, vector<3x128xf32>
    %cst_38 = arith.constant dense<0.000000e+00> : vector<8x128xf32>
    %62 = tpu.matmul %60, %61, %cst_38 {dimension_numbers = #tpu.dot_dimension_numbers<[1], [0], [0], [1], [0, 0, 1, 1], [], []>} : vector<8x3xf32>, vector<3x128xf32>, vector<8x128xf32> -> vector<8x128xf32>
    %c0_39 = arith.constant 0 : index
    %c0_40 = arith.constant 0 : index
    %63 = vector.load %arg16[%c0_39, %c0_40] : memref<128x128xf32, #tpu.memory_space<vmem>>, vector<128x128xf32>
    %cst_41 = arith.constant dense<0.000000e+00> : vector<8x128xf32>
    %64 = tpu.matmul %1, %63, %cst_41 {dimension_numbers = #tpu.dot_dimension_numbers<[1], [0], [0], [1], [0, 0, 1, 1], [], []>} : vector<8x128xf32>, vector<128x128xf32>, vector<8x128xf32> -> vector<8x128xf32>
    %65 = arith.addf %62, %64 : vector<8x128xf32>
    %c0_42 = arith.constant 0 : index
    %c0_43 = arith.constant 0 : index
    %66 = vector.load %arg17[%c0_42, %c0_43] : memref<1x128xf32, #tpu.memory_space<vmem>>, vector<1x128xf32>
    %67 = vector.broadcast %66 : vector<1x128xf32> to vector<8x128xf32>
    %68 = arith.addf %65, %67 : vector<8x128xf32>
    %cst_44 = arith.constant 0.000000e+00 : f32
    %69 = vector.broadcast %cst_44 : f32 to vector<8x128xf32>
    %70 = arith.cmpf ogt, %68, %69 : vector<8x128xf32>
    %cst_45 = arith.constant 2.500000e-01 : f32
    %71 = vector.broadcast %cst_45 : f32 to vector<8x128xf32>
    %72 = arith.mulf %71, %68 : vector<8x128xf32>
    %73 = arith.select %70, %68, %72 : vector<8x128xi1>, vector<8x128xf32>
    %c0_46 = arith.constant 0 : index
    %c0_47 = arith.constant 0 : index
    %74 = vector.load %arg18[%c0_46, %c0_47] : memref<128x128xf32, #tpu.memory_space<vmem>>, vector<128x128xf32>
    %cst_48 = arith.constant dense<0.000000e+00> : vector<8x128xf32>
    %75 = tpu.matmul %73, %74, %cst_48 {dimension_numbers = #tpu.dot_dimension_numbers<[1], [0], [0], [1], [0, 0, 1, 1], [], []>} : vector<8x128xf32>, vector<128x128xf32>, vector<8x128xf32> -> vector<8x128xf32>
    %c0_49 = arith.constant 0 : index
    %c0_50 = arith.constant 0 : index
    %76 = vector.load %arg19[%c0_49, %c0_50] : memref<1x128xf32, #tpu.memory_space<vmem>>, vector<1x128xf32>
    %77 = vector.broadcast %76 : vector<1x128xf32> to vector<8x128xf32>
    %78 = arith.addf %75, %77 : vector<8x128xf32>
    %79 = vector.extract_strided_slice %78 {offsets = [0, 0], sizes = [1, 128], strides = [1, 1]} : vector<8x128xf32> to vector<1x128xf32>
    %c0_51 = arith.constant 0 : index
    %c0_52 = arith.constant 0 : index
    %c0_53 = arith.constant 0 : index
    %80 = vector.load %arg51[%c0_51, %c0_52, %c0_53] : memref<8x1x128xf32, #tpu.memory_space<vmem>>, vector<1x1x128xf32>
    %81 = vector.shape_cast %80 : vector<1x1x128xf32> to vector<1x128xf32>
    %82 = vector.shape_cast %79 : vector<1x128xf32> to vector<1x1x128xf32>
    tpu.vector_store %arg51[%c0_51, %c0_52, %c0_53], %82 {strides = array<i32>} : memref<8x1x128xf32, #tpu.memory_space<vmem>>, vector<1x1x128xf32>,
    %83 = vector.extract_strided_slice %78 {offsets = [1, 0], sizes = [1, 128], strides = [1, 1]} : vector<8x128xf32> to vector<1x128xf32>
    %c1 = arith.constant 1 : index
    %c0_54 = arith.constant 0 : index
    %c0_55 = arith.constant 0 : index
    %84 = vector.load %arg51[%c1, %c0_54, %c0_55] : memref<8x1x128xf32, #tpu.memory_space<vmem>>, vector<1x1x128xf32>
    %85 = vector.shape_cast %84 : vector<1x1x128xf32> to vector<1x128xf32>
    %86 = vector.shape_cast %83 : vector<1x128xf32> to vector<1x1x128xf32>
    tpu.vector_store %arg51[%c1, %c0_54, %c0_55], %86 {strides = array<i32>} : memref<8x1x128xf32, #tpu.memory_space<vmem>>, vector<1x1x128xf32>,
    %87 = vector.extract_strided_slice %78 {offsets = [2, 0], sizes = [1, 128], strides = [1, 1]} : vector<8x128xf32> to vector<1x128xf32>
    %c2 = arith.constant 2 : index
    %c0_56 = arith.constant 0 : index
    %c0_57 = arith.constant 0 : index
    %88 = vector.load %arg51[%c2, %c0_56, %c0_57] : memref<8x1x128xf32, #tpu.memory_space<vmem>>, vector<1x1x128xf32>
    %89 = vector.shape_cast %88 : vector<1x1x128xf32> to vector<1x128xf32>
    %90 = vector.shape_cast %87 : vector<1x128xf32> to vector<1x1x128xf32>
    tpu.vector_store %arg51[%c2, %c0_56, %c0_57], %90 {strides = array<i32>} : memref<8x1x128xf32, #tpu.memory_space<vmem>>, vector<1x1x128xf32>,
    %91 = vector.extract_strided_slice %78 {offsets = [3, 0], sizes = [1, 128], strides = [1, 1]} : vector<8x128xf32> to vector<1x128xf32>
    %c3 = arith.constant 3 : index
    %c0_58 = arith.constant 0 : index
    %c0_59 = arith.constant 0 : index
    %92 = vector.load %arg51[%c3, %c0_58, %c0_59] : memref<8x1x128xf32, #tpu.memory_space<vmem>>, vector<1x1x128xf32>
    %93 = vector.shape_cast %92 : vector<1x1x128xf32> to vector<1x128xf32>
    %94 = vector.shape_cast %91 : vector<1x128xf32> to vector<1x1x128xf32>
    tpu.vector_store %arg51[%c3, %c0_58, %c0_59], %94 {strides = array<i32>} : memref<8x1x128xf32, #tpu.memory_space<vmem>>, vector<1x1x128xf32>,
    %95 = vector.extract_strided_slice %78 {offsets = [4, 0], sizes = [1, 128], strides = [1, 1]} : vector<8x128xf32> to vector<1x128xf32>
    %c4 = arith.constant 4 : index
    %c0_60 = arith.constant 0 : index
    %c0_61 = arith.constant 0 : index
    %96 = vector.load %arg51[%c4, %c0_60, %c0_61] : memref<8x1x128xf32, #tpu.memory_space<vmem>>, vector<1x1x128xf32>
    %97 = vector.shape_cast %96 : vector<1x1x128xf32> to vector<1x128xf32>
    %98 = vector.shape_cast %95 : vector<1x128xf32> to vector<1x1x128xf32>
    tpu.vector_store %arg51[%c4, %c0_60, %c0_61], %98 {strides = array<i32>} : memref<8x1x128xf32, #tpu.memory_space<vmem>>, vector<1x1x128xf32>,
    %99 = vector.extract_strided_slice %78 {offsets = [5, 0], sizes = [1, 128], strides = [1, 1]} : vector<8x128xf32> to vector<1x128xf32>
    %c5 = arith.constant 5 : index
    %c0_62 = arith.constant 0 : index
    %c0_63 = arith.constant 0 : index
    %100 = vector.load %arg51[%c5, %c0_62, %c0_63] : memref<8x1x128xf32, #tpu.memory_space<vmem>>, vector<1x1x128xf32>
    %101 = vector.shape_cast %100 : vector<1x1x128xf32> to vector<1x128xf32>
    %102 = vector.shape_cast %99 : vector<1x128xf32> to vector<1x1x128xf32>
    tpu.vector_store %arg51[%c5, %c0_62, %c0_63], %102 {strides = array<i32>} : memref<8x1x128xf32, #tpu.memory_space<vmem>>, vector<1x1x128xf32>,
    %103 = vector.extract_strided_slice %78 {offsets = [6, 0], sizes = [1, 128], strides = [1, 1]} : vector<8x128xf32> to vector<1x128xf32>
    %c6 = arith.constant 6 : index
    %c0_64 = arith.constant 0 : index
    %c0_65 = arith.constant 0 : index
    %104 = vector.load %arg51[%c6, %c0_64, %c0_65] : memref<8x1x128xf32, #tpu.memory_space<vmem>>, vector<1x1x128xf32>
    %105 = vector.shape_cast %104 : vector<1x1x128xf32> to vector<1x128xf32>
    %106 = vector.shape_cast %103 : vector<1x128xf32> to vector<1x1x128xf32>
    tpu.vector_store %arg51[%c6, %c0_64, %c0_65], %106 {strides = array<i32>} : memref<8x1x128xf32, #tpu.memory_space<vmem>>, vector<1x1x128xf32>,
    %107 = vector.extract_strided_slice %78 {offsets = [7, 0], sizes = [1, 128], strides = [1, 1]} : vector<8x128xf32> to vector<1x128xf32>
    %c7 = arith.constant 7 : index
    %c0_66 = arith.constant 0 : index
    %c0_67 = arith.constant 0 : index
    %108 = vector.load %arg51[%c7, %c0_66, %c0_67] : memref<8x1x128xf32, #tpu.memory_space<vmem>>, vector<1x1x128xf32>
    %109 = vector.shape_cast %108 : vector<1x1x128xf32> to vector<1x128xf32>
    %110 = vector.shape_cast %107 : vector<1x128xf32> to vector<1x1x128xf32>
    tpu.vector_store %arg51[%c7, %c0_66, %c0_67], %110 {strides = array<i32>} : memref<8x1x128xf32, #tpu.memory_space<vmem>>, vector<1x1x128xf32>,
    %111 = arith.index_cast %arg0 : i32 to index
    %c0_68 = arith.constant 0 : index
    %112 = memref.load %arg1[%111, %c0_68] : memref<2x8xi32, #tpu.memory_space<smem>>
    %113 = arith.index_cast %112 : i32 to index
    %c0_69 = arith.constant 0 : index
    %c0_70 = arith.constant 0 : index
    %114 = vector.load %arg51[%113, %c0_69, %c0_70] : memref<8x1x128xf32, #tpu.memory_space<vmem>>, vector<1x1x128xf32>
    %115 = vector.shape_cast %114 : vector<1x1x128xf32> to vector<1x128xf32>
    %116 = arith.index_cast %arg0 : i32 to index
    %c1_71 = arith.constant 1 : index
    %117 = memref.load %arg1[%116, %c1_71] : memref<2x8xi32, #tpu.memory_space<smem>>
    %118 = arith.index_cast %117 : i32 to index
    %c0_72 = arith.constant 0 : index
    %c0_73 = arith.constant 0 : index
    %119 = vector.load %arg51[%118, %c0_72, %c0_73] : memref<8x1x128xf32, #tpu.memory_space<vmem>>, vector<1x1x128xf32>
    %120 = vector.shape_cast %119 : vector<1x1x128xf32> to vector<1x128xf32>
    %121 = arith.index_cast %arg0 : i32 to index
    %c2_74 = arith.constant 2 : index
    %122 = memref.load %arg1[%121, %c2_74] : memref<2x8xi32, #tpu.memory_space<smem>>
    %123 = arith.index_cast %122 : i32 to index
    %c0_75 = arith.constant 0 : index
    %c0_76 = arith.constant 0 : index
    %124 = vector.load %arg51[%123, %c0_75, %c0_76] : memref<8x1x128xf32, #tpu.memory_space<vmem>>, vector<1x1x128xf32>
    %125 = vector.shape_cast %124 : vector<1x1x128xf32> to vector<1x128xf32>
    %126 = arith.index_cast %arg0 : i32 to index
    %c3_77 = arith.constant 3 : index
    %127 = memref.load %arg1[%126, %c3_77] : memref<2x8xi32, #tpu.memory_space<smem>>
    %128 = arith.index_cast %127 : i32 to index
    %c0_78 = arith.constant 0 : index
    %c0_79 = arith.constant 0 : index
    %129 = vector.load %arg51[%128, %c0_78, %c0_79] : memref<8x1x128xf32, #tpu.memory_space<vmem>>, vector<1x1x128xf32>
    %130 = vector.shape_cast %129 : vector<1x1x128xf32> to vector<1x128xf32>
    %131 = arith.index_cast %arg0 : i32 to index
    %c4_80 = arith.constant 4 : index
    %132 = memref.load %arg1[%131, %c4_80] : memref<2x8xi32, #tpu.memory_space<smem>>
    %133 = arith.index_cast %132 : i32 to index
    %c0_81 = arith.constant 0 : index
    %c0_82 = arith.constant 0 : index
    %134 = vector.load %arg51[%133, %c0_81, %c0_82] : memref<8x1x128xf32, #tpu.memory_space<vmem>>, vector<1x1x128xf32>
    %135 = vector.shape_cast %134 : vector<1x1x128xf32> to vector<1x128xf32>
    %136 = arith.index_cast %arg0 : i32 to index
    %c5_83 = arith.constant 5 : index
    %137 = memref.load %arg1[%136, %c5_83] : memref<2x8xi32, #tpu.memory_space<smem>>
    %138 = arith.index_cast %137 : i32 to index
    %c0_84 = arith.constant 0 : index
    %c0_85 = arith.constant 0 : index
    %139 = vector.load %arg51[%138, %c0_84, %c0_85] : memref<8x1x128xf32, #tpu.memory_space<vmem>>, vector<1x1x128xf32>
    %140 = vector.shape_cast %139 : vector<1x1x128xf32> to vector<1x128xf32>
    %141 = arith.index_cast %arg0 : i32 to index
    %c6_86 = arith.constant 6 : index
    %142 = memref.load %arg1[%141, %c6_86] : memref<2x8xi32, #tpu.memory_space<smem>>
    %143 = arith.index_cast %142 : i32 to index
    %c0_87 = arith.constant 0 : index
    %c0_88 = arith.constant 0 : index
    %144 = vector.load %arg51[%143, %c0_87, %c0_88] : memref<8x1x128xf32, #tpu.memory_space<vmem>>, vector<1x1x128xf32>
    %145 = vector.shape_cast %144 : vector<1x1x128xf32> to vector<1x128xf32>
    %146 = arith.index_cast %arg0 : i32 to index
    %c7_89 = arith.constant 7 : index
    %147 = memref.load %arg1[%146, %c7_89] : memref<2x8xi32, #tpu.memory_space<smem>>
    %148 = arith.index_cast %147 : i32 to index
    %c0_90 = arith.constant 0 : index
    %c0_91 = arith.constant 0 : index
    %149 = vector.load %arg51[%148, %c0_90, %c0_91] : memref<8x1x128xf32, #tpu.memory_space<vmem>>, vector<1x1x128xf32>
    %150 = vector.shape_cast %149 : vector<1x1x128xf32> to vector<1x128xf32>
    %151 = tpu.concatenate %115, %120, %125, %130, %135, %140, %145, %150 in 0 : vector<1x128xf32>, vector<1x128xf32>, vector<1x128xf32>, vector<1x128xf32>, vector<1x128xf32>, vector<1x128xf32>, vector<1x128xf32>, vector<1x128xf32> -> vector<8x128xf32>
    %c0_92 = arith.constant 0 : index
    %c0_93 = arith.constant 0 : index
    %152 = vector.load %arg20[%c0_92, %c0_93] : memref<128x128xf32, #tpu.memory_space<vmem>>, vector<128x128xf32>
    %cst_94 = arith.constant dense<0.000000e+00> : vector<8x128xf32>
    %153 = tpu.matmul %151, %152, %cst_94 {dimension_numbers = #tpu.dot_dimension_numbers<[1], [0], [0], [1], [0, 0, 1, 1], [], []>} : vector<8x128xf32>, vector<128x128xf32>, vector<8x128xf32> -> vector<8x128xf32>
    %c0_95 = arith.constant 0 : index
    %c0_96 = arith.constant 0 : index
    %154 = vector.load %arg21[%c0_95, %c0_96] : memref<1x128xf32, #tpu.memory_space<vmem>>, vector<1x128xf32>
    %155 = vector.broadcast %154 : vector<1x128xf32> to vector<8x128xf32>
    %156 = arith.addf %153, %155 : vector<8x128xf32>
    %cst_97 = arith.constant 0.000000e+00 : f32
    %157 = vector.broadcast %cst_97 : f32 to vector<8x128xf32>
    %158 = arith.cmpf ogt, %156, %157 : vector<8x128xf32>
    %cst_98 = arith.constant 2.500000e-01 : f32
    %159 = vector.broadcast %cst_98 : f32 to vector<8x128xf32>
    %160 = arith.mulf %159, %156 : vector<8x128xf32>
    %161 = arith.select %158, %156, %160 : vector<8x128xi1>, vector<8x128xf32>
    %c0_99 = arith.constant 0 : index
    %c0_100 = arith.constant 0 : index
    %162 = vector.load %arg22[%c0_99, %c0_100] : memref<128x128xf32, #tpu.memory_space<vmem>>, vector<128x128xf32>
    %cst_101 = arith.constant dense<0.000000e+00> : vector<8x128xf32>
    %163 = tpu.matmul %161, %162, %cst_101 {dimension_numbers = #tpu.dot_dimension_numbers<[1], [0], [0], [1], [0, 0, 1, 1], [], []>} : vector<8x128xf32>, vector<128x128xf32>, vector<8x128xf32> -> vector<8x128xf32>
    %c0_102 = arith.constant 0 : index
    %c0_103 = arith.constant 0 : index
    %164 = vector.load %arg23[%c0_102, %c0_103] : memref<1x128xf32, #tpu.memory_space<vmem>>, vector<1x128xf32>
    %165 = vector.broadcast %164 : vector<1x128xf32> to vector<8x128xf32>
    %166 = arith.addf %163, %165 : vector<8x128xf32>
    %167 = vector.extract_strided_slice %166 {offsets = [0, 0], sizes = [4, 128], strides = [1, 1]} : vector<8x128xf32> to vector<4x128xf32>
    %168 = vector.extract_strided_slice %166 {offsets = [4, 0], sizes = [4, 128], strides = [1, 1]} : vector<8x128xf32> to vector<4x128xf32>
    %169 = arith.maximumf %167, %168 : vector<4x128xf32>
    %c0_104 = arith.constant 0 : index
    %c0_105 = arith.constant 0 : index
    %170 = vector.load %arg24[%c0_104, %c0_105] : memref<128x128xf32, #tpu.memory_space<vmem>>, vector<128x128xf32>
    %cst_106 = arith.constant dense<0.000000e+00> : vector<4x128xf32>
    %171 = tpu.matmul %169, %170, %cst_106 {dimension_numbers = #tpu.dot_dimension_numbers<[1], [0], [0], [1], [0, 0, 1, 1], [], []>} : vector<4x128xf32>, vector<128x128xf32>, vector<4x128xf32> -> vector<4x128xf32>
    %c0_107 = arith.constant 0 : index
    %c0_108 = arith.constant 0 : index
    %172 = vector.load %arg25[%c0_107, %c0_108] : memref<1x128xf32, #tpu.memory_space<vmem>>, vector<1x128xf32>
    %173 = vector.broadcast %172 : vector<1x128xf32> to vector<4x128xf32>
    %174 = arith.addf %171, %173 : vector<4x128xf32>
    %c0_109 = arith.constant 0 : index
    %c0_110 = arith.constant 0 : index
    %175 = vector.load %arg26[%c0_109, %c0_110] : memref<128x128xf32, #tpu.memory_space<vmem>>, vector<128x128xf32>
    %cst_111 = arith.constant dense<0.000000e+00> : vector<4x128xf32>
    %176 = tpu.matmul %174, %175, %cst_111 {dimension_numbers = #tpu.dot_dimension_numbers<[1], [0], [0], [1], [0, 0, 1, 1], [], []>} : vector<4x128xf32>, vector<128x128xf32>, vector<4x128xf32> -> vector<4x128xf32>
    %c0_112 = arith.constant 0 : index
    %c0_113 = arith.constant 0 : index
    %177 = vector.load %arg27[%c0_112, %c0_113] : memref<1x128xf32, #tpu.memory_space<vmem>>, vector<1x128xf32>
    %178 = vector.broadcast %177 : vector<1x128xf32> to vector<4x128xf32>
    %179 = arith.addf %176, %178 : vector<4x128xf32>
    %cst_114 = arith.constant 0.000000e+00 : f32
    %180 = vector.broadcast %cst_114 : f32 to vector<4x128xf32>
    %181 = arith.cmpf ogt, %179, %180 : vector<4x128xf32>
    %cst_115 = arith.constant 2.500000e-01 : f32
    %182 = vector.broadcast %cst_115 : f32 to vector<4x128xf32>
    %183 = arith.mulf %182, %179 : vector<4x128xf32>
    %184 = arith.select %181, %179, %183 : vector<4x128xi1>, vector<4x128xf32>
    %c0_116 = arith.constant 0 : index
    %c0_117 = arith.constant 0 : index
    %185 = vector.load %arg28[%c0_116, %c0_117] : memref<128x128xf32, #tpu.memory_space<vmem>>, vector<128x128xf32>
    %cst_118 = arith.constant dense<0.000000e+00> : vector<4x128xf32>
    %186 = tpu.matmul %184, %185, %cst_118 {dimension_numbers = #tpu.dot_dimension_numbers<[1], [0], [0], [1], [0, 0, 1, 1], [], []>} : vector<4x128xf32>, vector<128x128xf32>, vector<4x128xf32> -> vector<4x128xf32>
    %c0_119 = arith.constant 0 : index
    %c0_120 = arith.constant 0 : index
    %187 = vector.load %arg29[%c0_119, %c0_120] : memref<1x128xf32, #tpu.memory_space<vmem>>, vector<1x128xf32>
    %188 = vector.broadcast %187 : vector<1x128xf32> to vector<4x128xf32>
    %189 = arith.addf %186, %188 : vector<4x128xf32>
    %190 = vector.extract_strided_slice %189 {offsets = [0, 0], sizes = [2, 128], strides = [1, 1]} : vector<4x128xf32> to vector<2x128xf32>
    %191 = vector.extract_strided_slice %189 {offsets = [2, 0], sizes = [2, 128], strides = [1, 1]} : vector<4x128xf32> to vector<2x128xf32>
    %192 = arith.maximumf %190, %191 : vector<2x128xf32>
    %c0_121 = arith.constant 0 : index
    %c0_122 = arith.constant 0 : index
    %193 = vector.load %arg30[%c0_121, %c0_122] : memref<128x128xf32, #tpu.memory_space<vmem>>, vector<128x128xf32>
    %cst_123 = arith.constant dense<0.000000e+00> : vector<2x128xf32>
    %194 = tpu.matmul %192, %193, %cst_123 {dimension_numbers = #tpu.dot_dimension_numbers<[1], [0], [0], [1], [0, 0, 1, 1], [], []>} : vector<2x128xf32>, vector<128x128xf32>, vector<2x128xf32> -> vector<2x128xf32>
    %c0_124 = arith.constant 0 : index
    %c0_125 = arith.constant 0 : index
    %195 = vector.load %arg31[%c0_124, %c0_125] : memref<1x128xf32, #tpu.memory_space<vmem>>, vector<1x128xf32>
    %196 = vector.broadcast %195 : vector<1x128xf32> to vector<2x128xf32>
    %197 = arith.addf %194, %196 : vector<2x128xf32>
    %c0_126 = arith.constant 0 : index
    %c0_127 = arith.constant 0 : index
    %198 = vector.load %arg32[%c0_126, %c0_127] : memref<128x128xf32, #tpu.memory_space<vmem>>, vector<128x128xf32>
    %cst_128 = arith.constant dense<0.000000e+00> : vector<2x128xf32>
    %199 = tpu.matmul %197, %198, %cst_128 {dimension_numbers = #tpu.dot_dimension_numbers<[1], [0], [0], [1], [0, 0, 1, 1], [], []>} : vector<2x128xf32>, vector<128x128xf32>, vector<2x128xf32> -> vector<2x128xf32>
    %c0_129 = arith.constant 0 : index
    %c0_130 = arith.constant 0 : index
    %200 = vector.load %arg33[%c0_129, %c0_130] : memref<1x128xf32, #tpu.memory_space<vmem>>, vector<1x128xf32>
    %201 = vector.broadcast %200 : vector<1x128xf32> to vector<2x128xf32>
    %202 = arith.addf %199, %201 : vector<2x128xf32>
    %cst_131 = arith.constant 0.000000e+00 : f32
    %203 = vector.broadcast %cst_131 : f32 to vector<2x128xf32>
    %204 = arith.maximumf %202, %203 : vector<2x128xf32>
    %c0_132 = arith.constant 0 : index
    %c0_133 = arith.constant 0 : index
    %205 = vector.load %arg34[%c0_132, %c0_133] : memref<128x256xbf16, #tpu.memory_space<vmem>>, vector<128x256xbf16>
    %206 = arith.truncf %204 : vector<2x128xf32> to vector<2x128xbf16>
    %cst_134 = arith.constant dense<0.000000e+00> : vector<2x256xf32>
    %207 = tpu.matmul %206, %205, %cst_134 {dimension_numbers = #tpu.dot_dimension_numbers<[1], [0], [0], [1], [0, 0, 1, 1], [], []>} : vector<2x128xbf16>, vector<128x256xbf16>, vector<2x256xf32> -> vector<2x256xf32>
    %c0_135 = arith.constant 0 : index
    %c0_136 = arith.constant 0 : index
    %208 = vector.load %arg35[%c0_135, %c0_136] : memref<1x256xf32, #tpu.memory_space<vmem>>, vector<1x256xf32>
    %209 = vector.broadcast %208 : vector<1x256xf32> to vector<2x256xf32>
    %210 = arith.addf %207, %209 : vector<2x256xf32>
    %cst_137 = arith.constant 0.000000e+00 : f32
    %211 = vector.broadcast %cst_137 : f32 to vector<2x256xf32>
    %212 = arith.maximumf %210, %211 : vector<2x256xf32>
    %c0_138 = arith.constant 0 : index
    %c0_139 = arith.constant 0 : index
    %213 = vector.load %arg36[%c0_138, %c0_139] : memref<256x1024xbf16, #tpu.memory_space<vmem>>, vector<256x1024xbf16>
    %214 = arith.truncf %212 : vector<2x256xf32> to vector<2x256xbf16>
    %cst_140 = arith.constant dense<0.000000e+00> : vector<2x1024xf32>
    %215 = tpu.matmul %214, %213, %cst_140 {dimension_numbers = #tpu.dot_dimension_numbers<[1], [0], [0], [1], [0, 0, 1, 1], [], []>} : vector<2x256xbf16>, vector<256x1024xbf16>, vector<2x1024xf32> -> vector<2x1024xf32>
    %c0_141 = arith.constant 0 : index
    %c0_142 = arith.constant 0 : index
    %216 = vector.load %arg37[%c0_141, %c0_142] : memref<1x1024xf32, #tpu.memory_space<vmem>>, vector<1x1024xf32>
    %217 = vector.broadcast %216 : vector<1x1024xf32> to vector<2x1024xf32>
    %218 = arith.addf %215, %217 : vector<2x1024xf32>
    %cst_143 = arith.constant dense<0xFF800000> : vector<1024xf32>
    %219 = vector.multi_reduction <maximumf>, %218, %cst_143 [0] : vector<2x1024xf32> to vector<1024xf32>
    %220 = vector.shape_cast %219 : vector<1024xf32> to vector<1x1024xf32>
    %c0_144 = arith.constant 0 : index
    %c0_145 = arith.constant 0 : index
    %221 = vector.load %arg38[%c0_144, %c0_145] : memref<1024x512xbf16, #tpu.memory_space<vmem>>, vector<1024x512xbf16>
    %222 = arith.truncf %220 : vector<1x1024xf32> to vector<1x1024xbf16>
    %cst_146 = arith.constant dense<0.000000e+00> : vector<1x512xf32>
    %223 = tpu.matmul %222, %221, %cst_146 {dimension_numbers = #tpu.dot_dimension_numbers<[1], [0], [0], [1], [0, 0, 1, 1], [], []>} : vector<1x1024xbf16>, vector<1024x512xbf16>, vector<1x512xf32> -> vector<1x512xf32>
    %c0_147 = arith.constant 0 : index
    %c0_148 = arith.constant 0 : index
    %224 = vector.load %arg39[%c0_147, %c0_148] : memref<1x512xf32, #tpu.memory_space<vmem>>, vector<1x512xf32>
    %225 = arith.addf %223, %224 : vector<1x512xf32>
    %cst_149 = arith.constant 0.000000e+00 : f32
    %226 = vector.broadcast %cst_149 : f32 to vector<1x512xf32>
    %227 = arith.maximumf %225, %226 : vector<1x512xf32>
    %c0_150 = arith.constant 0 : index
    %c0_151 = arith.constant 0 : index
    %228 = vector.load %arg40[%c0_150, %c0_151] : memref<512x256xbf16, #tpu.memory_space<vmem>>, vector<512x256xbf16>
    %229 = arith.truncf %227 : vector<1x512xf32> to vector<1x512xbf16>
    %cst_152 = arith.constant dense<0.000000e+00> : vector<1x256xf32>
    %230 = tpu.matmul %229, %228, %cst_152 {dimension_numbers = #tpu.dot_dimension_numbers<[1], [0], [0], [1], [0, 0, 1, 1], [], []>} : vector<1x512xbf16>, vector<512x256xbf16>, vector<1x256xf32> -> vector<1x256xf32>
    %c0_153 = arith.constant 0 : index
    %c0_154 = arith.constant 0 : index
    %231 = vector.load %arg41[%c0_153, %c0_154] : memref<1x256xf32, #tpu.memory_space<vmem>>, vector<1x256xf32>
    %232 = arith.addf %230, %231 : vector<1x256xf32>
    %cst_155 = arith.constant 0.000000e+00 : f32
    %233 = vector.broadcast %cst_155 : f32 to vector<1x256xf32>
    %234 = arith.maximumf %232, %233 : vector<1x256xf32>
    %c0_156 = arith.constant 0 : index
    %c0_157 = arith.constant 0 : index
    %235 = vector.load %arg42[%c0_156, %c0_157] : memref<256x256xf32, #tpu.memory_space<vmem>>, vector<256x256xf32>
    %cst_158 = arith.constant dense<0.000000e+00> : vector<1x256xf32>
    %236 = tpu.matmul %234, %235, %cst_158 {dimension_numbers = #tpu.dot_dimension_numbers<[1], [0], [0], [1], [0, 0, 1, 1], [], []>} : vector<1x256xf32>, vector<256x256xf32>, vector<1x256xf32> -> vector<1x256xf32>
    %c0_159 = arith.constant 0 : index
    %c0_160 = arith.constant 0 : index
    %237 = vector.load %arg43[%c0_159, %c0_160] : memref<1x256xf32, #tpu.memory_space<vmem>>, vector<1x256xf32>
    %238 = arith.addf %236, %237 : vector<1x256xf32>
    %239 = vector.extract_strided_slice %197 {offsets = [0, 0], sizes = [2, 16], strides = [1, 1]} : vector<2x128xf32> to vector<2x16xf32>
    %240 = vector.extract_strided_slice %239 {offsets = [0, 0], sizes = [2, 1], strides = [1, 1]} : vector<2x16xf32> to vector<2x1xf32>
    %241 = vector.extract_strided_slice %238 {offsets = [0, 0], sizes = [1, 16], strides = [1, 1]} : vector<1x256xf32> to vector<1x16xf32>
    %242 = vector.broadcast %240 : vector<2x1xf32> to vector<2x16xf32>
    %243 = vector.broadcast %241 : vector<1x16xf32> to vector<2x16xf32>
    %244 = arith.mulf %242, %243 : vector<2x16xf32>
    %245 = vector.extract_strided_slice %239 {offsets = [0, 1], sizes = [2, 1], strides = [1, 1]} : vector<2x16xf32> to vector<2x1xf32>
    %246 = vector.extract_strided_slice %238 {offsets = [0, 16], sizes = [1, 16], strides = [1, 1]} : vector<1x256xf32> to vector<1x16xf32>
    %247 = vector.broadcast %245 : vector<2x1xf32> to vector<2x16xf32>
    %248 = vector.broadcast %246 : vector<1x16xf32> to vector<2x16xf32>
    %249 = arith.mulf %247, %248 : vector<2x16xf32>
    %250 = arith.addf %244, %249 : vector<2x16xf32>
    %251 = vector.extract_strided_slice %239 {offsets = [0, 2], sizes = [2, 1], strides = [1, 1]} : vector<2x16xf32> to vector<2x1xf32>
    %252 = vector.extract_strided_slice %238 {offsets = [0, 32], sizes = [1, 16], strides = [1, 1]} : vector<1x256xf32> to vector<1x16xf32>
    %253 = vector.broadcast %251 : vector<2x1xf32> to vector<2x16xf32>
    %254 = vector.broadcast %252 : vector<1x16xf32> to vector<2x16xf32>
    %255 = arith.mulf %253, %254 : vector<2x16xf32>
    %256 = arith.addf %250, %255 : vector<2x16xf32>
    %257 = vector.extract_strided_slice %239 {offsets = [0, 3], sizes = [2, 1], strides = [1, 1]} : vector<2x16xf32> to vector<2x1xf32>
    %258 = vector.extract_strided_slice %238 {offsets = [0, 48], sizes = [1, 16], strides = [1, 1]} : vector<1x256xf32> to vector<1x16xf32>
    %259 = vector.broadcast %257 : vector<2x1xf32> to vector<2x16xf32>
    %260 = vector.broadcast %258 : vector<1x16xf32> to vector<2x16xf32>
    %261 = arith.mulf %259, %260 : vector<2x16xf32>
    %262 = arith.addf %256, %261 : vector<2x16xf32>
    %263 = vector.extract_strided_slice %239 {offsets = [0, 4], sizes = [2, 1], strides = [1, 1]} : vector<2x16xf32> to vector<2x1xf32>
    %264 = vector.extract_strided_slice %238 {offsets = [0, 64], sizes = [1, 16], strides = [1, 1]} : vector<1x256xf32> to vector<1x16xf32>
    %265 = vector.broadcast %263 : vector<2x1xf32> to vector<2x16xf32>
    %266 = vector.broadcast %264 : vector<1x16xf32> to vector<2x16xf32>
    %267 = arith.mulf %265, %266 : vector<2x16xf32>
    %268 = arith.addf %262, %267 : vector<2x16xf32>
    %269 = vector.extract_strided_slice %239 {offsets = [0, 5], sizes = [2, 1], strides = [1, 1]} : vector<2x16xf32> to vector<2x1xf32>
    %270 = vector.extract_strided_slice %238 {offsets = [0, 80], sizes = [1, 16], strides = [1, 1]} : vector<1x256xf32> to vector<1x16xf32>
    %271 = vector.broadcast %269 : vector<2x1xf32> to vector<2x16xf32>
    %272 = vector.broadcast %270 : vector<1x16xf32> to vector<2x16xf32>
    %273 = arith.mulf %271, %272 : vector<2x16xf32>
    %274 = arith.addf %268, %273 : vector<2x16xf32>
    %275 = vector.extract_strided_slice %239 {offsets = [0, 6], sizes = [2, 1], strides = [1, 1]} : vector<2x16xf32> to vector<2x1xf32>
    %276 = vector.extract_strided_slice %238 {offsets = [0, 96], sizes = [1, 16], strides = [1, 1]} : vector<1x256xf32> to vector<1x16xf32>
    %277 = vector.broadcast %275 : vector<2x1xf32> to vector<2x16xf32>
    %278 = vector.broadcast %276 : vector<1x16xf32> to vector<2x16xf32>
    %279 = arith.mulf %277, %278 : vector<2x16xf32>
    %280 = arith.addf %274, %279 : vector<2x16xf32>
    %281 = vector.extract_strided_slice %239 {offsets = [0, 7], sizes = [2, 1], strides = [1, 1]} : vector<2x16xf32> to vector<2x1xf32>
    %282 = vector.extract_strided_slice %238 {offsets = [0, 112], sizes = [1, 16], strides = [1, 1]} : vector<1x256xf32> to vector<1x16xf32>
    %283 = vector.broadcast %281 : vector<2x1xf32> to vector<2x16xf32>
    %284 = vector.broadcast %282 : vector<1x16xf32> to vector<2x16xf32>
    %285 = arith.mulf %283, %284 : vector<2x16xf32>
    %286 = arith.addf %280, %285 : vector<2x16xf32>
    %287 = vector.extract_strided_slice %239 {offsets = [0, 8], sizes = [2, 1], strides = [1, 1]} : vector<2x16xf32> to vector<2x1xf32>
    %288 = vector.extract_strided_slice %238 {offsets = [0, 128], sizes = [1, 16], strides = [1, 1]} : vector<1x256xf32> to vector<1x16xf32>
    %289 = vector.broadcast %287 : vector<2x1xf32> to vector<2x16xf32>
    %290 = vector.broadcast %288 : vector<1x16xf32> to vector<2x16xf32>
    %291 = arith.mulf %289, %290 : vector<2x16xf32>
    %292 = arith.addf %286, %291 : vector<2x16xf32>
    %293 = vector.extract_strided_slice %239 {offsets = [0, 9], sizes = [2, 1], strides = [1, 1]} : vector<2x16xf32> to vector<2x1xf32>
    %294 = vector.extract_strided_slice %238 {offsets = [0, 144], sizes = [1, 16], strides = [1, 1]} : vector<1x256xf32> to vector<1x16xf32>
    %295 = vector.broadcast %293 : vector<2x1xf32> to vector<2x16xf32>
    %296 = vector.broadcast %294 : vector<1x16xf32> to vector<2x16xf32>
    %297 = arith.mulf %295, %296 : vector<2x16xf32>
    %298 = arith.addf %292, %297 : vector<2x16xf32>
    %299 = vector.extract_strided_slice %239 {offsets = [0, 10], sizes = [2, 1], strides = [1, 1]} : vector<2x16xf32> to vector<2x1xf32>
    %300 = vector.extract_strided_slice %238 {offsets = [0, 160], sizes = [1, 16], strides = [1, 1]} : vector<1x256xf32> to vector<1x16xf32>
    %301 = vector.broadcast %299 : vector<2x1xf32> to vector<2x16xf32>
    %302 = vector.broadcast %300 : vector<1x16xf32> to vector<2x16xf32>
    %303 = arith.mulf %301, %302 : vector<2x16xf32>
    %304 = arith.addf %298, %303 : vector<2x16xf32>
    %305 = vector.extract_strided_slice %239 {offsets = [0, 11], sizes = [2, 1], strides = [1, 1]} : vector<2x16xf32> to vector<2x1xf32>
    %306 = vector.extract_strided_slice %238 {offsets = [0, 176], sizes = [1, 16], strides = [1, 1]} : vector<1x256xf32> to vector<1x16xf32>
    %307 = vector.broadcast %305 : vector<2x1xf32> to vector<2x16xf32>
    %308 = vector.broadcast %306 : vector<1x16xf32> to vector<2x16xf32>
    %309 = arith.mulf %307, %308 : vector<2x16xf32>
    %310 = arith.addf %304, %309 : vector<2x16xf32>
    %311 = vector.extract_strided_slice %239 {offsets = [0, 12], sizes = [2, 1], strides = [1, 1]} : vector<2x16xf32> to vector<2x1xf32>
    %312 = vector.extract_strided_slice %238 {offsets = [0, 192], sizes = [1, 16], strides = [1, 1]} : vector<1x256xf32> to vector<1x16xf32>
    %313 = vector.broadcast %311 : vector<2x1xf32> to vector<2x16xf32>
    %314 = vector.broadcast %312 : vector<1x16xf32> to vector<2x16xf32>
    %315 = arith.mulf %313, %314 : vector<2x16xf32>
    %316 = arith.addf %310, %315 : vector<2x16xf32>
    %317 = vector.extract_strided_slice %239 {offsets = [0, 13], sizes = [2, 1], strides = [1, 1]} : vector<2x16xf32> to vector<2x1xf32>
    %318 = vector.extract_strided_slice %238 {offsets = [0, 208], sizes = [1, 16], strides = [1, 1]} : vector<1x256xf32> to vector<1x16xf32>
    %319 = vector.broadcast %317 : vector<2x1xf32> to vector<2x16xf32>
    %320 = vector.broadcast %318 : vector<1x16xf32> to vector<2x16xf32>
    %321 = arith.mulf %319, %320 : vector<2x16xf32>
    %322 = arith.addf %316, %321 : vector<2x16xf32>
    %323 = vector.extract_strided_slice %239 {offsets = [0, 14], sizes = [2, 1], strides = [1, 1]} : vector<2x16xf32> to vector<2x1xf32>
    %324 = vector.extract_strided_slice %238 {offsets = [0, 224], sizes = [1, 16], strides = [1, 1]} : vector<1x256xf32> to vector<1x16xf32>
    %325 = vector.broadcast %323 : vector<2x1xf32> to vector<2x16xf32>
    %326 = vector.broadcast %324 : vector<1x16xf32> to vector<2x16xf32>
    %327 = arith.mulf %325, %326 : vector<2x16xf32>
    %328 = arith.addf %322, %327 : vector<2x16xf32>
    %329 = vector.extract_strided_slice %239 {offsets = [0, 15], sizes = [2, 1], strides = [1, 1]} : vector<2x16xf32> to vector<2x1xf32>
    %330 = vector.extract_strided_slice %238 {offsets = [0, 240], sizes = [1, 16], strides = [1, 1]} : vector<1x256xf32> to vector<1x16xf32>
    %331 = vector.broadcast %329 : vector<2x1xf32> to vector<2x16xf32>
    %332 = vector.broadcast %330 : vector<1x16xf32> to vector<2x16xf32>
    %333 = arith.mulf %331, %332 : vector<2x16xf32>
    %334 = arith.addf %328, %333 : vector<2x16xf32>
    %c0_161 = arith.constant 0 : index
    %c0_162 = arith.constant 0 : index
    %335 = vector.load %arg44[%c0_161, %c0_162] : memref<128x128xf32, #tpu.memory_space<vmem>>, vector<128x128xf32>
    %336 = vector.extract_strided_slice %335 {offsets = [0, 0], sizes = [16, 128], strides = [1, 1]} : vector<128x128xf32> to vector<16x128xf32>
    %cst_163 = arith.constant dense<0.000000e+00> : vector<2x128xf32>
    %337 = tpu.matmul %334, %336, %cst_163 {dimension_numbers = #tpu.dot_dimension_numbers<[1], [0], [0], [1], [0, 0, 1, 1], [], []>} : vector<2x16xf32>, vector<16x128xf32>, vector<2x128xf32> -> vector<2x128xf32>
    %c0_164 = arith.constant 0 : index
    %c0_165 = arith.constant 0 : index
    %338 = vector.load %arg45[%c0_164, %c0_165] : memref<1x128xf32, #tpu.memory_space<vmem>>, vector<1x128xf32>
    %339 = vector.broadcast %338 : vector<1x128xf32> to vector<2x128xf32>
    %340 = arith.addf %337, %339 : vector<2x128xf32>
    %cst_166 = arith.constant 0.000000e+00 : f32
    %341 = vector.broadcast %cst_166 : f32 to vector<2x128xf32>
    %342 = arith.cmpf ogt, %340, %341 : vector<2x128xf32>
    %cst_167 = arith.constant 2.500000e-01 : f32
    %343 = vector.broadcast %cst_167 : f32 to vector<2x128xf32>
    %344 = arith.mulf %343, %340 : vector<2x128xf32>
    %345 = arith.select %342, %340, %344 : vector<2x128xi1>, vector<2x128xf32>
    %c0_168 = arith.constant 0 : index
    %c0_169 = arith.constant 0 : index
    %346 = vector.load %arg46[%c0_168, %c0_169] : memref<128x128xf32, #tpu.memory_space<vmem>>, vector<128x128xf32>
    %cst_170 = arith.constant dense<0.000000e+00> : vector<2x128xf32>
    %347 = tpu.matmul %345, %346, %cst_170 {dimension_numbers = #tpu.dot_dimension_numbers<[1], [0], [0], [1], [0, 0, 1, 1], [], []>} : vector<2x128xf32>, vector<128x128xf32>, vector<2x128xf32> -> vector<2x128xf32>
    %c0_171 = arith.constant 0 : index
    %c0_172 = arith.constant 0 : index
    %348 = vector.load %arg47[%c0_171, %c0_172] : memref<1x128xf32, #tpu.memory_space<vmem>>, vector<1x128xf32>
    %349 = vector.broadcast %348 : vector<1x128xf32> to vector<2x128xf32>
    %350 = arith.addf %347, %349 : vector<2x128xf32>
    %351 = vector.extract_strided_slice %350 {offsets = [0, 0], sizes = [1, 128], strides = [1, 1]} : vector<2x128xf32> to vector<1x128xf32>
    %352 = vector.extract_strided_slice %350 {offsets = [1, 0], sizes = [1, 128], strides = [1, 1]} : vector<2x128xf32> to vector<1x128xf32>
    %353 = arith.maximumf %351, %352 : vector<1x128xf32>
    %c0_173 = arith.constant 0 : index
    %c0_174 = arith.constant 0 : index
    %354 = vector.load %arg48[%c0_173, %c0_174] : memref<128x128xf32, #tpu.memory_space<vmem>>, vector<128x128xf32>
    %cst_175 = arith.constant dense<0.000000e+00> : vector<1x128xf32>
    %355 = tpu.matmul %353, %354, %cst_175 {dimension_numbers = #tpu.dot_dimension_numbers<[1], [0], [0], [1], [0, 0, 1, 1], [], []>} : vector<1x128xf32>, vector<128x128xf32>, vector<1x128xf32> -> vector<1x128xf32>
    %c0_176 = arith.constant 0 : index
    %c0_177 = arith.constant 0 : index
    %356 = vector.load %arg49[%c0_176, %c0_177] : memref<1x128xf32, #tpu.memory_space<vmem>>, vector<1x128xf32>
    %357 = arith.addf %355, %356 : vector<1x128xf32>
    %c0_178 = arith.constant 0 : index
    %c0_179 = arith.constant 0 : index
    %c0_180 = arith.constant 0 : index
    %358 = vector.load %arg50[%c0_178, %c0_179, %c0_180] : memref<1x1x128xf32, #tpu.memory_space<vmem>>, vector<1x1x128xf32>
    %359 = vector.shape_cast %358 : vector<1x1x128xf32> to vector<1x128xf32>
    %360 = vector.shape_cast %357 : vector<1x128xf32> to vector<1x1x128xf32>
    tpu.vector_store %arg50[%c0_178, %c0_179, %c0_180], %360 {strides = array<i32>} : memref<1x1x128xf32, #tpu.memory_space<vmem>>, vector<1x1x128xf32>,
    return
  }
  func.func @transform_0(%arg0: i32, %arg1: memref<2x8xi32, #tpu.memory_space<smem>>) -> (i32, i32, i32) {
    %c0_i32 = arith.constant 0 : i32
    %c0_i32_0 = arith.constant 0 : i32
    %c0_i32_1 = arith.constant 0 : i32
    return %arg0, %c0_i32, %c0_i32_0 : i32, i32, i32
  }
  func.func @transform_1(%arg0: i32, %arg1: memref<2x8xi32, #tpu.memory_space<smem>>) -> (i32, i32) {
    %c0_i32 = arith.constant 0 : i32
    %c0_i32_0 = arith.constant 0 : i32
    %c0_i32_1 = arith.constant 0 : i32
    return %c0_i32, %c0_i32_0 : i32, i32
  }
  func.func @transform_2(%arg0: i32, %arg1: memref<2x8xi32, #tpu.memory_space<smem>>) -> (i32, i32) {
    %c0_i32 = arith.constant 0 : i32
    %c0_i32_0 = arith.constant 0 : i32
    %c0_i32_1 = arith.constant 0 : i32
    return %c0_i32, %c0_i32_0 : i32, i32
  }
  func.func @transform_3(%arg0: i32, %arg1: memref<2x8xi32, #tpu.memory_space<smem>>) -> (i32, i32) {
    %c0_i32 = arith.constant 0 : i32
    %c0_i32_0 = arith.constant 0 : i32
    %c0_i32_1 = arith.constant 0 : i32
    return %c0_i32, %c0_i32_0 : i32, i32
  }
  func.func @transform_4(%arg0: i32, %arg1: memref<2x8xi32, #tpu.memory_space<smem>>) -> (i32, i32) {
    %c0_i32 = arith.constant 0 : i32
    %c0_i32_0 = arith.constant 0 : i32
    %c0_i32_1 = arith.constant 0 : i32
    return %c0_i32, %c0_i32_0 : i32, i32
  }
  func.func @transform_5(%arg0: i32, %arg1: memref<2x8xi32, #tpu.memory_space<smem>>) -> (i32, i32) {
    %c0_i32 = arith.constant 0 : i32
    %c0_i32_0 = arith.constant 0 : i32
    %c0_i32_1 = arith.constant 0 : i32
    return %c0_i32, %c0_i32_0 : i32, i32
  }
  func.func @transform_6(%arg0: i32, %arg1: memref<2x8xi32, #tpu.memory_space<smem>>) -> (i32, i32) {
    %c0_i32 = arith.constant 0 : i32
    %c0_i32_0 = arith.constant 0 : i32
    %c0_i32_1 = arith.constant 0 : i32
    return %c0_i32, %c0_i32_0 : i32, i32
  }
  func.func @transform_7(%arg0: i32, %arg1: memref<2x8xi32, #tpu.memory_space<smem>>) -> (i32, i32) {
    %c0_i32 = arith.constant 0 : i32
    %c0_i32_0 = arith.constant 0 : i32
    %c0_i32_1 = arith.constant 0 : i32
    return %c0_i32, %c0_i32_0 : i32, i32
  }
  func.func @transform_8(%arg0: i32, %arg1: memref<2x8xi32, #tpu.memory_space<smem>>) -> (i32, i32) {
    %c0_i32 = arith.constant 0 : i32
    %c0_i32_0 = arith.constant 0 : i32
    %c0_i32_1 = arith.constant 0 : i32
    return %c0_i32, %c0_i32_0 : i32, i32
  }
  func.func @transform_9(%arg0: i32, %arg1: memref<2x8xi32, #tpu.memory_space<smem>>) -> (i32, i32) {
    %c0_i32 = arith.constant 0 : i32
    %c0_i32_0 = arith.constant 0 : i32
    %c0_i32_1 = arith.constant 0 : i32
    return %c0_i32, %c0_i32_0 : i32, i32
  }
  func.func @transform_10(%arg0: i32, %arg1: memref<2x8xi32, #tpu.memory_space<smem>>) -> (i32, i32) {
    %c0_i32 = arith.constant 0 : i32
    %c0_i32_0 = arith.constant 0 : i32
    %c0_i32_1 = arith.constant 0 : i32
    return %c0_i32, %c0_i32_0 : i32, i32
  }
  func.func @transform_11(%arg0: i32, %arg1: memref<2x8xi32, #tpu.memory_space<smem>>) -> (i32, i32) {
    %c0_i32 = arith.constant 0 : i32
    %c0_i32_0 = arith.constant 0 : i32
    %c0_i32_1 = arith.constant 0 : i32
    return %c0_i32, %c0_i32_0 : i32, i32
  }
  func.func @transform_12(%arg0: i32, %arg1: memref<2x8xi32, #tpu.memory_space<smem>>) -> (i32, i32) {
    %c0_i32 = arith.constant 0 : i32
    %c0_i32_0 = arith.constant 0 : i32
    %c0_i32_1 = arith.constant 0 : i32
    return %c0_i32, %c0_i32_0 : i32, i32
  }
  func.func @transform_13(%arg0: i32, %arg1: memref<2x8xi32, #tpu.memory_space<smem>>) -> (i32, i32) {
    %c0_i32 = arith.constant 0 : i32
    %c0_i32_0 = arith.constant 0 : i32
    %c0_i32_1 = arith.constant 0 : i32
    return %c0_i32, %c0_i32_0 : i32, i32
  }
  func.func @transform_14(%arg0: i32, %arg1: memref<2x8xi32, #tpu.memory_space<smem>>) -> (i32, i32) {
    %c0_i32 = arith.constant 0 : i32
    %c0_i32_0 = arith.constant 0 : i32
    %c0_i32_1 = arith.constant 0 : i32
    return %c0_i32, %c0_i32_0 : i32, i32
  }
  func.func @transform_15(%arg0: i32, %arg1: memref<2x8xi32, #tpu.memory_space<smem>>) -> (i32, i32) {
    %c0_i32 = arith.constant 0 : i32
    %c0_i32_0 = arith.constant 0 : i32
    %c0_i32_1 = arith.constant 0 : i32
    return %c0_i32, %c0_i32_0 : i32, i32
  }
  func.func @transform_16(%arg0: i32, %arg1: memref<2x8xi32, #tpu.memory_space<smem>>) -> (i32, i32) {
    %c0_i32 = arith.constant 0 : i32
    %c0_i32_0 = arith.constant 0 : i32
    %c0_i32_1 = arith.constant 0 : i32
    return %c0_i32, %c0_i32_0 : i32, i32
  }
  func.func @transform_17(%arg0: i32, %arg1: memref<2x8xi32, #tpu.memory_space<smem>>) -> (i32, i32) {
    %c0_i32 = arith.constant 0 : i32
    %c0_i32_0 = arith.constant 0 : i32
    %c0_i32_1 = arith.constant 0 : i32
    return %c0_i32, %c0_i32_0 : i32, i32
  }
  func.func @transform_18(%arg0: i32, %arg1: memref<2x8xi32, #tpu.memory_space<smem>>) -> (i32, i32) {
    %c0_i32 = arith.constant 0 : i32
    %c0_i32_0 = arith.constant 0 : i32
    %c0_i32_1 = arith.constant 0 : i32
    return %c0_i32, %c0_i32_0 : i32, i32
  }
  func.func @transform_19(%arg0: i32, %arg1: memref<2x8xi32, #tpu.memory_space<smem>>) -> (i32, i32) {
    %c0_i32 = arith.constant 0 : i32
    %c0_i32_0 = arith.constant 0 : i32
    %c0_i32_1 = arith.constant 0 : i32
    return %c0_i32, %c0_i32_0 : i32, i32
  }
  func.func @transform_20(%arg0: i32, %arg1: memref<2x8xi32, #tpu.memory_space<smem>>) -> (i32, i32) {
    %c0_i32 = arith.constant 0 : i32
    %c0_i32_0 = arith.constant 0 : i32
    %c0_i32_1 = arith.constant 0 : i32
    return %c0_i32, %c0_i32_0 : i32, i32
  }
  func.func @transform_21(%arg0: i32, %arg1: memref<2x8xi32, #tpu.memory_space<smem>>) -> (i32, i32) {
    %c0_i32 = arith.constant 0 : i32
    %c0_i32_0 = arith.constant 0 : i32
    %c0_i32_1 = arith.constant 0 : i32
    return %c0_i32, %c0_i32_0 : i32, i32
  }
  func.func @transform_22(%arg0: i32, %arg1: memref<2x8xi32, #tpu.memory_space<smem>>) -> (i32, i32) {
    %c0_i32 = arith.constant 0 : i32
    %c0_i32_0 = arith.constant 0 : i32
    %c0_i32_1 = arith.constant 0 : i32
    return %c0_i32, %c0_i32_0 : i32, i32
  }
  func.func @transform_23(%arg0: i32, %arg1: memref<2x8xi32, #tpu.memory_space<smem>>) -> (i32, i32) {
    %c0_i32 = arith.constant 0 : i32
    %c0_i32_0 = arith.constant 0 : i32
    %c0_i32_1 = arith.constant 0 : i32
    return %c0_i32, %c0_i32_0 : i32, i32
  }
  func.func @transform_24(%arg0: i32, %arg1: memref<2x8xi32, #tpu.memory_space<smem>>) -> (i32, i32) {
    %c0_i32 = arith.constant 0 : i32
    %c0_i32_0 = arith.constant 0 : i32
    %c0_i32_1 = arith.constant 0 : i32
    return %c0_i32, %c0_i32_0 : i32, i32
  }
  func.func @transform_25(%arg0: i32, %arg1: memref<2x8xi32, #tpu.memory_space<smem>>) -> (i32, i32) {
    %c0_i32 = arith.constant 0 : i32
    %c0_i32_0 = arith.constant 0 : i32
    %c0_i32_1 = arith.constant 0 : i32
    return %c0_i32, %c0_i32_0 : i32, i32
  }
  func.func @transform_26(%arg0: i32, %arg1: memref<2x8xi32, #tpu.memory_space<smem>>) -> (i32, i32) {
    %c0_i32 = arith.constant 0 : i32
    %c0_i32_0 = arith.constant 0 : i32
    %c0_i32_1 = arith.constant 0 : i32
    return %c0_i32, %c0_i32_0 : i32, i32
  }
  func.func @transform_27(%arg0: i32, %arg1: memref<2x8xi32, #tpu.memory_space<smem>>) -> (i32, i32) {
    %c0_i32 = arith.constant 0 : i32
    %c0_i32_0 = arith.constant 0 : i32
    %c0_i32_1 = arith.constant 0 : i32
    return %c0_i32, %c0_i32_0 : i32, i32
  }
  func.func @transform_28(%arg0: i32, %arg1: memref<2x8xi32, #tpu.memory_space<smem>>) -> (i32, i32) {
    %c0_i32 = arith.constant 0 : i32
    %c0_i32_0 = arith.constant 0 : i32
    %c0_i32_1 = arith.constant 0 : i32
    return %c0_i32, %c0_i32_0 : i32, i32
  }
  func.func @transform_29(%arg0: i32, %arg1: memref<2x8xi32, #tpu.memory_space<smem>>) -> (i32, i32) {
    %c0_i32 = arith.constant 0 : i32
    %c0_i32_0 = arith.constant 0 : i32
    %c0_i32_1 = arith.constant 0 : i32
    return %c0_i32, %c0_i32_0 : i32, i32
  }
  func.func @transform_30(%arg0: i32, %arg1: memref<2x8xi32, #tpu.memory_space<smem>>) -> (i32, i32) {
    %c0_i32 = arith.constant 0 : i32
    %c0_i32_0 = arith.constant 0 : i32
    %c0_i32_1 = arith.constant 0 : i32
    return %c0_i32, %c0_i32_0 : i32, i32
  }
  func.func @transform_31(%arg0: i32, %arg1: memref<2x8xi32, #tpu.memory_space<smem>>) -> (i32, i32) {
    %c0_i32 = arith.constant 0 : i32
    %c0_i32_0 = arith.constant 0 : i32
    %c0_i32_1 = arith.constant 0 : i32
    return %c0_i32, %c0_i32_0 : i32, i32
  }
  func.func @transform_32(%arg0: i32, %arg1: memref<2x8xi32, #tpu.memory_space<smem>>) -> (i32, i32) {
    %c0_i32 = arith.constant 0 : i32
    %c0_i32_0 = arith.constant 0 : i32
    %c0_i32_1 = arith.constant 0 : i32
    return %c0_i32, %c0_i32_0 : i32, i32
  }
  func.func @transform_33(%arg0: i32, %arg1: memref<2x8xi32, #tpu.memory_space<smem>>) -> (i32, i32) {
    %c0_i32 = arith.constant 0 : i32
    %c0_i32_0 = arith.constant 0 : i32
    %c0_i32_1 = arith.constant 0 : i32
    return %c0_i32, %c0_i32_0 : i32, i32
  }
  func.func @transform_34(%arg0: i32, %arg1: memref<2x8xi32, #tpu.memory_space<smem>>) -> (i32, i32) {
    %c0_i32 = arith.constant 0 : i32
    %c0_i32_0 = arith.constant 0 : i32
    %c0_i32_1 = arith.constant 0 : i32
    return %c0_i32, %c0_i32_0 : i32, i32
  }
  func.func @transform_35(%arg0: i32, %arg1: memref<2x8xi32, #tpu.memory_space<smem>>) -> (i32, i32) {
    %c0_i32 = arith.constant 0 : i32
    %c0_i32_0 = arith.constant 0 : i32
    %c0_i32_1 = arith.constant 0 : i32
    return %c0_i32, %c0_i32_0 : i32, i32
  }
  func.func @transform_36(%arg0: i32, %arg1: memref<2x8xi32, #tpu.memory_space<smem>>) -> (i32, i32) {
    %c0_i32 = arith.constant 0 : i32
    %c0_i32_0 = arith.constant 0 : i32
    %c0_i32_1 = arith.constant 0 : i32
    return %c0_i32, %c0_i32_0 : i32, i32
  }
  func.func @transform_37(%arg0: i32, %arg1: memref<2x8xi32, #tpu.memory_space<smem>>) -> (i32, i32) {
    %c0_i32 = arith.constant 0 : i32
    %c0_i32_0 = arith.constant 0 : i32
    %c0_i32_1 = arith.constant 0 : i32
    return %c0_i32, %c0_i32_0 : i32, i32
  }
  func.func @transform_38(%arg0: i32, %arg1: memref<2x8xi32, #tpu.memory_space<smem>>) -> (i32, i32) {
    %c0_i32 = arith.constant 0 : i32
    %c0_i32_0 = arith.constant 0 : i32
    %c0_i32_1 = arith.constant 0 : i32
    return %c0_i32, %c0_i32_0 : i32, i32
  }
  func.func @transform_39(%arg0: i32, %arg1: memref<2x8xi32, #tpu.memory_space<smem>>) -> (i32, i32) {
    %c0_i32 = arith.constant 0 : i32
    %c0_i32_0 = arith.constant 0 : i32
    %c0_i32_1 = arith.constant 0 : i32
    return %c0_i32, %c0_i32_0 : i32, i32
  }
  func.func @transform_40(%arg0: i32, %arg1: memref<2x8xi32, #tpu.memory_space<smem>>) -> (i32, i32) {
    %c0_i32 = arith.constant 0 : i32
    %c0_i32_0 = arith.constant 0 : i32
    %c0_i32_1 = arith.constant 0 : i32
    return %c0_i32, %c0_i32_0 : i32, i32
  }
  func.func @transform_41(%arg0: i32, %arg1: memref<2x8xi32, #tpu.memory_space<smem>>) -> (i32, i32) {
    %c0_i32 = arith.constant 0 : i32
    %c0_i32_0 = arith.constant 0 : i32
    %c0_i32_1 = arith.constant 0 : i32
    return %c0_i32, %c0_i32_0 : i32, i32
  }
  func.func @transform_42(%arg0: i32, %arg1: memref<2x8xi32, #tpu.memory_space<smem>>) -> (i32, i32) {
    %c0_i32 = arith.constant 0 : i32
    %c0_i32_0 = arith.constant 0 : i32
    %c0_i32_1 = arith.constant 0 : i32
    return %c0_i32, %c0_i32_0 : i32, i32
  }
  func.func @transform_43(%arg0: i32, %arg1: memref<2x8xi32, #tpu.memory_space<smem>>) -> (i32, i32) {
    %c0_i32 = arith.constant 0 : i32
    %c0_i32_0 = arith.constant 0 : i32
    %c0_i32_1 = arith.constant 0 : i32
    return %c0_i32, %c0_i32_0 : i32, i32
  }
  func.func @transform_44(%arg0: i32, %arg1: memref<2x8xi32, #tpu.memory_space<smem>>) -> (i32, i32) {
    %c0_i32 = arith.constant 0 : i32
    %c0_i32_0 = arith.constant 0 : i32
    %c0_i32_1 = arith.constant 0 : i32
    return %c0_i32, %c0_i32_0 : i32, i32
  }
  func.func @transform_45(%arg0: i32, %arg1: memref<2x8xi32, #tpu.memory_space<smem>>) -> (i32, i32) {
    %c0_i32 = arith.constant 0 : i32
    %c0_i32_0 = arith.constant 0 : i32
    %c0_i32_1 = arith.constant 0 : i32
    return %c0_i32, %c0_i32_0 : i32, i32
  }
  func.func @transform_46(%arg0: i32, %arg1: memref<2x8xi32, #tpu.memory_space<smem>>) -> (i32, i32) {
    %c0_i32 = arith.constant 0 : i32
    %c0_i32_0 = arith.constant 0 : i32
    %c0_i32_1 = arith.constant 0 : i32
    return %c0_i32, %c0_i32_0 : i32, i32
  }
  func.func @transform_47(%arg0: i32, %arg1: memref<2x8xi32, #tpu.memory_space<smem>>) -> (i32, i32) {
    %c0_i32 = arith.constant 0 : i32
    %c0_i32_0 = arith.constant 0 : i32
    %c0_i32_1 = arith.constant 0 : i32
    return %c0_i32, %c0_i32_0 : i32, i32
  }
  func.func @transform_48(%arg0: i32, %arg1: memref<2x8xi32, #tpu.memory_space<smem>>) -> (i32, i32, i32) {
    %c0_i32 = arith.constant 0 : i32
    %c0_i32_0 = arith.constant 0 : i32
    %c0_i32_1 = arith.constant 0 : i32
    return %arg0, %c0_i32, %c0_i32_0 : i32, i32, i32
  }
}

</mosaic_0001>

<bundles_post_ra>
// kernel: encoder_forward.1
= control target key start
LH: loop header
LB: loop body
LE: loop exit
PB: predicated region body
PF: predicated region fallthrough
CT: control target
= control target key end

     0   :  { %s15311_s6 = smov 1   ;;  %s15312_s10 = smov 2   ;;  %s16548_s0 = inlined_call_operand.smem [shape: u32[50], index: -1, kind: input, shape index: {}] }
   0x1   :  { %s15426_s5 = sld [smem:[%s16548_s0]]   ;;  %s15313_s14 = smov 3  }
   0x2   :  { %s15431_s9 = sld [smem:[%s16548_s0 + %s15311_s6]]   ;;  %s15314_s18 = smov 4  }
   0x3   :  { %s15436_s13 = sld [smem:[%s16548_s0 + %s15312_s10]]   ;;  %s15315_s22 = smov 5  }
   0x4   :  { %s15441_s17 = sld [smem:[%s16548_s0 + %s15313_s14]]   ;;  %s15316_s26 = smov 6  }
   0x5   :  { %s15446_s21 = sld [smem:[%s16548_s0 + %s15314_s18]]   ;;  %s15317_s30 = smov 7  }
   0x6   :  { %s15451_s25 = sld [smem:[%s16548_s0 + %s15315_s22]]   ;;  %s15318_s4 = smov 8  }
   0x7   :  { %s15456_s29 = sld [smem:[%s16548_s0 + %s15316_s26]]   ;;  %s15319_s10 = smov 9  }
   0x8   :  { %16593 = sst [smem:[#allocation55_spill]] %s15431_s9  ;;  %s15320_s15 = smov 10  }
   0x9   :  { %16594 = sst [smem:[#allocation56_spill]] %s15436_s13  ;;  %s15321_s20 = smov 11  }
   0xa   :  { %16595 = sst [smem:[#allocation57_spill]] %s15441_s17  ;;  %s15322_s26 = smov 12  }
   0xb   :  { %16596 = sst [smem:[#allocation58_spill]] %s15446_s21  ;;  %s15323_s1 = smov 13  }
   0xc   :  { %16597 = sst [smem:[#allocation59_spill]] %s15451_s25  ;;  %s15324_s7 = smov 14  }
   0xd   :  { %s15461_s3 = sld [smem:[%s16548_s0 + %s15317_s30]]   ;;  %s15326_s22 = smov 16  }
   0xe   :  { %s15466_s8 = sld [smem:[%s16548_s0 + %s15318_s4]]   ;;  %s15327_s28 = smov 17  }
   0xf   :  { %s15471_s14 = sld [smem:[%s16548_s0 + %s15319_s10]]  }
  0x10   :  { %s15476_s19 = sld [smem:[%s16548_s0 + %s15320_s15]]   ;;  %s15325_s15 = smov 15  }
  0x11   :  { %s15481_s24 = sld [smem:[%s16548_s0 + %s15321_s20]]  }
  0x12   :  { %s15486_s30 = sld [smem:[%s16548_s0 + %s15322_s26]]  }
  0x13   :  { %16598 = sst [smem:[#allocation60_spill]] %s15461_s3 }
  0x14   :  { %16599 = sst [smem:[#allocation61_spill]] %s15466_s8 }
  0x15   :  { %16600 = sst [smem:[#allocation62_spill]] %s15471_s14 }
  0x16   :  { %16601 = sst [smem:[#allocation63_spill]] %s15476_s19 }
  0x17   :  { %16602 = sst [smem:[#allocation64_spill]] %s15481_s24 }
  0x18   :  { %16603 = sst [smem:[#allocation65_spill]] %s15486_s30 }
  0x19   :  { %s15491_s6 = sld [smem:[%s16548_s0 + %s15323_s1]]  }
  0x1a   :  { %s15496_s12 = sld [smem:[%s16548_s0 + %s15324_s7]]   ;;  %s15328_s7 = smov 18  }
  0x1b   :  { %s15501_s20 = sld [smem:[%s16548_s0 + %s15325_s15]]   ;;  %s15329_s15 = smov 19  }
  0x1c   :  { %s15506_s27 = sld [smem:[%s16548_s0 + %s15326_s22]]   ;;  %s15330_s22 = smov 20  }
  0x1d   :  { %s15511_s4 = sld [smem:[%s16548_s0 + %s15327_s28]]   ;;  %s15331_s28 = smov 21  }
  0x1e   :  { %s15531_s24 = sld [smem:[%s16548_s0 + %s15331_s28]]   ;;  %s15335_s28 = smov 25  }
  0x1f   :  { %16604 = sst [smem:[#allocation66_spill]] %s15491_s6 }
  0x20   :  { %16605 = sst [smem:[#allocation67_spill]] %s15496_s12 }
  0x21   :  { %s15516_s6 = sld [smem:[%s16548_s0 + %s15328_s7]]   ;;  %s15332_s7 = smov 22  }
  0x22   :  { %16606 = sst [smem:[#allocation68_spill]] %s15506_s27 }
  0x23   :  { %16607 = sst [smem:[#allocation69_spill]] %s15511_s4 }
  0x24   :  { %s15521_s12 = sld [smem:[%s16548_s0 + %s15329_s15]]   ;;  %s15333_s15 = smov 23  }
  0x25   :  { %s15526_s27 = sld [smem:[%s16548_s0 + %s15330_s22]]   ;;  %s15334_s22 = smov 24  }
  0x26   :  { %16611 = sst [smem:[#allocation73_spill]] %s15531_s24 }
  0x27   :  { %16608 = sst [smem:[#allocation70_spill]] %s15516_s6 }
  0x28   :  { %s15536_s6 = sld [smem:[%s16548_s0 + %s15332_s7]]   ;;  %s15336_s7 = smov 26  }
  0x29   :  { %s15541_s14 = sld [smem:[%s16548_s0 + %s15333_s15]]   ;;  %s15337_s15 = smov 27  }
  0x2a   :  { %16609 = sst [smem:[#allocation71_spill]] %s15521_s12 }
  0x2b   :  { %16610 = sst [smem:[#allocation72_spill]] %s15526_s27 }
  0x2c   :  { %s15546_s27 = sld [smem:[%s16548_s0 + %s15334_s22]]   ;;  %s15338_s22 = smov 28  }
  0x2d   :  { %s15551_s30 = sld [smem:[%s16548_s0 + %s15335_s28]]   ;;  %s15339_s28 = smov 29  }
  0x2e   :  { %16612 = sst [smem:[#allocation74_spill]] %s15536_s6 }
  0x2f   :  { %16613 = sst [smem:[#allocation75_spill]] %s15541_s14 }
  0x30   :  { %s15556_s6 = sld [smem:[%s16548_s0 + %s15336_s7]]   ;;  %s15340_s7 = smov 30  }
  0x31   :  { %s15561_s3 = sld [smem:[%s16548_s0 + %s15337_s15]]   ;;  %s15341_s15 = smov 31  }
  0x32   :  { %16614 = sst [smem:[#allocation76_spill]] %s15546_s27 }
  0x33   :  { %16615 = sst [smem:[#allocation77_spill]] %s15551_s30 }
  0x34   :  { %s15566_s27 = sld [smem:[%s16548_s0 + %s15338_s22]]   ;;  %s15342_s22 = smov 32  }
  0x35   :  { %s15571_s25 = sld [smem:[%s16548_s0 + %s15339_s28]]   ;;  %s15343_s28 = smov 33  }
  0x36   :  { %16616 = sst [smem:[#allocation78_spill]] %s15556_s6 }
  0x37   :  { %16617 = sst [smem:[#allocation79_spill]] %s15561_s3 }
  0x38   :  { %s15576_s6 = sld [smem:[%s16548_s0 + %s15340_s7]]   ;;  %s15344_s7 = smov 34  }
  0x39   :  { %s15581_s17 = sld [smem:[%s16548_s0 + %s15341_s15]]   ;;  %s15345_s15 = smov 35  }
  0x3a   :  { %16618 = sst [smem:[#allocation80_spill]] %s15566_s27 }
  0x3b   :  { %16619 = sst [smem:[#allocation81_spill]] %s15571_s25 }
  0x3c   :  { %s15586_s27 = sld [smem:[%s16548_s0 + %s15342_s22]]   ;;  %s15346_s22 = smov 36  }
  0x3d   :  { %s15591_s9 = sld [smem:[%s16548_s0 + %s15343_s28]]   ;;  %s15347_s28 = smov 37  }
  0x3e   :  { %16620 = sst [smem:[#allocation82_spill]] %s15576_s6 }
  0x3f   :  { %16621 = sst [smem:[#allocation83_spill]] %s15581_s17 }
  0x40   :  { %s15596_s6 = sld [smem:[%s16548_s0 + %s15344_s7]]   ;;  %s15348_s7 = smov 38  }
  0x41   :  { %s15601_s25 = sld [smem:[%s16548_s0 + %s15345_s15]]   ;;  %s15349_s15 = smov 39  }
  0x42   :  { %16622 = sst [smem:[#allocation84_spill]] %s15586_s27 }
  0x43   :  { %16623 = sst [smem:[#allocation85_spill]] %s15591_s9 }
  0x44   :  { %s15606_s27 = sld [smem:[%s16548_s0 + %s15346_s22]]   ;;  %s15350_s22 = smov 40  }
  0x45   :  { %s15611_s9 = sld [smem:[%s16548_s0 + %s15347_s28]]   ;;  %s15351_s28 = smov 41  }
  0x46   :  { %16624 = sst [smem:[#allocation86_spill]] %s15596_s6 }
  0x47   :  { %s15616_s6 = sld [smem:[%s16548_s0 + %s15348_s7]]   ;;  %s15352_s7 = smov 42  }
  0x48   :  { %s15621_s30 = sld [smem:[%s16548_s0 + %s15349_s15]]   ;;  %s15353_s15 = smov 43  }
  0x49   :  { %s15636_s16 = sld [smem:[%s16548_s0 + %s15352_s7]]   ;;  %s15356_s7 = smov 46  }
  0x4a   :  { %16625 = sst [smem:[#allocation87_spill]] %s15606_s27 }
  0x4b   :  { %16626 = sst [smem:[#allocation88_spill]] %s15611_s9 }
  0x4c   :  { %s15626_s27 = sld [smem:[%s16548_s0 + %s15350_s22]]   ;;  %s15354_s22 = smov 44  }
  0x4d   :  { %16627 = sst [smem:[#allocation89_spill]] %s15616_s6  ;;  %s15357_s6 = smov 47  }
  0x4e   :  { %s15631_s9 = sld [smem:[%s16548_s0 + %s15351_s28]]   ;;  %s15355_s28 = smov 45  }
  0x4f   :  { %16630 = sst [smem:[#allocation92_spill]] %s15636_s16  ;;  %s104_s16 = sshll.u32 %s15426_s5, 4  ;;  %s105_s16 = int_to_ptr.vmem [resolvable:$true] %s104_s16 }
  0x50   :  { %s15641_s23 = sld [smem:[%s16548_s0 + %s15353_s15]]   ;;  %p14574_p1 = scmp.lt.s32.totalorder %s105_s16, %s105_s16 }
  0x51   :  { %s15646_s1 = sld [smem:[%s16548_s0 + %s15354_s22]]  }
  0x52   :  { %16628 = sst [smem:[#allocation90_spill]] %s15626_s27  ;;  %s15358_s27 = smov 48  }
  0x53   :  { %s15651_s10 = sld [smem:[%s16548_s0 + %s15355_s28]]  }
  0x54   :  { %16629 = sst [smem:[#allocation91_spill]] %s15631_s9  ;;  %s15359_s9 = smov 49  }
  0x55   :  { %s15656_s24 = sld [smem:[%s16548_s0 + %s15356_s7]]   ;;  %s14569_s7 = scalar_lea.vmem %s105_s16, 32 }
  0x56   :  { %s15661_s4 = sld [smem:[%s16548_s0 + %s15357_s6]]   ;;  %p14570_p0 = scmp.ne.s32.totalorder %s105_s16, %s14569_s7 }
  0x57   :  { %16631 = sst [smem:[#allocation93_spill]] %s15646_s1  ;;  %p14575_p2 = scmp.lt.s32.totalorder %s14569_s7, %s14569_s7 }
  0x58   :  { %s15666_s1 = sld [smem:[%s16548_s0 + %s15358_s27]]  }
  0x59   :  { %16632 = sst [smem:[#allocation94_spill]] %s15651_s10  ;;  %p14576_p3 = por %p14575_p2, %p14574_p1 }
  0x5a   :  { %s15671_s10 = sld [smem:[%s16548_s0 + %s15359_s9]]  }
  0x5b   :  { %p14577_p4 = pnand %p14576_p3, %p14570_p0 }
  0x5c   :  { %16633 = sst [smem:[#allocation95_spill]] %s15661_s4 }
  0x5d   :  { %14580 = shalt.err (!%p14577_p4)  }
  0x5e   :  { %s15360_s11 = smov [#allocation4]  }
  0x5f   :  { %107 = dma.vmem_to_smem %s105_s16, 32, %s15360_s11, [#allocation3] }
  0x60   :  { %15241 = dma.done.wait [#allocation3], 32 }
  0x61   :  { %15242 = vsyncadd [#allocation3], 4294967264 }
  0x62   :  { %109 = sfence }
  0x63   :  { %110 = vsyncpa [#allocation6], 0 }
  0x64   :  { %111 = vsyncpa [#allocation9], 0 }
  0x65   :  { %112 = vsyncpa [#allocation12], 0 }
  0x66   :  { %113 = vsyncpa [#allocation15], 0 }
  0x67   :  { %114 = vsyncpa [#allocation18], 0 }
  0x68   :  { %115 = vsyncpa [#allocation21], 0 }
  0x69   :  { %116 = vsyncpa [#allocation24], 0 }
  0x6a   :  { %117 = vsyncpa [#allocation27], 0 }
  0x6b   :  { %118 = vsyncpa [#allocation30], 0 }
  0x6c   :  { %119 = vsyncpa [#allocation33], 0 }
  0x6d   :  { %120 = vsyncpa [#allocation36], 0 }
  0x6e   :  { %121 = vsyncpa [#allocation39], 0 }
  0x6f   :  { %122 = vsyncpa [#allocation7], 0 }
  0x70   :  { %124 = vsyncpa [#allocation7 + $0x1], 0  ;;  %s15674_s0 = smov 0   ;;  %s15676_s5 = smov 0  }
  0x71   :  { %s15678_s6 = smov 0   ;;  %s15680_s15 = smov 0  }
  0x72 LB: > { %s16634_s19 = sld [smem:[#allocation63_spill]]  ;;  %s16636_s17 = sld [smem:[#allocation83_spill]]  ;;  %s15297_s0 = sphi %s15674_s0, %s16727_s0   ;;  %s15309_s15 = sphi %s15680_s15, %s16724_s15   ;;  %s15305_s6 = sphi %s15678_s6, %s16726_s6   ;;  %s15301_s5 = sphi %s15676_s5, %s16728_s5  }
  0x73   : > { %s16635_s4 = sld [smem:[#allocation95_spill]]  ;;  %s16637_s14 = sld [smem:[#allocation75_spill]] }
  0x74   : > { %s16638_s13 = sld [smem:[#allocation56_spill]]  ;;  %s16639_s12 = sld [smem:[#allocation71_spill]] }
  0x75   : > { %s16640_s8 = sld [smem:[#allocation61_spill]]  ;;  %s16641_s3 = sld [smem:[#allocation79_spill]] }
  0x76   : > { %s16642_s21 = sld [smem:[#allocation58_spill]]  ;;  %16643 = sst [smem:[#allocation96_spill]] %s15297_s0 }
  0x77   : > { %16644 = sst [smem:[#allocation97_spill]] %s15305_s6  ;;  %s15695_s18 = sadd.s32 4294967295, %s15309_s15  }
  0x78   : > { %16645 = sst [smem:[#allocation98_spill]] %s15309_s15  ;;  %s11062_s27 = sadd.s32 4294967294, %s15309_s15  }
  0x79   : > { %s15699_s22 = sadd.s32 1, %s15309_s15   ;;  %s1150_s26 = sadd.s32 1, %s15305_s6 }
  0x7a   : > { %16646 = sst [smem:[#allocation99_spill]] %s15699_s22  ;;  %s1147_s9 = ssub.s32 %s15309_s15, %s15699_s22 }
  0x7b   : > { %p1160_p5 = scmp.ne.s32.totalorder %s15305_s6, %s15301_s5  ;;  %p1148_p6 = scmp.eq.s32.totalorder %s1147_s9, 0 }
  0x7c   : > { %p1161_p7 = scmp.eq.s32.totalorder %s15695_s18, 1  ;;  %p1166_p8 = scmp.ne.s32.totalorder %s15301_s5, %s15297_s0 }
  0x7d   : > { %p1167_p9 = scmp.eq.s32.totalorder %s11062_s27, 1  ;;  %p11063_p12 = scmp.ge.s32.totalorder %s15309_s15, 1 }
  0x7e   : > { %s15710_s28 = scalar_select %p1148_p6, %s15305_s6, %s1150_s26  }
  0x7f   : > { %p15712_p10 = por %p1161_p7, %p1160_p5  ;;  %p15716_p11 = por %p1167_p9, %p1166_p8 }
  0x80   : > { %16647 = sst [smem:[#allocation100_spill]] %s15710_s28  ;;  %p1174_p13 = scmp.lt.s32.totalorder %s15309_s15, 3 }
  0x81   : > { %s16648_s2 = scalar_select %p15712_p10, 1, 0 }
  0x82   : > { %s16649_s16 = scalar_select %p15716_p11, 1, 0 }
  0x83   : > { %p16561_p0 = scmp.eq.s32.totalorder %s15695_s18, 0  ;;  %p15723_p1 = pnand %p11063_p12, %p1174_p13 }
  0x84   : > { %16650 = sst [smem:[#allocation101_spill]] %s16649_s16  ;;  %s15361_s11 = smov [#allocation8]  }
  0x85   : > { %s16651_s7 = scalar_select %p15723_p1, 1, 0 }
  0x86   : > { %p13286_p2 = pneg %p15723_p1  ;;  %s1202_s27 = sshll.u32 %s15361_s11, 4  ;;  %s1203_s27 = int_to_ptr.vmem [resolvable:$true] %s1202_s27 }
  0x87   : > { %s15362_s9 = smov [#allocation11]   ;;  %s14581_s6 = scalar_lea.hbm %s16642_s21, 2048 }
  0x88   : > { %p15731_p3 = pnand %p16561_p0, %p13286_p2  ;;  %s1234_s28 = sshll.u32 %s15362_s9, 4  ;;  %s15735_s28 = int_to_ptr.vmem [resolvable:$true] %s1234_s28 }
  0x89   : > { %p14582_p4 = scmp.ne.s32.totalorder %s16642_s21, %s14581_s6  ;;  %p14588_p8 = scmp.lt.u32.totalorder %s14581_s6, %s16642_s21 }
  0x8a   : > { %p15741_p5 = pneg %p15731_p3 }
  0x8c   : > { %p14584_p6 = pnand %p15741_p5, %p14582_p4 }
  0x8e   : > { %p14585_p7 = pneg %p14584_p6 }
  0x90   : > { %p14590_p9 = pnand %p14588_p8, %p14585_p7 }
  0x92   : > { %14593 = shalt.err (!%p14590_p9)
}
  0x93   : > { %s14594_s11 = scalar_lea.vmem %s1203_s27, 2048  ;;  %p14602_p0 = scmp.lt.s32.totalorder %s1203_s27, %s1203_s27 }
  0x94   : > { %p14595_p12 = scmp.ne.s32.totalorder %s1203_s27, %s14594_s11  ;;  %p14603_p11 = scmp.lt.s32.totalorder %s14594_s11, %s14594_s11 }
  0x96   : > { %p14597_p13 = pnand %p14595_p12, %p15741_p5  ;;  %p14604_p10 = por %p14603_p11, %p14602_p0 }
  0x98   : > { %p14598_p2 = pneg %p14597_p13 }
  0x9a   : > { %p14605_p1 = pnand %p14604_p10, %p14598_p2 }
  0x9c   : > { %14608 = shalt.err (!%p14605_p1)
}
  0x9d   : > { %s16565_s9 = smov 128   ;;  %s16567_s6 = smov 8  }
  0x9e   : > { %13292 = dma.hbm_to_vmem [thread:$0]  (!%p15731_p3), %s16642_s21, 2048, %s1203_s27, [#allocation9], %s16565_s9, %s16565_s9, %s16567_s6  }
  0x9f   : > { %s14609_s16 = scalar_lea.hbm %s16640_s8, 32768 }
  0xa0   : > { %p14610_p4 = scmp.ne.s32.totalorder %s16640_s8, %s14609_s16  ;;  %p14616_p10 = scmp.lt.u32.totalorder %s14609_s16, %s16640_s8 }
  0xa2   : > { %p14612_p6 = pnand %p14610_p4, %p15741_p5 }
  0xa4   : > { %p14613_p11 = pneg %p14612_p6 }
  0xa6   : > { %p14618_p0 = pnand %p14616_p10, %p14613_p11 }
  0xa8   : > { %14621 = shalt.err (!%p14618_p0)
}
  0xa9   : > { %s14622_s11 = scalar_lea.vmem %s15735_s28, 32768  ;;  %p14630_p9 = scmp.lt.s32.totalorder %s15735_s28, %s15735_s28 }
  0xaa   : > { %p14623_p1 = scmp.ne.s32.totalorder %s15735_s28, %s14622_s11  ;;  %p14631_p12 = scmp.lt.s32.totalorder %s14622_s11, %s14622_s11 }
  0xac   : > { %p14625_p7 = pnand %p14623_p1, %p15741_p5  ;;  %p14632_p13 = por %p14631_p12, %p14630_p9 }
  0xae   : > { %p14626_p8 = pneg %p14625_p7 }
  0xb0   : > { %p14633_p2 = pnand %p14632_p13, %p14626_p8 }
  0xb2   : > { %14636 = shalt.err (!%p14633_p2)
}
  0xb3   : > { %s16572_s27 = smov 256   ;;  %s16574_s16 = smov 16  }
  0xb4   : > { %13298 = dma.hbm_to_vmem [thread:$0]  (!%p15731_p3), %s16640_s8, 32768, %s15735_s28, [#allocation12], %s16572_s27, %s16572_s27, %s16574_s16  }
  0xb5   : > { %s15367_s9 = smov [#allocation14]   ;;  %s15368_s11 = smov [#allocation17]  }
  0xb6   : > { %s1275_s6 = sshll.u32 %s15367_s9, 4  ;;  %s1307_s21 = sshll.u32 %s15368_s11, 4  ;;  %s1276_s6 = int_to_ptr.vmem [resolvable:$true] %s1275_s6  ;;  %s15774_s21 = int_to_ptr.vmem [resolvable:$true] %s1307_s21 }
  0xb7   : > { %s14637_s0 = scalar_lea.hbm %s15501_s20, 2048 }
  0xb8   : > { %p14638_p4 = scmp.ne.s32.totalorder %s15501_s20, %s14637_s0  ;;  %p14644_p10 = scmp.lt.u32.totalorder %s14637_s0, %s15501_s20 }
  0xba   : > { %p14640_p6 = pnand %p14638_p4, %p15741_p5 }
  0xbc   : > { %p14641_p11 = pneg %p14640_p6 }
  0xbe   : > { %p14646_p0 = pnand %p14644_p10, %p14641_p11 }
  0xc0   : > { %14649 = shalt.err (!%p14646_p0)
}
  0xc1   : > { %s14650_s15 = scalar_lea.vmem %s1276_s6, 2048  ;;  %p14658_p9 = scmp.lt.s32.totalorder %s1276_s6, %s1276_s6 }
  0xc2   : > { %p14651_p1 = scmp.ne.s32.totalorder %s1276_s6, %s14650_s15  ;;  %p14659_p12 = scmp.lt.s32.totalorder %s14650_s15, %s14650_s15 }
  0xc4   : > { %p14653_p7 = pnand %p14651_p1, %p15741_p5  ;;  %p14660_p13 = por %p14659_p12, %p14658_p9 }
  0xc6   : > { %p14654_p8 = pneg %p14653_p7 }
  0xc8   : > { %p14661_p2 = pnand %p14660_p13, %p14654_p8 }
  0xca   : > { %14664 = shalt.err (!%p14661_p2)
}
  0xcb   : > { %s16654_s28 = smov 8   ;;  %s16655_s9 = smov 128  }
  0xcc   : > { %13304 = dma.hbm_to_vmem [thread:$0]  (!%p15731_p3), %s15501_s20, 2048, %s1276_s6, [#allocation15], %s16655_s9, %s16655_s9, %s16654_s28  }
  0xcd   : > { %s14665_s0 = scalar_lea.hbm %s16639_s12, 2048 }
  0xce   : > { %p14666_p4 = scmp.ne.s32.totalorder %s16639_s12, %s14665_s0  ;;  %p14672_p10 = scmp.lt.u32.totalorder %s14665_s0, %s16639_s12 }
  0xd0   : > { %p14668_p6 = pnand %p14666_p4, %p15741_p5 }
  0xd2   : > { %p14669_p11 = pneg %p14668_p6 }
  0xd4   : > { %p14674_p0 = pnand %p14672_p10, %p14669_p11 }
  0xd6   : > { %14677 = shalt.err (!%p14674_p0)
}
  0xd7   : > { %s14678_s15 = scalar_lea.vmem %s15774_s21, 2048  ;;  %p14686_p9 = scmp.lt.s32.totalorder %s15774_s21, %s15774_s21 }
  0xd8   : > { %p14679_p1 = scmp.ne.s32.totalorder %s15774_s21, %s14678_s15  ;;  %p14687_p12 = scmp.lt.s32.totalorder %s14678_s15, %s14678_s15 }
  0xda   : > { %p14681_p7 = pnand %p14679_p1, %p15741_p5  ;;  %p14688_p13 = por %p14687_p12, %p14686_p9 }
  0xdc   : > { %p14682_p8 = pneg %p14681_p7 }
  0xde   : > { %p14689_p2 = pnand %p14688_p13, %p14682_p8 }
  0xe0   : > { %14692 = shalt.err (!%p14689_p2)
}
  0xe1   : > { %13310 = dma.hbm_to_vmem [thread:$0]  (!%p15731_p3), %s16639_s12, 2048, %s15774_s21, [#allocation18], %s16655_s9, %s16655_s9, %s16654_s28  }
  0xe2   : > { %s15369_s6 = smov [#allocation20]   ;;  %s15370_s0 = smov [#allocation23]  }
  0xe3   : > { %s1339_s11 = sshll.u32 %s15369_s6, 4  ;;  %s1371_s27 = sshll.u32 %s15370_s0, 4  ;;  %s1340_s11 = int_to_ptr.vmem [resolvable:$true] %s1339_s11  ;;  %s15807_s27 = int_to_ptr.vmem [resolvable:$true] %s1371_s27 }
  0xe4   : > { %s14693_s15 = scalar_lea.hbm %s16637_s14, 2048 }
  0xe5   : > { %p14694_p4 = scmp.ne.s32.totalorder %s16637_s14, %s14693_s15  ;;  %p14700_p10 = scmp.lt.u32.totalorder %s14693_s15, %s16637_s14 }
  0xe7   : > { %p14696_p6 = pnand %p14694_p4, %p15741_p5 }
  0xe9   : > { %p14697_p11 = pneg %p14696_p6 }
  0xeb   : > { %p14702_p0 = pnand %p14700_p10, %p14697_p11 }
  0xed   : > { %14705 = shalt.err (!%p14702_p0)
}
  0xee   : > { %s14706_s16 = scalar_lea.vmem %s1340_s11, 2048  ;;  %p14714_p9 = scmp.lt.s32.totalorder %s1340_s11, %s1340_s11 }
  0xef   : > { %p14707_p1 = scmp.ne.s32.totalorder %s1340_s11, %s14706_s16  ;;  %p14715_p12 = scmp.lt.s32.totalorder %s14706_s16, %s14706_s16 }
  0xf1   : > { %p14709_p7 = pnand %p14707_p1, %p15741_p5  ;;  %p14716_p13 = por %p14715_p12, %p14714_p9 }
  0xf3   : > { %p14710_p8 = pneg %p14709_p7 }
  0xf5   : > { %p14717_p2 = pnand %p14716_p13, %p14710_p8 }
  0xf7   : > { %14720 = shalt.err (!%p14717_p2)
}
  0xf8   : > { %13316 = dma.hbm_to_vmem [thread:$0]  (!%p15731_p3), %s16637_s14, 2048, %s1340_s11, [#allocation21], %s16655_s9, %s16655_s9, %s16654_s28  }
  0xf9   : > { %s14721_s21 = scalar_lea.hbm %s16641_s3, 2048 }
  0xfa   : > { %p14722_p4 = scmp.ne.s32.totalorder %s16641_s3, %s14721_s21  ;;  %p14728_p10 = scmp.lt.u32.totalorder %s14721_s21, %s16641_s3 }
  0xfc   : > { %p14724_p6 = pnand %p14722_p4, %p15741_p5 }
  0xfe   : > { %p14725_p11 = pneg %p14724_p6 }
 0x100   : > { %p14730_p0 = pnand %p14728_p10, %p14725_p11 }
 0x102   : > { %14733 = shalt.err (!%p14730_p0)
}
 0x103   : > { %s14734_s16 = scalar_lea.vmem %s15807_s27, 2048  ;;  %p14742_p9 = scmp.lt.s32.totalorder %s15807_s27, %s15807_s27 }
 0x104   : > { %p14735_p1 = scmp.ne.s32.totalorder %s15807_s27, %s14734_s16  ;;  %p14743_p12 = scmp.lt.s32.totalorder %s14734_s16, %s14734_s16 }
 0x106   : > { %p14737_p7 = pnand %p14735_p1, %p15741_p5  ;;  %p14744_p13 = por %p14743_p12, %p14742_p9 }
 0x108   : > { %p14738_p8 = pneg %p14737_p7 }
 0x10a   : > { %p14745_p2 = pnand %p14744_p13, %p14738_p8 }
 0x10c   : > { %14748 = shalt.err (!%p14745_p2)
}
 0x10d   : > { %13322 = dma.hbm_to_vmem [thread:$0]  (!%p15731_p3), %s16641_s3, 2048, %s15807_s27, [#allocation24], %s16655_s9, %s16655_s9, %s16654_s28  }
 0x10e   : > { %s15371_s6 = smov [#allocation26]   ;;  %s14749_s0 = scalar_lea.hbm %s16636_s17, 2048 }
 0x10f   : > { %s1403_s11 = sshll.u32 %s15371_s6, 4  ;;  %p14750_p4 = scmp.ne.s32.totalorder %s16636_s17, %s14749_s0  ;;  %s1404_s11 = int_to_ptr.vmem [resolvable:$true] %s1403_s11 }
 0x110   : > { %p14756_p10 = scmp.lt.u32.totalorder %s14749_s0, %s16636_s17 }
 0x111   : > { %p14752_p6 = pnand %p14750_p4, %p15741_p5 }
 0x113   : > { %p14753_p11 = pneg %p14752_p6 }
 0x115   : > { %p14758_p0 = pnand %p14756_p10, %p14753_p11 }
 0x117   : > { %14761 = shalt.err (!%p14758_p0)
}
 0x118   : > { %s14762_s15 = scalar_lea.vmem %s1404_s11, 2048  ;;  %p14770_p9 = scmp.lt.s32.totalorder %s1404_s11, %s1404_s11 }
 0x119   : > { %p14763_p1 = scmp.ne.s32.totalorder %s1404_s11, %s14762_s15  ;;  %p14771_p12 = scmp.lt.s32.totalorder %s14762_s15, %s14762_s15 }
 0x11b   : > { %p14765_p7 = pnand %p14763_p1, %p15741_p5  ;;  %p14772_p13 = por %p14771_p12, %p14770_p9 }
 0x11d   : > { %p14766_p8 = pneg %p14765_p7 }
 0x11f   : > { %p14773_p2 = pnand %p14772_p13, %p14766_p8 }
 0x121   : > { %14776 = shalt.err (!%p14773_p2)
}
 0x122   : > { %13328 = dma.hbm_to_vmem [thread:$0]  (!%p15731_p3), %s16636_s17, 2048, %s1404_s11, [#allocation27], %s16655_s9, %s16655_s9, %s16654_s28  }
 0x123   : > { %s15372_s27 = smov [#allocation29]   ;;  %s15373_s16 = smov [#allocation32]  }
 0x124   : > { %s1435_s21 = sshll.u32 %s15372_s27, 4  ;;  %s1467_s6 = sshll.u32 %s15373_s16, 4  ;;  %s1436_s21 = int_to_ptr.vmem [resolvable:$true] %s1435_s21  ;;  %s1468_s6 = int_to_ptr.vmem [resolvable:$true] %s1467_s6 }
 0x125   : > { %s14777_s0 = scalar_lea.hbm %s15601_s25, 16384 }
 0x126   : > { %p14778_p4 = scmp.ne.s32.totalorder %s15601_s25, %s14777_s0  ;;  %p14784_p10 = scmp.lt.u32.totalorder %s14777_s0, %s15601_s25 }
 0x128   : > { %p14780_p6 = pnand %p14778_p4, %p15741_p5 }
 0x12a   : > { %p14781_p11 = pneg %p14780_p6 }
 0x12c   : > { %p14786_p0 = pnand %p14784_p10, %p14781_p11 }
 0x12e   : > { %14789 = shalt.err (!%p14786_p0)
}
 0x12f   : > { %s14790_s15 = scalar_lea.vmem %s1436_s21, 16384  ;;  %p14798_p9 = scmp.lt.s32.totalorder %s1436_s21, %s1436_s21 }
 0x130   : > { %p14791_p1 = scmp.ne.s32.totalorder %s1436_s21, %s14790_s15  ;;  %p14799_p12 = scmp.lt.s32.totalorder %s14790_s15, %s14790_s15 }
 0x132   : > { %p14793_p7 = pnand %p14791_p1, %p15741_p5  ;;  %p14800_p13 = por %p14799_p12, %p14798_p9 }
 0x134   : > { %p14794_p8 = pneg %p14793_p7 }
 0x136   : > { %p14801_p2 = pnand %p14800_p13, %p14794_p8 }
 0x138   : > { %14804 = shalt.err (!%p14801_p2)
}
 0x139   : > { %s16576_s11 = smov 512   ;;  %s16577_s27 = smov 32  }
 0x13a   : > { %13334 = dma.hbm_to_vmem [thread:$0]  (!%p15731_p3), %s15601_s25, 16384, %s1436_s21, [#allocation30], %s16576_s11, %s16576_s11, %s16577_s27  }
 0x13b   : > { %s14805_s16 = scalar_lea.hbm %s15621_s30, 8192 }
 0x13c   : > { %p14806_p4 = scmp.ne.s32.totalorder %s15621_s30, %s14805_s16  ;;  %p14812_p10 = scmp.lt.u32.totalorder %s14805_s16, %s15621_s30 }
 0x13e   : > { %p14808_p6 = pnand %p14806_p4, %p15741_p5 }
 0x140   : > { %p14809_p11 = pneg %p14808_p6 }
 0x142   : > { %p14814_p0 = pnand %p14812_p10, %p14809_p11 }
 0x144   : > { %14817 = shalt.err (!%p14814_p0)
}
 0x145   : > { %s14818_s0 = scalar_lea.vmem %s1468_s6, 8192  ;;  %p14826_p9 = scmp.lt.s32.totalorder %s1468_s6, %s1468_s6 }
 0x146   : > { %p14819_p1 = scmp.ne.s32.totalorder %s1468_s6, %s14818_s0  ;;  %p14827_p12 = scmp.lt.s32.totalorder %s14818_s0, %s14818_s0 }
 0x148   : > { %p14821_p7 = pnand %p14819_p1, %p15741_p5  ;;  %p14828_p13 = por %p14827_p12, %p14826_p9 }
 0x14a   : > { %p14822_p8 = pneg %p14821_p7 }
 0x14c   : > { %p14829_p2 = pnand %p14828_p13, %p14822_p8 }
 0x14e   : > { %14832 = shalt.err (!%p14829_p2)
}
 0x14f   : > { %13340 = dma.hbm_to_vmem [thread:$0]  (!%p15731_p3), %s15621_s30, 8192, %s1468_s6, [#allocation33], %s16655_s9, %s16655_s9, %s16654_s28  }
 0x150   : > { %s15376_s21 = smov [#allocation35]   ;;  %s15377_s16 = smov [#allocation5]  }
 0x151   : > { %s1499_s15 = sshll.u32 %s15376_s21, 4  ;;  %s1186_s11 = sshll.u32 %s15377_s16, 4  ;;  %s1500_s15 = int_to_ptr.vmem [resolvable:$true] %s1499_s15  ;;  %s1187_s11 = int_to_ptr.vmem [resolvable:$true] %s1186_s11 }
 0x152   : > { %s14833_s0 = scalar_lea.hbm %s15641_s23, 2048 }
 0x153   : > { %p14834_p4 = scmp.ne.s32.totalorder %s15641_s23, %s14833_s0  ;;  %p14840_p10 = scmp.lt.u32.totalorder %s14833_s0, %s15641_s23 }
 0x155   : > { %p14836_p6 = pnand %p14834_p4, %p15741_p5 }
 0x157   : > { %p14837_p11 = pneg %p14836_p6 }
 0x159   : > { %p14842_p0 = pnand %p14840_p10, %p14837_p11 }
 0x15b   : > { %14845 = shalt.err (!%p14842_p0)
}
 0x15c   : > { %s14846_s27 = scalar_lea.vmem %s1500_s15, 2048  ;;  %p14854_p9 = scmp.lt.s32.totalorder %s1500_s15, %s1500_s15 }
 0x15d   : > { %p14847_p1 = scmp.ne.s32.totalorder %s1500_s15, %s14846_s27  ;;  %p14855_p12 = scmp.lt.s32.totalorder %s14846_s27, %s14846_s27 }
 0x15f   : > { %p14849_p7 = pnand %p14847_p1, %p15741_p5  ;;  %p14856_p13 = por %p14855_p12, %p14854_p9 }
 0x161   : > { %p14850_p8 = pneg %p14849_p7 }
 0x163   : > { %p14857_p2 = pnand %p14856_p13, %p14850_p8 }
 0x165   : > { %14860 = shalt.err (!%p14857_p2)
}
 0x166   : > { %13346 = dma.hbm_to_vmem [thread:$0]  (!%p15731_p3), %s15641_s23, 2048, %s1500_s15, [#allocation36], %s16655_s9, %s16655_s9, %s16654_s28  }
 0x167   : > { %s14861_s6 = scalar_lea.hbm %s16638_s13, 2048 }
 0x168   : > { %p14862_p4 = scmp.ne.s32.totalorder %s16638_s13, %s14861_s6  ;;  %p14868_p10 = scmp.lt.u32.totalorder %s14861_s6, %s16638_s13 }
 0x16a   : > { %p14864_p6 = pnand %p14862_p4, %p15741_p5 }
 0x16c   : > { %p14865_p11 = pneg %p14864_p6 }
 0x16e   : > { %p14870_p0 = pnand %p14868_p10, %p14865_p11 }
 0x170   : > { %14873 = shalt.err (!%p14870_p0)
}
 0x171   : > { %s14874_s27 = scalar_lea.vmem %s1187_s11, 2048  ;;  %p14882_p9 = scmp.lt.s32.totalorder %s1187_s11, %s1187_s11 }
 0x172   : > { %p14875_p1 = scmp.ne.s32.totalorder %s1187_s11, %s14874_s27  ;;  %p14883_p12 = scmp.lt.s32.totalorder %s14874_s27, %s14874_s27 }
 0x174   : > { %p14877_p7 = pnand %p14875_p1, %p15741_p5  ;;  %p14884_p13 = por %p14883_p12, %p14882_p9 }
 0x176   : > { %p14878_p8 = pneg %p14877_p7 }
 0x178   : > { %p14885_p2 = pnand %p14884_p13, %p14878_p8 }
 0x17a   : > { %14888 = shalt.err (!%p14885_p2)
}
 0x17b   : > { %13289 = dma.hbm_to_vmem [thread:$0]  (!%p15731_p3), %s16638_s13, 2048, %s1187_s11, [#allocation6], %s16655_s9, %s16655_s9, %s16654_s28  }
 0x17c   : > { %s15378_s21 = smov [#allocation10]   ;;  %s15379_s16 = smov [#allocation13]  }
 0x17d   : > { %s1218_s15 = sshll.u32 %s15378_s21, 4  ;;  %s1250_s0 = sshll.u32 %s15379_s16, 4  ;;  %s1219_s15 = int_to_ptr.vmem [resolvable:$true] %s1218_s15  ;;  %s1251_s0 = int_to_ptr.vmem [resolvable:$true] %s1250_s0 }
 0x17e   : > { %s14889_s6 = scalar_lea.hbm %s15456_s29, 16384 }
 0x17f   : > { %p14890_p4 = scmp.ne.s32.totalorder %s15456_s29, %s14889_s6  ;;  %p14896_p10 = scmp.lt.u32.totalorder %s14889_s6, %s15456_s29 }
 0x181   : > { %p14892_p6 = pnand %p14890_p4, %p15741_p5 }
 0x183   : > { %p14893_p11 = pneg %p14892_p6 }
 0x185   : > { %p14898_p0 = pnand %p14896_p10, %p14893_p11 }
 0x187   : > { %14901 = shalt.err (!%p14898_p0)
}
 0x188   : > { %s14902_s27 = scalar_lea.vmem %s1219_s15, 16384  ;;  %p14910_p9 = scmp.lt.s32.totalorder %s1219_s15, %s1219_s15 }
 0x189   : > { %p14903_p1 = scmp.ne.s32.totalorder %s1219_s15, %s14902_s27  ;;  %p14911_p12 = scmp.lt.s32.totalorder %s14902_s27, %s14902_s27 }
 0x18b   : > { %p14905_p7 = pnand %p14903_p1, %p15741_p5  ;;  %p14912_p13 = por %p14911_p12, %p14910_p9 }
 0x18d   : > { %p14906_p8 = pneg %p14905_p7 }
 0x18f   : > { %p14913_p2 = pnand %p14912_p13, %p14906_p8 }
 0x191   : > { %14916 = shalt.err (!%p14913_p2)
}
 0x192   : > { %s16656_s11 = smov 32   ;;  %s16657_s21 = smov 512  }
 0x193   : > { %13295 = dma.hbm_to_vmem [thread:$0]  (!%p15731_p3), %s15456_s29, 16384, %s1219_s15, [#allocation9], %s16657_s21, %s16657_s21, %s16656_s11  }
 0x194   : > { %s14917_s16 = scalar_lea.hbm %s16634_s19, 8192 }
 0x195   : > { %p14918_p4 = scmp.ne.s32.totalorder %s16634_s19, %s14917_s16  ;;  %p14924_p10 = scmp.lt.u32.totalorder %s14917_s16, %s16634_s19 }
 0x197   : > { %p14920_p6 = pnand %p14918_p4, %p15741_p5 }
 0x199   : > { %p14921_p11 = pneg %p14920_p6 }
 0x19b   : > { %p14926_p0 = pnand %p14924_p10, %p14921_p11 }
 0x19d   : > { %14929 = shalt.err (!%p14926_p0)
}
 0x19e   : > { %s14930_s6 = scalar_lea.vmem %s1251_s0, 8192  ;;  %p14938_p9 = scmp.lt.s32.totalorder %s1251_s0, %s1251_s0 }
 0x19f   : > { %p14931_p1 = scmp.ne.s32.totalorder %s1251_s0, %s14930_s6  ;;  %p14939_p12 = scmp.lt.s32.totalorder %s14930_s6, %s14930_s6 }
 0x1a1   : > { %p14933_p7 = pnand %p14931_p1, %p15741_p5  ;;  %p14940_p13 = por %p14939_p12, %p14938_p9 }
 0x1a3   : > { %p14934_p8 = pneg %p14933_p7 }
 0x1a5   : > { %p14941_p2 = pnand %p14940_p13, %p14934_p8 }
 0x1a7   : > { %14944 = shalt.err (!%p14941_p2)
}
 0x1a8   : > { %s16658_s15 = sld [smem:[#allocation69_spill]]  ;;  %s15380_s11 = smov [#allocation16]  }
 0x1a9   : > { %13301 = dma.hbm_to_vmem [thread:$0]  (!%p15731_p3), %s16634_s19, 8192, %s1251_s0, [#allocation12], %s16655_s9, %s16655_s9, %s16654_s28  }
 0x1aa   : > { %s1291_s21 = sshll.u32 %s15380_s11, 4  ;;  %s15381_s16 = smov [#allocation19]   ;;  %s1292_s21 = int_to_ptr.vmem [resolvable:$true] %s1291_s21 }
 0x1ab   : > { %s1323_s3 = sshll.u32 %s15381_s16, 4  ;;  %s1324_s3 = int_to_ptr.vmem [resolvable:$true] %s1323_s3 }
 0x1ae   : > { %s16659_s27 = smov %s16658_s15  ;;  %s14945_s6 = scalar_lea.hbm %s16658_s15, 2048 }
 0x1af   : > { %p14946_p4 = scmp.ne.s32.totalorder %s16659_s27, %s14945_s6  ;;  %p14952_p10 = scmp.lt.u32.totalorder %s14945_s6, %s16659_s27 }
 0x1b1   : > { %p14948_p6 = pnand %p14946_p4, %p15741_p5 }
 0x1b3   : > { %p14949_p11 = pneg %p14948_p6 }
 0x1b5   : > { %p14954_p0 = pnand %p14952_p10, %p14949_p11 }
 0x1b7   : > { %14957 = shalt.err (!%p14954_p0)
}
 0x1b8   : > { %s14958_s8 = scalar_lea.vmem %s1292_s21, 2048  ;;  %p14966_p9 = scmp.lt.s32.totalorder %s1292_s21, %s1292_s21 }
 0x1b9   : > { %p14959_p1 = scmp.ne.s32.totalorder %s1292_s21, %s14958_s8  ;;  %p14967_p12 = scmp.lt.s32.totalorder %s14958_s8, %s14958_s8 }
 0x1bb   : > { %p14961_p7 = pnand %p14959_p1, %p15741_p5  ;;  %p14968_p13 = por %p14967_p12, %p14966_p9 }
 0x1bd   : > { %p14962_p8 = pneg %p14961_p7 }
 0x1bf   : > { %p14969_p2 = pnand %p14968_p13, %p14962_p8 }
 0x1c1   : > { %14972 = shalt.err (!%p14969_p2)
}
 0x1c2   : > { %s16660_s0 = sld [smem:[#allocation73_spill]] }
 0x1c3   : > { %13307 = dma.hbm_to_vmem [thread:$0]  (!%p15731_p3), %s16659_s27, 2048, %s1292_s21, [#allocation15], %s16655_s9, %s16655_s9, %s16654_s28  }
 0x1c8   : > { %s16661_s11 = smov %s16660_s0  ;;  %s14973_s15 = scalar_lea.hbm %s16660_s0, 2048 }
 0x1c9   : > { %p14974_p4 = scmp.ne.s32.totalorder %s16661_s11, %s14973_s15  ;;  %p14980_p10 = scmp.lt.u32.totalorder %s14973_s15, %s16661_s11 }
 0x1cb   : > { %p14976_p6 = pnand %p14974_p4, %p15741_p5 }
 0x1cd   : > { %p14977_p11 = pneg %p14976_p6 }
 0x1cf   : > { %p14982_p0 = pnand %p14980_p10, %p14977_p11 }
 0x1d1   : > { %14985 = shalt.err (!%p14982_p0)
}
 0x1d2   : > { %s14986_s8 = scalar_lea.vmem %s1324_s3, 2048  ;;  %p14994_p9 = scmp.lt.s32.totalorder %s1324_s3, %s1324_s3 }
 0x1d3   : > { %p14987_p1 = scmp.ne.s32.totalorder %s1324_s3, %s14986_s8  ;;  %p14995_p12 = scmp.lt.s32.totalorder %s14986_s8, %s14986_s8 }
 0x1d5   : > { %p14989_p7 = pnand %p14987_p1, %p15741_p5  ;;  %p14996_p13 = por %p14995_p12, %p14994_p9 }
 0x1d7   : > { %p14990_p8 = pneg %p14989_p7 }
 0x1d9   : > { %p14997_p2 = pnand %p14996_p13, %p14990_p8 }
 0x1db   : > { %15000 = shalt.err (!%p14997_p2)
}
 0x1dc   : > { %s16662_s21 = sld [smem:[#allocation77_spill]]  ;;  %s15382_s16 = smov [#allocation22]  }
 0x1dd   : > { %13313 = dma.hbm_to_vmem [thread:$0]  (!%p15731_p3), %s16661_s11, 2048, %s1324_s3, [#allocation18], %s16655_s9, %s16655_s9, %s16654_s28  }
 0x1de   : > { %s1355_s6 = sshll.u32 %s15382_s16, 4  ;;  %s15383_s0 = smov [#allocation25]   ;;  %s1356_s6 = int_to_ptr.vmem [resolvable:$true] %s1355_s6 }
 0x1df   : > { %s1387_s15 = sshll.u32 %s15383_s0, 4  ;;  %s1388_s15 = int_to_ptr.vmem [resolvable:$true] %s1387_s15 }
 0x1e2   : > { %s15001_s8 = scalar_lea.hbm %s16662_s21, 2048 }
 0x1e3   : > { %p15002_p4 = scmp.ne.s32.totalorder %s16662_s21, %s15001_s8  ;;  %p15008_p10 = scmp.lt.u32.totalorder %s15001_s8, %s16662_s21 }
 0x1e5   : > { %p15004_p6 = pnand %p15002_p4, %p15741_p5 }
 0x1e7   : > { %p15005_p11 = pneg %p15004_p6 }
 0x1e9   : > { %p15010_p0 = pnand %p15008_p10, %p15005_p11 }
 0x1eb   : > { %15013 = shalt.err (!%p15010_p0)
}
 0x1ec   : > { %s15014_s12 = scalar_lea.vmem %s1356_s6, 2048  ;;  %p15022_p9 = scmp.lt.s32.totalorder %s1356_s6, %s1356_s6 }
 0x1ed   : > { %p15015_p1 = scmp.ne.s32.totalorder %s1356_s6, %s15014_s12  ;;  %p15023_p12 = scmp.lt.s32.totalorder %s15014_s12, %s15014_s12 }
 0x1ef   : > { %p15017_p7 = pnand %p15015_p1, %p15741_p5  ;;  %p15024_p13 = por %p15023_p12, %p15022_p9 }
 0x1f1   : > { %p15018_p8 = pneg %p15017_p7 }
 0x1f3   : > { %p15025_p2 = pnand %p15024_p13, %p15018_p8 }
 0x1f5   : > { %15028 = shalt.err (!%p15025_p2)
}
 0x1f6   : > { %s16663_s3 = sld [smem:[#allocation81_spill]] }
 0x1f7   : > { %13319 = dma.hbm_to_vmem [thread:$0]  (!%p15731_p3), %s16662_s21, 2048, %s1356_s6, [#allocation21], %s16655_s9, %s16655_s9, %s16654_s28  }
 0x1fc   : > { %s15029_s16 = scalar_lea.hbm %s16663_s3, 2048 }
 0x1fd   : > { %p15030_p4 = scmp.ne.s32.totalorder %s16663_s3, %s15029_s16  ;;  %p15036_p10 = scmp.lt.u32.totalorder %s15029_s16, %s16663_s3 }
 0x1ff   : > { %p15032_p6 = pnand %p15030_p4, %p15741_p5 }
 0x201   : > { %p15033_p11 = pneg %p15032_p6 }
 0x203   : > { %p15038_p0 = pnand %p15036_p10, %p15033_p11 }
 0x205   : > { %15041 = shalt.err (!%p15038_p0)
}
 0x206   : > { %s15042_s12 = scalar_lea.vmem %s1388_s15, 2048  ;;  %p15050_p9 = scmp.lt.s32.totalorder %s1388_s15, %s1388_s15 }
 0x207   : > { %p15043_p1 = scmp.ne.s32.totalorder %s1388_s15, %s15042_s12  ;;  %p15051_p12 = scmp.lt.s32.totalorder %s15042_s12, %s15042_s12 }
 0x209   : > { %p15045_p7 = pnand %p15043_p1, %p15741_p5  ;;  %p15052_p13 = por %p15051_p12, %p15050_p9 }
 0x20b   : > { %p15046_p8 = pneg %p15045_p7 }
 0x20d   : > { %p15053_p2 = pnand %p15052_p13, %p15046_p8 }
 0x20f   : > { %15056 = shalt.err (!%p15053_p2)
}
 0x210   : > { %s16664_s6 = sld [smem:[#allocation85_spill]]  ;;  %s15384_s0 = smov [#allocation28]  }
 0x211   : > { %13325 = dma.hbm_to_vmem [thread:$0]  (!%p15731_p3), %s16663_s3, 2048, %s1388_s15, [#allocation24], %s16655_s9, %s16655_s9, %s16654_s28  }
 0x212   : > { %s1419_s16 = sshll.u32 %s15384_s0, 4  ;;  %s15385_s11 = smov [#allocation31]   ;;  %s1420_s16 = int_to_ptr.vmem [resolvable:$true] %s1419_s16 }
 0x213   : > { %s1451_s13 = sshll.u32 %s15385_s11, 4  ;;  %s1452_s13 = int_to_ptr.vmem [resolvable:$true] %s1451_s13 }
 0x216   : > { %s16665_s8 = smov %s16664_s6  ;;  %s15057_s12 = scalar_lea.hbm %s16664_s6, 2048 }
 0x217   : > { %p15058_p4 = scmp.ne.s32.totalorder %s16665_s8, %s15057_s12  ;;  %p15064_p10 = scmp.lt.u32.totalorder %s15057_s12, %s16665_s8 }
 0x219   : > { %p15060_p6 = pnand %p15058_p4, %p15741_p5 }
 0x21b   : > { %p15061_p11 = pneg %p15060_p6 }
 0x21d   : > { %p15066_p0 = pnand %p15064_p10, %p15061_p11 }
 0x21f   : > { %15069 = shalt.err (!%p15066_p0)
}
 0x220   : > { %s15070_s14 = scalar_lea.vmem %s1420_s16, 2048  ;;  %p15078_p9 = scmp.lt.s32.totalorder %s1420_s16, %s1420_s16 }
 0x221   : > { %p15071_p1 = scmp.ne.s32.totalorder %s1420_s16, %s15070_s14  ;;  %p15079_p12 = scmp.lt.s32.totalorder %s15070_s14, %s15070_s14 }
 0x223   : > { %p15073_p7 = pnand %p15071_p1, %p15741_p5  ;;  %p15080_p13 = por %p15079_p12, %p15078_p9 }
 0x225   : > { %p15074_p8 = pneg %p15073_p7 }
 0x227   : > { %p15081_p2 = pnand %p15080_p13, %p15074_p8 }
 0x229   : > { %15084 = shalt.err (!%p15081_p2)
}
 0x22a   : > { %s16666_s11 = sld [smem:[#allocation88_spill]] }
 0x22b   : > { %13331 = dma.hbm_to_vmem [thread:$0]  (!%p15731_p3), %s16665_s8, 2048, %s1420_s16, [#allocation27], %s16655_s9, %s16655_s9, %s16654_s28  }
 0x230   : > { %s15085_s15 = scalar_lea.hbm %s16666_s11, 32768 }
 0x231   : > { %p15086_p4 = scmp.ne.s32.totalorder %s16666_s11, %s15085_s15  ;;  %p15092_p10 = scmp.lt.u32.totalorder %s15085_s15, %s16666_s11 }
 0x233   : > { %p15088_p6 = pnand %p15086_p4, %p15741_p5 }
 0x235   : > { %p15089_p11 = pneg %p15088_p6 }
 0x237   : > { %p15094_p0 = pnand %p15092_p10, %p15089_p11 }
 0x239   : > { %15097 = shalt.err (!%p15094_p0)
}
 0x23a   : > { %s15098_s14 = scalar_lea.vmem %s1452_s13, 32768  ;;  %p15106_p9 = scmp.lt.s32.totalorder %s1452_s13, %s1452_s13 }
 0x23b   : > { %p15099_p1 = scmp.ne.s32.totalorder %s1452_s13, %s15098_s14  ;;  %p15107_p12 = scmp.lt.s32.totalorder %s15098_s14, %s15098_s14 }
 0x23d   : > { %p15101_p7 = pnand %p15099_p1, %p15741_p5  ;;  %p15108_p13 = por %p15107_p12, %p15106_p9 }
 0x23f   : > { %p15102_p8 = pneg %p15101_p7 }
 0x241   : > { %p15109_p2 = pnand %p15108_p13, %p15102_p8 }
 0x243   : > { %15112 = shalt.err (!%p15109_p2)
}
 0x244   : > { %s16667_s6 = smov 16   ;;  %s16668_s0 = smov 256  }
 0x245   : > { %s16669_s16 = sld [smem:[#allocation91_spill]]  ;;  %s15386_s12 = smov [#allocation34]  }
 0x246   : > { %13337 = dma.hbm_to_vmem [thread:$0]  (!%p15731_p3), %s16666_s11, 32768, %s1452_s13, [#allocation30], %s16668_s0, %s16668_s0, %s16667_s6  }
 0x247   : > { %s1483_s15 = sshll.u32 %s15386_s12, 4  ;;  %s15387_s3 = smov [#allocation37]   ;;  %s1484_s15 = int_to_ptr.vmem [resolvable:$true] %s1483_s15 }
 0x248   : > { %s1515_s8 = sshll.u32 %s15387_s3, 4  ;;  %s1516_s8 = int_to_ptr.vmem [resolvable:$true] %s1515_s8 }
 0x24b   : > { %s15113_s14 = scalar_lea.hbm %s16669_s16, 8192 }
 0x24c   : > { %p15114_p4 = scmp.ne.s32.totalorder %s16669_s16, %s15113_s14  ;;  %p15120_p10 = scmp.lt.u32.totalorder %s15113_s14, %s16669_s16 }
 0x24e   : > { %p15116_p6 = pnand %p15114_p4, %p15741_p5 }
 0x250   : > { %p15117_p11 = pneg %p15116_p6 }
 0x252   : > { %p15122_p0 = pnand %p15120_p10, %p15117_p11 }
 0x254   : > { %15125 = shalt.err (!%p15122_p0)
}
 0x255   : > { %s15126_s17 = scalar_lea.vmem %s1484_s15, 8192  ;;  %p15134_p9 = scmp.lt.s32.totalorder %s1484_s15, %s1484_s15 }
 0x256   : > { %p15127_p1 = scmp.ne.s32.totalorder %s1484_s15, %s15126_s17  ;;  %p15135_p12 = scmp.lt.s32.totalorder %s15126_s17, %s15126_s17 }
 0x258   : > { %p15129_p7 = pnand %p15127_p1, %p15741_p5  ;;  %p15136_p13 = por %p15135_p12, %p15134_p9 }
 0x25a   : > { %p15130_p8 = pneg %p15129_p7 }
 0x25c   : > { %p15137_p2 = pnand %p15136_p13, %p15130_p8 }
 0x25e   : > { %15140 = shalt.err (!%p15137_p2)
}
 0x25f   : > { %s16670_s13 = sld [smem:[#allocation94_spill]] }
 0x260   : > { %13343 = dma.hbm_to_vmem [thread:$0]  (!%p15731_p3), %s16669_s16, 8192, %s1484_s15, [#allocation33], %s16668_s0, %s16668_s0, %s16667_s6  }
 0x265   : > { %s15141_s3 = scalar_lea.hbm %s16670_s13, 2048 }
 0x266   : > { %p15142_p4 = scmp.ne.s32.totalorder %s16670_s13, %s15141_s3  ;;  %p15148_p10 = scmp.lt.u32.totalorder %s15141_s3, %s16670_s13 }
 0x268   : > { %p15144_p6 = pnand %p15142_p4, %p15741_p5 }
 0x26a   : > { %p15145_p11 = pneg %p15144_p6 }
 0x26c   : > { %p15150_p0 = pnand %p15148_p10, %p15145_p11 }
 0x26e   : > { %15153 = shalt.err (!%p15150_p0)
}
 0x26f   : > { %s15154_s17 = scalar_lea.vmem %s1516_s8, 2048  ;;  %p15162_p9 = scmp.lt.s32.totalorder %s1516_s8, %s1516_s8 }
 0x270   : > { %p15155_p1 = scmp.ne.s32.totalorder %s1516_s8, %s15154_s17  ;;  %p15163_p12 = scmp.lt.s32.totalorder %s15154_s17, %s15154_s17 }
 0x272   : > { %p15157_p7 = pnand %p15155_p1, %p15741_p5  ;;  %p15164_p13 = por %p15163_p12, %p15162_p9 }
 0x274   : > { %p15158_p8 = pneg %p15157_p7 }
 0x276   : > { %p15165_p2 = pnand %p15164_p13, %p15158_p8 }
 0x278   : > { %15168 = shalt.err (!%p15165_p2)
}
 0x279   : > { %13349 = dma.hbm_to_vmem [thread:$0]  (!%p15731_p3), %s16670_s13, 2048, %s1516_s8, [#allocation36], %s16655_s9, %s16655_s9, %s16654_s28  }
 0x27a   : > { %s15388_s6 = smov [#allocation38]   ;;  %s15169_s12 = scalar_lea.hbm %s16635_s4, 2048 }
 0x27b   : > { %s1531_s0 = sshll.u32 %s15388_s6, 4  ;;  %p15170_p4 = scmp.ne.s32.totalorder %s16635_s4, %s15169_s12  ;;  %s1532_s0 = int_to_ptr.vmem [resolvable:$true] %s1531_s0 }
 0x27c   : > { %p15176_p10 = scmp.lt.u32.totalorder %s15169_s12, %s16635_s4 }
 0x27d   : > { %p15172_p6 = pnand %p15170_p4, %p15741_p5 }
 0x27f   : > { %p15173_p11 = pneg %p15172_p6 }
 0x281   : > { %p15178_p0 = pnand %p15176_p10, %p15173_p11 }
 0x283   : > { %15181 = shalt.err (!%p15178_p0)
}
 0x284   : > { %s15182_s15 = scalar_lea.vmem %s1532_s0, 2048  ;;  %p15190_p9 = scmp.lt.s32.totalorder %s1532_s0, %s1532_s0 }
 0x285   : > { %p15183_p1 = scmp.ne.s32.totalorder %s1532_s0, %s15182_s15  ;;  %p15191_p12 = scmp.lt.s32.totalorder %s15182_s15, %s15182_s15 }
 0x287   : > { %p15185_p7 = pnand %p15183_p1, %p15741_p5  ;;  %p15192_p13 = por %p15191_p12, %p15190_p9 }
 0x289   : > { %p15186_p8 = pneg %p15185_p7 }
 0x28b   : > { %p15193_p2 = pnand %p15192_p13, %p15186_p8 }
 0x28d   : > { %15196 = shalt.err (!%p15193_p2)
}
 0x28e   : > { %13352 = dma.hbm_to_vmem [thread:$0]  (!%p15731_p3), %s16635_s4, 2048, %s1532_s0, [#allocation39], %s16655_s9, %s16655_s9, %s16654_s28  }
 0x28f   : > { %p16671_p4 = scmp.ne.s32.totalorder %s16651_s7, 0 }
 0x290   : > { %p16672_p6 = scmp.eq.s32.totalorder (!%p16671_p4), %s15695_s18, 0 }
 0x291   : > { %1557 = sbr.rel (%p16671_p4) target bundleno = 6587 (0x19bb), region = 212 }
 0x298   : > { %15244 = dma.done.wait (%p16672_p6), [#allocation6], 2048   ;;  %p16673_p5 = pmov %p16672_p6 }
 0x29a   : > { %15246 = vsyncadd (%p16673_p5), [#allocation6], 4294965248  ;;  %p16674_p11 = pmov %p16673_p5 }
 0x29b   : > { %p16675_p10 = pmov %p16673_p5 }
 0x29c   : > { %15248 = dma.done.wait (%p16674_p11), [#allocation9], 18432  }
 0x29d   : > { %15250 = vsyncadd (%p16675_p10), [#allocation9], 4294948864  ;;  %p16676_p0 = pmov %p16673_p5 }
 0x29f   : > { %15252 = dma.done.wait (%p16676_p0), [#allocation12], 40960   ;;  %p16677_p3 = pmov %p16676_p0 }
 0x2a0   : > { %p16678_p1 = pmov %p16676_p0 }
 0x2a1   : > { %15254 = vsyncadd (%p16677_p3), [#allocation12], 4294926336 }
 0x2a2   : > { %15256 = dma.done.wait (%p16678_p1), [#allocation15], 4096   ;;  %p16679_p7 = pmov %p16676_p0 }
 0x2a3   : > { %p16680_p8 = pmov %p16676_p0 }
 0x2a4   : > { %15258 = vsyncadd (%p16679_p7), [#allocation15], 4294963200 }
 0x2a5   : > { %15260 = dma.done.wait (%p16680_p8), [#allocation18], 4096   ;;  %p16681_p9 = pmov %p16676_p0 }
 0x2a6   : > { %p16682_p12 = pmov %p16676_p0 }
 0x2a7   : > { %15262 = vsyncadd (%p16681_p9), [#allocation18], 4294963200 }
 0x2a8   : > { %15264 = dma.done.wait (%p16682_p12), [#allocation21], 4096   ;;  %p16683_p13 = pmov %p16676_p0 }
 0x2a9   : > { %p16684_p2 = pmov %p16676_p0 }
 0x2aa   : > { %15266 = vsyncadd (%p16683_p13), [#allocation21], 4294963200 }
 0x2ab   : > { %15268 = dma.done.wait (%p16684_p2), [#allocation24], 4096   ;;  %p16685_p4 = pmov %p16676_p0 }
 0x2ac   : > { %p16686_p6 = pmov %p16676_p0 }
 0x2ad   : > { %15270 = vsyncadd (%p16685_p4), [#allocation24], 4294963200 }
 0x2ae   : > { %15272 = dma.done.wait (%p16686_p6), [#allocation27], 4096   ;;  %p16687_p5 = pmov %p16676_p0 }
 0x2af   : > { %p16688_p11 = pmov %p16676_p0 }
 0x2b0   : > { %15274 = vsyncadd (%p16687_p5), [#allocation27], 4294963200 }
 0x2b1   : > { %15276 = dma.done.wait (%p16688_p11), [#allocation30], 49152   ;;  %p16689_p10 = pmov %p16676_p0 }
 0x2b3   : > { %15278 = vsyncadd (%p16689_p10), [#allocation30], 4294918144 }
 0x2b4   : > { %15280 = dma.done.wait (%p16676_p0), [#allocation33], 16384   ;;  %p16690_p3 = pmov %p16676_p0 }
 0x2b5   : > { %p16691_p1 = pmov %p16676_p0 }
 0x2b6   : > { %15282 = vsyncadd (%p16690_p3), [#allocation33], 4294950912 }
 0x2b7   : > { %15284 = dma.done.wait (%p16691_p1), [#allocation36], 4096   ;;  %p16692_p7 = pmov %p16676_p0 }
 0x2b8   : > { %p16693_p8 = pmov %p16676_p0 }
 0x2b9   : > { %15286 = vsyncadd (%p16692_p7), [#allocation36], 4294963200 }
 0x2ba   : > { %15288 = dma.done.wait (%p16693_p8), [#allocation39], 2048   ;;  %p16694_p9 = pmov %p16676_p0 }
 0x2bb   : > { %v15389_v0 = vmov 0.0|0.0   ;;  %vm15390_vm0 = vmmov 0   ;;  %v15391_v1 = vmov 0.0   ;;  %v1759_v2 = vld [vmem:[#allocation5] sm:$0xff]  ;;  %v1760_v3 = vld [vmem:[#allocation5 + $0x8] sm:$0xff]  ;;  %v1761_v4 = vld [vmem:[#allocation5 + $0x10] sm:$0xff] }
 0x2bc   : > { %15290 = vsyncadd (%p16694_p9), [#allocation39], 4294965248  ;;  %12741 = vmatprep.subr.bf16.mxu0 %v15389_v0  ;;  %12341 = vmatprep.mubr.msk.f32.mxu0 %vm15390_vm0, %v15391_v1  ;;  %v12742_v5 = vpack.c.bf16 %v1760_v3, %v1759_v2  ;;  %v1762_v6 = vld [vmem:[#allocation5 + $0x18] sm:$0xff]  ;;  %v1763_v8 = vld [vmem:[#allocation5 + $0x20] sm:$0xff]  ;;  %p1753_p12 = scmp.lt.s32.totalorder %s15695_s18, 1  ;;  %s16695_s22 = sld [smem:[#allocation55_spill]] }
 0x2bd   : > { %v12745_v7 = vpack.c.bf16 %v1762_v6, %v1761_v4  ;;  %v1764_v9 = vld [vmem:[#allocation5 + $0x28] sm:$0xff]  ;;  %v1765_v10 = vld [vmem:[#allocation5 + $0x30] sm:$0xff]  ;;  %v1766_v15 = vld [vmem:[#allocation5 + $0x38] sm:$0xff]  ;;  %v15392_v43 = vmov 0   ;;  %s16696_s9 = sld [smem:[#allocation57_spill]]  ;;  %s16697_s8 = sld [smem:[#allocation59_spill]] }
 0x2be   : > { %12743 = vmatpush3.bf16.msra.mxu0 %v12742_v5  ;;  %v13560_v11 = vld [vmem:[#allocation8 + $0x4] ss:$8 sps:$4 sm:$0xff]   ;;  %v13562_v12 = vld [vmem:[#allocation8] ss:$8 sps:$4 sm:$0xff]   ;;  %v12748_v13 = vpack.c.bf16 %v1764_v9, %v1763_v8  ;;  %v13563_v14 = vld [vmem:[#allocation8 + $0x14] ss:$8 sps:$4 sm:$0xff]   ;;  %v12751_v18 = vpack.c.bf16 %v1766_v15, %v1765_v10  ;;  %1994 = vmatprep.mubr.bf16.mxu1 %v15392_v43 }
 0x2bf   : > { %12744 = vmatprep.subr.bf16.mxu0 %v15389_v0  ;;  %1962 = vmatprep.subr.bf16.mxu1 %v13560_v11  ;;  %v13565_v16 = vld [vmem:[#allocation8 + $0x10] ss:$8 sps:$4 sm:$0xff]   ;;  %v13566_v17 = vld [vmem:[#allocation8 + $0x24] ss:$8 sps:$4 sm:$0xff]   ;;  %v13568_v21 = vld [vmem:[#allocation8 + $0x20] ss:$8 sps:$4 sm:$0xff]  }
 0x2c0   : > { %1963 = vmatpush1.bf16.msra.mxu1 %v13562_v12  ;;  %v1767_v19 = vld [vmem:[#allocation5 + $0x40] sm:$0xff]  ;;  %v1768_v20 = vld [vmem:[#allocation5 + $0x48] sm:$0xff]  ;;  %v1769_v22 = vld [vmem:[#allocation5 + $0x50] sm:$0xff]  ;;  %s1754_s7 = scalar_select %p1753_p12, %s15695_s18, 1  ;;  %13542 = vset.pattern.permute.xlu1 %v15392_v43  ;;  %vm5635_vm1 = vcmask 1042432   ;;  %vm5631_vm2 = vcmask 23552  }
 0x2c1   : > { %1964 = vmatprep.subr.bf16.mxu1 %v13563_v14  ;;  %v1770_v23 = vld [vmem:[#allocation5 + $0x58] sm:$0xff]  ;;  %v12754_v25 = vpack.c.bf16 %v1768_v20, %v1767_v19  ;;  %v13572_v27 = vld [vmem:[#allocation8 + $0x44] ss:$8 sps:$4 sm:$0xff]   ;;  %v13574_v31 = vld [vmem:[#allocation8 + $0x40] ss:$8 sps:$4 sm:$0xff]   ;;  %s16698_s14 = sld [smem:[#allocation60_spill]] }
 0x2c2   : > { %12746 = vmatpush3.bf16.msra.mxu0 %v12745_v7  ;;  %v13569_v24 = vld [vmem:[#allocation8 + $0x34] ss:$8 sps:$4 sm:$0xff]   ;;  %v13571_v26 = vld [vmem:[#allocation8 + $0x30] ss:$8 sps:$4 sm:$0xff]   ;;  %v1771_v28 = vld [vmem:[#allocation5 + $0x60] sm:$0xff]  ;;  %v12757_v30 = vpack.c.bf16 %v1770_v23, %v1769_v22  ;;  %s11110_s26 = sshll.u32 %s1754_s7, 3 }
 0x2c3   : > { %12747 = vmatprep.subr.bf16.mxu0 %v15389_v0  ;;  %v1772_v29 = vld [vmem:[#allocation5 + $0x68] sm:$0xff]  ;;  %v13575_v32 = vld [vmem:[#allocation8 + $0x54] ss:$8 sps:$4 sm:$0xff]   ;;  %v13577_v36 = vld [vmem:[#allocation8 + $0x50] ss:$8 sps:$4 sm:$0xff]   ;;  %s16110_s28 = scalar_lea.vmem %s16695_s22, %s11110_s26  ;;  %s16699_s3 = sld [smem:[#allocation65_spill]] }
 0x2c4   : > { %1965 = vmatpush1.bf16.msra.mxu1 %v13565_v16  ;;  %v1773_v33 = vld [vmem:[#allocation5 + $0x70] sm:$0xff]  ;;  %v1774_v34 = vld [vmem:[#allocation5 + $0x78] sm:$0xff]  ;;  %v12760_v35 = vpack.c.bf16 %v1772_v29, %v1771_v28  ;;  %v13578_v37 = vld [vmem:[#allocation8 + $0x64] ss:$8 sps:$4 sm:$0xff]   ;;  %s16700_s17 = sld [smem:[#allocation62_spill]]  ;;  %s16701_s6 = sld [smem:[#allocation64_spill]] }
 0x2c5   : > { %1966 = vmatprep.subr.bf16.mxu1 %v13566_v17  ;;  %v12763_v38 = vpack.c.bf16 %v1774_v34, %v1773_v33  ;;  %v1758_v39 = vld [vmem:[%s16110_s28] sm:$0xff]  ;;  %v13580_v40 = vld [vmem:[#allocation8 + $0x60] ss:$8 sps:$4 sm:$0xff]   ;;  %s16702_s0 = sld [smem:[#allocation67_spill]]  ;;  %s16703_s12 = sld [smem:[#allocation66_spill]]  ;;  %vm5902_vm4 = vcmask 1040384  }
 0x2c6   : > { %12749 = vmatpush3.bf16.msra.mxu0 %v12748_v13  ;;  %v13581_v41 = vld [vmem:[#allocation8 + $0x74] ss:$8 sps:$4 sm:$0xff]   ;;  %v13583_v42 = vld [vmem:[#allocation8 + $0x70] ss:$8 sps:$4 sm:$0xff]   ;;  %v2005_v44 = vld [vmem:[#allocation10] sm:$0xff]  ;;  %5516 = vperm.xlu1 %13542, %v1758_v39   ;;  %s15395_s15 = smov 125  }
 0x2c7   : > { %12750 = vmatprep.subr.bf16.mxu0 %v15389_v0  ;;  %v2009_v45 = vld [vmem:[#allocation10 + $0x20] sm:$0xff]  ;;  %v16116_v46 = vld [vmem:[#allocation10 + $0x8] sm:$0xff]  ;;  %s15396_s22 = smov 122   ;;  %s16704_s7 = sld [smem:[#allocation68_spill]]  ;;  %vm5904_vm5 = vcmask 1041408   ;;  %vm5907_vm6 = vcmask 1043456  }
 0x2c8   : > { %1967 = vmatpush1.bf16.msra.mxu1 %v13568_v21  ;;  %v11128_v47 = vcombine.low %v2005_v44, %v2009_v45  ;;  %v11129_v48 = vcombine.high %v2005_v44, %v2009_v45  ;;  %v16118_v49 = vld [vmem:[#allocation10 + $0x28] sm:$0xff]  ;;  %v2013_v50 = vld [vmem:[#allocation10 + $0x40] sm:$0xff]  ;;  %s16705_s26 = sld [smem:[#allocation70_spill]]  ;;  %vm5909_vm7 = vcmask 1044480   ;;  %vm5911_vm8 = vcmask 1045504   ;;  %p16719_p2 = scmp.ne.s32.totalorder %s16648_s2, 0 }
 0x2c9   : > { %1968 = vmatprep.subr.bf16.mxu1 %v13569_v24  ;;  %v2017_v51 = vld [vmem:[#allocation10 + $0x60] sm:$0xff]  ;;  %v11130_v52 = vcombine.low %v16116_v46, %v16118_v49  ;;  %v11131_v53 = vcombine.high %v16116_v46, %v16118_v49  ;;  %v2014_v45 = vld [vmem:[#allocation10 + $0x48] sm:$0xff]  ;;  %vm5913_vm9 = vcmask 1046528   ;;  %vm10463_vm12 = vcmask 130048  }
 0x2ca   : > { %12752 = vmatpush3.bf16.msra.mxu0 %v12751_v18  ;;  %v11137_v54 = vcombine.high %v2013_v50, %v2017_v51  ;;  %v11136_v55 = vcombine.low %v2013_v50, %v2017_v51  ;;  %v2021_v56 = vld [vmem:[#allocation10 + $0x80] sm:$0xff] }
 0x2cb   : > { %12753 = vmatprep.subr.bf16.mxu0 %v15389_v0  ;;  %v2025_v57 = vld [vmem:[#allocation10 + $0xa0] sm:$0xff] }
 0x2cc   : > { %1969 = vmatpush1.bf16.msra.mxu1 %v13571_v26  ;;  %v11145_v58 = vcombine.high %v2021_v56, %v2025_v57  ;;  %v11144_v59 = vcombine.low %v2021_v56, %v2025_v57  ;;  %v2029_v60 = vld [vmem:[#allocation10 + $0xc0] sm:$0xff] }
 0x2cd   : > { %1970 = vmatprep.subr.bf16.mxu1 %v13572_v27  ;;  %v2033_v61 = vld [vmem:[#allocation10 + $0xe0] sm:$0xff] }
 0x2ce   : > { %12755 = vmatpush3.bf16.msra.mxu0 %v12754_v25  ;;  %v11153_v62 = vcombine.high %v2029_v60, %v2033_v61  ;;  %v11152_v63 = vcombine.low %v2029_v60, %v2033_v61  ;;  %v2037_v2 = vld [vmem:[#allocation10 + $0x100] sm:$0xff]  ;;  %v2034_v60 = vld [vmem:[#allocation10 + $0xe8] sm:$0xff] }
 0x2cf   : > { %12756 = vmatprep.subr.bf16.mxu0 %v15389_v0  ;;  %v2041_v3 = vld [vmem:[#allocation10 + $0x120] sm:$0xff] }
 0x2d0   : > { %1971 = vmatpush1.bf16.msra.mxu1 %v13574_v31  ;;  %v11161_v4 = vcombine.high %v2037_v2, %v2041_v3  ;;  %v11160_v5 = vcombine.low %v2037_v2, %v2041_v3  ;;  %v2045_v6 = vld [vmem:[#allocation10 + $0x140] sm:$0xff]  ;;  %v2042_v2 = vld [vmem:[#allocation10 + $0x128] sm:$0xff] }
 0x2d1   : > { %1972 = vmatprep.subr.bf16.mxu1 %v13575_v32  ;;  %v2049_v7 = vld [vmem:[#allocation10 + $0x160] sm:$0xff] }
 0x2d2   : > { %12758 = vmatpush3.bf16.msra.mxu0 %v12757_v30  ;;  %v11169_v8 = vcombine.high %v2045_v6, %v2049_v7  ;;  %v11168_v9 = vcombine.low %v2045_v6, %v2049_v7  ;;  %v2053_v10 = vld [vmem:[#allocation10 + $0x180] sm:$0xff]  ;;  %v2050_v6 = vld [vmem:[#allocation10 + $0x168] sm:$0xff] }
 0x2d3   : > { %12759 = vmatprep.subr.bf16.mxu0 %v15389_v0  ;;  %v2057_v11 = vld [vmem:[#allocation10 + $0x1a0] sm:$0xff]  ;;  %v2058_v7 = vld [vmem:[#allocation10 + $0x1a8] sm:$0xff] }
 0x2d4   : > { %1973 = vmatpush1.bf16.msra.mxu1 %v13577_v36  ;;  %v11177_v12 = vcombine.high %v2053_v10, %v2057_v11  ;;  %v11176_v13 = vcombine.low %v2053_v10, %v2057_v11  ;;  %v2061_v14 = vld [vmem:[#allocation10 + $0x1c0] sm:$0xff]  ;;  %v2062_v10 = vld [vmem:[#allocation10 + $0x1c8] sm:$0xff] }
 0x2d5   : > { %1974 = vmatprep.subr.bf16.mxu1 %v13578_v37  ;;  %v2065_v15 = vld [vmem:[#allocation10 + $0x1e0] sm:$0xff]  ;;  %v2066_v11 = vld [vmem:[#allocation10 + $0x1e8] sm:$0xff] }
 0x2d6   : > { %12761 = vmatpush3.bf16.msra.mxu0 %v12760_v35  ;;  %v11185_v16 = vcombine.high %v2061_v14, %v2065_v15  ;;  %v11184_v17 = vcombine.low %v2061_v14, %v2065_v15  ;;  %v2069_v18 = vld [vmem:[#allocation10 + $0x200] sm:$0xff]  ;;  %v2070_v14 = vld [vmem:[#allocation10 + $0x208] sm:$0xff] }
 0x2d7   : > { %12762 = vmatprep.subr.bf16.mxu0 %v15389_v0  ;;  %v2073_v19 = vld [vmem:[#allocation10 + $0x220] sm:$0xff]  ;;  %v2074_v15 = vld [vmem:[#allocation10 + $0x228] sm:$0xff] }
 0x2d8   : > { %1975 = vmatpush1.bf16.msra.mxu1 %v13580_v40  ;;  %v11193_v20 = vcombine.high %v2069_v18, %v2073_v19  ;;  %v11192_v21 = vcombine.low %v2069_v18, %v2073_v19  ;;  %v2077_v22 = vld [vmem:[#allocation10 + $0x240] sm:$0xff]  ;;  %v2078_v18 = vld [vmem:[#allocation10 + $0x248] sm:$0xff] }
 0x2d9   : > { %1976 = vmatprep.subr.bf16.mxu1 %v13581_v41  ;;  %v2081_v23 = vld [vmem:[#allocation10 + $0x260] sm:$0xff]  ;;  %v2082_v19 = vld [vmem:[#allocation10 + $0x268] sm:$0xff] }
 0x2da   : > { %12764 = vmatpush3.bf16.msra.mxu0 %v12763_v38  ;;  %v11201_v24 = vcombine.high %v2077_v22, %v2081_v23  ;;  %v11200_v25 = vcombine.low %v2077_v22, %v2081_v23  ;;  %v2085_v26 = vld [vmem:[#allocation10 + $0x280] sm:$0xff]  ;;  %v2086_v22 = vld [vmem:[#allocation10 + $0x288] sm:$0xff] }
 0x2db   : > { %2817 = vmatprep.subr.bf16.mxu0 %v11129_v48  ;;  %v2089_v27 = vld [vmem:[#allocation10 + $0x2a0] sm:$0xff]  ;;  %v2090_v23 = vld [vmem:[#allocation10 + $0x2a8] sm:$0xff] }
 0x2dc   : > { %1977 = vmatpush1.bf16.msra.mxu1 %v13583_v42  ;;  %v11209_v28 = vcombine.high %v2085_v26, %v2089_v27  ;;  %v11208_v29 = vcombine.low %v2085_v26, %v2089_v27  ;;  %v2093_v30 = vld [vmem:[#allocation10 + $0x2c0] sm:$0xff]  ;;  %v11111_v42 = vld [vmem:[%s16696_s9] ss:$0 sm:$0xff]  ;;  %v2094_v26 = vld [vmem:[#allocation10 + $0x2c8] sm:$0xff] }
 0x2dd   : > { %12342 = vmatmul.mubr.f32.vlgmr.msra.gmra.mrb[0].mxu0 %v1758_v39  ;;  %2858 = vmatprep.subr.bf16.mxu1 %v11131_v53  ;;  %v2097_v31 = vld [vmem:[#allocation10 + $0x2e0] sm:$0xff]  ;;  %v2022_v53 = vld [vmem:[#allocation10 + $0x88] sm:$0xff] }
 0x2de   : > { %2818 = vmatpush1.bf16.msra.mxu0 %v11128_v47  ;;  %v11217_v32 = vcombine.high %v2093_v30, %v2097_v31  ;;  %v11216_v33 = vcombine.low %v2093_v30, %v2097_v31  ;;  %v2101_v34 = vld [vmem:[#allocation10 + $0x300] sm:$0xff]  ;;  %v2018_v47 = vld [vmem:[#allocation10 + $0x68] sm:$0xff] }
 0x2df   : > { %2819 = vmatprep.subr.bf16.mxu0 %v11137_v54  ;;  %v2105_v35 = vld [vmem:[#allocation10 + $0x320] sm:$0xff]  ;;  %v2026_v54 = vld [vmem:[#allocation10 + $0xa8] sm:$0xff]  ;;  %v11139_v56 = vcombine.high %v2014_v45, %v2018_v47  ;;  %v11138_v57 = vcombine.low %v2014_v45, %v2018_v47 }
 0x2e0   : > { %v11225_v36 = vcombine.high %v2101_v34, %v2105_v35  ;;  %v11224_v37 = vcombine.low %v2101_v34, %v2105_v35  ;;  %v2109_v38 = vld [vmem:[#allocation10 + $0x340] sm:$0xff]  ;;  %v11146_v61 = vcombine.low %v2022_v53, %v2026_v54  ;;  %v2098_v27 = vld [vmem:[#allocation10 + $0x2e8] sm:$0xff] }
 0x2e1   : > { %v2113_v39 = vld [vmem:[#allocation10 + $0x360] sm:$0xff]  ;;  %v2102_v30 = vld [vmem:[#allocation10 + $0x308] sm:$0xff] }
 0x2e2   : > { %2820 = vmatpush1.bf16.msra.mxu0 %v11136_v55  ;;  %v11233_v40 = vcombine.high %v2109_v38, %v2113_v39  ;;  %v11232_v41 = vcombine.low %v2109_v38, %v2113_v39  ;;  %v2106_v31 = vld [vmem:[#allocation10 + $0x328] sm:$0xff]  ;;  %v2117_v39 = vld [vmem:[#allocation10 + $0x380] sm:$0xff] }
 0x2e3   : > { %2821 = vmatprep.subr.bf16.mxu0 %v11145_v58  ;;  %v11147_v58 = vcombine.high %v2022_v53, %v2026_v54  ;;  %v2110_v34 = vld [vmem:[#allocation10 + $0x348] sm:$0xff] }
 0x2e4   : > { %v2114_v35 = vld [vmem:[#allocation10 + $0x368] sm:$0xff] }
 0x2e5   : > { %v11234_v38 = vcombine.low %v2110_v34, %v2114_v35  ;;  %v2126_v53 = vld [vmem:[#allocation10 + $0x3c8] sm:$0xff] }
 0x2e6   : > { %2822 = vmatpush1.bf16.msra.mxu0 %v11144_v59  ;;  %v2030_v59 = vld [vmem:[#allocation10 + $0xc8] sm:$0xff] }
 0x2e7   : > { %2823 = vmatprep.subr.bf16.mxu0 %v11153_v62  ;;  %v11155_v62 = vcombine.high %v2030_v59, %v2034_v60  ;;  %v11154_v3 = vcombine.low %v2030_v59, %v2034_v60  ;;  %v2007_v59 = vld [vmem:[#allocation10 + $0x10] sm:$0xff] }
 0x2e8   : > { %v2011_v60 = vld [vmem:[#allocation10 + $0x30] sm:$0xff] }
 0x2ea   : > { %2824 = vmatpush1.bf16.msra.mxu0 %v11152_v63  ;;  %v2038_v63 = vld [vmem:[#allocation10 + $0x108] sm:$0xff] }
 0x2eb   : > { %2825 = vmatprep.subr.bf16.mxu0 %v11161_v4  ;;  %v11163_v4 = vcombine.high %v2038_v63, %v2042_v2  ;;  %v11162_v46 = vcombine.low %v2038_v63, %v2042_v2  ;;  %v2012_v63 = vld [vmem:[#allocation10 + $0x38] sm:$0xff]  ;;  %v11132_v2 = vcombine.low %v2007_v59, %v2011_v60 }
 0x2ee   : > { %2826 = vmatpush1.bf16.msra.mxu0 %v11160_v5  ;;  %v2046_v5 = vld [vmem:[#allocation10 + $0x148] sm:$0xff] }
 0x2ef   : > { %2827 = vmatprep.subr.bf16.mxu0 %v11169_v8  ;;  %v11171_v49 = vcombine.high %v2046_v5, %v2050_v6  ;;  %v11170_v8 = vcombine.low %v2046_v5, %v2050_v6  ;;  %v1872_v5 = vlaneseq }
 0x2f1   : > { %v16128_v6 = vshrl.u32 %v1872_v5, 7 }
 0x2f2   : > { %2828 = vmatpush1.bf16.msra.mxu0 %v11168_v9 }
 0x2f3   : > { %2829 = vmatprep.subr.bf16.mxu0 %v11177_v12 }
 0x2f6   : > { %2830 = vmatpush1.bf16.msra.mxu0 %v11176_v13  ;;  %v11187_v13 = vcombine.high %v2062_v10, %v2066_v11 }
 0x2f7   : > { %2831 = vmatprep.subr.bf16.mxu0 %v11185_v16  ;;  %v11186_v16 = vcombine.low %v2062_v10, %v2066_v11 }
 0x2fa   : > { %2832 = vmatpush1.bf16.msra.mxu0 %v11184_v17  ;;  %v11195_v17 = vcombine.high %v2070_v14, %v2074_v15 }
 0x2fb   : > { %2833 = vmatprep.subr.bf16.mxu0 %v11193_v20  ;;  %v11194_v20 = vcombine.low %v2070_v14, %v2074_v15 }
 0x2fe   : > { %2834 = vmatpush1.bf16.msra.mxu0 %v11192_v21  ;;  %v11203_v21 = vcombine.high %v2078_v18, %v2082_v19 }
 0x2ff   : > { %2835 = vmatprep.subr.bf16.mxu0 %v11201_v24  ;;  %v11202_v24 = vcombine.low %v2078_v18, %v2082_v19  ;;  %v2019_v18 = vld [vmem:[#allocation10 + $0x70] sm:$0xff]  ;;  %v2016_v19 = vld [vmem:[#allocation10 + $0x58] sm:$0xff] }
 0x302   : > { %2836 = vmatpush1.bf16.msra.mxu0 %v11200_v25  ;;  %v11211_v25 = vcombine.high %v2086_v22, %v2090_v23 }
 0x303   : > { %2837 = vmatprep.subr.bf16.mxu0 %v11209_v28  ;;  %v11210_v28 = vcombine.low %v2086_v22, %v2090_v23  ;;  %v2023_v23 = vld [vmem:[#allocation10 + $0x90] sm:$0xff] }
 0x306   : > { %2838 = vmatpush1.bf16.msra.mxu0 %v11208_v29  ;;  %v11219_v29 = vcombine.high %v2094_v26, %v2098_v27 }
 0x307   : > { %2839 = vmatprep.subr.bf16.mxu0 %v11217_v32  ;;  %v11218_v32 = vcombine.low %v2094_v26, %v2098_v27  ;;  %v2027_v26 = vld [vmem:[#allocation10 + $0xb0] sm:$0xff]  ;;  %v2024_v27 = vld [vmem:[#allocation10 + $0x98] sm:$0xff] }
 0x30a   : > { %2840 = vmatpush1.bf16.msra.mxu0 %v11216_v33  ;;  %v11227_v33 = vcombine.high %v2102_v30, %v2106_v31 }
 0x30b   : > { %2841 = vmatprep.subr.bf16.mxu0 %v11225_v36  ;;  %v11226_v36 = vcombine.low %v2102_v30, %v2106_v31  ;;  %v11149_v31 = vcombine.high %v2023_v23, %v2027_v26 }
 0x30e   : > { %2842 = vmatpush1.bf16.msra.mxu0 %v11224_v37  ;;  %v11235_v37 = vcombine.high %v2110_v34, %v2114_v35  ;;  %v2035_v34 = vld [vmem:[#allocation10 + $0xf0] sm:$0xff]  ;;  %v2032_v35 = vld [vmem:[#allocation10 + $0xd8] sm:$0xff] }
 0x30f   : > { %2843 = vmatprep.subr.bf16.mxu0 %v11233_v40  ;;  %v2121_v40 = vld [vmem:[#allocation10 + $0x3a0] sm:$0xff] }
 0x310   : > { %v11240_v45 = vcombine.low %v2117_v39, %v2121_v40 }
 0x312   : > { %2844 = vmatpush1.bf16.msra.mxu0 %v11232_v41  ;;  %v2118_v41 = vld [vmem:[#allocation10 + $0x388] sm:$0xff] }
 0x3b0   : > { %v1848_v44 = vpop.f32.mrb[0].mxu0 }
 0x3b1   : > { %v1849_v48 = vadd.f32 %v11111_v42, %v1848_v44  ;;  %v12343_v50 = vpop.f32.mrb[1].mxu0  ;;  %v11241_v42 = vcombine.high %v2117_v39, %v2121_v40  ;;  %v2122_v44 = vld [vmem:[#allocation10 + $0x3a8] sm:$0xff] }
 0x3b2   : > { %v11242_v47 = vcombine.low %v2118_v41, %v2122_v44  ;;  %v2125_v50 = vld [vmem:[#allocation10 + $0x3c0] sm:$0xff] }
 0x3b3   : > { %v1852_v51 = vmax.f32 %v1849_v48, 0.0  ;;  %v11243_v48 = vcombine.high %v2118_v41, %v2122_v44  ;;  %2845 = vmatprep.subr.bf16.mxu0 %v11241_v42  ;;  %v2039_v41 = vld [vmem:[#allocation10 + $0x110] sm:$0xff]  ;;  %v2040_v44 = vld [vmem:[#allocation10 + $0x118] sm:$0xff] }
 0x3b4   : > { %2846 = vmatpush1.bf16.msra.mxu0 %v11240_v45  ;;  %v2043_v42 = vld [vmem:[#allocation10 + $0x130] sm:$0xff]  ;;  %v2044_v45 = vld [vmem:[#allocation10 + $0x138] sm:$0xff] }
 0x3b5   : > { %v1869_v55 = vpack.c.bf16 %v1852_v51, %v1852_v51  ;;  %v2129_v51 = vld [vmem:[#allocation10 + $0x3e0] sm:$0xff] }
 0x3b6   : > { %v11249_v54 = vcombine.high %v2125_v50, %v2129_v51 }
 0x3b7   : > { %1995 = vmatmul.mubr.bf16.vlgmr.msra.gmra.mrb[0].mxu1 %v1869_v55  ;;  %v2130_v55 = vld [vmem:[#allocation10 + $0x3e8] sm:$0xff] }
 0x3b8   : > { %2859 = vmatpush1.bf16.msra.mxu1 %v11130_v52  ;;  %v2054_v52 = vld [vmem:[#allocation10 + $0x188] sm:$0xff]  ;;  %2847 = vmatprep.subr.bf16.mxu0 %v11249_v54  ;;  %v2051_v54 = vld [vmem:[#allocation10 + $0x170] sm:$0xff] }
 0x3b9   : > { %2860 = vmatprep.subr.bf16.mxu1 %v11139_v56  ;;  %v11179_v9 = vcombine.high %v2054_v52, %v2058_v7  ;;  %v11178_v12 = vcombine.low %v2054_v52, %v2058_v7  ;;  %v11248_v56 = vcombine.low %v2125_v50, %v2129_v51  ;;  %v16135_v52 = vsub.s32 1, %v16128_v6 }
 0x3ba   : > { %v11165_v50 = vcombine.high %v2039_v41, %v2043_v42  ;;  %v11167_v51 = vcombine.high %v2040_v44, %v2044_v45 }
 0x3bb   : > { %2848 = vmatpush1.bf16.msra.mxu0 %v11248_v56  ;;  %v2052_v56 = vld [vmem:[#allocation10 + $0x178] sm:$0xff] }
 0x3bc   : > { %2861 = vmatpush1.bf16.msra.mxu1 %v11138_v57  ;;  %v11250_v57 = vcombine.low %v2126_v53, %v2130_v55 }
 0x3bd   : > { %2862 = vmatprep.subr.bf16.mxu1 %v11147_v58  ;;  %v11251_v58 = vcombine.high %v2126_v53, %v2130_v55  ;;  %v2047_v53 = vld [vmem:[#allocation10 + $0x150] sm:$0xff]  ;;  %v2048_v55 = vld [vmem:[#allocation10 + $0x158] sm:$0xff] }
 0x3c0   : > { %2863 = vmatpush1.bf16.msra.mxu1 %v11146_v61  ;;  %v2008_v61 = vld [vmem:[#allocation10 + $0x18] sm:$0xff] }
 0x3c1   : > { %2864 = vmatprep.subr.bf16.mxu1 %v11155_v62  ;;  %v11133_v62 = vcombine.high %v2007_v59, %v2011_v60  ;;  %v11173_v59 = vcombine.high %v2047_v53, %v2051_v54  ;;  %v11175_v60 = vcombine.high %v2048_v55, %v2052_v56 }
 0x3c3   : > { %2899 = vmatprep.subr.bf16.mxu0 %v11133_v62  ;;  %v2059_v62 = vld [vmem:[#allocation10 + $0x1b0] sm:$0xff] }
 0x3c4   : > { %2865 = vmatpush1.bf16.msra.mxu1 %v11154_v3  ;;  %v11134_v3 = vcombine.low %v2008_v61, %v2012_v63 }
 0x3c5   : > { %2866 = vmatprep.subr.bf16.mxu1 %v11163_v4  ;;  %v11135_v4 = vcombine.high %v2008_v61, %v2012_v63  ;;  %v2055_v61 = vld [vmem:[#allocation10 + $0x190] sm:$0xff]  ;;  %v2056_v63 = vld [vmem:[#allocation10 + $0x198] sm:$0xff] }
 0x3c6   : > { %v11181_v5 = vcombine.high %v2055_v61, %v2059_v62 }
 0x3c8   : > { %2867 = vmatpush1.bf16.msra.mxu1 %v11162_v46  ;;  %v16131_v46 = vsub.s32 0, %v16128_v6 }
 0x3c9   : > { %2868 = vmatprep.subr.bf16.mxu1 %v11171_v49  ;;  %v1870_v49 = vld [vmem:[%s16697_s8] sm:$0x3] }
 0x3ca   : > { %v1875_v7 = vrot.slane %v1870_v49, %v16131_v46 }
 0x3cc   : > { %2869 = vmatpush1.bf16.msra.mxu1 %v11170_v8  ;;  %v1879_v8 = vrot.slane %v1870_v49, %v16135_v52 }
 0x3cd   : > { %2870 = vmatprep.subr.bf16.mxu1 %v11179_v9 }
 0x3d0   : > { %2871 = vmatpush1.bf16.msra.mxu1 %v11178_v12 }
 0x3d1   : > { %2872 = vmatprep.subr.bf16.mxu1 %v11187_v13 }
 0x3d4   : > { %2873 = vmatpush1.bf16.msra.mxu1 %v11186_v16 }
 0x3d5   : > { %2874 = vmatprep.subr.bf16.mxu1 %v11195_v17  ;;  %v2015_v17 = vld [vmem:[#allocation10 + $0x50] sm:$0xff] }
 0x3d8   : > { %2875 = vmatpush1.bf16.msra.mxu1 %v11194_v20  ;;  %v2020_v20 = vld [vmem:[#allocation10 + $0x78] sm:$0xff] }
 0x3d9   : > { %2876 = vmatprep.subr.bf16.mxu1 %v11203_v21  ;;  %v11142_v30 = vcombine.low %v2016_v19, %v2020_v20 }
 0x3dc   : > { %2877 = vmatpush1.bf16.msra.mxu1 %v11202_v24  ;;  %v11141_v24 = vcombine.high %v2015_v17, %v2019_v18 }
 0x3dd   : > { %2878 = vmatprep.subr.bf16.mxu1 %v11211_v25  ;;  %v11143_v25 = vcombine.high %v2016_v19, %v2020_v20 }
 0x3e0   : > { %2879 = vmatpush1.bf16.msra.mxu1 %v11210_v28  ;;  %v2028_v28 = vld [vmem:[#allocation10 + $0xb8] sm:$0xff] }
 0x3e1   : > { %2880 = vmatprep.subr.bf16.mxu1 %v11219_v29  ;;  %v11140_v29 = vcombine.low %v2015_v17, %v2019_v18  ;;  %v2072_v17 = vld [vmem:[#allocation10 + $0x218] sm:$0xff] }
 0x3e2   : > { %v2076_v18 = vld [vmem:[#allocation10 + $0x238] sm:$0xff] }
 0x3e4   : > { %2881 = vmatpush1.bf16.msra.mxu1 %v11218_v32  ;;  %v11151_v32 = vcombine.high %v2024_v27, %v2028_v28 }
 0x3e5   : > { %2882 = vmatprep.subr.bf16.mxu1 %v11227_v33  ;;  %v2031_v33 = vld [vmem:[#allocation10 + $0xd0] sm:$0xff] }
 0x3e6   : > { %v11157_v39 = vcombine.high %v2031_v33, %v2035_v34 }
 0x3e8   : > { %2883 = vmatpush1.bf16.msra.mxu1 %v11226_v36  ;;  %v2036_v36 = vld [vmem:[#allocation10 + $0xf8] sm:$0xff] }
 0x3e9   : > { %2884 = vmatprep.subr.bf16.mxu1 %v11235_v37  ;;  %v11148_v37 = vcombine.low %v2023_v23, %v2027_v26  ;;  %v11159_v40 = vcombine.high %v2032_v35, %v2036_v36  ;;  %v11199_v23 = vcombine.high %v2072_v17, %v2076_v18  ;;  %v2080_v26 = vld [vmem:[#allocation10 + $0x258] sm:$0xff] }
 0x3ec   : > { %2885 = vmatpush1.bf16.msra.mxu1 %v11234_v38  ;;  %v11150_v38 = vcombine.low %v2024_v27, %v2028_v28  ;;  %v2084_v27 = vld [vmem:[#allocation10 + $0x278] sm:$0xff] }
 0x3ed   : > { %2886 = vmatprep.subr.bf16.mxu1 %v11243_v48  ;;  %v11158_v48 = vcombine.low %v2032_v35, %v2036_v36  ;;  %v2092_v35 = vld [vmem:[#allocation10 + $0x2b8] sm:$0xff] }
 0x3f0   : > { %2887 = vmatpush1.bf16.msra.mxu1 %v11242_v47  ;;  %v11156_v47 = vcombine.low %v2031_v33, %v2035_v34  ;;  %v2091_v33 = vld [vmem:[#allocation10 + $0x2b0] sm:$0xff]  ;;  %v2088_v34 = vld [vmem:[#allocation10 + $0x298] sm:$0xff] }
 0x3f1   : > { %2888 = vmatprep.subr.bf16.mxu1 %v11251_v58  ;;  %v11166_v58 = vcombine.low %v2040_v44, %v2044_v45  ;;  %v2100_v44 = vld [vmem:[#allocation10 + $0x2f8] sm:$0xff] }
 0x3f4   : > { %2889 = vmatpush1.bf16.msra.mxu1 %v11250_v57  ;;  %v11164_v57 = vcombine.low %v2039_v41, %v2043_v42  ;;  %v2099_v41 = vld [vmem:[#allocation10 + $0x2f0] sm:$0xff]  ;;  %v2096_v42 = vld [vmem:[#allocation10 + $0x2d8] sm:$0xff] }
 0x3f5   : > { %2940 = vmatprep.subr.bf16.mxu1 %v11135_v4  ;;  %v11174_v4 = vcombine.low %v2048_v55, %v2052_v56  ;;  %v2108_v55 = vld [vmem:[#allocation10 + $0x338] sm:$0xff] }
 0x48a   : > { %v1996_v9 = vpop.f32.mrb[0].mxu1 }
 0x48b   : > { %v1997_v10 = vadd.f32 %v1996_v9, %v1875_v7  ;;  %v1998_v11 = vpop.f32.mrb[1].mxu1  ;;  %v2063_v7 = vld [vmem:[#allocation10 + $0x1d0] sm:$0xff]  ;;  %v2064_v9 = vld [vmem:[#allocation10 + $0x1d8] sm:$0xff] }
 0x48c   : > { %v1999_v12 = vadd.f32 %v1998_v11, %v1879_v8  ;;  %v2000_v13 = vpop.f32.mrb[2].mxu1  ;;  %v2067_v8 = vld [vmem:[#allocation10 + $0x1f0] sm:$0xff]  ;;  %v11180_v11 = vcombine.low %v2055_v61, %v2059_v62  ;;  %v2112_v62 = vld [vmem:[#allocation10 + $0x358] sm:$0xff] }
 0x48d   : > { %v2003_v14 = vmax.f32 %v1997_v10, 0.0  ;;  %v2001_v15 = vpop.f32.mrb[3].mxu1  ;;  %v2068_v10 = vld [vmem:[#allocation10 + $0x1f8] sm:$0xff]  ;;  %v11189_v13 = vcombine.high %v2063_v7, %v2067_v8  ;;  %v11188_v19 = vcombine.low %v2063_v7, %v2067_v8  ;;  %v2115_v61 = vld [vmem:[#allocation10 + $0x370] sm:$0xff] }
 0x48e   : > { %v2004_v16 = vmax.f32 %v1999_v12, 0.0  ;;  %v2071_v15 = vld [vmem:[#allocation10 + $0x210] sm:$0xff]  ;;  %v11190_v20 = vcombine.low %v2064_v9, %v2068_v10  ;;  %v2120_v8 = vld [vmem:[#allocation10 + $0x398] sm:$0xff] }
 0x48f   : > { %v16139_v22 = vpack.c.bf16 %v2003_v14, %v2003_v14  ;;  %v11191_v14 = vcombine.high %v2064_v9, %v2068_v10  ;;  %v2123_v7 = vld [vmem:[#allocation10 + $0x3b0] sm:$0xff]  ;;  %v2124_v9 = vld [vmem:[#allocation10 + $0x3b8] sm:$0xff] }
 0x490   : > { %v2134_v21 = vpack.c.bf16 %v2004_v16, %v2004_v16  ;;  %v2075_v16 = vld [vmem:[#allocation10 + $0x230] sm:$0xff] }
 0x491   : > { %v11196_v28 = vcombine.low %v2071_v15, %v2075_v16 }
 0x492   : > { %2849 = vmatprep.mubr.bf16.mxu0 %v2134_v21  ;;  %2890 = vmatprep.mubr.bf16.mxu1 %v2134_v21 }
 0x493   : > { %2850 = vmatmul.mubr.bf16.vlgmr.msra.gmra.mrb[4].mxu0 %v16139_v22  ;;  %2891 = vmatmul.mubr.bf16.vlgmr.msra.gmra.mrb[4].mxu1 %v16139_v22 }
 0x494   : > { %2900 = vmatpush1.bf16.msra.mxu0 %v11132_v2  ;;  %2941 = vmatpush1.bf16.msra.mxu1 %v11134_v3  ;;  %v2060_v2 = vld [vmem:[#allocation10 + $0x1b8] sm:$0xff]  ;;  %v11172_v3 = vcombine.low %v2047_v53, %v2051_v54  ;;  %v2107_v53 = vld [vmem:[#allocation10 + $0x330] sm:$0xff] }
 0x495   : > { %2931 = vmatprep.mubr.bf16.mxu0 %v2134_v21  ;;  %2972 = vmatprep.mubr.bf16.mxu1 %v2134_v21  ;;  %v11183_v49 = vcombine.high %v2056_v63, %v2060_v2  ;;  %v11182_v12 = vcombine.low %v2056_v63, %v2060_v2  ;;  %v11197_v21 = vcombine.high %v2071_v15, %v2075_v16  ;;  %v2104_v54 = vld [vmem:[#allocation10 + $0x318] sm:$0xff]  ;;  %v2131_v15 = vld [vmem:[#allocation10 + $0x3f0] sm:$0xff] }
 0x496   : > { %2901 = vmatprep.subr.bf16.mxu0 %v11141_v24  ;;  %2942 = vmatprep.subr.bf16.mxu1 %v11143_v25  ;;  %v2079_v24 = vld [vmem:[#allocation10 + $0x250] sm:$0xff]  ;;  %v2116_v63 = vld [vmem:[#allocation10 + $0x378] sm:$0xff] }
 0x497   : > { %v2083_v25 = vld [vmem:[#allocation10 + $0x270] sm:$0xff]  ;;  %v2128_v16 = vld [vmem:[#allocation10 + $0x3d8] sm:$0xff] }
 0x498   : > { %2902 = vmatpush1.bf16.msra.mxu0 %v11140_v29  ;;  %2943 = vmatpush1.bf16.msra.mxu1 %v11142_v30  ;;  %v11198_v29 = vcombine.low %v2072_v17, %v2076_v18  ;;  %v11205_v30 = vcombine.high %v2079_v24, %v2083_v25  ;;  %v11204_v36 = vcombine.low %v2079_v24, %v2083_v25  ;;  %v2132_v17 = vld [vmem:[#allocation10 + $0x3f8] sm:$0xff]  ;;  %v13586_v25 = vld [vmem:[#allocation11 + $0x4] ss:$16 sps:$4 sm:$0xff]  }
 0x499   : > { %2903 = vmatprep.subr.bf16.mxu0 %v11149_v31  ;;  %2944 = vmatprep.subr.bf16.mxu1 %v11151_v32  ;;  %v11207_v31 = vcombine.high %v2080_v26, %v2084_v27  ;;  %v2087_v32 = vld [vmem:[#allocation10 + $0x290] sm:$0xff]  ;;  %v11254_v24 = vcombine.low %v2128_v16, %v2132_v17 }
 0x49a   : > { %v11212_v45 = vcombine.low %v2087_v32, %v2091_v33 }
 0x49c   : > { %2904 = vmatpush1.bf16.msra.mxu0 %v11148_v37  ;;  %2945 = vmatpush1.bf16.msra.mxu1 %v11150_v38  ;;  %v11206_v37 = vcombine.low %v2080_v26, %v2084_v27  ;;  %v11213_v38 = vcombine.high %v2087_v32, %v2091_v33  ;;  %v13589_v26 = vld [vmem:[#allocation11 + $0xc] ss:$16 sps:$4 sm:$0xff]   ;;  %v13584_v27 = vld [vmem:[#allocation11] ss:$16 sps:$4 sm:$0xff]   ;;  %v13593_v32 = vld [vmem:[#allocation11 + $0x28] ss:$16 sps:$4 sm:$0xff]  }
 0x49d   : > { %2905 = vmatprep.subr.bf16.mxu0 %v11157_v39  ;;  %2946 = vmatprep.subr.bf16.mxu1 %v11159_v40  ;;  %v11215_v39 = vcombine.high %v2088_v34, %v2092_v35  ;;  %v2095_v40 = vld [vmem:[#allocation10 + $0x2d0] sm:$0xff] }
 0x49e   : > { %v11220_v56 = vcombine.low %v2095_v40, %v2099_v41  ;;  %v13598_v33 = vld [vmem:[#allocation11 + $0x44] ss:$16 sps:$4 sm:$0xff]  }
 0x4a0   : > { %2906 = vmatpush1.bf16.msra.mxu0 %v11156_v47  ;;  %2947 = vmatpush1.bf16.msra.mxu1 %v11158_v48  ;;  %v11214_v47 = vcombine.low %v2088_v34, %v2092_v35  ;;  %v11221_v48 = vcombine.high %v2095_v40, %v2099_v41  ;;  %v13601_v34 = vld [vmem:[#allocation11 + $0x4c] ss:$16 sps:$4 sm:$0xff]   ;;  %v13596_v35 = vld [vmem:[#allocation11 + $0x40] ss:$16 sps:$4 sm:$0xff]   ;;  %v13610_v40 = vld [vmem:[#allocation11 + $0x84] ss:$16 sps:$4 sm:$0xff]  }
 0x4a1   : > { %2907 = vmatprep.subr.bf16.mxu0 %v11165_v50  ;;  %2948 = vmatprep.subr.bf16.mxu1 %v11167_v51  ;;  %v11223_v50 = vcombine.high %v2096_v42, %v2100_v44  ;;  %v2103_v51 = vld [vmem:[#allocation10 + $0x310] sm:$0xff]  ;;  %v13613_v41 = vld [vmem:[#allocation11 + $0x8c] ss:$16 sps:$4 sm:$0xff]  }
 0x4a2   : > { %v11228_v2 = vcombine.low %v2103_v51, %v2107_v53 }
 0x4a4   : > { %2908 = vmatpush1.bf16.msra.mxu0 %v11164_v57  ;;  %2949 = vmatpush1.bf16.msra.mxu1 %v11166_v58  ;;  %v11222_v57 = vcombine.low %v2096_v42, %v2100_v44  ;;  %v11229_v58 = vcombine.high %v2103_v51, %v2107_v53  ;;  %v13608_v42 = vld [vmem:[#allocation11 + $0x80] ss:$16 sps:$4 sm:$0xff]   ;;  %v13611_v44 = vld [vmem:[#allocation11 + $0x88] ss:$16 sps:$4 sm:$0xff]   ;;  %v13622_v51 = vld [vmem:[#allocation11 + $0xc4] ss:$16 sps:$4 sm:$0xff]  }
 0x4a5   : > { %2909 = vmatprep.subr.bf16.mxu0 %v11173_v59  ;;  %2950 = vmatprep.subr.bf16.mxu1 %v11175_v60  ;;  %v11231_v59 = vcombine.high %v2104_v54, %v2108_v55  ;;  %v2111_v60 = vld [vmem:[#allocation10 + $0x350] sm:$0xff]  ;;  %v13625_v53 = vld [vmem:[#allocation11 + $0xcc] ss:$16 sps:$4 sm:$0xff]  }
 0x4a6   : > { %v11236_v10 = vcombine.low %v2111_v60, %v2115_v61 }
 0x4a8   : > { %2910 = vmatpush1.bf16.msra.mxu0 %v11172_v3  ;;  %2951 = vmatpush1.bf16.msra.mxu1 %v11174_v4  ;;  %v11230_v3 = vcombine.low %v2104_v54, %v2108_v55  ;;  %v11237_v4 = vcombine.high %v2111_v60, %v2115_v61  ;;  %v13620_v54 = vld [vmem:[#allocation11 + $0xc0] ss:$16 sps:$4 sm:$0xff]   ;;  %v13623_v55 = vld [vmem:[#allocation11 + $0xc8] ss:$16 sps:$4 sm:$0xff]   ;;  %v13634_v60 = vld [vmem:[#allocation11 + $0x104] ss:$16 sps:$4 sm:$0xff]  }
 0x4a9   : > { %2911 = vmatprep.subr.bf16.mxu0 %v11181_v5  ;;  %2952 = vmatprep.subr.bf16.mxu1 %v11183_v49  ;;  %v11239_v5 = vcombine.high %v2112_v62, %v2116_v63  ;;  %v2119_v49 = vld [vmem:[#allocation10 + $0x390] sm:$0xff]  ;;  %v13637_v61 = vld [vmem:[#allocation11 + $0x10c] ss:$16 sps:$4 sm:$0xff]  }
 0x4aa   : > { %v11244_v18 = vcombine.low %v2119_v49, %v2123_v7 }
 0x4ac   : > { %2912 = vmatpush1.bf16.msra.mxu0 %v11180_v11  ;;  %2953 = vmatpush1.bf16.msra.mxu1 %v11182_v12  ;;  %v11238_v11 = vcombine.low %v2112_v62, %v2116_v63  ;;  %v11245_v12 = vcombine.high %v2119_v49, %v2123_v7  ;;  %v13632_v62 = vld [vmem:[#allocation11 + $0x100] ss:$16 sps:$4 sm:$0xff]   ;;  %v13635_v63 = vld [vmem:[#allocation11 + $0x108] ss:$16 sps:$4 sm:$0xff]   ;;  %v13646_v49 = vld [vmem:[#allocation11 + $0x144] ss:$16 sps:$4 sm:$0xff]  }
 0x4ad   : > { %2913 = vmatprep.subr.bf16.mxu0 %v11189_v13  ;;  %2954 = vmatprep.subr.bf16.mxu1 %v11191_v14  ;;  %v11247_v13 = vcombine.high %v2120_v8, %v2124_v9  ;;  %v2127_v14 = vld [vmem:[#allocation10 + $0x3d0] sm:$0xff]  ;;  %v13649_v7 = vld [vmem:[#allocation11 + $0x14c] ss:$16 sps:$4 sm:$0xff]  }
 0x4b0   : > { %2914 = vmatpush1.bf16.msra.mxu0 %v11188_v19  ;;  %2955 = vmatpush1.bf16.msra.mxu1 %v11190_v20  ;;  %v11246_v19 = vcombine.low %v2120_v8, %v2124_v9  ;;  %v11253_v20 = vcombine.high %v2127_v14, %v2131_v15  ;;  %v13644_v8 = vld [vmem:[#allocation11 + $0x140] ss:$16 sps:$4 sm:$0xff]   ;;  %v13647_v9 = vld [vmem:[#allocation11 + $0x148] ss:$16 sps:$4 sm:$0xff]  }
 0x4b1   : > { %2915 = vmatprep.subr.bf16.mxu0 %v11197_v21  ;;  %2956 = vmatprep.subr.bf16.mxu1 %v11199_v23  ;;  %v11255_v21 = vcombine.high %v2128_v16, %v2132_v17  ;;  %v11252_v23 = vcombine.low %v2127_v14, %v2131_v15  ;;  %v13658_v14 = vld [vmem:[#allocation11 + $0x184] ss:$16 sps:$4 sm:$0xff]   ;;  %v13661_v15 = vld [vmem:[#allocation11 + $0x18c] ss:$16 sps:$4 sm:$0xff]   ;;  %v13656_v16 = vld [vmem:[#allocation11 + $0x180] ss:$16 sps:$4 sm:$0xff]  }
 0x4b2   : > { %v13659_v17 = vld [vmem:[#allocation11 + $0x188] ss:$16 sps:$4 sm:$0xff]  }
 0x4b4   : > { %2916 = vmatpush1.bf16.msra.mxu0 %v11196_v28  ;;  %2957 = vmatpush1.bf16.msra.mxu1 %v11198_v29  ;;  %v13587_v28 = vld [vmem:[#allocation11 + $0x8] ss:$16 sps:$4 sm:$0xff]   ;;  %v13592_v29 = vld [vmem:[#allocation11 + $0x24] ss:$16 sps:$4 sm:$0xff]  }
 0x4b5   : > { %2917 = vmatprep.subr.bf16.mxu0 %v11205_v30  ;;  %2958 = vmatprep.subr.bf16.mxu1 %v11207_v31  ;;  %v13595_v30 = vld [vmem:[#allocation11 + $0x2c] ss:$16 sps:$4 sm:$0xff]   ;;  %v13590_v31 = vld [vmem:[#allocation11 + $0x20] ss:$16 sps:$4 sm:$0xff]  }
 0x4b8   : > { %2918 = vmatpush1.bf16.msra.mxu0 %v11204_v36  ;;  %2959 = vmatpush1.bf16.msra.mxu1 %v11206_v37  ;;  %v13599_v36 = vld [vmem:[#allocation11 + $0x48] ss:$16 sps:$4 sm:$0xff]   ;;  %v13604_v37 = vld [vmem:[#allocation11 + $0x64] ss:$16 sps:$4 sm:$0xff]  }
 0x4b9   : > { %2919 = vmatprep.subr.bf16.mxu0 %v11213_v38  ;;  %2960 = vmatprep.subr.bf16.mxu1 %v11215_v39  ;;  %v13607_v38 = vld [vmem:[#allocation11 + $0x6c] ss:$16 sps:$4 sm:$0xff]   ;;  %v13602_v39 = vld [vmem:[#allocation11 + $0x60] ss:$16 sps:$4 sm:$0xff]  }
 0x4bc   : > { %2920 = vmatpush1.bf16.msra.mxu0 %v11212_v45  ;;  %2961 = vmatpush1.bf16.msra.mxu1 %v11214_v47  ;;  %v13616_v45 = vld [vmem:[#allocation11 + $0xa4] ss:$16 sps:$4 sm:$0xff]   ;;  %v13619_v47 = vld [vmem:[#allocation11 + $0xac] ss:$16 sps:$4 sm:$0xff]  }
 0x4bd   : > { %2921 = vmatprep.subr.bf16.mxu0 %v11221_v48  ;;  %2962 = vmatprep.subr.bf16.mxu1 %v11223_v50  ;;  %v13614_v48 = vld [vmem:[#allocation11 + $0xa0] ss:$16 sps:$4 sm:$0xff]   ;;  %v13617_v50 = vld [vmem:[#allocation11 + $0xa8] ss:$16 sps:$4 sm:$0xff]  }
 0x4c0   : > { %2922 = vmatpush1.bf16.msra.mxu0 %v11220_v56  ;;  %2963 = vmatpush1.bf16.msra.mxu1 %v11222_v57  ;;  %v13628_v56 = vld [vmem:[#allocation11 + $0xe4] ss:$16 sps:$4 sm:$0xff]   ;;  %v13631_v57 = vld [vmem:[#allocation11 + $0xec] ss:$16 sps:$4 sm:$0xff]  }
 0x4c1   : > { %2923 = vmatprep.subr.bf16.mxu0 %v11229_v58  ;;  %2964 = vmatprep.subr.bf16.mxu1 %v11231_v59  ;;  %v13626_v58 = vld [vmem:[#allocation11 + $0xe0] ss:$16 sps:$4 sm:$0xff]   ;;  %v13629_v59 = vld [vmem:[#allocation11 + $0xe8] ss:$16 sps:$4 sm:$0xff]  }
 0x4c4   : > { %2924 = vmatpush1.bf16.msra.mxu0 %v11228_v2  ;;  %2965 = vmatpush1.bf16.msra.mxu1 %v11230_v3  ;;  %v13640_v2 = vld [vmem:[#allocation11 + $0x124] ss:$16 sps:$4 sm:$0xff]   ;;  %v13643_v3 = vld [vmem:[#allocation11 + $0x12c] ss:$16 sps:$4 sm:$0xff]  }
 0x4c5   : > { %2925 = vmatprep.subr.bf16.mxu0 %v11237_v4  ;;  %2966 = vmatprep.subr.bf16.mxu1 %v11239_v5  ;;  %v13638_v4 = vld [vmem:[#allocation11 + $0x120] ss:$16 sps:$4 sm:$0xff]   ;;  %v13641_v5 = vld [vmem:[#allocation11 + $0x128] ss:$16 sps:$4 sm:$0xff]  }
 0x4c8   : > { %2926 = vmatpush1.bf16.msra.mxu0 %v11236_v10  ;;  %2967 = vmatpush1.bf16.msra.mxu1 %v11238_v11  ;;  %v13652_v10 = vld [vmem:[#allocation11 + $0x164] ss:$16 sps:$4 sm:$0xff]   ;;  %v13655_v11 = vld [vmem:[#allocation11 + $0x16c] ss:$16 sps:$4 sm:$0xff]  }
 0x4c9   : > { %2927 = vmatprep.subr.bf16.mxu0 %v11245_v12  ;;  %2968 = vmatprep.subr.bf16.mxu1 %v11247_v13  ;;  %v13650_v12 = vld [vmem:[#allocation11 + $0x160] ss:$16 sps:$4 sm:$0xff]   ;;  %v13653_v13 = vld [vmem:[#allocation11 + $0x168] ss:$16 sps:$4 sm:$0xff]  }
 0x4cc   : > { %2928 = vmatpush1.bf16.msra.mxu0 %v11244_v18  ;;  %2969 = vmatpush1.bf16.msra.mxu1 %v11246_v19  ;;  %v13664_v18 = vld [vmem:[#allocation11 + $0x1a4] ss:$16 sps:$4 sm:$0xff]   ;;  %v13667_v19 = vld [vmem:[#allocation11 + $0x1ac] ss:$16 sps:$4 sm:$0xff]  }
 0x4cd   : > { %2929 = vmatprep.subr.bf16.mxu0 %v11253_v20  ;;  %2970 = vmatprep.subr.bf16.mxu1 %v11255_v21  ;;  %v13662_v20 = vld [vmem:[#allocation11 + $0x1a0] ss:$16 sps:$4 sm:$0xff]   ;;  %v13665_v21 = vld [vmem:[#allocation11 + $0x1a8] ss:$16 sps:$4 sm:$0xff]  }
 0x4d0   : > { %2930 = vmatpush1.bf16.msra.mxu0 %v11252_v23  ;;  %2971 = vmatpush1.bf16.msra.mxu1 %v11254_v24  ;;  %v13670_v23 = vld [vmem:[#allocation11 + $0x1c4] ss:$16 sps:$4 sm:$0xff]   ;;  %v13673_v24 = vld [vmem:[#allocation11 + $0x1cc] ss:$16 sps:$4 sm:$0xff]  }
 0x4d1   : > { %4595 = vmatprep.subr.bf16.mxu0 %v13586_v25  ;;  %4759 = vmatprep.subr.bf16.mxu1 %v13589_v26  ;;  %v13668_v25 = vld [vmem:[#allocation11 + $0x1c0] ss:$16 sps:$4 sm:$0xff]   ;;  %v13671_v26 = vld [vmem:[#allocation11 + $0x1c8] ss:$16 sps:$4 sm:$0xff]  }
 0x4d3   : > { %2932 = vmatmul.mubr.bf16.vlgmr.msra.gmra.mrb[8].mxu0 %v16139_v22  ;;  %2973 = vmatmul.mubr.bf16.vlgmr.msra.gmra.mrb[8].mxu1 %v16139_v22  ;;  %v13605_v22 = vld [vmem:[#allocation11 + $0x68] ss:$16 sps:$4 sm:$0xff]  }
 0x4d4   : > { %4596 = vmatpush1.bf16.msra.mxu0 %v13584_v27  ;;  %4760 = vmatpush1.bf16.msra.mxu1 %v13587_v28  ;;  %v13676_v27 = vld [vmem:[#allocation11 + $0x1e4] ss:$16 sps:$4 sm:$0xff]   ;;  %v13679_v28 = vld [vmem:[#allocation11 + $0x1ec] ss:$16 sps:$4 sm:$0xff]  }
 0x4d5   : > { %4597 = vmatprep.subr.bf16.mxu0 %v13592_v29  ;;  %4761 = vmatprep.subr.bf16.mxu1 %v13595_v30  ;;  %v13674_v29 = vld [vmem:[#allocation11 + $0x1e0] ss:$16 sps:$4 sm:$0xff]   ;;  %v13677_v30 = vld [vmem:[#allocation11 + $0x1e8] ss:$16 sps:$4 sm:$0xff]  }
 0x4d8   : > { %4598 = vmatpush1.bf16.msra.mxu0 %v13590_v31  ;;  %4762 = vmatpush1.bf16.msra.mxu1 %v13593_v32  ;;  %v13682_v31 = vld [vmem:[#allocation11 + $0x204] ss:$16 sps:$4 sm:$0xff]   ;;  %v13685_v32 = vld [vmem:[#allocation11 + $0x20c] ss:$16 sps:$4 sm:$0xff]  }
 0x4d9   : > { %4599 = vmatprep.subr.bf16.mxu0 %v13598_v33  ;;  %4763 = vmatprep.subr.bf16.mxu1 %v13601_v34  ;;  %v16146_v33 = vld [vmem:[%s16698_s14] sm:$0xff]  ;;  %v16149_v34 = vsub.s32 3, %v16128_v6 }
 0x4dc   : > { %4600 = vmatpush1.bf16.msra.mxu0 %v13596_v35  ;;  %4764 = vmatpush1.bf16.msra.mxu1 %v13599_v36  ;;  %v2140_v35 = vrot.slane %v16146_v33, %v16131_v46  ;;  %v2144_v36 = vrot.slane %v16146_v33, %v16135_v52 }
 0x4dd   : > { %4601 = vmatprep.subr.bf16.mxu0 %v13604_v37  ;;  %4765 = vmatprep.subr.bf16.mxu1 %v13607_v38  ;;  %v2152_v37 = vrot.slane %v16146_v33, %v16149_v34 }
 0x4e0   : > { %4602 = vmatpush1.bf16.msra.mxu0 %v13602_v39  ;;  %4766 = vmatpush1.bf16.msra.mxu1 %v13605_v22 }
 0x4e1   : > { %4603 = vmatprep.subr.bf16.mxu0 %v13610_v40  ;;  %4767 = vmatprep.subr.bf16.mxu1 %v13613_v41 }
 0x4e4   : > { %4604 = vmatpush1.bf16.msra.mxu0 %v13608_v42  ;;  %4768 = vmatpush1.bf16.msra.mxu1 %v13611_v44 }
 0x4e5   : > { %4605 = vmatprep.subr.bf16.mxu0 %v13616_v45  ;;  %4769 = vmatprep.subr.bf16.mxu1 %v13619_v47 }
 0x4e8   : > { %4606 = vmatpush1.bf16.msra.mxu0 %v13614_v48  ;;  %4770 = vmatpush1.bf16.msra.mxu1 %v13617_v50 }
 0x4e9   : > { %4607 = vmatprep.subr.bf16.mxu0 %v13622_v51  ;;  %4771 = vmatprep.subr.bf16.mxu1 %v13625_v53 }
 0x4ec   : > { %4608 = vmatpush1.bf16.msra.mxu0 %v13620_v54  ;;  %4772 = vmatpush1.bf16.msra.mxu1 %v13623_v55 }
 0x4ed   : > { %4609 = vmatprep.subr.bf16.mxu0 %v13628_v56  ;;  %4773 = vmatprep.subr.bf16.mxu1 %v13631_v57 }
 0x4f0   : > { %4610 = vmatpush1.bf16.msra.mxu0 %v13626_v58  ;;  %4774 = vmatpush1.bf16.msra.mxu1 %v13629_v59 }
 0x4f1   : > { %4611 = vmatprep.subr.bf16.mxu0 %v13634_v60  ;;  %4775 = vmatprep.subr.bf16.mxu1 %v13637_v61 }
 0x4f4   : > { %4612 = vmatpush1.bf16.msra.mxu0 %v13632_v62  ;;  %4776 = vmatpush1.bf16.msra.mxu1 %v13635_v63 }
 0x4f5   : > { %4613 = vmatprep.subr.bf16.mxu0 %v13640_v2  ;;  %4777 = vmatprep.subr.bf16.mxu1 %v13643_v3 }
 0x4f8   : > { %4614 = vmatpush1.bf16.msra.mxu0 %v13638_v4  ;;  %4778 = vmatpush1.bf16.msra.mxu1 %v13641_v5 }
 0x4f9   : > { %4615 = vmatprep.subr.bf16.mxu0 %v13646_v49  ;;  %4779 = vmatprep.subr.bf16.mxu1 %v13649_v7 }
 0x4fc   : > { %4616 = vmatpush1.bf16.msra.mxu0 %v13644_v8  ;;  %4780 = vmatpush1.bf16.msra.mxu1 %v13647_v9  ;;  %v13680_v9 = vld [vmem:[#allocation11 + $0x200] ss:$16 sps:$4 sm:$0xff]  }
 0x4fd   : > { %4617 = vmatprep.subr.bf16.mxu0 %v13652_v10  ;;  %4781 = vmatprep.subr.bf16.mxu1 %v13655_v11  ;;  %v13683_v10 = vld [vmem:[#allocation11 + $0x208] ss:$16 sps:$4 sm:$0xff]  }
 0x500   : > { %4618 = vmatpush1.bf16.msra.mxu0 %v13650_v12  ;;  %4782 = vmatpush1.bf16.msra.mxu1 %v13653_v13  ;;  %v13688_v12 = vld [vmem:[#allocation11 + $0x224] ss:$16 sps:$4 sm:$0xff]   ;;  %v13691_v13 = vld [vmem:[#allocation11 + $0x22c] ss:$16 sps:$4 sm:$0xff]  }
 0x501   : > { %4619 = vmatprep.subr.bf16.mxu0 %v13658_v14  ;;  %4783 = vmatprep.subr.bf16.mxu1 %v13661_v15  ;;  %v13686_v15 = vld [vmem:[#allocation11 + $0x220] ss:$16 sps:$4 sm:$0xff]  }
 0x504   : > { %4620 = vmatpush1.bf16.msra.mxu0 %v13656_v16  ;;  %4784 = vmatpush1.bf16.msra.mxu1 %v13659_v17  ;;  %v13689_v16 = vld [vmem:[#allocation11 + $0x228] ss:$16 sps:$4 sm:$0xff]   ;;  %v13694_v17 = vld [vmem:[#allocation11 + $0x244] ss:$16 sps:$4 sm:$0xff]  }
 0x505   : > { %4621 = vmatprep.subr.bf16.mxu0 %v13664_v18  ;;  %4785 = vmatprep.subr.bf16.mxu1 %v13667_v19  ;;  %v13697_v18 = vld [vmem:[#allocation11 + $0x24c] ss:$16 sps:$4 sm:$0xff]   ;;  %v13692_v19 = vld [vmem:[#allocation11 + $0x240] ss:$16 sps:$4 sm:$0xff]  }
 0x508   : > { %4622 = vmatpush1.bf16.msra.mxu0 %v13662_v20  ;;  %4786 = vmatpush1.bf16.msra.mxu1 %v13665_v21  ;;  %v13695_v20 = vld [vmem:[#allocation11 + $0x248] ss:$16 sps:$4 sm:$0xff]   ;;  %v13700_v21 = vld [vmem:[#allocation11 + $0x264] ss:$16 sps:$4 sm:$0xff]  }
 0x509   : > { %4623 = vmatprep.subr.bf16.mxu0 %v13670_v23  ;;  %4787 = vmatprep.subr.bf16.mxu1 %v13673_v24  ;;  %v13703_v23 = vld [vmem:[#allocation11 + $0x26c] ss:$16 sps:$4 sm:$0xff]   ;;  %v13698_v24 = vld [vmem:[#allocation11 + $0x260] ss:$16 sps:$4 sm:$0xff]  }
 0x50c   : > { %4624 = vmatpush1.bf16.msra.mxu0 %v13668_v25  ;;  %4788 = vmatpush1.bf16.msra.mxu1 %v13671_v26  ;;  %v13701_v25 = vld [vmem:[#allocation11 + $0x268] ss:$16 sps:$4 sm:$0xff]   ;;  %v13706_v26 = vld [vmem:[#allocation11 + $0x284] ss:$16 sps:$4 sm:$0xff]  }
 0x50d   : > { %4625 = vmatprep.subr.bf16.mxu0 %v13676_v27  ;;  %4789 = vmatprep.subr.bf16.mxu1 %v13679_v28  ;;  %v13709_v27 = vld [vmem:[#allocation11 + $0x28c] ss:$16 sps:$4 sm:$0xff]   ;;  %v13704_v28 = vld [vmem:[#allocation11 + $0x280] ss:$16 sps:$4 sm:$0xff]  }
 0x510   : > { %4626 = vmatpush1.bf16.msra.mxu0 %v13674_v29  ;;  %4790 = vmatpush1.bf16.msra.mxu1 %v13677_v30  ;;  %v13707_v29 = vld [vmem:[#allocation11 + $0x288] ss:$16 sps:$4 sm:$0xff]   ;;  %v13712_v30 = vld [vmem:[#allocation11 + $0x2a4] ss:$16 sps:$4 sm:$0xff]  }
 0x511   : > { %4636 = vmatprep.subr.bf16.mxu0 %v13682_v31  ;;  %4800 = vmatprep.subr.bf16.mxu1 %v13685_v32  ;;  %v13715_v31 = vld [vmem:[#allocation11 + $0x2ac] ss:$16 sps:$4 sm:$0xff]   ;;  %v13710_v32 = vld [vmem:[#allocation11 + $0x2a0] ss:$16 sps:$4 sm:$0xff]  }
 0x566   : > { %v2851_v38 = vpop.f32.mrb[4].mxu0  ;;  %v16157_v39 = vpop.f32.mrb[4].mxu1 }
 0x567   : > { %v2852_v22 = vadd.f32 %v2851_v38, %v2140_v35  ;;  %v2853_v40 = vpop.f32.mrb[5].mxu0  ;;  %v2894_v41 = vpop.f32.mrb[5].mxu1  ;;  %v13713_v35 = vld [vmem:[#allocation11 + $0x2a8] ss:$16 sps:$4 sm:$0xff]   ;;  %v13716_v38 = vld [vmem:[#allocation11 + $0x2c0] ss:$16 sps:$4 sm:$0xff]  }
 0x568   : > { %v2854_v42 = vadd.f32 %v2853_v40, %v2144_v36  ;;  %v2895_v44 = vadd.f32 %v2894_v41, %v2152_v37  ;;  %v2855_v45 = vpop.f32.mrb[6].mxu0  ;;  %v2896_v47 = vpop.f32.mrb[6].mxu1  ;;  %v13718_v36 = vld [vmem:[#allocation11 + $0x2c4] ss:$16 sps:$4 sm:$0xff]   ;;  %v13721_v37 = vld [vmem:[#allocation11 + $0x2cc] ss:$16 sps:$4 sm:$0xff]  }
 0x569   : > { %v2981_v48 = vrot.slane %v2852_v22, 4  ;;  %v2856_v50 = vpop.f32.mrb[7].mxu0  ;;  %v2897_v51 = vpop.f32.mrb[7].mxu1  ;;  %v13724_v40 = vld [vmem:[#allocation11 + $0x2e4] ss:$16 sps:$4 sm:$0xff]   ;;  %v16160_v45 = vsub.s32 2, %v16128_v6 }
 0x56a   : > { %v2987_v53 = vrot.slane %v2854_v42, 4  ;;  %v2999_v54 = vrot.slane %v2895_v44, 4  ;;  %v13727_v41 = vld [vmem:[#allocation11 + $0x2ec] ss:$16 sps:$4 sm:$0xff]   ;;  %v13730_v47 = vld [vmem:[#allocation11 + $0x304] ss:$16 sps:$4 sm:$0xff]  }
 0x56b   : > { %v2982_v55 = vmax.f32 %v2852_v22, %v2981_v48  ;;  %v13719_v22 = vld [vmem:[#allocation11 + $0x2c8] ss:$16 sps:$4 sm:$0xff]   ;;  %v13733_v48 = vld [vmem:[#allocation11 + $0x30c] ss:$16 sps:$4 sm:$0xff]   ;;  %v13728_v50 = vld [vmem:[#allocation11 + $0x300] ss:$16 sps:$4 sm:$0xff]  }
 0x56c   : > { %v2988_v56 = vmax.f32 %v2854_v42, %v2987_v53  ;;  %v3000_v57 = vmax.f32 %v2895_v44, %v2999_v54  ;;  %v13722_v42 = vld [vmem:[#allocation11 + $0x2e0] ss:$16 sps:$4 sm:$0xff]   ;;  %v13725_v44 = vld [vmem:[#allocation11 + $0x2e8] ss:$16 sps:$4 sm:$0xff]   ;;  %v2148_v53 = vrot.slane %v16146_v33, %v16160_v45  ;;  %v13736_v54 = vld [vmem:[#allocation11 + $0x324] ss:$16 sps:$4 sm:$0xff]  }
 0x56d   : > { %v2983_v58 = vrot.slane %v2982_v55, 2  ;;  %v13731_v51 = vld [vmem:[#allocation11 + $0x308] ss:$16 sps:$4 sm:$0xff]  }
 0x56e   : > { %v2989_v59 = vrot.slane %v2988_v56, 2  ;;  %v3001_v60 = vrot.slane %v3000_v57, 2 }
 0x56f   : > { %v2984_v61 = vmax.f32 %v2982_v55, %v2983_v58  ;;  %v13739_v55 = vld [vmem:[#allocation11 + $0x32c] ss:$16 sps:$4 sm:$0xff]   ;;  %v2893_v58 = vadd.f32 %v16157_v39, %v2148_v53  ;;  %v13776_v53 = vld [vmem:[#allocation11 + $0x400] ss:$16 sps:$4 sm:$0xff]  }
 0x570   : > { %v2990_v62 = vmax.f32 %v2988_v56, %v2989_v59  ;;  %v3002_v63 = vmax.f32 %v3000_v57, %v3001_v60  ;;  %v13734_v56 = vld [vmem:[#allocation11 + $0x320] ss:$16 sps:$4 sm:$0xff]   ;;  %v13737_v57 = vld [vmem:[#allocation11 + $0x328] ss:$16 sps:$4 sm:$0xff]   ;;  %v13742_v59 = vld [vmem:[#allocation11 + $0x344] ss:$16 sps:$4 sm:$0xff]  }
 0x571   : > { %v2985_v2 = vrot.slane %v2984_v61, 1  ;;  %v13745_v60 = vld [vmem:[#allocation11 + $0x34c] ss:$16 sps:$4 sm:$0xff]  }
 0x572   : > { %v2991_v3 = vrot.slane %v2990_v62, 1  ;;  %v3003_v4 = vrot.slane %v3002_v63, 1 }
 0x573   : > { %v2986_v5 = vmax.f32 %v2984_v61, %v2985_v2  ;;  %v13740_v61 = vld [vmem:[#allocation11 + $0x340] ss:$16 sps:$4 sm:$0xff]   ;;  %v13748_v2 = vld [vmem:[#allocation11 + $0x364] ss:$16 sps:$4 sm:$0xff]  }
 0x574   : > { %v2992_v49 = vmax.f32 %v2990_v62, %v2991_v3  ;;  %v3004_v7 = vmax.f32 %v3002_v63, %v3003_v4  ;;  %v13743_v62 = vld [vmem:[#allocation11 + $0x348] ss:$16 sps:$4 sm:$0xff]   ;;  %v2993_v63 = vrot.slane %v2893_v58, 4  ;;  %v13751_v3 = vld [vmem:[#allocation11 + $0x36c] ss:$16 sps:$4 sm:$0xff]   ;;  %v2159_v4 = vsub.s32 5, %v16128_v6 }
 0x575   : > { %v3285_v11 = vpack.c.bf16 %v2986_v5, %v2986_v5  ;;  %v13746_v5 = vld [vmem:[#allocation11 + $0x360] ss:$16 sps:$4 sm:$0xff]  }
 0x576   : > { %v3286_v8 = vpack.c.bf16 %v2992_v49, %v2992_v49  ;;  %v3288_v14 = vpack.c.bf16 %v3004_v7, %v3004_v7  ;;  %v13749_v49 = vld [vmem:[#allocation11 + $0x368] ss:$16 sps:$4 sm:$0xff]   ;;  %v2994_v39 = vmax.f32 %v2893_v58, %v2993_v63  ;;  %v13754_v7 = vld [vmem:[#allocation11 + $0x384] ss:$16 sps:$4 sm:$0xff]   ;;  %v13787_v58 = vld [vmem:[#allocation11 + $0x42c] ss:$16 sps:$4 sm:$0xff]  }
 0x577   : > { %v13788_v63 = vld [vmem:[#allocation11 + $0x440] ss:$16 sps:$4 sm:$0xff]  }
 0x578   : > { %4627 = vmatprep.mubr.bf16.mxu0 %v3286_v8  ;;  %4791 = vmatprep.mubr.bf16.mxu1 %v3286_v8  ;;  %v13757_v8 = vld [vmem:[#allocation11 + $0x38c] ss:$16 sps:$4 sm:$0xff]  }
 0x579   : > { %4628 = vmatmul.mubr.bf16.vlgmr.msra.gmra.mrb[12].mxu0 %v3285_v11  ;;  %4792 = vmatmul.mubr.bf16.vlgmr.msra.gmra.mrb[12].mxu1 %v3285_v11 }
 0x57a   : > { %4637 = vmatpush1.bf16.msra.mxu0 %v13680_v9  ;;  %4801 = vmatpush1.bf16.msra.mxu1 %v13683_v10  ;;  %v2160_v9 = vrot.slane %v16146_v33, %v2159_v4  ;;  %v13752_v10 = vld [vmem:[#allocation11 + $0x380] ss:$16 sps:$4 sm:$0xff]  }
 0x57b   : > { %4668 = vmatprep.mubr.bf16.mxu0 %v3288_v14  ;;  %4832 = vmatprep.mubr.bf16.mxu1 %v3288_v14  ;;  %v13760_v14 = vld [vmem:[#allocation11 + $0x3a4] ss:$16 sps:$4 sm:$0xff]  }
 0x57c   : > { %4638 = vmatprep.subr.bf16.mxu0 %v13688_v12  ;;  %4802 = vmatprep.subr.bf16.mxu1 %v13691_v13  ;;  %v13755_v13 = vld [vmem:[#allocation11 + $0x388] ss:$16 sps:$4 sm:$0xff]  }
 0x57e   : > { %4639 = vmatpush1.bf16.msra.mxu0 %v13686_v15  ;;  %4803 = vmatpush1.bf16.msra.mxu1 %v13689_v16  ;;  %v2995_v15 = vrot.slane %v2994_v39, 2 }
 0x57f   : > { %4640 = vmatprep.subr.bf16.mxu0 %v13694_v17  ;;  %4804 = vmatprep.subr.bf16.mxu1 %v13697_v18  ;;  %v13763_v18 = vld [vmem:[#allocation11 + $0x3ac] ss:$16 sps:$4 sm:$0xff]  }
 0x582   : > { %4641 = vmatpush1.bf16.msra.mxu0 %v13692_v19  ;;  %4805 = vmatpush1.bf16.msra.mxu1 %v13695_v20 }
 0x583   : > { %4642 = vmatprep.subr.bf16.mxu0 %v13700_v21  ;;  %4806 = vmatprep.subr.bf16.mxu1 %v13703_v23 }
 0x586   : > { %4643 = vmatpush1.bf16.msra.mxu0 %v13698_v24  ;;  %4807 = vmatpush1.bf16.msra.mxu1 %v13701_v25 }
 0x587   : > { %4644 = vmatprep.subr.bf16.mxu0 %v13706_v26  ;;  %4808 = vmatprep.subr.bf16.mxu1 %v13709_v27  ;;  %v13758_v26 = vld [vmem:[#allocation11 + $0x3a0] ss:$16 sps:$4 sm:$0xff]   ;;  %v13761_v27 = vld [vmem:[#allocation11 + $0x3a8] ss:$16 sps:$4 sm:$0xff]  }
 0x58a   : > { %4645 = vmatpush1.bf16.msra.mxu0 %v13704_v28  ;;  %4809 = vmatpush1.bf16.msra.mxu1 %v13707_v29  ;;  %v2996_v28 = vmax.f32 %v2994_v39, %v2995_v15  ;;  %v13766_v29 = vld [vmem:[#allocation11 + $0x3c4] ss:$16 sps:$4 sm:$0xff]   ;;  %v13797_v39 = vld [vmem:[#allocation11 + $0x468] ss:$16 sps:$4 sm:$0xff]   ;;  %v13806_v15 = vld [vmem:[#allocation11 + $0x4a0] ss:$16 sps:$4 sm:$0xff]  }
 0x58b   : > { %4646 = vmatprep.subr.bf16.mxu0 %v13712_v30  ;;  %4810 = vmatprep.subr.bf16.mxu1 %v13715_v31  ;;  %v13769_v30 = vld [vmem:[#allocation11 + $0x3cc] ss:$16 sps:$4 sm:$0xff]  }
 0x58e   : > { %4647 = vmatpush1.bf16.msra.mxu0 %v13710_v32  ;;  %4811 = vmatpush1.bf16.msra.mxu1 %v13713_v35  ;;  %v13764_v35 = vld [vmem:[#allocation11 + $0x3c0] ss:$16 sps:$4 sm:$0xff]  }
 0x58f   : > { %4648 = vmatprep.subr.bf16.mxu0 %v13718_v36  ;;  %4812 = vmatprep.subr.bf16.mxu1 %v13721_v37  ;;  %v13767_v36 = vld [vmem:[#allocation11 + $0x3c8] ss:$16 sps:$4 sm:$0xff]   ;;  %v2997_v37 = vrot.slane %v2996_v28, 1 }
 0x592   : > { %4649 = vmatpush1.bf16.msra.mxu0 %v13716_v38  ;;  %4813 = vmatpush1.bf16.msra.mxu1 %v13719_v22  ;;  %v13772_v38 = vld [vmem:[#allocation11 + $0x3e4] ss:$16 sps:$4 sm:$0xff]   ;;  %v13775_v22 = vld [vmem:[#allocation11 + $0x3ec] ss:$16 sps:$4 sm:$0xff]  }
 0x593   : > { %4650 = vmatprep.subr.bf16.mxu0 %v13724_v40  ;;  %4814 = vmatprep.subr.bf16.mxu1 %v13727_v41  ;;  %v13770_v41 = vld [vmem:[#allocation11 + $0x3e0] ss:$16 sps:$4 sm:$0xff]  }
 0x596   : > { %4651 = vmatpush1.bf16.msra.mxu0 %v13722_v42  ;;  %4815 = vmatpush1.bf16.msra.mxu1 %v13725_v44  ;;  %v13773_v42 = vld [vmem:[#allocation11 + $0x3e8] ss:$16 sps:$4 sm:$0xff]  }
 0x597   : > { %4652 = vmatprep.subr.bf16.mxu0 %v13730_v47  ;;  %4816 = vmatprep.subr.bf16.mxu1 %v13733_v48  ;;  %v2998_v47 = vmax.f32 %v2996_v28, %v2997_v37  ;;  %v13778_v48 = vld [vmem:[#allocation11 + $0x404] ss:$16 sps:$4 sm:$0xff]   ;;  %v13835_v37 = vld [vmem:[#allocation11 + $0x52c] ss:$16 sps:$4 sm:$0xff]  }
 0x598   : > { %v13826_v28 = vld [vmem:[#allocation11 + $0x504] ss:$16 sps:$4 sm:$0xff]  }
 0x59a   : > { %4653 = vmatpush1.bf16.msra.mxu0 %v13728_v50  ;;  %4817 = vmatpush1.bf16.msra.mxu1 %v13731_v51  ;;  %v13781_v50 = vld [vmem:[#allocation11 + $0x40c] ss:$16 sps:$4 sm:$0xff]  }
 0x59b   : > { %4654 = vmatprep.subr.bf16.mxu0 %v13736_v54  ;;  %4818 = vmatprep.subr.bf16.mxu1 %v13739_v55  ;;  %v3287_v54 = vpack.c.bf16 %v2998_v47, %v2998_v47  ;;  %v13779_v55 = vld [vmem:[#allocation11 + $0x408] ss:$16 sps:$4 sm:$0xff]  }
 0x59e   : > { %4655 = vmatpush1.bf16.msra.mxu0 %v13734_v56  ;;  %4819 = vmatpush1.bf16.msra.mxu1 %v13737_v57  ;;  %v13784_v57 = vld [vmem:[#allocation11 + $0x424] ss:$16 sps:$4 sm:$0xff]  }
 0x59f   : > { %4656 = vmatprep.subr.bf16.mxu0 %v13742_v59  ;;  %4820 = vmatprep.subr.bf16.mxu1 %v13745_v60  ;;  %v13782_v59 = vld [vmem:[#allocation11 + $0x420] ss:$16 sps:$4 sm:$0xff]   ;;  %v13785_v60 = vld [vmem:[#allocation11 + $0x428] ss:$16 sps:$4 sm:$0xff]  }
 0x5a2   : > { %4657 = vmatpush1.bf16.msra.mxu0 %v13740_v61  ;;  %4821 = vmatpush1.bf16.msra.mxu1 %v13743_v62  ;;  %v13790_v61 = vld [vmem:[#allocation11 + $0x444] ss:$16 sps:$4 sm:$0xff]   ;;  %v13793_v62 = vld [vmem:[#allocation11 + $0x44c] ss:$16 sps:$4 sm:$0xff]  }
 0x5a3   : > { %4658 = vmatprep.subr.bf16.mxu0 %v13748_v2  ;;  %4822 = vmatprep.subr.bf16.mxu1 %v13751_v3  ;;  %v13791_v2 = vld [vmem:[#allocation11 + $0x448] ss:$16 sps:$4 sm:$0xff]   ;;  %v13796_v3 = vld [vmem:[#allocation11 + $0x464] ss:$16 sps:$4 sm:$0xff]  }
 0x5a6   : > { %v16169_v11 = vpop.f32.mrb[8].mxu0  ;;  %v16171_v12 = vpop.f32.mrb[8].mxu1  ;;  %4659 = vmatpush1.bf16.msra.mxu0 %v13746_v5  ;;  %4823 = vmatpush1.bf16.msra.mxu1 %v13749_v49  ;;  %v13799_v5 = vld [vmem:[#allocation11 + $0x46c] ss:$16 sps:$4 sm:$0xff]   ;;  %v13794_v49 = vld [vmem:[#allocation11 + $0x460] ss:$16 sps:$4 sm:$0xff]  }
 0x5a7   : > { %v2935_v16 = vpop.f32.mrb[9].mxu0  ;;  %v16173_v17 = vpop.f32.mrb[9].mxu1  ;;  %4660 = vmatprep.subr.bf16.mxu0 %v13754_v7  ;;  %4824 = vmatprep.subr.bf16.mxu1 %v13757_v8  ;;  %v13802_v7 = vld [vmem:[#allocation11 + $0x484] ss:$16 sps:$4 sm:$0xff]   ;;  %v13805_v8 = vld [vmem:[#allocation11 + $0x48c] ss:$16 sps:$4 sm:$0xff]  }
 0x5a8   : > { %v2936_v19 = vadd.f32 %v2935_v16, %v2160_v9  ;;  %v2937_v20 = vpop.f32.mrb[10].mxu0  ;;  %v2978_v21 = vpop.f32.mrb[10].mxu1  ;;  %v13800_v9 = vld [vmem:[#allocation11 + $0x480] ss:$16 sps:$4 sm:$0xff]   ;;  %v13809_v16 = vld [vmem:[#allocation11 + $0x4a8] ss:$16 sps:$4 sm:$0xff]  }
 0x5a9   : > { %v2938_v23 = vpop.f32.mrb[11].mxu0  ;;  %v2979_v24 = vpop.f32.mrb[11].mxu1  ;;  %v13812_v20 = vld [vmem:[#allocation11 + $0x4c0] ss:$16 sps:$4 sm:$0xff]   ;;  %v13815_v21 = vld [vmem:[#allocation11 + $0x4c8] ss:$16 sps:$4 sm:$0xff]  }
 0x5aa   : > { %v3011_v25 = vrot.slane %v2936_v19, 4  ;;  %4661 = vmatpush1.bf16.msra.mxu0 %v13752_v10  ;;  %4825 = vmatpush1.bf16.msra.mxu1 %v13755_v13  ;;  %v13803_v10 = vld [vmem:[#allocation11 + $0x488] ss:$16 sps:$4 sm:$0xff]   ;;  %v13808_v13 = vld [vmem:[#allocation11 + $0x4a4] ss:$16 sps:$4 sm:$0xff]  }
 0x5ab   : > { %4662 = vmatprep.subr.bf16.mxu0 %v13760_v14  ;;  %4826 = vmatprep.subr.bf16.mxu1 %v13763_v18  ;;  %v13811_v14 = vld [vmem:[#allocation11 + $0x4ac] ss:$16 sps:$4 sm:$0xff]   ;;  %v13814_v18 = vld [vmem:[#allocation11 + $0x4c4] ss:$16 sps:$4 sm:$0xff]  }
 0x5ac   : > { %v3012_v31 = vmax.f32 %v2936_v19, %v3011_v25  ;;  %v13817_v19 = vld [vmem:[#allocation11 + $0x4cc] ss:$16 sps:$4 sm:$0xff]   ;;  %v13820_v23 = vld [vmem:[#allocation11 + $0x4e4] ss:$16 sps:$4 sm:$0xff]   ;;  %v13818_v25 = vld [vmem:[#allocation11 + $0x4e0] ss:$16 sps:$4 sm:$0xff]  }
 0x5ad   : > { %v13823_v24 = vld [vmem:[#allocation11 + $0x4ec] ss:$16 sps:$4 sm:$0xff]  }
 0x5ae   : > { %v3013_v32 = vrot.slane %v3012_v31, 2  ;;  %4663 = vmatpush1.bf16.msra.mxu0 %v13758_v26  ;;  %4827 = vmatpush1.bf16.msra.mxu1 %v13761_v27  ;;  %v2155_v26 = vsub.s32 4, %v16128_v6  ;;  %v13821_v27 = vld [vmem:[#allocation11 + $0x4e8] ss:$16 sps:$4 sm:$0xff]  }
 0x5af   : > { %4664 = vmatprep.subr.bf16.mxu0 %v13766_v29  ;;  %4828 = vmatprep.subr.bf16.mxu1 %v13769_v30  ;;  %v13829_v29 = vld [vmem:[#allocation11 + $0x50c] ss:$16 sps:$4 sm:$0xff]   ;;  %v2167_v30 = vsub.s32 7, %v16128_v6 }
 0x5b0   : > { %v3014_v40 = vmax.f32 %v3012_v31, %v3013_v32  ;;  %v13824_v31 = vld [vmem:[#allocation11 + $0x500] ss:$16 sps:$4 sm:$0xff]   ;;  %v2156_v32 = vrot.slane %v16146_v33, %v2155_v26 }
 0x5b2   : > { %4665 = vmatpush1.bf16.msra.mxu0 %v13764_v35  ;;  %4829 = vmatpush1.bf16.msra.mxu1 %v13767_v36  ;;  %v3015_v44 = vrot.slane %v3014_v40, 1  ;;  %v13827_v35 = vld [vmem:[#allocation11 + $0x508] ss:$16 sps:$4 sm:$0xff]   ;;  %v13832_v36 = vld [vmem:[#allocation11 + $0x524] ss:$16 sps:$4 sm:$0xff]  }
 0x5b3   : > { %4666 = vmatprep.subr.bf16.mxu0 %v13772_v38  ;;  %4830 = vmatprep.subr.bf16.mxu1 %v13775_v22  ;;  %v2168_v38 = vrot.slane %v16146_v33, %v2167_v30  ;;  %v13830_v22 = vld [vmem:[#allocation11 + $0x520] ss:$16 sps:$4 sm:$0xff]  }
 0x5b4   : > { %v3016_v51 = vmax.f32 %v3014_v40, %v3015_v44  ;;  %v2934_v40 = vadd.f32 %v16169_v11, %v2156_v32  ;;  %v13841_v44 = vld [vmem:[#allocation11 + $0x54c] ss:$16 sps:$4 sm:$0xff]   ;;  %v13842_v11 = vld [vmem:[#allocation11 + $0x560] ss:$16 sps:$4 sm:$0xff]  }
 0x5b5   : > { %v2977_v47 = vadd.f32 %v16173_v17, %v2168_v38  ;;  %v13886_v38 = vld [vmem:[#allocation11 + $0x644] ss:$16 sps:$4 sm:$0xff]  }
 0x5b6   : > { %4667 = vmatpush1.bf16.msra.mxu0 %v13770_v41  ;;  %4831 = vmatpush1.bf16.msra.mxu1 %v13773_v42  ;;  %v3290_v56 = vpack.c.bf16 %v3016_v51, %v3016_v51  ;;  %v13833_v41 = vld [vmem:[#allocation11 + $0x528] ss:$16 sps:$4 sm:$0xff]   ;;  %v13838_v42 = vld [vmem:[#allocation11 + $0x544] ss:$16 sps:$4 sm:$0xff]  }
 0x5b7   : > { %4677 = vmatprep.subr.bf16.mxu0 %v13778_v48  ;;  %4841 = vmatprep.subr.bf16.mxu1 %v13781_v50  ;;  %v13836_v48 = vld [vmem:[#allocation11 + $0x540] ss:$16 sps:$4 sm:$0xff]   ;;  %v3005_v50 = vrot.slane %v2934_v40, 4  ;;  %v13839_v51 = vld [vmem:[#allocation11 + $0x548] ss:$16 sps:$4 sm:$0xff]  }
 0x5b9   : > { %4669 = vmatmul.mubr.bf16.vlgmr.msra.gmra.mrb[12].mxu0 %v3287_v54  ;;  %4833 = vmatmul.mubr.bf16.vlgmr.msra.gmra.mrb[12].mxu1 %v3287_v54  ;;  %v13847_v54 = vld [vmem:[#allocation11 + $0x56c] ss:$16 sps:$4 sm:$0xff]  }
 0x5ba   : > { %4678 = vmatpush1.bf16.msra.mxu0 %v13776_v53  ;;  %4709 = vmatprep.mubr.bf16.mxu0 %v3290_v56  ;;  %v13844_v53 = vld [vmem:[#allocation11 + $0x564] ss:$16 sps:$4 sm:$0xff]  }
 0x5bb   : > { %4842 = vmatpush1.bf16.msra.mxu1 %v13779_v55  ;;  %4873 = vmatprep.mubr.bf16.mxu1 %v3290_v56  ;;  %v3023_v55 = vrot.slane %v2977_v47, 4  ;;  %v3006_v56 = vmax.f32 %v2934_v40, %v3005_v50  ;;  %v13884_v40 = vld [vmem:[#allocation11 + $0x640] ss:$16 sps:$4 sm:$0xff]   ;;  %v13898_v50 = vld [vmem:[#allocation11 + $0x684] ss:$16 sps:$4 sm:$0xff]  }
 0x5bc   : > { %4679 = vmatprep.subr.bf16.mxu0 %v13784_v57  ;;  %4843 = vmatprep.subr.bf16.mxu1 %v13787_v58  ;;  %v13845_v57 = vld [vmem:[#allocation11 + $0x568] ss:$16 sps:$4 sm:$0xff]   ;;  %v13850_v58 = vld [vmem:[#allocation11 + $0x584] ss:$16 sps:$4 sm:$0xff]  }
 0x5bd   : > { %v3024_v17 = vmax.f32 %v2977_v47, %v3023_v55  ;;  %v13890_v47 = vld [vmem:[#allocation11 + $0x660] ss:$16 sps:$4 sm:$0xff]   ;;  %v13904_v55 = vld [vmem:[#allocation11 + $0x6a4] ss:$16 sps:$4 sm:$0xff]  }
 0x5be   : > { %4680 = vmatpush1.bf16.msra.mxu0 %v13782_v59  ;;  %v13853_v59 = vld [vmem:[#allocation11 + $0x58c] ss:$16 sps:$4 sm:$0xff]  }
 0x5bf   : > { %4844 = vmatpush1.bf16.msra.mxu1 %v13785_v60  ;;  %4681 = vmatprep.subr.bf16.mxu0 %v13790_v61  ;;  %v13848_v60 = vld [vmem:[#allocation11 + $0x580] ss:$16 sps:$4 sm:$0xff]   ;;  %v3007_v61 = vrot.slane %v3006_v56, 2 }
 0x5c0   : > { %4845 = vmatprep.subr.bf16.mxu1 %v13793_v62  ;;  %v13851_v62 = vld [vmem:[#allocation11 + $0x588] ss:$16 sps:$4 sm:$0xff]  }
 0x5c2   : > { %4682 = vmatpush1.bf16.msra.mxu0 %v13788_v63  ;;  %v13856_v63 = vld [vmem:[#allocation11 + $0x5a4] ss:$16 sps:$4 sm:$0xff]  }
 0x5c3   : > { %4846 = vmatpush1.bf16.msra.mxu1 %v13791_v2  ;;  %4683 = vmatprep.subr.bf16.mxu0 %v13796_v3  ;;  %v13859_v2 = vld [vmem:[#allocation11 + $0x5ac] ss:$16 sps:$4 sm:$0xff]   ;;  %v3025_v3 = vrot.slane %v3024_v17, 2 }
 0x5c4   : > { %4847 = vmatprep.subr.bf16.mxu1 %v13799_v5  ;;  %v13854_v5 = vld [vmem:[#allocation11 + $0x5a0] ss:$16 sps:$4 sm:$0xff]  }
 0x5c6   : > { %4684 = vmatpush1.bf16.msra.mxu0 %v13794_v49  ;;  %v3008_v49 = vmax.f32 %v3006_v56, %v3007_v61  ;;  %v13902_v56 = vld [vmem:[#allocation11 + $0x6a0] ss:$16 sps:$4 sm:$0xff]   ;;  %v13916_v61 = vld [vmem:[#allocation11 + $0x6e4] ss:$16 sps:$4 sm:$0xff]  }
 0x5c7   : > { %4848 = vmatpush1.bf16.msra.mxu1 %v13797_v39  ;;  %4685 = vmatprep.subr.bf16.mxu0 %v13802_v7  ;;  %v13857_v39 = vld [vmem:[#allocation11 + $0x5a8] ss:$16 sps:$4 sm:$0xff]   ;;  %v13862_v7 = vld [vmem:[#allocation11 + $0x5c4] ss:$16 sps:$4 sm:$0xff]  }
 0x5c8   : > { %4849 = vmatprep.subr.bf16.mxu1 %v13805_v8  ;;  %v13865_v8 = vld [vmem:[#allocation11 + $0x5cc] ss:$16 sps:$4 sm:$0xff]  }
 0x5ca   : > { %4686 = vmatpush1.bf16.msra.mxu0 %v13800_v9  ;;  %v3026_v9 = vmax.f32 %v3024_v17, %v3025_v3  ;;  %v13908_v17 = vld [vmem:[#allocation11 + $0x6c0] ss:$16 sps:$4 sm:$0xff]   ;;  %v13917_v3 = vld [vmem:[#allocation11 + $0x6e8] ss:$16 sps:$4 sm:$0xff]  }
 0x5cb   : > { %4850 = vmatpush1.bf16.msra.mxu1 %v13803_v10  ;;  %4687 = vmatprep.subr.bf16.mxu0 %v13808_v13  ;;  %v13860_v10 = vld [vmem:[#allocation11 + $0x5c0] ss:$16 sps:$4 sm:$0xff]   ;;  %v3009_v13 = vrot.slane %v3008_v49, 1 }
 0x5cc   : > { %4851 = vmatprep.subr.bf16.mxu1 %v13811_v14  ;;  %v13863_v14 = vld [vmem:[#allocation11 + $0x5c8] ss:$16 sps:$4 sm:$0xff]  }
 0x5ce   : > { %4688 = vmatpush1.bf16.msra.mxu0 %v13806_v15  ;;  %v13868_v15 = vld [vmem:[#allocation11 + $0x5e4] ss:$16 sps:$4 sm:$0xff]  }
 0x5cf   : > { %4852 = vmatpush1.bf16.msra.mxu1 %v13809_v16  ;;  %4689 = vmatprep.subr.bf16.mxu0 %v13814_v18  ;;  %v13871_v16 = vld [vmem:[#allocation11 + $0x5ec] ss:$16 sps:$4 sm:$0xff]   ;;  %v3027_v18 = vrot.slane %v3026_v9, 1 }
 0x5d0   : > { %4853 = vmatprep.subr.bf16.mxu1 %v13817_v19  ;;  %v13866_v19 = vld [vmem:[#allocation11 + $0x5e0] ss:$16 sps:$4 sm:$0xff]  }
 0x5d2   : > { %4690 = vmatpush1.bf16.msra.mxu0 %v13812_v20  ;;  %v3010_v20 = vmax.f32 %v3008_v49, %v3009_v13  ;;  %v13925_v49 = vld [vmem:[#allocation11 + $0x70c] ss:$16 sps:$4 sm:$0xff]   ;;  %v13926_v13 = vld [vmem:[#allocation11 + $0x720] ss:$16 sps:$4 sm:$0xff]  }
 0x5d3   : > { %4854 = vmatpush1.bf16.msra.mxu1 %v13815_v21  ;;  %4691 = vmatprep.subr.bf16.mxu0 %v13820_v23  ;;  %v13869_v21 = vld [vmem:[#allocation11 + $0x5e8] ss:$16 sps:$4 sm:$0xff]   ;;  %v13874_v23 = vld [vmem:[#allocation11 + $0x604] ss:$16 sps:$4 sm:$0xff]  }
 0x5d4   : > { %4855 = vmatprep.subr.bf16.mxu1 %v13823_v24  ;;  %v13877_v24 = vld [vmem:[#allocation11 + $0x60c] ss:$16 sps:$4 sm:$0xff]  }
 0x5d6   : > { %4692 = vmatpush1.bf16.msra.mxu0 %v13818_v25  ;;  %v3028_v25 = vmax.f32 %v3026_v9, %v3027_v18  ;;  %v13928_v9 = vld [vmem:[#allocation11 + $0x724] ss:$16 sps:$4 sm:$0xff]   ;;  %v13937_v18 = vld [vmem:[#allocation11 + $0x74c] ss:$16 sps:$4 sm:$0xff]  }
 0x5d7   : > { %4856 = vmatpush1.bf16.msra.mxu1 %v13821_v27  ;;  %4693 = vmatprep.subr.bf16.mxu0 %v13826_v28  ;;  %v13872_v27 = vld [vmem:[#allocation11 + $0x600] ss:$16 sps:$4 sm:$0xff]   ;;  %v3289_v28 = vpack.c.bf16 %v3010_v20, %v3010_v20 }
 0x5d8   : > { %4857 = vmatprep.subr.bf16.mxu1 %v13829_v29  ;;  %v13875_v29 = vld [vmem:[#allocation11 + $0x608] ss:$16 sps:$4 sm:$0xff]   ;;  %v3292_v32 = vpack.c.bf16 %v3028_v25, %v3028_v25 }
 0x5da   : > { %4694 = vmatpush1.bf16.msra.mxu0 %v13824_v31  ;;  %v13880_v31 = vld [vmem:[#allocation11 + $0x624] ss:$16 sps:$4 sm:$0xff]  }
 0x5db   : > { %4858 = vmatpush1.bf16.msra.mxu1 %v13827_v35  ;;  %4695 = vmatprep.subr.bf16.mxu0 %v13832_v36  ;;  %v13883_v35 = vld [vmem:[#allocation11 + $0x62c] ss:$16 sps:$4 sm:$0xff]   ;;  %v13878_v36 = vld [vmem:[#allocation11 + $0x620] ss:$16 sps:$4 sm:$0xff]  }
 0x5dc   : > { %4859 = vmatprep.subr.bf16.mxu1 %v13835_v37  ;;  %v13881_v37 = vld [vmem:[#allocation11 + $0x628] ss:$16 sps:$4 sm:$0xff]  }
 0x5de   : > { %4696 = vmatpush1.bf16.msra.mxu0 %v13830_v22  ;;  %v13889_v22 = vld [vmem:[#allocation11 + $0x64c] ss:$16 sps:$4 sm:$0xff]  }
 0x5df   : > { %4860 = vmatpush1.bf16.msra.mxu1 %v13833_v41  ;;  %4697 = vmatprep.subr.bf16.mxu0 %v13838_v42  ;;  %v13887_v41 = vld [vmem:[#allocation11 + $0x648] ss:$16 sps:$4 sm:$0xff]   ;;  %v13892_v42 = vld [vmem:[#allocation11 + $0x664] ss:$16 sps:$4 sm:$0xff]  }
 0x5e0   : > { %4861 = vmatprep.subr.bf16.mxu1 %v13841_v44  ;;  %v13895_v44 = vld [vmem:[#allocation11 + $0x66c] ss:$16 sps:$4 sm:$0xff]  }
 0x5e2   : > { %4698 = vmatpush1.bf16.msra.mxu0 %v13836_v48  ;;  %v13893_v48 = vld [vmem:[#allocation11 + $0x668] ss:$16 sps:$4 sm:$0xff]  }
 0x5e3   : > { %4862 = vmatpush1.bf16.msra.mxu1 %v13839_v51  ;;  %4699 = vmatprep.subr.bf16.mxu0 %v13844_v53  ;;  %v13901_v51 = vld [vmem:[#allocation11 + $0x68c] ss:$16 sps:$4 sm:$0xff]   ;;  %v13896_v53 = vld [vmem:[#allocation11 + $0x680] ss:$16 sps:$4 sm:$0xff]  }
 0x5e4   : > { %4863 = vmatprep.subr.bf16.mxu1 %v13847_v54  ;;  %v13899_v54 = vld [vmem:[#allocation11 + $0x688] ss:$16 sps:$4 sm:$0xff]  }
 0x5e6   : > { %4700 = vmatpush1.bf16.msra.mxu0 %v13842_v11  ;;  %v13907_v11 = vld [vmem:[#allocation11 + $0x6ac] ss:$16 sps:$4 sm:$0xff]  }
 0x5e7   : > { %4864 = vmatpush1.bf16.msra.mxu1 %v13845_v57  ;;  %4701 = vmatprep.subr.bf16.mxu0 %v13850_v58  ;;  %v13905_v57 = vld [vmem:[#allocation11 + $0x6a8] ss:$16 sps:$4 sm:$0xff]   ;;  %v13910_v58 = vld [vmem:[#allocation11 + $0x6c4] ss:$16 sps:$4 sm:$0xff]  }
 0x5e8   : > { %4865 = vmatprep.subr.bf16.mxu1 %v13853_v59  ;;  %v13913_v59 = vld [vmem:[#allocation11 + $0x6cc] ss:$16 sps:$4 sm:$0xff]  }
 0x5ea   : > { %4702 = vmatpush1.bf16.msra.mxu0 %v13848_v60  ;;  %v13911_v60 = vld [vmem:[#allocation11 + $0x6c8] ss:$16 sps:$4 sm:$0xff]  }
 0x5eb   : > { %4866 = vmatpush1.bf16.msra.mxu1 %v13851_v62  ;;  %4703 = vmatprep.subr.bf16.mxu0 %v13856_v63  ;;  %v13919_v62 = vld [vmem:[#allocation11 + $0x6ec] ss:$16 sps:$4 sm:$0xff]   ;;  %v13914_v63 = vld [vmem:[#allocation11 + $0x6e0] ss:$16 sps:$4 sm:$0xff]  }
 0x5ec   : > { %4867 = vmatprep.subr.bf16.mxu1 %v13859_v2  ;;  %v2163_v2 = vsub.s32 6, %v16128_v6  ;;  %v14438_v6 = vld [vmem:[#allocation31 + $0x744] ss:$16 sps:$4 sm:$0xff]  }
 0x5ee   : > { %4704 = vmatpush1.bf16.msra.mxu0 %v13854_v5  ;;  %v13922_v5 = vld [vmem:[#allocation11 + $0x704] ss:$16 sps:$4 sm:$0xff]  }
 0x5ef   : > { %4868 = vmatpush1.bf16.msra.mxu1 %v13857_v39  ;;  %4705 = vmatprep.subr.bf16.mxu0 %v13862_v7  ;;  %v13920_v39 = vld [vmem:[#allocation11 + $0x700] ss:$16 sps:$4 sm:$0xff]   ;;  %v2164_v7 = vrot.slane %v16146_v33, %v2163_v2  ;;  %v13935_v33 = vld [vmem:[#allocation11 + $0x748] ss:$16 sps:$4 sm:$0xff]  }
 0x5f0   : > { %4869 = vmatprep.subr.bf16.mxu1 %v13865_v8  ;;  %v13923_v8 = vld [vmem:[#allocation11 + $0x708] ss:$16 sps:$4 sm:$0xff]  }
 0x5f2   : > { %4706 = vmatpush1.bf16.msra.mxu0 %v13860_v10  ;;  %v13931_v10 = vld [vmem:[#allocation11 + $0x72c] ss:$16 sps:$4 sm:$0xff]  }
 0x5f3   : > { %4870 = vmatpush1.bf16.msra.mxu1 %v13863_v14  ;;  %4707 = vmatprep.subr.bf16.mxu0 %v13868_v15  ;;  %v2975_v14 = vadd.f32 %v16171_v12, %v2164_v7  ;;  %v13929_v15 = vld [vmem:[#allocation11 + $0x728] ss:$16 sps:$4 sm:$0xff]   ;;  %v13991_v7 = vld [vmem:[#allocation13 + $0x74] ss:$8 sps:$4 sm:$0xff]  }
 0x5f4   : > { %4871 = vmatprep.subr.bf16.mxu1 %v13871_v16  ;;  %v13934_v16 = vld [vmem:[#allocation11 + $0x744] ss:$16 sps:$4 sm:$0xff]   ;;  %v13941_v12 = vld [vmem:[#allocation11 + $0x768] ss:$16 sps:$4 sm:$0xff]  }
 0x5f5   : > { %v3017_v20 = vrot.slane %v2975_v14, 4 }
 0x5f6   : > { %4708 = vmatpush1.bf16.msra.mxu0 %v13866_v19  ;;  %v13932_v19 = vld [vmem:[#allocation11 + $0x740] ss:$16 sps:$4 sm:$0xff]  }
 0x5f7   : > { %4872 = vmatpush1.bf16.msra.mxu1 %v13869_v21  ;;  %4718 = vmatprep.subr.bf16.mxu0 %v13874_v23  ;;  %v13940_v21 = vld [vmem:[#allocation11 + $0x764] ss:$16 sps:$4 sm:$0xff]   ;;  %v13943_v23 = vld [vmem:[#allocation11 + $0x76c] ss:$16 sps:$4 sm:$0xff]   ;;  %v3018_v25 = vmax.f32 %v2975_v14, %v3017_v20  ;;  %v13995_v14 = vld [vmem:[#allocation13 + $0x90] ss:$8 sps:$4 sm:$0xff]  }
 0x5f8   : > { %4882 = vmatprep.subr.bf16.mxu1 %v13877_v24  ;;  %v13938_v24 = vld [vmem:[#allocation11 + $0x760] ss:$16 sps:$4 sm:$0xff]   ;;  %v14006_v20 = vld [vmem:[#allocation13 + $0xc4] ss:$8 sps:$4 sm:$0xff]  }
 0x5f9   : > { %4710 = vmatmul.mubr.bf16.vlgmr.msra.gmra.mrb[12].mxu0 %v3289_v28 }
 0x5fa   : > { %4874 = vmatmul.mubr.bf16.vlgmr.msra.gmra.mrb[12].mxu1 %v3289_v28  ;;  %4719 = vmatpush1.bf16.msra.mxu0 %v13872_v27  ;;  %v13946_v27 = vld [vmem:[#allocation11 + $0x784] ss:$16 sps:$4 sm:$0xff]   ;;  %v13949_v28 = vld [vmem:[#allocation11 + $0x78c] ss:$16 sps:$4 sm:$0xff]  }
 0x5fb   : > { %4750 = vmatprep.mubr.bf16.mxu0 %v3292_v32  ;;  %4883 = vmatpush1.bf16.msra.mxu1 %v13875_v29  ;;  %v13944_v29 = vld [vmem:[#allocation11 + $0x780] ss:$16 sps:$4 sm:$0xff]  }
 0x5fc   : > { %4914 = vmatprep.mubr.bf16.mxu1 %v3292_v32  ;;  %4720 = vmatprep.subr.bf16.mxu0 %v13880_v31  ;;  %v3019_v31 = vrot.slane %v3018_v25, 2  ;;  %v13947_v32 = vld [vmem:[#allocation11 + $0x788] ss:$16 sps:$4 sm:$0xff]  }
 0x5fd   : > { %4884 = vmatprep.subr.bf16.mxu1 %v13883_v35  ;;  %v13952_v35 = vld [vmem:[#allocation11 + $0x7a4] ss:$16 sps:$4 sm:$0xff]  }
 0x5fe   : > { %4721 = vmatpush1.bf16.msra.mxu0 %v13878_v36  ;;  %v13955_v36 = vld [vmem:[#allocation11 + $0x7ac] ss:$16 sps:$4 sm:$0xff]  }
 0x5ff   : > { %4885 = vmatpush1.bf16.msra.mxu1 %v13881_v37  ;;  %4722 = vmatprep.subr.bf16.mxu0 %v13886_v38  ;;  %v13950_v37 = vld [vmem:[#allocation11 + $0x7a0] ss:$16 sps:$4 sm:$0xff]   ;;  %v3020_v38 = vmax.f32 %v3018_v25, %v3019_v31 }
 0x600   : > { %4886 = vmatprep.subr.bf16.mxu1 %v13889_v22  ;;  %v13953_v22 = vld [vmem:[#allocation11 + $0x7a8] ss:$16 sps:$4 sm:$0xff]   ;;  %v5428_v31 = vld [vmem:[%s16699_s3 + $0x88] sm:$0xff] }
 0x601   : > { %v14010_v25 = vld [vmem:[#allocation13 + $0xe0] ss:$8 sps:$4 sm:$0xff]  }
 0x602   : > { %4723 = vmatpush1.bf16.msra.mxu0 %v13884_v40  ;;  %v13958_v40 = vld [vmem:[#allocation11 + $0x7c4] ss:$16 sps:$4 sm:$0xff]  }
 0x603   : > { %4887 = vmatpush1.bf16.msra.mxu1 %v13887_v41  ;;  %4724 = vmatprep.subr.bf16.mxu0 %v13892_v42  ;;  %v13961_v41 = vld [vmem:[#allocation11 + $0x7cc] ss:$16 sps:$4 sm:$0xff]   ;;  %v13956_v42 = vld [vmem:[#allocation11 + $0x7c0] ss:$16 sps:$4 sm:$0xff]  }
 0x604   : > { %4888 = vmatprep.subr.bf16.mxu1 %v13895_v44  ;;  %v3021_v44 = vrot.slane %v3020_v38, 1 }
 0x606   : > { %4725 = vmatpush1.bf16.msra.mxu0 %v13890_v47  ;;  %v13959_v47 = vld [vmem:[#allocation11 + $0x7c8] ss:$16 sps:$4 sm:$0xff]  }
 0x607   : > { %4889 = vmatpush1.bf16.msra.mxu1 %v13893_v48  ;;  %4726 = vmatprep.subr.bf16.mxu0 %v13898_v50  ;;  %v13964_v48 = vld [vmem:[#allocation11 + $0x7e4] ss:$16 sps:$4 sm:$0xff]   ;;  %v13967_v50 = vld [vmem:[#allocation11 + $0x7ec] ss:$16 sps:$4 sm:$0xff]  }
 0x608   : > { %4890 = vmatprep.subr.bf16.mxu1 %v13901_v51  ;;  %v13962_v51 = vld [vmem:[#allocation11 + $0x7e0] ss:$16 sps:$4 sm:$0xff]  }
 0x60a   : > { %4727 = vmatpush1.bf16.msra.mxu0 %v13896_v53  ;;  %v3022_v53 = vmax.f32 %v3020_v38, %v3021_v44  ;;  %v5430_v38 = vld [vmem:[%s16699_s3 + $0x98] sm:$0xff]  ;;  %v5431_v44 = vld [vmem:[%s16699_s3 + $0xa0] sm:$0xff] }
 0x60b   : > { %4891 = vmatpush1.bf16.msra.mxu1 %v13899_v54  ;;  %4728 = vmatprep.subr.bf16.mxu0 %v13904_v55  ;;  %v13965_v54 = vld [vmem:[#allocation11 + $0x7e8] ss:$16 sps:$4 sm:$0xff]   ;;  %v13970_v55 = vld [vmem:[#allocation13 + $0x4] ss:$8 sps:$4 sm:$0xff]  }
 0x60c   : > { %4892 = vmatprep.subr.bf16.mxu1 %v13907_v11  ;;  %v13968_v11 = vld [vmem:[#allocation13] ss:$8 sps:$4 sm:$0xff]  }
 0x60e   : > { %4729 = vmatpush1.bf16.msra.mxu0 %v13902_v56  ;;  %v3291_v56 = vpack.c.bf16 %v3022_v53, %v3022_v53  ;;  %v5416_v53 = vld [vmem:[%s16699_s3 + $0x28] sm:$0xff] }
 0x60f   : > { %4893 = vmatpush1.bf16.msra.mxu1 %v13905_v57  ;;  %4730 = vmatprep.subr.bf16.mxu0 %v13910_v58  ;;  %v13973_v57 = vld [vmem:[#allocation13 + $0x14] ss:$8 sps:$4 sm:$0xff]   ;;  %v13971_v58 = vld [vmem:[#allocation13 + $0x10] ss:$8 sps:$4 sm:$0xff]  }
 0x610   : > { %4894 = vmatprep.subr.bf16.mxu1 %v13913_v59  ;;  %v13976_v59 = vld [vmem:[#allocation13 + $0x24] ss:$8 sps:$4 sm:$0xff]  }
 0x612   : > { %4731 = vmatpush1.bf16.msra.mxu0 %v13908_v17  ;;  %v13974_v17 = vld [vmem:[#allocation13 + $0x20] ss:$8 sps:$4 sm:$0xff]  }
 0x613   : > { %4895 = vmatpush1.bf16.msra.mxu1 %v13911_v60  ;;  %4732 = vmatprep.subr.bf16.mxu0 %v13916_v61  ;;  %v13979_v60 = vld [vmem:[#allocation13 + $0x34] ss:$8 sps:$4 sm:$0xff]   ;;  %v13977_v61 = vld [vmem:[#allocation13 + $0x30] ss:$8 sps:$4 sm:$0xff]  }
 0x614   : > { %4896 = vmatprep.subr.bf16.mxu1 %v13919_v62  ;;  %v13982_v62 = vld [vmem:[#allocation13 + $0x44] ss:$8 sps:$4 sm:$0xff]  }
 0x616   : > { %4733 = vmatpush1.bf16.msra.mxu0 %v13914_v63  ;;  %v13980_v63 = vld [vmem:[#allocation13 + $0x40] ss:$8 sps:$4 sm:$0xff]  }
 0x617   : > { %4897 = vmatpush1.bf16.msra.mxu1 %v13917_v3  ;;  %4734 = vmatprep.subr.bf16.mxu0 %v13922_v5  ;;  %v13985_v3 = vld [vmem:[#allocation13 + $0x54] ss:$8 sps:$4 sm:$0xff]   ;;  %v13983_v5 = vld [vmem:[#allocation13 + $0x50] ss:$8 sps:$4 sm:$0xff]  }
 0x618   : > { %4898 = vmatprep.subr.bf16.mxu1 %v13925_v49  ;;  %v13988_v49 = vld [vmem:[#allocation13 + $0x64] ss:$8 sps:$4 sm:$0xff]  }
 0x61a   : > { %4735 = vmatpush1.bf16.msra.mxu0 %v13920_v39  ;;  %v13986_v39 = vld [vmem:[#allocation13 + $0x60] ss:$8 sps:$4 sm:$0xff]  }
 0x61b   : > { %4899 = vmatpush1.bf16.msra.mxu1 %v13923_v8  ;;  %4736 = vmatprep.subr.bf16.mxu0 %v13928_v9  ;;  %v13989_v8 = vld [vmem:[#allocation13 + $0x70] ss:$8 sps:$4 sm:$0xff]   ;;  %v13994_v9 = vld [vmem:[#allocation13 + $0x84] ss:$8 sps:$4 sm:$0xff]  }
 0x61c   : > { %4900 = vmatprep.subr.bf16.mxu1 %v13931_v10  ;;  %v13992_v10 = vld [vmem:[#allocation13 + $0x80] ss:$8 sps:$4 sm:$0xff]  }
 0x61e   : > { %4737 = vmatpush1.bf16.msra.mxu0 %v13926_v13  ;;  %v13997_v13 = vld [vmem:[#allocation13 + $0x94] ss:$8 sps:$4 sm:$0xff]  }
 0x61f   : > { %4901 = vmatpush1.bf16.msra.mxu1 %v13929_v15  ;;  %4738 = vmatprep.subr.bf16.mxu0 %v13934_v16  ;;  %v14000_v15 = vld [vmem:[#allocation13 + $0xa4] ss:$8 sps:$4 sm:$0xff]   ;;  %v13998_v16 = vld [vmem:[#allocation13 + $0xa0] ss:$8 sps:$4 sm:$0xff]  }
 0x620   : > { %4902 = vmatprep.subr.bf16.mxu1 %v13937_v18  ;;  %v14003_v18 = vld [vmem:[#allocation13 + $0xb4] ss:$8 sps:$4 sm:$0xff]  }
 0x622   : > { %4739 = vmatpush1.bf16.msra.mxu0 %v13932_v19  ;;  %v14001_v19 = vld [vmem:[#allocation13 + $0xb0] ss:$8 sps:$4 sm:$0xff]  }
 0x623   : > { %4903 = vmatpush1.bf16.msra.mxu1 %v13935_v33  ;;  %4740 = vmatprep.subr.bf16.mxu0 %v13940_v21  ;;  %v14004_v33 = vld [vmem:[#allocation13 + $0xc0] ss:$8 sps:$4 sm:$0xff]   ;;  %v14009_v21 = vld [vmem:[#allocation13 + $0xd4] ss:$8 sps:$4 sm:$0xff]  }
 0x624   : > { %4904 = vmatprep.subr.bf16.mxu1 %v13943_v23  ;;  %v14007_v23 = vld [vmem:[#allocation13 + $0xd0] ss:$8 sps:$4 sm:$0xff]  }
 0x626   : > { %4741 = vmatpush1.bf16.msra.mxu0 %v13938_v24  ;;  %v14012_v24 = vld [vmem:[#allocation13 + $0xe4] ss:$8 sps:$4 sm:$0xff]  }
 0x627   : > { %4905 = vmatpush1.bf16.msra.mxu1 %v13941_v12  ;;  %4742 = vmatprep.subr.bf16.mxu0 %v13946_v27  ;;  %v14015_v12 = vld [vmem:[#allocation13 + $0xf4] ss:$8 sps:$4 sm:$0xff]   ;;  %v14013_v27 = vld [vmem:[#allocation13 + $0xf0] ss:$8 sps:$4 sm:$0xff]  }
 0x628   : > { %4906 = vmatprep.subr.bf16.mxu1 %v13949_v28  ;;  %v14018_v28 = vld [vmem:[#allocation13 + $0x104] ss:$8 sps:$4 sm:$0xff]  }
 0x62a   : > { %4743 = vmatpush1.bf16.msra.mxu0 %v13944_v29  ;;  %v5427_v29 = vld [vmem:[%s16699_s3 + $0x80] sm:$0xff] }
 0x62b   : > { %4907 = vmatpush1.bf16.msra.mxu1 %v13947_v32  ;;  %4744 = vmatprep.subr.bf16.mxu0 %v13952_v35  ;;  %v5411_v32 = vld [vmem:[%s16699_s3] sm:$0xff]  ;;  %v12765_v35 = vpack.c.bf16 %v5428_v31, %v5427_v29 }
 0x62c   : > { %4908 = vmatprep.subr.bf16.mxu1 %v13955_v36  ;;  %v5412_v36 = vld [vmem:[%s16699_s3 + $0x8] sm:$0xff] }
 0x62e   : > { %4745 = vmatpush1.bf16.msra.mxu0 %v13950_v37  ;;  %v5429_v37 = vld [vmem:[%s16699_s3 + $0x90] sm:$0xff] }
 0x62f   : > { %4909 = vmatpush1.bf16.msra.mxu1 %v13953_v22  ;;  %4746 = vmatprep.subr.bf16.mxu0 %v13958_v40  ;;  %v12767_v22 = vpack.c.bf16 %v5412_v36, %v5411_v32  ;;  %v12769_v40 = vpack.c.bf16 %v5430_v38, %v5429_v37  ;;  %v14016_v38 = vld [vmem:[#allocation13 + $0x100] ss:$8 sps:$4 sm:$0xff]  }
 0x630   : > { %4910 = vmatprep.subr.bf16.mxu1 %v13961_v41  ;;  %v5413_v41 = vld [vmem:[%s16699_s3 + $0x10] sm:$0xff] }
 0x632   : > { %4747 = vmatpush1.bf16.msra.mxu0 %v13956_v42  ;;  %v5414_v42 = vld [vmem:[%s16699_s3 + $0x18] sm:$0xff] }
 0x633   : > { %4911 = vmatpush1.bf16.msra.mxu1 %v13959_v47  ;;  %4748 = vmatprep.subr.bf16.mxu0 %v13964_v48  ;;  %v5432_v47 = vld [vmem:[%s16699_s3 + $0xa8] sm:$0xff]  ;;  %v12771_v48 = vpack.c.bf16 %v5414_v42, %v5413_v41  ;;  %v14019_v42 = vld [vmem:[#allocation13 + $0x110] ss:$8 sps:$4 sm:$0xff]  }
 0x634   : > { %4912 = vmatprep.subr.bf16.mxu1 %v13967_v50  ;;  %v12773_v50 = vpack.c.bf16 %v5432_v47, %v5431_v44  ;;  %v14024_v44 = vld [vmem:[#allocation13 + $0x124] ss:$8 sps:$4 sm:$0xff]   ;;  %v14022_v47 = vld [vmem:[#allocation13 + $0x120] ss:$8 sps:$4 sm:$0xff]  }
 0x636   : > { %4749 = vmatpush1.bf16.msra.mxu0 %v13962_v51  ;;  %v5415_v51 = vld [vmem:[%s16699_s3 + $0x20] sm:$0xff] }
 0x637   : > { %4913 = vmatpush1.bf16.msra.mxu1 %v13965_v54  ;;  %5327 = vmatprep.subr.bf16.mxu0 %v13970_v55  ;;  %v5433_v54 = vld [vmem:[%s16699_s3 + $0xb0] sm:$0xff]  ;;  %v5434_v55 = vld [vmem:[%s16699_s3 + $0xb8] sm:$0xff] }
 0x638   : > { %12766 = vmatprep.subr.bf16.mxu1 %v12765_v35 }
 0x639   : > { %4751 = vmatmul.mubr.bf16.vlgmr.msra.gmra.mrb[12].mxu0 %v3291_v56 }
 0x63a   : > { %4915 = vmatmul.mubr.bf16.vlgmr.msra.gmra.mrb[12].mxu1 %v3291_v56  ;;  %5328 = vmatpush1.bf16.msra.mxu0 %v13968_v11  ;;  %v12775_v11 = vpack.c.bf16 %v5416_v53, %v5415_v51  ;;  %v12777_v56 = vpack.c.bf16 %v5434_v55, %v5433_v54  ;;  %v14030_v51 = vld [vmem:[#allocation13 + $0x144] ss:$8 sps:$4 sm:$0xff]   ;;  %v14028_v53 = vld [vmem:[#allocation13 + $0x140] ss:$8 sps:$4 sm:$0xff]   ;;  %v14033_v54 = vld [vmem:[#allocation13 + $0x154] ss:$8 sps:$4 sm:$0xff]  }
 0x63b   : > { %5329 = vmatprep.subr.bf16.mxu0 %v13973_v57  ;;  %12768 = vmatpush3.bf16.msra.mxu1 %v12767_v22  ;;  %v5417_v57 = vld [vmem:[%s16699_s3 + $0x30] sm:$0xff]  ;;  %v14031_v55 = vld [vmem:[#allocation13 + $0x150] ss:$8 sps:$4 sm:$0xff]  }
 0x63c   : > { %12770 = vmatprep.subr.bf16.mxu1 %v12769_v40  ;;  %v14021_v40 = vld [vmem:[#allocation13 + $0x114] ss:$8 sps:$4 sm:$0xff]  }
 0x63e   : > { %5330 = vmatpush1.bf16.msra.mxu0 %v13971_v58  ;;  %v5418_v58 = vld [vmem:[%s16699_s3 + $0x38] sm:$0xff] }
 0x63f   : > { %5331 = vmatprep.subr.bf16.mxu0 %v13976_v59  ;;  %12772 = vmatpush3.bf16.msra.mxu1 %v12771_v48  ;;  %v5435_v59 = vld [vmem:[%s16699_s3 + $0xc0] sm:$0xff] }
 0x640   : > { %12774 = vmatprep.subr.bf16.mxu1 %v12773_v50  ;;  %v14027_v48 = vld [vmem:[#allocation13 + $0x134] ss:$8 sps:$4 sm:$0xff]   ;;  %v14025_v50 = vld [vmem:[#allocation13 + $0x130] ss:$8 sps:$4 sm:$0xff]  }
 0x642   : > { %5332 = vmatpush1.bf16.msra.mxu0 %v13974_v17  ;;  %v5436_v17 = vld [vmem:[%s16699_s3 + $0xc8] sm:$0xff] }
 0x643   : > { %5333 = vmatprep.subr.bf16.mxu0 %v13979_v60  ;;  %12776 = vmatpush3.bf16.msra.mxu1 %v12775_v11  ;;  %v12779_v60 = vpack.c.bf16 %v5418_v58, %v5417_v57  ;;  %v14036_v11 = vld [vmem:[#allocation13 + $0x164] ss:$8 sps:$4 sm:$0xff]   ;;  %v14039_v57 = vld [vmem:[#allocation13 + $0x174] ss:$8 sps:$4 sm:$0xff]   ;;  %v14037_v58 = vld [vmem:[#allocation13 + $0x170] ss:$8 sps:$4 sm:$0xff]  }
 0x644   : > { %12778 = vmatprep.subr.bf16.mxu1 %v12777_v56  ;;  %v14034_v56 = vld [vmem:[#allocation13 + $0x160] ss:$8 sps:$4 sm:$0xff]  }
 0x646   : > { %5334 = vmatpush1.bf16.msra.mxu0 %v13977_v61  ;;  %v12781_v61 = vpack.c.bf16 %v5436_v17, %v5435_v59  ;;  %v14042_v59 = vld [vmem:[#allocation13 + $0x184] ss:$8 sps:$4 sm:$0xff]   ;;  %v14040_v17 = vld [vmem:[#allocation13 + $0x180] ss:$8 sps:$4 sm:$0xff]  }
 0x647   : > { %5335 = vmatprep.subr.bf16.mxu0 %v13982_v62  ;;  %v5419_v62 = vld [vmem:[%s16699_s3 + $0x40] sm:$0xff]  ;;  %12780 = vmatpush3.bf16.msra.mxu1 %v12779_v60 }
 0x648   : > { %12782 = vmatprep.subr.bf16.mxu1 %v12781_v61  ;;  %v14045_v60 = vld [vmem:[#allocation13 + $0x194] ss:$8 sps:$4 sm:$0xff]   ;;  %v14043_v61 = vld [vmem:[#allocation13 + $0x190] ss:$8 sps:$4 sm:$0xff]  }
 0x64a   : > { %5336 = vmatpush1.bf16.msra.mxu0 %v13980_v63  ;;  %v5420_v63 = vld [vmem:[%s16699_s3 + $0x48] sm:$0xff] }
 0x64b   : > { %5337 = vmatprep.subr.bf16.mxu0 %v13985_v3  ;;  %v5437_v3 = vld [vmem:[%s16699_s3 + $0xd0] sm:$0xff] }
 0x64e   : > { %5338 = vmatpush1.bf16.msra.mxu0 %v13983_v5  ;;  %v5438_v5 = vld [vmem:[%s16699_s3 + $0xd8] sm:$0xff] }
 0x64f   : > { %5339 = vmatprep.subr.bf16.mxu0 %v13988_v49  ;;  %v12783_v49 = vpack.c.bf16 %v5420_v63, %v5419_v62  ;;  %v14048_v62 = vld [vmem:[#allocation13 + $0x1a4] ss:$8 sps:$4 sm:$0xff]   ;;  %v14046_v63 = vld [vmem:[#allocation13 + $0x1a0] ss:$8 sps:$4 sm:$0xff]  }
 0x651   : > { %12784 = vmatpush3.bf16.msra.mxu1 %v12783_v49  ;;  %v14054_v49 = vld [vmem:[#allocation13 + $0x1c4] ss:$8 sps:$4 sm:$0xff]  }
 0x652   : > { %5340 = vmatpush1.bf16.msra.mxu0 %v13986_v39  ;;  %v12785_v39 = vpack.c.bf16 %v5438_v5, %v5437_v3  ;;  %v14051_v3 = vld [vmem:[#allocation13 + $0x1b4] ss:$8 sps:$4 sm:$0xff]   ;;  %v14049_v5 = vld [vmem:[#allocation13 + $0x1b0] ss:$8 sps:$4 sm:$0xff]  }
 0x653   : > { %5341 = vmatprep.subr.bf16.mxu0 %v13991_v7  ;;  %v5421_v7 = vld [vmem:[%s16699_s3 + $0x50] sm:$0xff] }
 0x654   : > { %12786 = vmatprep.subr.bf16.mxu1 %v12785_v39  ;;  %v14052_v39 = vld [vmem:[#allocation13 + $0x1c0] ss:$8 sps:$4 sm:$0xff]  }
 0x656   : > { %5342 = vmatpush1.bf16.msra.mxu0 %v13989_v8  ;;  %v5422_v8 = vld [vmem:[%s16699_s3 + $0x58] sm:$0xff] }
 0x657   : > { %5343 = vmatprep.subr.bf16.mxu0 %v13994_v9  ;;  %v5439_v9 = vld [vmem:[%s16699_s3 + $0xe0] sm:$0xff] }
 0x65a   : > { %5344 = vmatpush1.bf16.msra.mxu0 %v13992_v10  ;;  %v5440_v10 = vld [vmem:[%s16699_s3 + $0xe8] sm:$0xff] }
 0x65b   : > { %5345 = vmatprep.subr.bf16.mxu0 %v13997_v13  ;;  %v12787_v13 = vpack.c.bf16 %v5422_v8, %v5421_v7  ;;  %v14057_v7 = vld [vmem:[#allocation13 + $0x1d4] ss:$8 sps:$4 sm:$0xff]   ;;  %v14055_v8 = vld [vmem:[#allocation13 + $0x1d0] ss:$8 sps:$4 sm:$0xff]  }
 0x65d   : > { %12788 = vmatpush3.bf16.msra.mxu1 %v12787_v13  ;;  %v14058_v13 = vld [vmem:[#allocation13 + $0x1e0] ss:$8 sps:$4 sm:$0xff]  }
 0x65e   : > { %5346 = vmatpush1.bf16.msra.mxu0 %v13995_v14  ;;  %v12789_v14 = vpack.c.bf16 %v5440_v10, %v5439_v9  ;;  %v14060_v10 = vld [vmem:[#allocation13 + $0x1e4] ss:$8 sps:$4 sm:$0xff]  }
 0x65f   : > { %5347 = vmatprep.subr.bf16.mxu0 %v14000_v15  ;;  %v16217_v15 = vld [vmem:[%s16700_s17] sm:$0xf] }
 0x660   : > { %12790 = vmatprep.subr.bf16.mxu1 %v12789_v14  ;;  %v4586_v9 = vrot.slane %v16217_v15, %v16160_v45 }
 0x662   : > { %5348 = vmatpush1.bf16.msra.mxu0 %v13998_v16  ;;  %v4578_v16 = vrot.slane %v16217_v15, %v16131_v46 }
 0x663   : > { %5349 = vmatprep.subr.bf16.mxu0 %v14003_v18  ;;  %v4582_v18 = vrot.slane %v16217_v15, %v16135_v52 }
 0x666   : > { %5350 = vmatpush1.bf16.msra.mxu0 %v14001_v19  ;;  %v4590_v19 = vrot.slane %v16217_v15, %v16149_v34 }
 0x667   : > { %5351 = vmatprep.subr.bf16.mxu0 %v14006_v20 }
 0x66a   : > { %5352 = vmatpush1.bf16.msra.mxu0 %v14004_v33 }
 0x66b   : > { %5353 = vmatprep.subr.bf16.mxu0 %v14009_v21 }
 0x66e   : > { %5354 = vmatpush1.bf16.msra.mxu0 %v14007_v23 }
 0x66f   : > { %5355 = vmatprep.subr.bf16.mxu0 %v14012_v24 }
 0x672   : > { %5356 = vmatpush1.bf16.msra.mxu0 %v14010_v25 }
 0x673   : > { %5357 = vmatprep.subr.bf16.mxu0 %v14015_v12 }
 0x676   : > { %5358 = vmatpush1.bf16.msra.mxu0 %v14013_v27 }
 0x677   : > { %5368 = vmatprep.subr.bf16.mxu0 %v14018_v28 }
 0x70c   : > { %v4752_v20 = vpop.f32.mrb[12].mxu0 }
 0x70d   : > { %v13128_v33 = vadd.f32 %v4752_v20, %v4578_v16  ;;  %v16225_v21 = vpop.f32.mrb[12].mxu1  ;;  %v4754_v23 = vpop.f32.mrb[13].mxu0  ;;  %v14063_v16 = vld [vmem:[#allocation13 + $0x1f4] ss:$8 sps:$4 sm:$0xff]  }
 0x70e   : > { %v13129_v24 = vadd.f32 %v4754_v23, %v4582_v18  ;;  %v4918_v25 = vpop.f32.mrb[13].mxu1  ;;  %v4756_v12 = vpop.f32.mrb[14].mxu0  ;;  %v13130_v14 = vadd.f32 %v16225_v21, %v4586_v9  ;;  %v14061_v18 = vld [vmem:[#allocation13 + $0x1f0] ss:$8 sps:$4 sm:$0xff]   ;;  %v5441_v23 = vld [vmem:[%s16699_s3 + $0xf0] sm:$0xff] }
 0x70f   : > { %v4923_v27 = vmax.f32 %v13128_v33, 0.0  ;;  %v13131_v28 = vadd.f32 %v4918_v25, %v4590_v19  ;;  %v4920_v29 = vpop.f32.mrb[14].mxu1  ;;  %v4757_v31 = vpop.f32.mrb[15].mxu0  ;;  %v5423_v20 = vld [vmem:[%s16699_s3 + $0x60] sm:$0xff]  ;;  %v5424_v33 = vld [vmem:[%s16699_s3 + $0x68] sm:$0xff]  ;;  %v5425_v12 = vld [vmem:[%s16699_s3 + $0x70] sm:$0xff] }
 0x710   : > { %v4924_v32 = vmax.f32 %v13129_v24, 0.0  ;;  %v4921_v35 = vpop.f32.mrb[15].mxu1  ;;  %v4925_v19 = vmax.f32 %v13130_v14, 0.0  ;;  %v12791_v21 = vpack.c.bf16 %v5424_v33, %v5423_v20  ;;  %v5442_v24 = vld [vmem:[%s16699_s3 + $0xf8] sm:$0xff]  ;;  %v15393_v29 = vmov 1  }
 0x711   : > { %v4926_v36 = vmax.f32 %v13131_v28, 0.0  ;;  %v4991_v22 = vpack.c.bf16 %v4923_v27, %v4923_v27  ;;  %v12793_v25 = vpack.c.bf16 %v5442_v24, %v5441_v23  ;;  %v5426_v27 = vld [vmem:[%s16699_s3 + $0x78] sm:$0xff]  ;;  %13540 = vset.pattern.permute.xlu0 %v15393_v29  ;;  %v15394_v31 = vmov 2   ;;  %v4995_v35 = vld [vmem:[%s16701_s6] sm:$0x3] }
 0x712   : > { %v4992_v37 = vpack.c.bf16 %v4924_v32, %v4924_v32  ;;  %v4993_v15 = vpack.c.bf16 %v4925_v19, %v4925_v19  ;;  %12792 = vmatpush3.bf16.msra.mxu1 %v12791_v21  ;;  %v12795_v28 = vpack.c.bf16 %v5426_v27, %v5425_v12  ;;  %13544 = vset.pattern.permute.xlu1 %v15394_v31  ;;  %v14568_v32 = vld [vmem:[%s16110_s28] sm:$0xff]  ;;  %v5559_v9 = vld [vmem:[#allocation14 + $0x70] sm:$0xff]  ;;  %v5517_v12 = vpop.permute.xlu1 %5516  ;;  %s11580_s28 = sshll.u32 %s15695_s18, 7 }
 0x713   : > { %v4994_v41 = vpack.c.bf16 %v4926_v36, %v4926_v36  ;;  %12794 = vmatprep.subr.bf16.mxu1 %v12793_v25  ;;  %5525 = vperm.xlu0 %13540, %v14568_v32   ;;  %v5320_v36 = vrot.slane %v4995_v35, %v16131_v46  ;;  %v5544_v14 = vld [vmem:[%s16702_s0] sm:$0x7]  ;;  %s5832_s9 = sadd.s32 1, %s11580_s28  ;;  %s5836_s8 = sadd.s32 2, %s11580_s28 }
 0x714   : > { %5359 = vmatprep.mubr.bf16.mxu0 %v4992_v37  ;;  %v5324_v37 = vrot.slane %v4995_v35, %v16135_v52  ;;  %s5840_s14 = sadd.s32 3, %s11580_s28  ;;  %s5829_s17 = sld [smem:[#allocation4 + %s11580_s28]] }
 0x715   : > { %5360 = vmatmul.mubr.bf16.vlgmr.msra.gmra.mrb[16].mxu0 %v4991_v22  ;;  %s5844_s6 = sadd.s32 4, %s11580_s28  ;;  %s5833_s0 = sld [smem:[#allocation4 + %s5832_s9]] }
 0x716   : > { %5369 = vmatpush1.bf16.msra.mxu0 %v14016_v38  ;;  %5400 = vmatprep.mubr.bf16.mxu0 %v4994_v41  ;;  %s5852_s3 = sadd.s32 6, %s11580_s28  ;;  %s5856_s4 = sadd.s32 7, %s11580_s28 }
 0x717   : > { %5370 = vmatprep.subr.bf16.mxu0 %v14021_v40  ;;  %12796 = vmatpush3.bf16.msra.mxu1 %v12795_v28  ;;  %s5853_s13 = sld [smem:[#allocation4 + %s5852_s3]] }
 0x718   : > { %12797 = vmatprep.subr.bf16.mxu1 %v15389_v0  ;;  %13541 = vset.pattern.permute.xlu0 %v15394_v31  ;;  %v5721_v31 = vld [vmem:[#allocation16 + $0x8] sm:$0xff]  ;;  %s5857_s16 = sld [smem:[#allocation4 + %s5856_s4]] }
 0x719   : > { %5535 = vperm.xlu0 %13541, %v14568_v32  }
 0x71a   : > { %5371 = vmatpush1.bf16.msra.mxu0 %v14019_v42 }
 0x71b   : > { %5372 = vmatprep.subr.bf16.mxu0 %v14024_v44  ;;  %s5834_s19 = scalar_lea.vmem [#allocation2], %s5833_s0  ;;  %s16712_s0 = sld [smem:[#allocation84_spill]] }
 0x71d   : > { %13543 = vset.pattern.permute.xlu0 %v15393_v29  ;;  %v5720_v29 = vld [vmem:[#allocation16] sm:$0xff]  ;;  %s5854_s3 = scalar_lea.vmem [#allocation2], %s5853_s13  ;;  %s16708_s13 = sld [smem:[#allocation76_spill]] }
 0x71e   : > { %5373 = vmatpush1.bf16.msra.mxu0 %v14022_v47 }
 0x71f   : > { %5374 = vmatprep.subr.bf16.mxu0 %v14027_v48 }
 0x722   : > { %5375 = vmatpush1.bf16.msra.mxu0 %v14025_v50  ;;  %v5545_v50 = vld [vmem:[#allocation14] sm:$0xff] }
 0x723   : > { %5376 = vmatprep.subr.bf16.mxu0 %v14030_v51  ;;  %v5546_v51 = vld [vmem:[#allocation14 + $0x8] sm:$0xff] }
 0x726   : > { %5377 = vmatpush1.bf16.msra.mxu0 %v14028_v53  ;;  %v5547_v53 = vld [vmem:[#allocation14 + $0x10] sm:$0xff] }
 0x727   : > { %5378 = vmatprep.subr.bf16.mxu0 %v14033_v54  ;;  %v12798_v54 = vpack.c.bf16 %v5546_v51, %v5545_v50  ;;  %v5726_v50 = vld [vmem:[#allocation16 + $0x30] sm:$0xff]  ;;  %v5727_v51 = vld [vmem:[#allocation16 + $0x38] sm:$0xff] }
 0x72a   : > { %5379 = vmatpush1.bf16.msra.mxu0 %v14031_v55  ;;  %v5548_v55 = vld [vmem:[#allocation14 + $0x18] sm:$0xff] }
 0x72b   : > { %5380 = vmatprep.subr.bf16.mxu0 %v14036_v11  ;;  %v12801_v11 = vpack.c.bf16 %v5548_v55, %v5547_v53  ;;  %v12831_v53 = vpack.c.bf16 %v5727_v51, %v5726_v50  ;;  %v5729_v55 = vld [vmem:[#allocation16 + $0x48] sm:$0xff]  ;;  %v6015_v50 = vld [vmem:[#allocation19 + $0x20] sm:$0xff] }
 0x72c   : > { %v6016_v51 = vld [vmem:[#allocation19 + $0x28] sm:$0xff] }
 0x72e   : > { %5381 = vmatpush1.bf16.msra.mxu0 %v14034_v56  ;;  %v5549_v56 = vld [vmem:[#allocation14 + $0x20] sm:$0xff] }
 0x72f   : > { %5382 = vmatprep.subr.bf16.mxu0 %v14039_v57  ;;  %v5550_v57 = vld [vmem:[#allocation14 + $0x28] sm:$0xff] }
 0x732   : > { %5383 = vmatpush1.bf16.msra.mxu0 %v14037_v58  ;;  %v12804_v58 = vpack.c.bf16 %v5550_v57, %v5549_v56  ;;  %v5730_v56 = vld [vmem:[#allocation16 + $0x50] sm:$0xff]  ;;  %v5731_v57 = vld [vmem:[#allocation16 + $0x58] sm:$0xff] }
 0x733   : > { %5384 = vmatprep.subr.bf16.mxu0 %v14042_v59  ;;  %v5551_v59 = vld [vmem:[#allocation14 + $0x30] sm:$0xff] }
 0x736   : > { %5385 = vmatpush1.bf16.msra.mxu0 %v14040_v17  ;;  %v5552_v17 = vld [vmem:[#allocation14 + $0x38] sm:$0xff] }
 0x737   : > { %5386 = vmatprep.subr.bf16.mxu0 %v14045_v60  ;;  %v12807_v60 = vpack.c.bf16 %v5552_v17, %v5551_v59  ;;  %v5732_v59 = vld [vmem:[#allocation16 + $0x60] sm:$0xff]  ;;  %v5733_v17 = vld [vmem:[#allocation16 + $0x68] sm:$0xff] }
 0x73a   : > { %5387 = vmatpush1.bf16.msra.mxu0 %v14043_v61  ;;  %v5553_v61 = vld [vmem:[#allocation14 + $0x40] sm:$0xff] }
 0x73b   : > { %5388 = vmatprep.subr.bf16.mxu0 %v14048_v62  ;;  %v5554_v62 = vld [vmem:[#allocation14 + $0x48] sm:$0xff] }
 0x73e   : > { %5389 = vmatpush1.bf16.msra.mxu0 %v14046_v63  ;;  %v12810_v63 = vpack.c.bf16 %v5554_v62, %v5553_v61  ;;  %v5734_v61 = vld [vmem:[#allocation16 + $0x70] sm:$0xff]  ;;  %v5735_v62 = vld [vmem:[#allocation16 + $0x78] sm:$0xff] }
 0x73f   : > { %5390 = vmatprep.subr.bf16.mxu0 %v14051_v3  ;;  %v5555_v3 = vld [vmem:[#allocation14 + $0x50] sm:$0xff] }
 0x742   : > { %5391 = vmatpush1.bf16.msra.mxu0 %v14049_v5  ;;  %v5556_v5 = vld [vmem:[#allocation14 + $0x58] sm:$0xff] }
 0x743   : > { %5392 = vmatprep.subr.bf16.mxu0 %v14054_v49  ;;  %v12813_v49 = vpack.c.bf16 %v5556_v5, %v5555_v3  ;;  %v11578_v5 = vld [vmem:[%s16704_s7] ss:$0 sm:$0xff]  ;;  %s5845_s7 = sld [smem:[#allocation4 + %s5844_s6]] }
 0x744   : > { %s16711_s6 = sld [smem:[#allocation82_spill]] }
 0x746   : > { %5393 = vmatpush1.bf16.msra.mxu0 %v14052_v39  ;;  %v5557_v39 = vld [vmem:[#allocation14 + $0x60] sm:$0xff] }
 0x747   : > { %5394 = vmatprep.subr.bf16.mxu0 %v14057_v7  ;;  %v5558_v7 = vld [vmem:[#allocation14 + $0x68] sm:$0xff] }
 0x74a   : > { %5395 = vmatpush1.bf16.msra.mxu0 %v14055_v8  ;;  %v12816_v8 = vpack.c.bf16 %v5558_v7, %v5557_v39  ;;  %v5915_v7 = vld [vmem:[#allocation17] sm:$0xff] }
 0x74b   : > { %5396 = vmatprep.subr.bf16.mxu0 %v14060_v10  ;;  %v5560_v10 = vld [vmem:[#allocation14 + $0x78] sm:$0xff] }
 0x74e   : > { %5397 = vmatpush1.bf16.msra.mxu0 %v14058_v13  ;;  %v12819_v13 = vpack.c.bf16 %v5560_v10, %v5559_v9 }
 0x74f   : > { %5398 = vmatprep.subr.bf16.mxu0 %v14063_v16 }
 0x752   : > { %5399 = vmatpush1.bf16.msra.mxu0 %v14061_v18  ;;  %v5443_v18 = vld [vmem:[%s16703_s12] sm:$0x1]  ;;  %s5837_s12 = sld [smem:[#allocation4 + %s5836_s8]] }
 0x753   : > { %12869 = vmatprep.subr.bf16.mxu0 %v15389_v0 }
 0x755   : > { %5401 = vmatmul.mubr.bf16.vlgmr.msra.gmra.mrb[16].mxu0 %v4993_v15 }
 0x756   : > { %12486 = vmatprep.mubr.msk.f32.mxu0 %vm15390_vm0, %v15391_v1 }
 0x758   : > { %s5838_s9 = scalar_lea.vmem [#allocation2], %s5837_s12  ;;  %s16713_s12 = sld [smem:[#allocation86_spill]] }
 0x792   : > { %v5526_v20 = vpop.permute.xlu0 %5525 }
 0x798   : > { %v5536_v24 = vpop.permute.xlu0 %5535 }
 0x828   : > { %v5402_v38 = vpop.f32.mrb[16].mxu0 }
 0x829   : > { %v13132_v22 = vadd.f32 %v5402_v38, %v5320_v36  ;;  %v5404_v40 = vpop.f32.mrb[17].mxu0  ;;  %v12822_v36 = vpack.c.bf16 %v5721_v31, %v5720_v29  ;;  %v5722_v38 = vld [vmem:[#allocation16 + $0x10] sm:$0xff]  ;;  %v5926_v29 = vld [vmem:[#allocation17 + $0x58] sm:$0xff] }
 0x82a   : > { %v13133_v41 = vadd.f32 %v5404_v40, %v5324_v37  ;;  %v5406_v42 = vpop.f32.mrb[18].mxu0 }
 0x82b   : > { %v5407_v44 = vpop.f32.mrb[19].mxu0  ;;  %v5409_v48 = vmax.f32 %v13132_v22, 0.0  ;;  %v5723_v22 = vld [vmem:[#allocation16 + $0x18] sm:$0xff] }
 0x82c   : > { %v5410_v47 = vmax.f32 %v13133_v41, 0.0  ;;  %v12825_v41 = vpack.c.bf16 %v5723_v22, %v5722_v38  ;;  %v5724_v44 = vld [vmem:[#allocation16 + $0x20] sm:$0xff]  ;;  %v5930_v38 = vld [vmem:[#allocation17 + $0x78] sm:$0xff] }
 0x82e   : > { %5508 = vmatprep.mubr.f32.mxu1 %v5410_v47  ;;  %v5725_v47 = vld [vmem:[#allocation16 + $0x28] sm:$0xff] }
 0x82f   : > { %5509 = vmatmul.mubr.f32.vlgmr.msra.gmra.mrb[16].mxu1 %v5409_v48  ;;  %v12828_v48 = vpack.c.bf16 %v5725_v47, %v5724_v44  ;;  %v6014_v47 = vld [vmem:[#allocation19 + $0x18] sm:$0xff] }
 0x830   : > { %12376 = vmatprep.mubr.msk.f32.mxu1 %vm15390_vm0, %v15391_v1  ;;  %12799 = vmatpush3.bf16.msra.mxu1 %v12798_v54  ;;  %v5728_v54 = vld [vmem:[#allocation16 + $0x40] sm:$0xff] }
 0x831   : > { %12800 = vmatprep.subr.bf16.mxu1 %v15389_v0 }
 0x834   : > { %12802 = vmatpush3.bf16.msra.mxu1 %v12801_v11  ;;  %v12834_v11 = vpack.c.bf16 %v5729_v55, %v5728_v54  ;;  %v6017_v54 = vld [vmem:[#allocation19 + $0x30] sm:$0xff]  ;;  %v6018_v55 = vld [vmem:[#allocation19 + $0x38] sm:$0xff] }
 0x835   : > { %12803 = vmatprep.subr.bf16.mxu1 %v15389_v0 }
 0x838   : > { %12805 = vmatpush3.bf16.msra.mxu1 %v12804_v58  ;;  %v12837_v58 = vpack.c.bf16 %v5731_v57, %v5730_v56  ;;  %v6019_v56 = vld [vmem:[#allocation19 + $0x40] sm:$0xff]  ;;  %v6020_v57 = vld [vmem:[#allocation19 + $0x48] sm:$0xff] }
 0x839   : > { %12806 = vmatprep.subr.bf16.mxu1 %v15389_v0 }
 0x83c   : > { %12808 = vmatpush3.bf16.msra.mxu1 %v12807_v60  ;;  %v12840_v60 = vpack.c.bf16 %v5733_v17, %v5732_v59  ;;  %v6021_v59 = vld [vmem:[#allocation19 + $0x50] sm:$0xff]  ;;  %v6022_v17 = vld [vmem:[#allocation19 + $0x58] sm:$0xff] }
 0x83d   : > { %12809 = vmatprep.subr.bf16.mxu1 %v15389_v0 }
 0x840   : > { %12811 = vmatpush3.bf16.msra.mxu1 %v12810_v63  ;;  %v12843_v63 = vpack.c.bf16 %v5735_v62, %v5734_v61  ;;  %v6023_v61 = vld [vmem:[#allocation19 + $0x60] sm:$0xff]  ;;  %v6024_v62 = vld [vmem:[#allocation19 + $0x68] sm:$0xff] }
 0x841   : > { %12812 = vmatprep.subr.bf16.mxu1 %v15389_v0 }
 0x844   : > { %12814 = vmatpush3.bf16.msra.mxu1 %v12813_v49 }
 0x845   : > { %12815 = vmatprep.subr.bf16.mxu1 %v15389_v0 }
 0x848   : > { %12817 = vmatpush3.bf16.msra.mxu1 %v12816_v8  ;;  %v5916_v8 = vld [vmem:[#allocation17 + $0x8] sm:$0xff] }
 0x849   : > { %12818 = vmatprep.subr.bf16.mxu1 %v15389_v0 }
 0x84c   : > { %12820 = vmatpush3.bf16.msra.mxu1 %v12819_v13  ;;  %v12846_v13 = vpack.c.bf16 %v5916_v8, %v5915_v7 }
 0x84d   : > { %12379 = vmatprep.subr.mxu1 %v15391_v1 }
 0x84f   : > { %12377 = vmatmul.mubr.f32.vlgmr.msra.gmra.mrb[18].mxu1 %v14568_v32 }
 0x850   : > { %12381 = vmatprep.mubr.msk.f32.mxu1 %vm15390_vm0, %v15391_v1  ;;  %12380 = vmatpush3.msk.msra.mxu1 %vm5635_vm1, %v5544_v14  ;;  %v5917_v14 = vld [vmem:[#allocation17 + $0x10] sm:$0xff] }
 0x851   : > { %12821 = vmatprep.subr.bf16.mxu1 %v15389_v0 }
 0x902   : > { %v12114_v16 = vpop.f32.mrb[16].mxu1 }
 0x903   : > { %v12115_v19 = vpop.f32.mrb[17].mxu1 }
 0x904   : > { %v12116_v15 = vadd.f32 %v12115_v19, %v12114_v16  ;;  %v5918_v16 = vld [vmem:[#allocation17 + $0x18] sm:$0xff] }
 0x905   : > { %v12849_v19 = vpack.c.bf16 %v5918_v16, %v5917_v14 }
 0x906   : > { %v5511_v33 = vadd.f32 %v12116_v15, %v5443_v18  ;;  %v5919_v15 = vld [vmem:[#allocation17 + $0x20] sm:$0xff] }
 0x908   : > { %v5522_v21 = vrot.slane %v5511_v33, %v16131_v46 }
 0x90a   : > { %v5528_v23 = vmul.f32 %v5526_v20, %v5522_v21  ;;  %v5538_v25 = vmul.f32 %v5536_v24, %v5522_v21  ;;  %v5523_v28 = vmul.f32 %v5522_v21, %v5517_v12  ;;  %v5920_v20 = vld [vmem:[#allocation17 + $0x28] sm:$0xff]  ;;  %v5921_v21 = vld [vmem:[#allocation17 + $0x30] sm:$0xff] }
 0x90b   : > { %v12852_v33 = vpack.c.bf16 %v5920_v20, %v5919_v15  ;;  %v5924_v12 = vld [vmem:[#allocation17 + $0x48] sm:$0xff] }
 0x90c   : > { %5530 = vrot.lane.b32.xlu1 %v5528_v23, %s15395_s15  ;;  %v5922_v23 = vld [vmem:[#allocation17 + $0x38] sm:$0xff]  ;;  %s5841_s15 = sld [smem:[#allocation4 + %s5840_s14]] }
 0x90d   : > { %v12855_v24 = vpack.c.bf16 %v5922_v23, %v5921_v21  ;;  %s16709_s14 = sld [smem:[#allocation78_spill]] }
 0x910   : > { %5540 = vrot.lane.b32.xlu1 %v5538_v25, %s15396_s22  ;;  %v5923_v25 = vld [vmem:[#allocation17 + $0x40] sm:$0xff]  ;;  %s5848_s22 = sadd.s32 5, %s11580_s28  ;;  %s5846_s28 = scalar_lea.vmem [#allocation2], %s5845_s7 }
 0x911   : > { %s5849_s11 = sld [smem:[#allocation4 + %s5848_s22]] }
 0x912   : > { %s5842_s8 = scalar_lea.vmem [#allocation2], %s5841_s15  ;;  %s16714_s15 = sld [smem:[#allocation87_spill]] }
 0x913   : > { %s16715_s22 = sld [smem:[#allocation89_spill]]  ;;  %s16716_s7 = sld [smem:[#allocation90_spill]] }
 0x917   : > { %s5850_s4 = scalar_lea.vmem [#allocation2], %s5849_s11  ;;  %s16706_s11 = sld [smem:[#allocation72_spill]] }
 0x922   : > { %v5627_v40 = vpop.f32.mrb[18].mxu1 }
 0x923   : > { %v12378_v42 = vpop.f32.mrb[19].mxu1 }
 0x924   : > { %v6013_v42 = vld [vmem:[#allocation19 + $0x10] sm:$0xff] }
 0x97e   : > { %v5531_v27 = vpop.permute.xlu1 %5530 }
 0x97f   : > { %v5533_v32 = vadd.f32 %v5531_v27, %v5523_v28  ;;  %v12858_v27 = vpack.c.bf16 %v5924_v12, %v5923_v25  ;;  %v5925_v28 = vld [vmem:[#allocation17 + $0x50] sm:$0xff]  ;;  %v6026_v12 = vld [vmem:[#allocation19 + $0x78] sm:$0xff] }
 0x980   : > { %v12861_v31 = vpack.c.bf16 %v5926_v29, %v5925_v28  ;;  %v6025_v25 = vld [vmem:[#allocation19 + $0x70] sm:$0xff]  ;;  %v6108_v28 = vld [vmem:[#allocation20] sm:$0xff]  ;;  %v6109_v29 = vld [vmem:[#allocation20 + $0x8] sm:$0xff] }
 0x982   : > { %v5541_v35 = vpop.permute.xlu1 %5540 }
 0x983   : > { %v5543_v37 = vadd.f32 %v5541_v35, %v5533_v32  ;;  %v5927_v32 = vld [vmem:[#allocation17 + $0x60] sm:$0xff]  ;;  %v5928_v35 = vld [vmem:[#allocation17 + $0x68] sm:$0xff] }
 0x985   : > { %12382 = vmatmul.mubr.msk.f32.vlgmr.msra.gmra.mrb[20].mxu1 %vm5631_vm2, %v5543_v37  ;;  %v5929_v37 = vld [vmem:[#allocation17 + $0x70] sm:$0xff] }
 0x986   : > { %12823 = vmatpush3.bf16.msra.mxu1 %v12822_v36  ;;  %12416 = vmatprep.mubr.msk.f32.mxu1 %vm15390_vm0, %v15391_v1  ;;  %v12864_v36 = vpack.c.bf16 %v5928_v35, %v5927_v32  ;;  %v12867_v22 = vpack.c.bf16 %v5930_v38, %v5929_v37  ;;  %v12894_v32 = vpack.c.bf16 %v6109_v29, %v6108_v28  ;;  %v6111_v35 = vld [vmem:[#allocation20 + $0x18] sm:$0xff]  ;;  %v6112_v37 = vld [vmem:[#allocation20 + $0x20] sm:$0xff]  ;;  %v6113_v38 = vld [vmem:[#allocation20 + $0x28] sm:$0xff] }
 0x987   : > { %12824 = vmatprep.subr.bf16.mxu1 %v15389_v0 }
 0x98a   : > { %12826 = vmatpush3.bf16.msra.mxu1 %v12825_v41  ;;  %v6012_v41 = vld [vmem:[#allocation19 + $0x8] sm:$0xff] }
 0x98b   : > { %12827 = vmatprep.subr.bf16.mxu1 %v15389_v0 }
 0x98e   : > { %12829 = vmatpush3.bf16.msra.mxu1 %v12828_v48  ;;  %v12873_v48 = vpack.c.bf16 %v6014_v47, %v6013_v42  ;;  %v6117_v47 = vld [vmem:[#allocation20 + $0x48] sm:$0xff] }
 0x98f   : > { %12830 = vmatprep.subr.bf16.mxu1 %v15389_v0 }
 0x992   : > { %12832 = vmatpush3.bf16.msra.mxu1 %v12831_v53  ;;  %v12876_v53 = vpack.c.bf16 %v6016_v51, %v6015_v50  ;;  %v6118_v50 = vld [vmem:[#allocation20 + $0x50] sm:$0xff]  ;;  %v6119_v51 = vld [vmem:[#allocation20 + $0x58] sm:$0xff] }
 0x993   : > { %12833 = vmatprep.subr.bf16.mxu1 %v15389_v0 }
 0x996   : > { %12835 = vmatpush3.bf16.msra.mxu1 %v12834_v11  ;;  %v12879_v11 = vpack.c.bf16 %v6018_v55, %v6017_v54  ;;  %v11588_v54 = vld [vmem:[%s16706_s11] ss:$0 sm:$0xff]  ;;  %s15416_s11 = smov 32  }
 0x997   : > { %12836 = vmatprep.subr.bf16.mxu1 %v15389_v0 }
 0x99a   : > { %12838 = vmatpush3.bf16.msra.mxu1 %v12837_v58  ;;  %v12882_v58 = vpack.c.bf16 %v6020_v57, %v6019_v56 }
 0x99b   : > { %12839 = vmatprep.subr.bf16.mxu1 %v15389_v0 }
 0x99e   : > { %12841 = vmatpush3.bf16.msra.mxu1 %v12840_v60  ;;  %v12885_v60 = vpack.c.bf16 %v6022_v17, %v6021_v59  ;;  %v6120_v59 = vld [vmem:[#allocation20 + $0x60] sm:$0xff]  ;;  %v6121_v17 = vld [vmem:[#allocation20 + $0x68] sm:$0xff] }
 0x99f   : > { %12842 = vmatprep.subr.bf16.mxu1 %v15389_v0 }
 0x9a2   : > { %12844 = vmatpush3.bf16.msra.mxu1 %v12843_v63  ;;  %v12888_v63 = vpack.c.bf16 %v6024_v62, %v6023_v61  ;;  %v6122_v61 = vld [vmem:[#allocation20 + $0x70] sm:$0xff]  ;;  %v6123_v62 = vld [vmem:[#allocation20 + $0x78] sm:$0xff] }
 0x9a3   : > { %12845 = vmatprep.subr.bf16.mxu1 %v15389_v0 }
 0xa58   : > { %v5705_v3 = vpop.f32.mrb[20].mxu1 }
 0xa59   : > { %v5706_v49 = vadd.f32 %v5705_v3, %v5627_v40  ;;  %v12383_v39 = vpop.f32.mrb[21].mxu1  ;;  %v6011_v40 = vld [vmem:[#allocation19] sm:$0xff]  ;;  %v11579_v3 = vld [vmem:[%s16705_s26] ss:$0 sm:$0xff]  ;;  %s5830_s26 = scalar_lea.vmem [#allocation2], %s5829_s17  ;;  %s16710_s17 = sld [smem:[#allocation80_spill]] }
 0xa5a   : > { %v12870_v44 = vpack.c.bf16 %v6012_v41, %v6011_v40  ;;  %v6114_v40 = vld [vmem:[#allocation20 + $0x30] sm:$0xff]  ;;  %v6115_v41 = vld [vmem:[#allocation20 + $0x38] sm:$0xff] }
 0xa5b   : > { %v5716_v9 = vadd.f32 %v11578_v5, %v5706_v49  ;;  %v12903_v42 = vpack.c.bf16 %v6115_v41, %v6114_v40  ;;  %v6298_v40 = vld [vmem:[#allocation23 + $0x8] sm:$0xff]  ;;  %v6299_v41 = vld [vmem:[#allocation23 + $0x10] sm:$0xff] }
 0xa5c   : > { %12871 = vmatpush3.bf16.msra.mxu0 %v12870_v44  ;;  %v6116_v44 = vld [vmem:[#allocation20 + $0x40] sm:$0xff] }
 0xa5d   : > { %v5718_v10 = vmul.f32 0.25, %v5716_v9  ;;  %vm5717_vm3 = vcmp.gt.f32.partialorder %v5716_v9, 0.0  ;;  %12872 = vmatprep.subr.bf16.mxu0 %v15389_v0 }
 0xa5f   : > { %v5719_v18 = vsel %vm5717_vm3, %v5716_v9, %v5718_v10 }
 0xa60   : > { %12417 = vmatmul.mubr.f32.vlgmr.msra.gmra.mrb[22].mxu1 %v5719_v18  ;;  %12874 = vmatpush3.bf16.msra.mxu0 %v12873_v48  ;;  %v12906_v48 = vpack.c.bf16 %v6117_v47, %v6116_v44  ;;  %v6300_v44 = vld [vmem:[#allocation23 + $0x18] sm:$0xff] }
 0xa61   : > { %12847 = vmatpush3.bf16.msra.mxu1 %v12846_v13  ;;  %12451 = vmatprep.mubr.msk.f32.mxu1 %vm15390_vm0, %v15391_v1  ;;  %v12945_v47 = vpack.c.bf16 %v6300_v44, %v6299_v41  ;;  %v6409_v44 = vld [vmem:[#allocation25 + $0x78] sm:$0xff] }
 0xa62   : > { %12848 = vmatprep.subr.bf16.mxu1 %v15389_v0  ;;  %12875 = vmatprep.subr.bf16.mxu0 %v15389_v0 }
 0xa64   : > { %12877 = vmatpush3.bf16.msra.mxu0 %v12876_v53  ;;  %v12909_v53 = vpack.c.bf16 %v6119_v51, %v6118_v50  ;;  %v6302_v50 = vld [vmem:[#allocation23 + $0x28] sm:$0xff] }
 0xa65   : > { %12850 = vmatpush3.bf16.msra.mxu1 %v12849_v19  ;;  %12878 = vmatprep.subr.bf16.mxu0 %v15389_v0 }
 0xa66   : > { %12851 = vmatprep.subr.bf16.mxu1 %v15389_v0 }
 0xa68   : > { %12880 = vmatpush3.bf16.msra.mxu0 %v12879_v11 }
 0xa69   : > { %12853 = vmatpush3.bf16.msra.mxu1 %v12852_v33  ;;  %12881 = vmatprep.subr.bf16.mxu0 %v15389_v0 }
 0xa6a   : > { %12854 = vmatprep.subr.bf16.mxu1 %v15389_v0 }
 0xa6c   : > { %12883 = vmatpush3.bf16.msra.mxu0 %v12882_v58 }
 0xa6d   : > { %12856 = vmatpush3.bf16.msra.mxu1 %v12855_v24  ;;  %12884 = vmatprep.subr.bf16.mxu0 %v15389_v0 }
 0xa6e   : > { %12857 = vmatprep.subr.bf16.mxu1 %v15389_v0 }
 0xa70   : > { %12886 = vmatpush3.bf16.msra.mxu0 %v12885_v60  ;;  %v12912_v60 = vpack.c.bf16 %v6121_v17, %v6120_v59  ;;  %v6308_v59 = vld [vmem:[#allocation23 + $0x58] sm:$0xff] }
 0xa71   : > { %12859 = vmatpush3.bf16.msra.mxu1 %v12858_v27  ;;  %12887 = vmatprep.subr.bf16.mxu0 %v15389_v0  ;;  %v12891_v27 = vpack.c.bf16 %v6026_v12, %v6025_v25  ;;  %v6214_v25 = vld [vmem:[#allocation22 + $0x68] sm:$0xff] }
 0xa72   : > { %12860 = vmatprep.subr.bf16.mxu1 %v15389_v0 }
 0xa74   : > { %12889 = vmatpush3.bf16.msra.mxu0 %v12888_v63  ;;  %v12915_v63 = vpack.c.bf16 %v6123_v62, %v6122_v61  ;;  %v6310_v61 = vld [vmem:[#allocation23 + $0x68] sm:$0xff] }
 0xa75   : > { %12862 = vmatpush3.bf16.msra.mxu1 %v12861_v31  ;;  %12890 = vmatprep.subr.bf16.mxu0 %v15389_v0  ;;  %v6110_v31 = vld [vmem:[#allocation20 + $0x10] sm:$0xff] }
 0xa76   : > { %12863 = vmatprep.subr.bf16.mxu1 %v15389_v0 }
 0xa78   : > { %12892 = vmatpush3.bf16.msra.mxu0 %v12891_v27 }
 0xa79   : > { %12865 = vmatpush3.bf16.msra.mxu1 %v12864_v36  ;;  %12917 = vmatprep.subr.bf16.mxu0 %v15389_v0  ;;  %v12897_v36 = vpack.c.bf16 %v6111_v35, %v6110_v31 }
 0xa7a   : > { %12866 = vmatprep.subr.bf16.mxu1 %v15389_v0 }
 0xa7d   : > { %12868 = vmatpush3.bf16.msra.mxu1 %v12867_v22  ;;  %v12900_v22 = vpack.c.bf16 %v6113_v38, %v6112_v37  ;;  %v6216_v37 = vld [vmem:[#allocation22 + $0x78] sm:$0xff] }
 0xa7e   : > { %12893 = vmatprep.subr.bf16.mxu1 %v15389_v0 }
 0xb33   : > { %v5809_v5 = vpop.f32.mrb[22].mxu1 }
 0xb34   : > { %v5810_v49 = vadd.f32 %v11579_v3, %v5809_v5  ;;  %v12418_v39 = vpop.f32.mrb[23].mxu1  ;;  %v6201_v3 = vld [vmem:[#allocation22] sm:$0xff]  ;;  %v6202_v5 = vld [vmem:[#allocation22 + $0x8] sm:$0xff] }
 0xb35   : > { %v12918_v39 = vpack.c.bf16 %v6202_v5, %v6201_v3 }
 0xb36   : > { %5813 = vst [vmem:[#allocation2] ss:$4 sps:$4 sm:$0x33] %v5810_v49   ;;  %5817 = vst [vmem:[#allocation2] ss:$4 sps:$4 sm:$0xcc] %v5810_v49  }
 0xb37   : > { %v6203_v49 = vld [vmem:[#allocation22 + $0x10] sm:$0xff] }
 0xb3d   : > { %v5831_v7 = vld [vmem:[%s5830_s26] sm:$0x1]  ;;  %s16717_s26 = sld [smem:[#allocation92_spill]] }
 0xb3e   : > { %v11581_v8 = vld [vmem:[%s5834_s19] ss:$0 sm:$0xff]  ;;  %s5858_s19 = scalar_lea.vmem [#allocation2], %s5857_s16  ;;  %s16707_s16 = sld [smem:[#allocation74_spill]] }
 0xb3f   : > { %v11582_v9 = vld [vmem:[%s5838_s9] ss:$0 sm:$0xff]  ;;  %v5903_v10 = vsel %vm5902_vm4, %v5831_v7, %v11581_v8  ;;  %s15410_s9 = smov 96  }
 0xb40   : > { %v11583_v13 = vld [vmem:[%s5842_s8] ss:$0 sm:$0xff]  ;;  %v5905_v14 = vsel %vm5904_vm5, %v5903_v10, %v11582_v9  ;;  %v6205_v9 = vld [vmem:[#allocation22 + $0x20] sm:$0xff]  ;;  %v6206_v10 = vld [vmem:[#allocation22 + $0x28] sm:$0xff]  ;;  %s15411_s8 = smov 112  }
 0xb41   : > { %v11584_v16 = vld [vmem:[%s5846_s28] ss:$0 sm:$0xff]  ;;  %v5906_v18 = vsel %vm5635_vm1, %v5905_v14, %v11583_v13  ;;  %v12924_v13 = vpack.c.bf16 %v6206_v10, %v6205_v9  ;;  %v6207_v14 = vld [vmem:[#allocation22 + $0x30] sm:$0xff]  ;;  %v6394_v9 = vld [vmem:[#allocation25] sm:$0xff]  ;;  %s15412_s28 = smov 80  }
 0xb42   : > { %v11585_v19 = vld [vmem:[%s5850_s4] ss:$0 sm:$0xff]  ;;  %v5908_v15 = vsel %vm5907_vm6, %v5906_v18, %v11584_v16  ;;  %v6395_v10 = vld [vmem:[#allocation25 + $0x8] sm:$0xff]  ;;  %s15413_s4 = smov 48  }
 0xb43   : > { %v11586_v20 = vld [vmem:[%s5854_s3] ss:$0 sm:$0xff]  ;;  %v5910_v33 = vsel %vm5909_vm7, %v5908_v15, %v11585_v19  ;;  %v6209_v19 = vld [vmem:[#allocation22 + $0x40] sm:$0xff]  ;;  %v6210_v15 = vld [vmem:[#allocation22 + $0x48] sm:$0xff]  ;;  %s15414_s3 = smov 64  }
 0xb44   : > { %v11587_v21 = vld [vmem:[%s5858_s19] ss:$0 sm:$0xff]  ;;  %v5912_v23 = vsel %vm5911_vm8, %v5910_v33, %v11586_v20  ;;  %v12930_v20 = vpack.c.bf16 %v6210_v15, %v6209_v19  ;;  %v6211_v33 = vld [vmem:[#allocation22 + $0x50] sm:$0xff]  ;;  %v6398_v19 = vld [vmem:[#allocation25 + $0x20] sm:$0xff]  ;;  %s15415_s19 = smov 16  }
 0xb45   : > { %v5914_v24 = vsel %vm5913_vm9, %v5912_v23, %v11587_v21  ;;  %v6204_v7 = vld [vmem:[#allocation22 + $0x18] sm:$0xff]  ;;  %v6399_v15 = vld [vmem:[#allocation25 + $0x28] sm:$0xff] }
 0xb46   : > { %12452 = vmatmul.mubr.f32.vlgmr.msra.gmra.mrb[24].mxu1 %v5914_v24  ;;  %v12921_v8 = vpack.c.bf16 %v6204_v7, %v6203_v49  ;;  %v6208_v16 = vld [vmem:[#allocation22 + $0x38] sm:$0xff]  ;;  %v6213_v24 = vld [vmem:[#allocation22 + $0x60] sm:$0xff] }
 0xb47   : > { %12521 = vmatprep.mubr.msk.f32.mxu1 %vm15390_vm0, %v15391_v1  ;;  %12895 = vmatpush3.bf16.msra.mxu1 %v12894_v32  ;;  %v12927_v18 = vpack.c.bf16 %v6208_v16, %v6207_v14  ;;  %v6212_v21 = vld [vmem:[#allocation22 + $0x58] sm:$0xff]  ;;  %v12936_v12 = vpack.c.bf16 %v6214_v25, %v6213_v24  ;;  %v12966_v14 = vpack.c.bf16 %v6395_v10, %v6394_v9  ;;  %v6402_v24 = vld [vmem:[#allocation25 + $0x40] sm:$0xff]  ;;  %v6403_v25 = vld [vmem:[#allocation25 + $0x48] sm:$0xff] }
 0xb48   : > { %12896 = vmatprep.subr.bf16.mxu1 %v15389_v0  ;;  %v12933_v23 = vpack.c.bf16 %v6212_v21, %v6211_v33  ;;  %v11589_v27 = vld [vmem:[%s16707_s16] ss:$0 sm:$0xff]  ;;  %v6400_v33 = vld [vmem:[#allocation25 + $0x30] sm:$0xff]  ;;  %s16718_s16 = sld [smem:[#allocation93_spill]] }
 0xb49   : > { %v6312_v7 = vld [vmem:[#allocation23 + $0x78] sm:$0xff] }
 0xb4a   : > { %v6397_v16 = vld [vmem:[#allocation25 + $0x18] sm:$0xff] }
 0xb4b   : > { %12898 = vmatpush3.bf16.msra.mxu1 %v12897_v36  ;;  %v6215_v36 = vld [vmem:[#allocation22 + $0x70] sm:$0xff]  ;;  %v6401_v21 = vld [vmem:[#allocation25 + $0x38] sm:$0xff] }
 0xb4c   : > { %12899 = vmatprep.subr.bf16.mxu1 %v15389_v0  ;;  %v12939_v38 = vpack.c.bf16 %v6216_v37, %v6215_v36 }
 0xb4f   : > { %12901 = vmatpush3.bf16.msra.mxu1 %v12900_v22  ;;  %v6297_v22 = vld [vmem:[#allocation23] sm:$0xff] }
 0xb50   : > { %12902 = vmatprep.subr.bf16.mxu1 %v15389_v0 }
 0xb53   : > { %12904 = vmatpush3.bf16.msra.mxu1 %v12903_v42  ;;  %v12942_v42 = vpack.c.bf16 %v6298_v40, %v6297_v22  ;;  %v6406_v22 = vld [vmem:[#allocation25 + $0x60] sm:$0xff]  ;;  %v6407_v40 = vld [vmem:[#allocation25 + $0x68] sm:$0xff] }
 0xb54   : > { %12905 = vmatprep.subr.bf16.mxu1 %v15389_v0  ;;  %v12984_v41 = vpack.c.bf16 %v6407_v40, %v6406_v22  ;;  %v14064_v22 = vld [vmem:[#allocation28] ss:$8 sps:$4 sm:$0xff]   ;;  %v14066_v40 = vld [vmem:[#allocation28 + $0x4] ss:$8 sps:$4 sm:$0xff]  }
 0xb57   : > { %12907 = vmatpush3.bf16.msra.mxu1 %v12906_v48  ;;  %v6301_v48 = vld [vmem:[#allocation23 + $0x20] sm:$0xff] }
 0xb58   : > { %12908 = vmatprep.subr.bf16.mxu1 %v15389_v0  ;;  %v12948_v51 = vpack.c.bf16 %v6302_v50, %v6301_v48  ;;  %v6487_v48 = vld [vmem:[#allocation26] sm:$0xff]  ;;  %v6488_v50 = vld [vmem:[#allocation26 + $0x8] sm:$0xff] }
 0xb5b   : > { %12910 = vmatpush3.bf16.msra.mxu1 %v12909_v53  ;;  %v6303_v53 = vld [vmem:[#allocation23 + $0x30] sm:$0xff] }
 0xb5c   : > { %12911 = vmatprep.subr.bf16.mxu1 %v15389_v0 }
 0xb5f   : > { %12913 = vmatpush3.bf16.msra.mxu1 %v12912_v60  ;;  %v6309_v60 = vld [vmem:[#allocation23 + $0x60] sm:$0xff] }
 0xb60   : > { %12914 = vmatprep.subr.bf16.mxu1 %v15389_v0  ;;  %v12960_v62 = vpack.c.bf16 %v6310_v61, %v6309_v60  ;;  %v6495_v60 = vld [vmem:[#allocation26 + $0x40] sm:$0xff]  ;;  %v6496_v61 = vld [vmem:[#allocation26 + $0x48] sm:$0xff] }
 0xb63   : > { %12916 = vmatpush3.bf16.msra.mxu1 %v12915_v63  ;;  %v11590_v63 = vld [vmem:[%s16708_s13] ss:$0 sm:$0xff]  ;;  %s1751_s13 = sand.u32 1, %s15301_s5  }
 0xb64   : > { %12941 = vmatprep.subr.bf16.mxu1 %v15389_v0 }
 0xc19   : > { %v6004_v55 = vpop.f32.mrb[24].mxu1 }
 0xc1a   : > { %v6005_v11 = vadd.f32 %v11588_v54, %v6004_v55  ;;  %v12453_v56 = vpop.f32.mrb[25].mxu1  ;;  %v6304_v54 = vld [vmem:[#allocation23 + $0x38] sm:$0xff] }
 0xc1b   : > { %v12951_v55 = vpack.c.bf16 %v6304_v54, %v6303_v53  ;;  %v6306_v56 = vld [vmem:[#allocation23 + $0x48] sm:$0xff]  ;;  %v12990_v53 = vpack.c.bf16 %v6488_v50, %v6487_v48  ;;  %v6490_v54 = vld [vmem:[#allocation26 + $0x18] sm:$0xff] }
 0xc1c   : > { %vm6008_vm10 = vcmp.gt.f32.partialorder %v6005_v11, 0.0  ;;  %v6009_v57 = vmul.f32 0.25, %v6005_v11  ;;  %v14075_v48 = vld [vmem:[#allocation28 + $0x34] ss:$8 sps:$4 sm:$0xff]   ;;  %v14073_v50 = vld [vmem:[#allocation28 + $0x30] ss:$8 sps:$4 sm:$0xff]  }
 0xc1e   : > { %v6010_v58 = vsel %vm6008_vm10, %v6005_v11, %v6009_v57  ;;  %v6305_v11 = vld [vmem:[#allocation23 + $0x40] sm:$0xff] }
 0xc1f   : > { %12487 = vmatmul.mubr.f32.vlgmr.msra.gmra.mrb[2].mxu0 %v6010_v58  ;;  %v12954_v57 = vpack.c.bf16 %v6306_v56, %v6305_v11  ;;  %v6307_v58 = vld [vmem:[#allocation23 + $0x50] sm:$0xff]  ;;  %v6491_v11 = vld [vmem:[#allocation26 + $0x20] sm:$0xff]  ;;  %v6492_v56 = vld [vmem:[#allocation26 + $0x28] sm:$0xff] }
 0xc20   : > { %12556 = vmatprep.mubr.msk.f32.mxu0 %vm15390_vm0, %v15391_v1  ;;  %12919 = vmatpush3.bf16.msra.mxu0 %v12918_v39  ;;  %v12957_v17 = vpack.c.bf16 %v6308_v59, %v6307_v58  ;;  %v6311_v39 = vld [vmem:[#allocation23 + $0x70] sm:$0xff]  ;;  %v6494_v59 = vld [vmem:[#allocation26 + $0x38] sm:$0xff] }
 0xc21   : > { %12920 = vmatprep.subr.bf16.mxu0 %v15389_v0  ;;  %v6493_v58 = vld [vmem:[#allocation26 + $0x30] sm:$0xff] }
 0xc24   : > { %12922 = vmatpush3.bf16.msra.mxu0 %v12921_v8  ;;  %v12963_v8 = vpack.c.bf16 %v6312_v7, %v6311_v39  ;;  %v6500_v39 = vld [vmem:[#allocation26 + $0x68] sm:$0xff] }
 0xc25   : > { %12923 = vmatprep.subr.bf16.mxu0 %v15389_v0 }
 0xc28   : > { %12925 = vmatpush3.bf16.msra.mxu0 %v12924_v13  ;;  %v6396_v13 = vld [vmem:[#allocation25 + $0x10] sm:$0xff] }
 0xc29   : > { %12926 = vmatprep.subr.bf16.mxu0 %v15389_v0 }
 0xc2c   : > { %12928 = vmatpush3.bf16.msra.mxu0 %v12927_v18  ;;  %v12969_v18 = vpack.c.bf16 %v6397_v16, %v6396_v13 }
 0xc2d   : > { %12929 = vmatprep.subr.bf16.mxu0 %v15389_v0 }
 0xc30   : > { %12931 = vmatpush3.bf16.msra.mxu0 %v12930_v20  ;;  %v12972_v20 = vpack.c.bf16 %v6399_v15, %v6398_v19  ;;  %v6502_v19 = vld [vmem:[#allocation26 + $0x78] sm:$0xff] }
 0xc31   : > { %12932 = vmatprep.subr.bf16.mxu0 %v15389_v0 }
 0xc34   : > { %12934 = vmatpush3.bf16.msra.mxu0 %v12933_v23  ;;  %v12975_v23 = vpack.c.bf16 %v6401_v21, %v6400_v33 }
 0xc35   : > { %12935 = vmatprep.subr.bf16.mxu0 %v15389_v0 }
 0xc38   : > { %12937 = vmatpush3.bf16.msra.mxu0 %v12936_v12  ;;  %v12978_v12 = vpack.c.bf16 %v6403_v25, %v6402_v24  ;;  %v15397_v24 = vmov 3   ;;  %v15398_v25 = vmov 4  }
 0xc39   : > { %12938 = vmatprep.subr.bf16.mxu0 %v15389_v0 }
 0xc3c   : > { %12940 = vmatpush3.bf16.msra.mxu0 %v12939_v38 }
 0xc3d   : > { %12965 = vmatprep.subr.bf16.mxu0 %v15389_v0 }
 0xcf2   : > { %v6100_v28 = vpop.f32.mrb[2].mxu0 }
 0xcf3   : > { %v6101_v29 = vadd.f32 %v11589_v27, %v6100_v28  ;;  %v12488_v31 = vpop.f32.mrb[3].mxu0  ;;  %v6404_v27 = vld [vmem:[#allocation25 + $0x50] sm:$0xff]  ;;  %v6405_v28 = vld [vmem:[#allocation25 + $0x58] sm:$0xff] }
 0xcf4   : > { %v11591_v31 = vld [vmem:[%s16709_s14] ss:$0 sm:$0xff]  ;;  %s12062_s14 = sshll.u32 %s15695_s18, 4  ;;  %s15417_s18 = smov [#allocation40]  }
 0xcf5   : > { %v6105_v32 = vrot.slane %v6101_v29, 4 }
 0xcf7   : > { %v6107_v35 = vmax.f32 %v6101_v29, %v6105_v32  ;;  %v12981_v29 = vpack.c.bf16 %v6405_v28, %v6404_v27  ;;  %v15400_v27 = vmov 7   ;;  %v15401_v28 = vmov 6  }
 0xcf9   : > { %12522 = vmatmul.mubr.f32.vlgmr.msra.gmra.mrb[26].mxu1 %v6107_v35 }
 0xcfa   : > { %12591 = vmatprep.mubr.msk.f32.mxu1 %vm15390_vm0, %v15391_v1  ;;  %12943 = vmatpush3.bf16.msra.mxu1 %v12942_v42  ;;  %v6408_v42 = vld [vmem:[#allocation25 + $0x70] sm:$0xff] }
 0xcfb   : > { %12944 = vmatprep.subr.bf16.mxu1 %v15389_v0 }
 0xcfe   : > { %12946 = vmatpush3.bf16.msra.mxu1 %v12945_v47  ;;  %v12987_v47 = vpack.c.bf16 %v6409_v44, %v6408_v42  ;;  %v14067_v42 = vld [vmem:[#allocation28 + $0x10] ss:$8 sps:$4 sm:$0xff]   ;;  %v14072_v44 = vld [vmem:[#allocation28 + $0x24] ss:$8 sps:$4 sm:$0xff]  }
 0xcff   : > { %12947 = vmatprep.subr.bf16.mxu1 %v15389_v0 }
 0xd02   : > { %12949 = vmatpush3.bf16.msra.mxu1 %v12948_v51  ;;  %v6489_v51 = vld [vmem:[#allocation26 + $0x10] sm:$0xff] }
 0xd03   : > { %12950 = vmatprep.subr.bf16.mxu1 %v15389_v0 }
 0xd06   : > { %12952 = vmatpush3.bf16.msra.mxu1 %v12951_v55  ;;  %v12993_v55 = vpack.c.bf16 %v6490_v54, %v6489_v51  ;;  %v14078_v51 = vld [vmem:[#allocation28 + $0x44] ss:$8 sps:$4 sm:$0xff]   ;;  %v14079_v54 = vld [vmem:[#allocation28 + $0x50] ss:$8 sps:$4 sm:$0xff]  }
 0xd07   : > { %12953 = vmatprep.subr.bf16.mxu1 %v15389_v0 }
 0xd0a   : > { %12955 = vmatpush3.bf16.msra.mxu1 %v12954_v57  ;;  %v12996_v57 = vpack.c.bf16 %v6492_v56, %v6491_v11  ;;  %v14082_v11 = vld [vmem:[#allocation28 + $0x60] ss:$8 sps:$4 sm:$0xff]   ;;  %v14087_v56 = vld [vmem:[#allocation28 + $0x74] ss:$8 sps:$4 sm:$0xff]  }
 0xd0b   : > { %12956 = vmatprep.subr.bf16.mxu1 %v15389_v0 }
 0xd0e   : > { %12958 = vmatpush3.bf16.msra.mxu1 %v12957_v17  ;;  %v12999_v17 = vpack.c.bf16 %v6494_v59, %v6493_v58  ;;  %v6733_v58 = vld [vmem:[#allocation29] sm:$0xff] }
 0xd0f   : > { %12959 = vmatprep.subr.bf16.mxu1 %v15389_v0  ;;  %v6737_v59 = vld [vmem:[#allocation29 + $0x20] sm:$0xff] }
 0xd12   : > { %12961 = vmatpush3.bf16.msra.mxu1 %v12960_v62  ;;  %v13002_v62 = vpack.c.bf16 %v6496_v61, %v6495_v60  ;;  %v11611_v60 = vcombine.low %v6733_v58, %v6737_v59  ;;  %v11612_v61 = vcombine.high %v6733_v58, %v6737_v59  ;;  %v6829_v58 = vld [vmem:[#allocation29 + $0x300] sm:$0xff] }
 0xd13   : > { %12962 = vmatprep.subr.bf16.mxu1 %v15389_v0  ;;  %v6833_v59 = vld [vmem:[#allocation29 + $0x320] sm:$0xff] }
 0xd16   : > { %12964 = vmatpush3.bf16.msra.mxu1 %v12963_v8  ;;  %v11592_v8 = vld [vmem:[%s16710_s17] ss:$0 sm:$0xff]  ;;  %s1752_s17 = scalar_lea.vmem [#allocation40], %s1751_s13 }
 0xd17   : > { %12989 = vmatprep.subr.bf16.mxu1 %v15389_v0 }
 0xdcc   : > { %v6197_v3 = vpop.f32.mrb[26].mxu1 }
 0xdcd   : > { %v6198_v5 = vadd.f32 %v11590_v63, %v6197_v3  ;;  %v12523_v49 = vpop.f32.mrb[27].mxu1  ;;  %v6497_v63 = vld [vmem:[#allocation26 + $0x50] sm:$0xff]  ;;  %v6498_v3 = vld [vmem:[#allocation26 + $0x58] sm:$0xff] }
 0xdce   : > { %v6499_v49 = vld [vmem:[#allocation26 + $0x60] sm:$0xff] }
 0xdcf   : > { %12557 = vmatmul.mubr.f32.vlgmr.msra.gmra.mrb[20].mxu0 %v6198_v5  ;;  %v13005_v5 = vpack.c.bf16 %v6498_v3, %v6497_v63  ;;  %v13008_v7 = vpack.c.bf16 %v6500_v39, %v6499_v49  ;;  %v6741_v63 = vld [vmem:[#allocation29 + $0x40] sm:$0xff] }
 0xdd0   : > { %12626 = vmatprep.mubr.msk.f32.mxu0 %vm15390_vm0, %v15391_v1  ;;  %12967 = vmatpush3.bf16.msra.mxu0 %v12966_v14  ;;  %v6745_v3 = vld [vmem:[#allocation29 + $0x60] sm:$0xff] }
 0xdd1   : > { %12968 = vmatprep.subr.bf16.mxu0 %v15389_v0  ;;  %v11620_v39 = vcombine.high %v6741_v63, %v6745_v3 }
 0xdd4   : > { %12970 = vmatpush3.bf16.msra.mxu0 %v12969_v18  ;;  %v6501_v18 = vld [vmem:[#allocation26 + $0x70] sm:$0xff] }
 0xdd5   : > { %12971 = vmatprep.subr.bf16.mxu0 %v15389_v0  ;;  %v13011_v15 = vpack.c.bf16 %v6502_v19, %v6501_v18 }
 0xdd8   : > { %12973 = vmatpush3.bf16.msra.mxu0 %v12972_v20  ;;  %v11593_v20 = vld [vmem:[%s16711_s6] ss:$0 sm:$0xff]  ;;  %s10738_s6 = sshll.u32 %s1752_s17, 4  ;;  %s16512_s6 = int_to_ptr.vmem [resolvable:$true] %s10738_s6 }
 0xdd9   : > { %12974 = vmatprep.subr.bf16.mxu0 %v15389_v0 }
 0xddc   : > { %12976 = vmatpush3.bf16.msra.mxu0 %v12975_v23 }
 0xddd   : > { %12977 = vmatprep.subr.bf16.mxu0 %v15389_v0 }
 0xde0   : > { %12979 = vmatpush3.bf16.msra.mxu0 %v12978_v12  ;;  %v15399_v12 = vmov 5  }
 0xde1   : > { %12980 = vmatprep.subr.bf16.mxu0 %v15389_v0 }
 0xde4   : > { %12982 = vmatpush3.bf16.msra.mxu0 %v12981_v29  ;;  %v15402_v29 = vmov 11  }
 0xde5   : > { %12983 = vmatprep.subr.bf16.mxu0 %v15389_v0 }
 0xde8   : > { %12985 = vmatpush3.bf16.msra.mxu0 %v12984_v41  ;;  %v14069_v41 = vld [vmem:[#allocation28 + $0x14] ss:$8 sps:$4 sm:$0xff]  }
 0xde9   : > { %12986 = vmatprep.subr.bf16.mxu0 %v15389_v0 }
 0xdec   : > { %12988 = vmatpush3.bf16.msra.mxu0 %v12987_v47  ;;  %v14070_v47 = vld [vmem:[#allocation28 + $0x20] ss:$8 sps:$4 sm:$0xff]  }
 0xded   : > { %6690 = vmatprep.subr.bf16.mxu0 %v14066_v40  ;;  %v6801_v40 = vld [vmem:[#allocation29 + $0x220] sm:$0xff] }
 0xea2   : > { %v6290_v32 = vpop.f32.mrb[20].mxu0 }
 0xea3   : > { %v6291_v35 = vadd.f32 %v11591_v31, %v6290_v32  ;;  %v12558_v36 = vpop.f32.mrb[21].mxu0  ;;  %v15403_v31 = vmov 9   ;;  %v15404_v32 = vmov 14  }
 0xea4   : > { %v15406_v36 = vmov 15  }
 0xea5   : > { %vm6294_vm11 = vcmp.gt.f32.partialorder %v6291_v35, 0.0  ;;  %v6295_v37 = vmul.f32 0.25, %v6291_v35 }
 0xea7   : > { %v6296_v38 = vsel %vm6294_vm11, %v6291_v35, %v6295_v37  ;;  %v15405_v35 = vmov 10   ;;  %v15407_v37 = vmov 12  }
 0xea8   : > { %12592 = vmatmul.mubr.f32.vlgmr.msra.gmra.mrb[28].mxu1 %v6296_v38  ;;  %v15408_v38 = vmov 13  }
 0xea9   : > { %12661 = vmatprep.mubr.msk.f32.mxu1 %vm15390_vm0, %v15391_v1  ;;  %12991 = vmatpush3.bf16.msra.mxu1 %v12990_v53  ;;  %v14081_v53 = vld [vmem:[#allocation28 + $0x54] ss:$8 sps:$4 sm:$0xff]  }
 0xeaa   : > { %12992 = vmatprep.subr.bf16.mxu1 %v15389_v0 }
 0xead   : > { %12994 = vmatpush3.bf16.msra.mxu1 %v12993_v55  ;;  %v14084_v55 = vld [vmem:[#allocation28 + $0x64] ss:$8 sps:$4 sm:$0xff]  }
 0xeae   : > { %12995 = vmatprep.subr.bf16.mxu1 %v15389_v0 }
 0xeb1   : > { %12997 = vmatpush3.bf16.msra.mxu1 %v12996_v57  ;;  %v14085_v57 = vld [vmem:[#allocation28 + $0x70] ss:$8 sps:$4 sm:$0xff]  }
 0xeb2   : > { %12998 = vmatprep.subr.bf16.mxu1 %v15389_v0 }
 0xeb5   : > { %13000 = vmatpush3.bf16.msra.mxu1 %v12999_v17  ;;  %v16368_v17 = vld [vmem:[#allocation29 + $0x8] sm:$0xff] }
 0xeb6   : > { %13001 = vmatprep.subr.bf16.mxu1 %v15389_v0 }
 0xeb9   : > { %13003 = vmatpush3.bf16.msra.mxu1 %v13002_v62  ;;  %v16370_v62 = vld [vmem:[#allocation29 + $0x28] sm:$0xff] }
 0xeba   : > { %13004 = vmatprep.subr.bf16.mxu1 %v15389_v0  ;;  %v11614_v49 = vcombine.high %v16368_v17, %v16370_v62 }
 0xebd   : > { %13006 = vmatpush3.bf16.msra.mxu1 %v13005_v5  ;;  %v11613_v5 = vcombine.low %v16368_v17, %v16370_v62 }
 0xebe   : > { %13007 = vmatprep.subr.bf16.mxu1 %v15389_v0 }
 0xec1   : > { %13009 = vmatpush3.bf16.msra.mxu1 %v13008_v7  ;;  %v11619_v7 = vcombine.low %v6741_v63, %v6745_v3  ;;  %v6837_v63 = vld [vmem:[#allocation29 + $0x340] sm:$0xff] }
 0xec2   : > { %13010 = vmatprep.subr.bf16.mxu1 %v15389_v0  ;;  %v6841_v3 = vld [vmem:[#allocation29 + $0x360] sm:$0xff] }
 0xec5   : > { %13012 = vmatpush3.bf16.msra.mxu1 %v13011_v15  ;;  %v6765_v15 = vld [vmem:[#allocation29 + $0x100] sm:$0xff] }
 0xec6   : > { %7545 = vmatprep.subr.bf16.mxu1 %v11612_v61  ;;  %v11707_v61 = vcombine.low %v6829_v58, %v6833_v59 }
 0xf7b   : > { %v6386_v9 = vpop.f32.mrb[28].mxu1 }
 0xf7c   : > { %v6387_v10 = vadd.f32 %v11592_v8, %v6386_v9  ;;  %v12593_v13 = vpop.f32.mrb[29].mxu1  ;;  %v6749_v8 = vld [vmem:[#allocation29 + $0x80] sm:$0xff] }
 0xf7d   : > { %v6753_v9 = vld [vmem:[#allocation29 + $0xa0] sm:$0xff] }
 0xf7e   : > { %v6391_v14 = vrot.slane %v6387_v10, 2  ;;  %v11627_v13 = vcombine.low %v6749_v8, %v6753_v9 }
 0xf80   : > { %v6393_v16 = vmax.f32 %v6387_v10, %v6391_v14  ;;  %v11628_v10 = vcombine.high %v6749_v8, %v6753_v9  ;;  %v6757_v14 = vld [vmem:[#allocation29 + $0xc0] sm:$0xff] }
 0xf82   : > { %12627 = vmatmul.mubr.f32.vlgmr.msra.gmra.mrb[22].mxu0 %v6393_v16  ;;  %v6761_v16 = vld [vmem:[#allocation29 + $0xe0] sm:$0xff] }
 0xf83   : > { %6722 = vmatprep.mubr.bf16.mxu0 %v15392_v43  ;;  %6691 = vmatpush1.bf16.msra.mxu0 %v14064_v22  ;;  %v11636_v18 = vcombine.high %v6757_v14, %v6761_v16  ;;  %v11635_v19 = vcombine.low %v6757_v14, %v6761_v16  ;;  %v6797_v22 = vld [vmem:[#allocation29 + $0x200] sm:$0xff]  ;;  %v6746_v14 = vld [vmem:[#allocation29 + $0x68] sm:$0xff] }
 0xf84   : > { %6692 = vmatprep.subr.bf16.mxu0 %v14069_v41  ;;  %v11676_v41 = vcombine.high %v6797_v22, %v6801_v40 }
 0xf87   : > { %6693 = vmatpush1.bf16.msra.mxu0 %v14067_v42  ;;  %v11675_v42 = vcombine.low %v6797_v22, %v6801_v40  ;;  %v6790_v40 = vld [vmem:[#allocation29 + $0x1c8] sm:$0xff] }
 0xf88   : > { %6694 = vmatprep.subr.bf16.mxu0 %v14072_v44  ;;  %v6805_v44 = vld [vmem:[#allocation29 + $0x240] sm:$0xff] }
 0xf8b   : > { %6695 = vmatpush1.bf16.msra.mxu0 %v14070_v47  ;;  %v6809_v47 = vld [vmem:[#allocation29 + $0x260] sm:$0xff] }
 0xf8c   : > { %6696 = vmatprep.subr.bf16.mxu0 %v14075_v48  ;;  %v11684_v48 = vcombine.high %v6805_v44, %v6809_v47 }
 0xf8f   : > { %6697 = vmatpush1.bf16.msra.mxu0 %v14073_v50  ;;  %v11683_v50 = vcombine.low %v6805_v44, %v6809_v47  ;;  %v6798_v47 = vld [vmem:[#allocation29 + $0x208] sm:$0xff] }
 0xf90   : > { %6698 = vmatprep.subr.bf16.mxu0 %v14078_v51  ;;  %v6813_v51 = vld [vmem:[#allocation29 + $0x280] sm:$0xff] }
0x1055   : > { %v6483_v33 = vpop.f32.mrb[22].mxu0 }
0x1056   : > { %v16349_v21 = vadd.f32 %v11593_v20, %v6483_v33  ;;  %v12628_v23 = vpop.f32.mrb[23].mxu0  ;;  %v6769_v20 = vld [vmem:[#allocation29 + $0x120] sm:$0xff] }
0x1057   : > { %v11644_v33 = vcombine.high %v6765_v15, %v6769_v20  ;;  %v11643_v23 = vcombine.low %v6765_v15, %v6769_v20  ;;  %v6750_v15 = vld [vmem:[#allocation29 + $0x88] sm:$0xff] }
0x1058   : > { %10315 = vperm.xlu1 %13544, %v16349_v21   ;;  %10305 = vperm.xlu0 %13543, %v16349_v21   ;;  %v6754_v20 = vld [vmem:[#allocation29 + $0xa8] sm:$0xff] }
0x1059   : > { %12662 = vmatmul.mubr.f32.vlgmr.msra.gmra.mrb[30].mxu1 %v16349_v21 }
0x105a   : > { %7546 = vmatpush1.bf16.msra.mxu1 %v11611_v60  ;;  %v11708_v60 = vcombine.high %v6829_v58, %v6833_v59  ;;  %v6822_v59 = vld [vmem:[#allocation29 + $0x2c8] sm:$0xff] }
0x105b   : > { %7547 = vmatprep.subr.bf16.mxu1 %v11620_v39  ;;  %v11715_v39 = vcombine.low %v6837_v63, %v6841_v3 }
0x105c   : > { %13545 = vset.pattern.permute.xlu1 %v15397_v24  ;;  %13546 = vset.pattern.permute.xlu0 %v15398_v25  ;;  %v6773_v24 = vld [vmem:[#allocation29 + $0x140] sm:$0xff] }
0x105d   : > { %10325 = vperm.xlu1 %13545, %v16349_v21   ;;  %10335 = vperm.xlu0 %13546, %v16349_v21   ;;  %v6777_v25 = vld [vmem:[#allocation29 + $0x160] sm:$0xff] }
0x105e   : > { %7548 = vmatpush1.bf16.msra.mxu1 %v11619_v7  ;;  %v11594_v7 = vld [vmem:[%s16712_s0] ss:$0 sm:$0xff]  ;;  %s16510_s0 = scalar_lea.hbm %s15671_s10, %s12062_s14 }
0x105f   : > { %7549 = vmatprep.subr.bf16.mxu1 %v11628_v10 }
0x1061   : > { %13547 = vset.pattern.permute.xlu1 %v15399_v12  ;;  %13549 = vset.pattern.permute.xlu0 %v15400_v27  ;;  %v11652_v12 = vcombine.high %v6773_v24, %v6777_v25  ;;  %v11651_v27 = vcombine.low %v6773_v24, %v6777_v25  ;;  %v6758_v24 = vld [vmem:[#allocation29 + $0xc8] sm:$0xff] }
0x1062   : > { %10345 = vperm.xlu1 %13547, %v16349_v21   ;;  %10365 = vperm.xlu0 %13549, %v16349_v21   ;;  %v6762_v25 = vld [vmem:[#allocation29 + $0xe8] sm:$0xff] }
0x1063   : > { %7550 = vmatpush1.bf16.msra.mxu1 %v11627_v13  ;;  %v6742_v13 = vld [vmem:[#allocation29 + $0x48] sm:$0xff] }
0x1064   : > { %7551 = vmatprep.subr.bf16.mxu1 %v11636_v18 }
0x1066   : > { %13548 = vset.pattern.permute.xlu1 %v15401_v28  ;;  %13552 = vset.pattern.permute.xlu0 %v15402_v29  ;;  %v6781_v28 = vld [vmem:[#allocation29 + $0x180] sm:$0xff] }
0x1067   : > { %10355 = vperm.xlu1 %13548, %v16349_v21   ;;  %10405 = vperm.xlu0 %13552, %v16349_v21   ;;  %v6785_v29 = vld [vmem:[#allocation29 + $0x1a0] sm:$0xff] }
0x1068   : > { %7552 = vmatpush1.bf16.msra.mxu1 %v11635_v19  ;;  %v11622_v19 = vcombine.high %v6742_v13, %v6746_v14 }
0x1069   : > { %7553 = vmatprep.subr.bf16.mxu1 %v11644_v33  ;;  %v11621_v33 = vcombine.low %v6742_v13, %v6746_v14 }
0x106b   : > { %13550 = vset.pattern.permute.xlu1 %v15403_v31  ;;  %13555 = vset.pattern.permute.xlu0 %v15404_v32  ;;  %v11660_v31 = vcombine.high %v6781_v28, %v6785_v29  ;;  %v11659_v32 = vcombine.low %v6781_v28, %v6785_v29  ;;  %v6766_v28 = vld [vmem:[#allocation29 + $0x108] sm:$0xff] }
0x106c   : > { %10385 = vperm.xlu1 %13550, %v16349_v21   ;;  %10435 = vperm.xlu0 %13555, %v16349_v21   ;;  %v6770_v29 = vld [vmem:[#allocation29 + $0x128] sm:$0xff] }
0x106d   : > { %7554 = vmatpush1.bf16.msra.mxu1 %v11643_v23  ;;  %v11630_v23 = vcombine.high %v6750_v15, %v6754_v20  ;;  %v11645_v17 = vcombine.low %v6766_v28, %v6770_v29 }
0x106e   : > { %7555 = vmatprep.subr.bf16.mxu1 %v11652_v12  ;;  %v11629_v12 = vcombine.low %v6750_v15, %v6754_v20  ;;  %v6850_v20 = vld [vmem:[#allocation29 + $0x3a8] sm:$0xff] }
0x1070   : > { %13551 = vset.pattern.permute.xlu1 %v15405_v35  ;;  %13559 = vset.pattern.permute.xlu0 %v15406_v36  ;;  %v6789_v35 = vld [vmem:[#allocation29 + $0x1c0] sm:$0xff] }
0x1071   : > { %10395 = vperm.xlu1 %13551, %v16349_v21   ;;  %7556 = vmatpush1.bf16.msra.mxu1 %v11651_v27  ;;  %v11638_v27 = vcombine.high %v6758_v24, %v6762_v25 }
0x1072   : > { %7557 = vmatprep.subr.bf16.mxu1 %v11660_v31  ;;  %v11637_v31 = vcombine.low %v6758_v24, %v6762_v25  ;;  %v6853_v25 = vld [vmem:[#allocation29 + $0x3c0] sm:$0xff] }
0x1075   : > { %13553 = vset.pattern.permute.xlu1 %v15407_v37  ;;  %7558 = vmatpush1.bf16.msra.mxu1 %v11659_v32  ;;  %v11646_v32 = vcombine.high %v6766_v28, %v6770_v29  ;;  %v6858_v29 = vld [vmem:[#allocation29 + $0x3e8] sm:$0xff] }
0x1076   : > { %10415 = vperm.xlu1 %13553, %v16349_v21  }
0x107a   : > { %13554 = vset.pattern.permute.xlu1 %v15408_v38 }
0x107b   : > { %10425 = vperm.xlu1 %13554, %v16349_v21  }
0x107f   : > { %13556 = vset.pattern.permute.xlu1 %v15406_v36  ;;  %v6793_v36 = vld [vmem:[#allocation29 + $0x1e0] sm:$0xff] }
0x1080   : > { %10445 = vperm.xlu1 %13556, %v16349_v21   ;;  %v11668_v37 = vcombine.high %v6789_v35, %v6793_v36  ;;  %v11667_v38 = vcombine.low %v6789_v35, %v6793_v36  ;;  %v6774_v35 = vld [vmem:[#allocation29 + $0x148] sm:$0xff] }
0x1081   : > { %v6778_v36 = vld [vmem:[#allocation29 + $0x168] sm:$0xff] }
0x1082   : > { %7559 = vmatprep.subr.bf16.mxu1 %v11668_v37  ;;  %v11654_v62 = vcombine.high %v6774_v35, %v6778_v36  ;;  %v6786_v37 = vld [vmem:[#allocation29 + $0x1a8] sm:$0xff] }
0x1083   : > { %7560 = vmatpush1.bf16.msra.mxu1 %v11667_v38  ;;  %v11653_v38 = vcombine.low %v6774_v35, %v6778_v36  ;;  %v6735_v36 = vld [vmem:[#allocation29 + $0x10] sm:$0xff] }
0x1084   : > { %13557 = vset.pattern.permute.xlu1 %v15392_v43  ;;  %v14076_v43 = vld [vmem:[#allocation28 + $0x40] ss:$8 sps:$4 sm:$0xff]   ;;  %7561 = vmatprep.subr.bf16.mxu1 %v11676_v41 }
0x1085   : > { %10296 = vperm.xlu1 %13557, %v16349_v21   ;;  %6699 = vmatpush1.bf16.msra.mxu0 %v14076_v43  ;;  %v6817_v43 = vld [vmem:[#allocation29 + $0x2a0] sm:$0xff]  ;;  %v6794_v41 = vld [vmem:[#allocation29 + $0x1e8] sm:$0xff] }
0x1086   : > { %6700 = vmatprep.subr.bf16.mxu0 %v14081_v53  ;;  %v11692_v53 = vcombine.high %v6813_v51, %v6817_v43  ;;  %v11670_v44 = vcombine.high %v6790_v40, %v6794_v41 }
0x1087   : > { %7562 = vmatpush1.bf16.msra.mxu1 %v11675_v42 }
0x1088   : > { %7563 = vmatprep.subr.bf16.mxu1 %v11684_v48  ;;  %v6802_v48 = vld [vmem:[#allocation29 + $0x228] sm:$0xff] }
0x1089   : > { %6701 = vmatpush1.bf16.msra.mxu0 %v14079_v54  ;;  %v11691_v54 = vcombine.low %v6813_v51, %v6817_v43  ;;  %v11678_v51 = vcombine.high %v6798_v47, %v6802_v48  ;;  %v6806_v43 = vld [vmem:[#allocation29 + $0x248] sm:$0xff] }
0x108a   : > { %6702 = vmatprep.subr.bf16.mxu0 %v14084_v55  ;;  %v6821_v55 = vld [vmem:[#allocation29 + $0x2c0] sm:$0xff] }
0x108b   : > { %7564 = vmatpush1.bf16.msra.mxu1 %v11683_v50  ;;  %v11669_v50 = vcombine.low %v6790_v40, %v6794_v41  ;;  %v6598_v41 = vld [vmem:[%s16713_s12] sm:$0x3]  ;;  %s10726_s12 = scalar_lea.sflag [#allocation7], %s1751_s13 }
0x108c   : > { %7565 = vmatprep.subr.bf16.mxu1 %v11692_v53  ;;  %v6810_v53 = vld [vmem:[#allocation29 + $0x268] sm:$0xff] }
0x108d   : > { %6703 = vmatpush1.bf16.msra.mxu0 %v14082_v11  ;;  %v6825_v11 = vld [vmem:[#allocation29 + $0x2e0] sm:$0xff] }
0x108e   : > { %6704 = vmatprep.subr.bf16.mxu0 %v14087_v56  ;;  %v11700_v56 = vcombine.high %v6821_v55, %v6825_v11 }
0x108f   : > { %7566 = vmatpush1.bf16.msra.mxu1 %v11691_v54  ;;  %v11677_v54 = vcombine.low %v6798_v47, %v6802_v48 }
0x1090   : > { %7567 = vmatprep.subr.bf16.mxu1 %v11700_v56  ;;  %v6818_v56 = vld [vmem:[#allocation29 + $0x2a8] sm:$0xff] }
0x1091   : > { %6705 = vmatpush1.bf16.msra.mxu0 %v14085_v57  ;;  %v11699_v57 = vcombine.low %v6821_v55, %v6825_v11  ;;  %v11686_v55 = vcombine.high %v6806_v43, %v6810_v53  ;;  %v6814_v11 = vld [vmem:[#allocation29 + $0x288] sm:$0xff] }
0x1092   : > { %7586 = vmatprep.subr.bf16.mxu0 %v11614_v49  ;;  %v11716_v49 = vcombine.high %v6837_v63, %v6841_v3  ;;  %v11694_v58 = vcombine.high %v6814_v11, %v6818_v56  ;;  %v6830_v3 = vld [vmem:[#allocation29 + $0x308] sm:$0xff] }
0x1093   : > { %7568 = vmatpush1.bf16.msra.mxu1 %v11699_v57  ;;  %v11685_v57 = vcombine.low %v6806_v43, %v6810_v53 }
0x1094   : > { %7569 = vmatprep.subr.bf16.mxu1 %v11708_v60  ;;  %v6826_v60 = vld [vmem:[#allocation29 + $0x2e8] sm:$0xff] }
0x1095   : > { %v11702_v63 = vcombine.high %v6822_v59, %v6826_v60 }
0x1097   : > { %7570 = vmatpush1.bf16.msra.mxu1 %v11707_v61  ;;  %v11693_v61 = vcombine.low %v6814_v11, %v6818_v56  ;;  %v6743_v11 = vld [vmem:[#allocation29 + $0x50] sm:$0xff] }
0x1098   : > { %7571 = vmatprep.subr.bf16.mxu1 %v11716_v49  ;;  %v6834_v49 = vld [vmem:[#allocation29 + $0x328] sm:$0xff]  ;;  %v6747_v56 = vld [vmem:[#allocation29 + $0x70] sm:$0xff] }
0x109b   : > { %7572 = vmatpush1.bf16.msra.mxu1 %v11715_v39  ;;  %v11701_v39 = vcombine.low %v6822_v59, %v6826_v60 }
0x112c   : > { %v6576_v8 = vpop.f32.mrb[30].mxu1 }
0x112d   : > { %v6577_v9 = vadd.f32 %v11594_v7, %v6576_v8  ;;  %v12663_v10 = vpop.f32.mrb[31].mxu1  ;;  %v11710_v7 = vcombine.high %v6830_v3, %v6834_v49  ;;  %v6838_v8 = vld [vmem:[#allocation29 + $0x348] sm:$0xff] }
0x112e   : > { %v11709_v10 = vcombine.low %v6830_v3, %v6834_v49  ;;  %v6755_v49 = vld [vmem:[#allocation29 + $0xb0] sm:$0xff] }
0x112f   : > { %v6580_v16 = vmax.f32 %v6577_v9, 0.0  ;;  %v6842_v9 = vld [vmem:[#allocation29 + $0x368] sm:$0xff] }
0x1130   : > { %v11718_v13 = vcombine.high %v6838_v8, %v6842_v9  ;;  %v11717_v14 = vcombine.low %v6838_v8, %v6842_v9  ;;  %v11623_v8 = vcombine.low %v6743_v11, %v6747_v56 }
0x1131   : > { %v6597_v18 = vpack.c.bf16 %v6580_v16, %v6580_v16  ;;  %v6845_v16 = vld [vmem:[#allocation29 + $0x380] sm:$0xff] }
0x1133   : > { %6723 = vmatmul.mubr.bf16.vlgmr.msra.gmra.mrb[24].mxu0 %v6597_v18  ;;  %v6849_v18 = vld [vmem:[#allocation29 + $0x3a0] sm:$0xff] }
0x1134   : > { %7587 = vmatpush1.bf16.msra.mxu0 %v11613_v5  ;;  %v6782_v5 = vld [vmem:[#allocation29 + $0x188] sm:$0xff]  ;;  %v11724_v15 = vcombine.high %v6845_v16, %v6849_v18 }
0x1135   : > { %7588 = vmatprep.subr.bf16.mxu0 %v11622_v19  ;;  %v11662_v22 = vcombine.high %v6782_v5, %v6786_v37  ;;  %v11661_v42 = vcombine.low %v6782_v5, %v6786_v37  ;;  %v6846_v19 = vld [vmem:[#allocation29 + $0x388] sm:$0xff]  ;;  %v6740_v37 = vld [vmem:[#allocation29 + $0x38] sm:$0xff] }
0x1136   : > { %v11726_v24 = vcombine.high %v6846_v19, %v6850_v20  ;;  %7573 = vmatprep.subr.bf16.mxu1 %v11724_v15 }
0x1138   : > { %7589 = vmatpush1.bf16.msra.mxu0 %v11621_v33  ;;  %v11723_v33 = vcombine.low %v6845_v16, %v6849_v18  ;;  %v6763_v16 = vld [vmem:[#allocation29 + $0xf0] sm:$0xff]  ;;  %v6760_v18 = vld [vmem:[#allocation29 + $0xd8] sm:$0xff] }
0x1139   : > { %7590 = vmatprep.subr.bf16.mxu0 %v11630_v23  ;;  %v11725_v23 = vcombine.low %v6846_v19, %v6850_v20  ;;  %v6764_v19 = vld [vmem:[#allocation29 + $0xf8] sm:$0xff] }
0x113a   : > { %7574 = vmatpush1.bf16.msra.mxu1 %v11723_v33 }
0x113c   : > { %7591 = vmatpush1.bf16.msra.mxu0 %v11629_v12  ;;  %v6857_v12 = vld [vmem:[#allocation29 + $0x3e0] sm:$0xff] }
0x113d   : > { %7592 = vmatprep.subr.bf16.mxu0 %v11638_v27  ;;  %v6854_v27 = vld [vmem:[#allocation29 + $0x3c8] sm:$0xff]  ;;  %v11732_v28 = vcombine.high %v6853_v25, %v6857_v12 }
0x113e   : > { %v11734_v35 = vcombine.high %v6854_v27, %v6858_v29 }
0x113f   : > { %7575 = vmatprep.subr.bf16.mxu1 %v11732_v28 }
0x1140   : > { %7593 = vmatpush1.bf16.msra.mxu0 %v11637_v31  ;;  %v11731_v31 = vcombine.low %v6853_v25, %v6857_v12  ;;  %v6771_v25 = vld [vmem:[#allocation29 + $0x130] sm:$0xff]  ;;  %v6768_v12 = vld [vmem:[#allocation29 + $0x118] sm:$0xff] }
0x1141   : > { %7594 = vmatprep.subr.bf16.mxu0 %v11646_v32  ;;  %v11733_v32 = vcombine.low %v6854_v27, %v6858_v29  ;;  %v6772_v27 = vld [vmem:[#allocation29 + $0x138] sm:$0xff]  ;;  %v11641_v29 = vcombine.low %v6760_v18, %v6764_v19 }
0x1142   : > { %7576 = vmatpush1.bf16.msra.mxu1 %v11731_v31 }
0x1144   : > { %7595 = vmatpush1.bf16.msra.mxu0 %v11645_v17  ;;  %v6739_v17 = vld [vmem:[#allocation29 + $0x30] sm:$0xff] }
0x1145   : > { %7596 = vmatprep.subr.bf16.mxu0 %v11654_v62  ;;  %v6736_v62 = vld [vmem:[#allocation29 + $0x18] sm:$0xff]  ;;  %v11616_v5 = vcombine.high %v6735_v36, %v6739_v17 }
0x1146   : > { %v11618_v40 = vcombine.high %v6736_v62, %v6740_v37 }
0x1147   : > { %7627 = vmatprep.subr.bf16.mxu1 %v11616_v5 }
0x1148   : > { %7597 = vmatpush1.bf16.msra.mxu0 %v11653_v38  ;;  %v11615_v38 = vcombine.low %v6735_v36, %v6739_v17  ;;  %v6779_v36 = vld [vmem:[#allocation29 + $0x170] sm:$0xff]  ;;  %v6776_v17 = vld [vmem:[#allocation29 + $0x158] sm:$0xff] }
0x1149   : > { %7598 = vmatprep.subr.bf16.mxu0 %v11662_v22  ;;  %v11617_v22 = vcombine.low %v6736_v62, %v6740_v37  ;;  %v6780_v62 = vld [vmem:[#allocation29 + $0x178] sm:$0xff]  ;;  %v11649_v37 = vcombine.low %v6768_v12, %v6772_v27 }
0x114c   : > { %7599 = vmatpush1.bf16.msra.mxu0 %v11661_v42  ;;  %v6603_v42 = vrot.slane %v6598_v41, %v16131_v46 }
0x114d   : > { %7600 = vmatprep.subr.bf16.mxu0 %v11670_v44  ;;  %v6607_v44 = vrot.slane %v6598_v41, %v16135_v52  ;;  %v6787_v41 = vld [vmem:[#allocation29 + $0x1b0] sm:$0xff] }
0x1150   : > { %7601 = vmatpush1.bf16.msra.mxu0 %v11669_v50 }
0x1151   : > { %7602 = vmatprep.subr.bf16.mxu0 %v11678_v51 }
0x1154   : > { %7603 = vmatpush1.bf16.msra.mxu0 %v11677_v54 }
0x1155   : > { %7604 = vmatprep.subr.bf16.mxu0 %v11686_v55 }
0x1158   : > { %7605 = vmatpush1.bf16.msra.mxu0 %v11685_v57  ;;  %v6744_v57 = vld [vmem:[#allocation29 + $0x58] sm:$0xff] }
0x1159   : > { %7606 = vmatprep.subr.bf16.mxu0 %v11694_v58  ;;  %v6748_v58 = vld [vmem:[#allocation29 + $0x78] sm:$0xff] }
0x115a   : > { %v11626_v3 = vcombine.high %v6744_v57, %v6748_v58  ;;  %v11625_v9 = vcombine.low %v6744_v57, %v6748_v58 }
0x115c   : > { %7607 = vmatpush1.bf16.msra.mxu0 %v11693_v61  ;;  %v6751_v61 = vld [vmem:[#allocation29 + $0x90] sm:$0xff] }
0x115d   : > { %7608 = vmatprep.subr.bf16.mxu0 %v11702_v63  ;;  %v11624_v63 = vcombine.high %v6743_v11, %v6747_v56  ;;  %v11631_v15 = vcombine.low %v6751_v61, %v6755_v49 }
0x1160   : > { %7609 = vmatpush1.bf16.msra.mxu0 %v11701_v39  ;;  %v6752_v39 = vld [vmem:[#allocation29 + $0x98] sm:$0xff] }
0x1161   : > { %7610 = vmatprep.subr.bf16.mxu0 %v11710_v7  ;;  %v6756_v7 = vld [vmem:[#allocation29 + $0xb8] sm:$0xff] }
0x1162   : > { %v11633_v20 = vcombine.low %v6752_v39, %v6756_v7 }
0x1164   : > { %7611 = vmatpush1.bf16.msra.mxu0 %v11709_v10  ;;  %v11632_v10 = vcombine.high %v6751_v61, %v6755_v49  ;;  %v6803_v61 = vld [vmem:[#allocation29 + $0x230] sm:$0xff] }
0x1165   : > { %7612 = vmatprep.subr.bf16.mxu0 %v11718_v13  ;;  %v11634_v13 = vcombine.high %v6752_v39, %v6756_v7 }
0x1168   : > { %7613 = vmatpush1.bf16.msra.mxu0 %v11717_v14  ;;  %v6759_v14 = vld [vmem:[#allocation29 + $0xd0] sm:$0xff] }
0x1169   : > { %7614 = vmatprep.subr.bf16.mxu0 %v11726_v24  ;;  %v11640_v33 = vcombine.high %v6759_v14, %v6763_v16  ;;  %v6767_v24 = vld [vmem:[#allocation29 + $0x110] sm:$0xff]  ;;  %v11639_v28 = vcombine.low %v6759_v14, %v6763_v16  ;;  %v6812_v14 = vld [vmem:[#allocation29 + $0x278] sm:$0xff] }
0x116a   : > { %v11648_v31 = vcombine.high %v6767_v24, %v6771_v25  ;;  %v11647_v5 = vcombine.low %v6767_v24, %v6771_v25  ;;  %v6820_v24 = vld [vmem:[#allocation29 + $0x2b8] sm:$0xff] }
0x116c   : > { %7615 = vmatpush1.bf16.msra.mxu0 %v11725_v23  ;;  %v11642_v23 = vcombine.high %v6760_v18, %v6764_v19 }
0x116d   : > { %7616 = vmatprep.subr.bf16.mxu0 %v11734_v35  ;;  %v6775_v35 = vld [vmem:[#allocation29 + $0x150] sm:$0xff] }
0x1170   : > { %7617 = vmatpush1.bf16.msra.mxu0 %v11733_v32  ;;  %v11650_v32 = vcombine.high %v6768_v12, %v6772_v27 }
0x1171   : > { %7668 = vmatprep.subr.bf16.mxu0 %v11618_v40  ;;  %v6783_v40 = vld [vmem:[#allocation29 + $0x190] sm:$0xff] }
0x1172   : > { %v11663_v11 = vcombine.low %v6783_v40, %v6787_v41 }
0x1206   : > { %v6724_v47 = vpop.f32.mrb[24].mxu0 }
0x1207   : > { %v6725_v48 = vadd.f32 %v6724_v47, %v6603_v42  ;;  %v6726_v50 = vpop.f32.mrb[25].mxu0  ;;  %v6784_v42 = vld [vmem:[#allocation29 + $0x198] sm:$0xff]  ;;  %v11655_v47 = vcombine.low %v6775_v35, %v6779_v36 }
0x1208   : > { %v6727_v51 = vadd.f32 %v6726_v50, %v6607_v44  ;;  %v6728_v43 = vpop.f32.mrb[26].mxu0  ;;  %v6788_v44 = vld [vmem:[#allocation29 + $0x1b8] sm:$0xff]  ;;  %v11664_v50 = vcombine.high %v6783_v40, %v6787_v41 }
0x1209   : > { %v6731_v53 = vmax.f32 %v6725_v48, 0.0  ;;  %v6729_v54 = vpop.f32.mrb[27].mxu0  ;;  %v11657_v48 = vcombine.low %v6776_v17, %v6780_v62  ;;  %v6791_v43 = vld [vmem:[#allocation29 + $0x1d0] sm:$0xff]  ;;  %v11665_v56 = vcombine.low %v6784_v42, %v6788_v44  ;;  %v6836_v40 = vld [vmem:[#allocation29 + $0x338] sm:$0xff] }
0x120a   : > { %v6732_v55 = vmax.f32 %v6727_v51, 0.0  ;;  %v11666_v51 = vcombine.high %v6784_v42, %v6788_v44  ;;  %v6792_v54 = vld [vmem:[#allocation29 + $0x1d8] sm:$0xff] }
0x120b   : > { %v16383_v60 = vpack.c.bf16 %v6731_v53, %v6731_v53  ;;  %v6795_v53 = vld [vmem:[#allocation29 + $0x1f0] sm:$0xff] }
0x120c   : > { %v6862_v59 = vpack.c.bf16 %v6732_v55, %v6732_v55  ;;  %v6796_v55 = vld [vmem:[#allocation29 + $0x1f8] sm:$0xff]  ;;  %v11672_v57 = vcombine.high %v6791_v43, %v6795_v53  ;;  %v11671_v49 = vcombine.low %v6791_v43, %v6795_v53 }
0x120d   : > { %v11674_v58 = vcombine.high %v6792_v54, %v6796_v55  ;;  %v11673_v39 = vcombine.low %v6792_v54, %v6796_v55  ;;  %v6844_v43 = vld [vmem:[#allocation29 + $0x378] sm:$0xff] }
0x120e   : > { %7577 = vmatprep.mubr.bf16.mxu1 %v6862_v59  ;;  %7618 = vmatprep.mubr.bf16.mxu0 %v6862_v59 }
0x120f   : > { %7578 = vmatmul.mubr.bf16.vlgmr.msra.gmra.mrb[32].mxu1 %v16383_v60  ;;  %7619 = vmatmul.mubr.bf16.vlgmr.msra.gmra.mrb[28].mxu0 %v16383_v60 }
0x1210   : > { %7628 = vmatpush1.bf16.msra.mxu1 %v11615_v38  ;;  %7669 = vmatpush1.bf16.msra.mxu0 %v11617_v22  ;;  %v11656_v38 = vcombine.high %v6775_v35, %v6779_v36  ;;  %v11658_v22 = vcombine.high %v6776_v17, %v6780_v62  ;;  %v6828_v35 = vld [vmem:[#allocation29 + $0x2f8] sm:$0xff] }
0x1211   : > { %7659 = vmatprep.mubr.bf16.mxu1 %v6862_v59  ;;  %7700 = vmatprep.mubr.bf16.mxu0 %v6862_v59  ;;  %v6799_v59 = vld [vmem:[#allocation29 + $0x210] sm:$0xff] }
0x1212   : > { %7629 = vmatprep.subr.bf16.mxu1 %v11624_v63  ;;  %7670 = vmatprep.subr.bf16.mxu0 %v11626_v3  ;;  %v6800_v63 = vld [vmem:[#allocation29 + $0x218] sm:$0xff]  ;;  %v11680_v7 = vcombine.high %v6799_v59, %v6803_v61  ;;  %v11679_v16 = vcombine.low %v6799_v59, %v6803_v61 }
0x1213   : > { %v6804_v3 = vld [vmem:[#allocation29 + $0x238] sm:$0xff] }
0x1214   : > { %7630 = vmatpush1.bf16.msra.mxu1 %v11623_v8  ;;  %7671 = vmatpush1.bf16.msra.mxu0 %v11625_v9  ;;  %v11682_v8 = vcombine.high %v6800_v63, %v6804_v3  ;;  %v6807_v9 = vld [vmem:[#allocation29 + $0x250] sm:$0xff]  ;;  %v11681_v18 = vcombine.low %v6800_v63, %v6804_v3  ;;  %v6852_v59 = vld [vmem:[#allocation29 + $0x3b8] sm:$0xff] }
0x1215   : > { %7631 = vmatprep.subr.bf16.mxu1 %v11632_v10  ;;  %7672 = vmatprep.subr.bf16.mxu0 %v11634_v13  ;;  %v6811_v10 = vld [vmem:[#allocation29 + $0x270] sm:$0xff]  ;;  %v6808_v13 = vld [vmem:[#allocation29 + $0x258] sm:$0xff] }
0x1216   : > { %v11688_v19 = vcombine.high %v6807_v9, %v6811_v10  ;;  %v11687_v25 = vcombine.low %v6807_v9, %v6811_v10  ;;  %v11689_v12 = vcombine.low %v6808_v13, %v6812_v14  ;;  %v6860_v9 = vld [vmem:[#allocation29 + $0x3f8] sm:$0xff] }
0x1218   : > { %7632 = vmatpush1.bf16.msra.mxu1 %v11631_v15  ;;  %7673 = vmatpush1.bf16.msra.mxu0 %v11633_v20  ;;  %v11690_v15 = vcombine.high %v6808_v13, %v6812_v14  ;;  %v6815_v20 = vld [vmem:[#allocation29 + $0x290] sm:$0xff] }
0x1219   : > { %7633 = vmatprep.subr.bf16.mxu1 %v11640_v33  ;;  %7674 = vmatprep.subr.bf16.mxu0 %v11642_v23  ;;  %v6819_v33 = vld [vmem:[#allocation29 + $0x2b0] sm:$0xff]  ;;  %v6816_v23 = vld [vmem:[#allocation29 + $0x298] sm:$0xff] }
0x121a   : > { %v11696_v27 = vcombine.high %v6815_v20, %v6819_v33  ;;  %v11695_v36 = vcombine.low %v6815_v20, %v6819_v33  ;;  %v11697_v17 = vcombine.low %v6816_v23, %v6820_v24  ;;  %v14093_v20 = vld [vmem:[#allocation31 + $0xc] ss:$16 sps:$4 sm:$0xff]   ;;  %v14088_v33 = vld [vmem:[#allocation31] ss:$16 sps:$4 sm:$0xff]  }
0x121c   : > { %7634 = vmatpush1.bf16.msra.mxu1 %v11639_v28  ;;  %7675 = vmatpush1.bf16.msra.mxu0 %v11641_v29  ;;  %v11698_v28 = vcombine.high %v6816_v23, %v6820_v24  ;;  %v6823_v29 = vld [vmem:[#allocation29 + $0x2d0] sm:$0xff]  ;;  %v14091_v23 = vld [vmem:[#allocation31 + $0x8] ss:$16 sps:$4 sm:$0xff]  }
0x121d   : > { %7635 = vmatprep.subr.bf16.mxu1 %v11648_v31  ;;  %7676 = vmatprep.subr.bf16.mxu0 %v11650_v32  ;;  %v6827_v31 = vld [vmem:[#allocation29 + $0x2f0] sm:$0xff]  ;;  %v6824_v32 = vld [vmem:[#allocation29 + $0x2d8] sm:$0xff] }
0x121e   : > { %v11704_v62 = vcombine.high %v6823_v29, %v6827_v31  ;;  %v11703_v41 = vcombine.low %v6823_v29, %v6827_v31  ;;  %v11705_v42 = vcombine.low %v6824_v32, %v6828_v35  ;;  %v14096_v24 = vld [vmem:[#allocation31 + $0x24] ss:$16 sps:$4 sm:$0xff]   ;;  %v14105_v29 = vld [vmem:[#allocation31 + $0x4c] ss:$16 sps:$4 sm:$0xff]   ;;  %v14100_v31 = vld [vmem:[#allocation31 + $0x40] ss:$16 sps:$4 sm:$0xff]  }
0x1220   : > { %7636 = vmatpush1.bf16.msra.mxu1 %v11647_v5  ;;  %7677 = vmatpush1.bf16.msra.mxu0 %v11649_v37  ;;  %v11706_v5 = vcombine.high %v6824_v32, %v6828_v35  ;;  %v6831_v37 = vld [vmem:[#allocation29 + $0x310] sm:$0xff]  ;;  %v14103_v32 = vld [vmem:[#allocation31 + $0x48] ss:$16 sps:$4 sm:$0xff]  }
0x1221   : > { %7637 = vmatprep.subr.bf16.mxu1 %v11656_v38  ;;  %7678 = vmatprep.subr.bf16.mxu0 %v11658_v22  ;;  %v6835_v38 = vld [vmem:[#allocation29 + $0x330] sm:$0xff]  ;;  %v6832_v22 = vld [vmem:[#allocation29 + $0x318] sm:$0xff] }
0x1222   : > { %v11712_v44 = vcombine.high %v6831_v37, %v6835_v38  ;;  %v11711_v53 = vcombine.low %v6831_v37, %v6835_v38  ;;  %v11713_v54 = vcombine.low %v6832_v22, %v6836_v40  ;;  %v14108_v35 = vld [vmem:[#allocation31 + $0x64] ss:$16 sps:$4 sm:$0xff]   ;;  %v14112_v37 = vld [vmem:[#allocation31 + $0x80] ss:$16 sps:$4 sm:$0xff]   ;;  %v14115_v38 = vld [vmem:[#allocation31 + $0x88] ss:$16 sps:$4 sm:$0xff]  }
0x1224   : > { %7638 = vmatpush1.bf16.msra.mxu1 %v11655_v47  ;;  %7679 = vmatpush1.bf16.msra.mxu0 %v11657_v48  ;;  %v11714_v47 = vcombine.high %v6832_v22, %v6836_v40  ;;  %v6839_v48 = vld [vmem:[#allocation29 + $0x350] sm:$0xff]  ;;  %v14123_v40 = vld [vmem:[#allocation31 + $0xac] ss:$16 sps:$4 sm:$0xff]  }
0x1225   : > { %7639 = vmatprep.subr.bf16.mxu1 %v11664_v50  ;;  %7680 = vmatprep.subr.bf16.mxu0 %v11666_v51  ;;  %v6843_v50 = vld [vmem:[#allocation29 + $0x370] sm:$0xff]  ;;  %v6840_v51 = vld [vmem:[#allocation29 + $0x358] sm:$0xff] }
0x1226   : > { %v11720_v55 = vcombine.high %v6839_v48, %v6843_v50  ;;  %v11719_v61 = vcombine.low %v6839_v48, %v6843_v50  ;;  %v11721_v63 = vcombine.low %v6840_v51, %v6844_v43  ;;  %v14120_v22 = vld [vmem:[#allocation31 + $0xa4] ss:$16 sps:$4 sm:$0xff]   ;;  %v14124_v48 = vld [vmem:[#allocation31 + $0xc0] ss:$16 sps:$4 sm:$0xff]   ;;  %v14127_v50 = vld [vmem:[#allocation31 + $0xc8] ss:$16 sps:$4 sm:$0xff]  }
0x1228   : > { %7640 = vmatpush1.bf16.msra.mxu1 %v11663_v11  ;;  %7681 = vmatpush1.bf16.msra.mxu0 %v11665_v56  ;;  %v11722_v11 = vcombine.high %v6840_v51, %v6844_v43  ;;  %v6847_v56 = vld [vmem:[#allocation29 + $0x390] sm:$0xff]  ;;  %v14135_v43 = vld [vmem:[#allocation31 + $0xec] ss:$16 sps:$4 sm:$0xff]  }
0x1229   : > { %7641 = vmatprep.subr.bf16.mxu1 %v11672_v57  ;;  %7682 = vmatprep.subr.bf16.mxu0 %v11674_v58  ;;  %v6851_v57 = vld [vmem:[#allocation29 + $0x3b0] sm:$0xff]  ;;  %v6848_v58 = vld [vmem:[#allocation29 + $0x398] sm:$0xff] }
0x122a   : > { %v11728_v3 = vcombine.high %v6847_v56, %v6851_v57  ;;  %v11727_v10 = vcombine.low %v6847_v56, %v6851_v57  ;;  %v11729_v13 = vcombine.low %v6848_v58, %v6852_v59  ;;  %v14132_v51 = vld [vmem:[#allocation31 + $0xe4] ss:$16 sps:$4 sm:$0xff]   ;;  %v14136_v56 = vld [vmem:[#allocation31 + $0x100] ss:$16 sps:$4 sm:$0xff]   ;;  %v14139_v57 = vld [vmem:[#allocation31 + $0x108] ss:$16 sps:$4 sm:$0xff]  }
0x122c   : > { %7642 = vmatpush1.bf16.msra.mxu1 %v11671_v49  ;;  %7683 = vmatpush1.bf16.msra.mxu0 %v11673_v39  ;;  %v11730_v49 = vcombine.high %v6848_v58, %v6852_v59  ;;  %v6855_v39 = vld [vmem:[#allocation29 + $0x3d0] sm:$0xff]  ;;  %v14147_v59 = vld [vmem:[#allocation31 + $0x12c] ss:$16 sps:$4 sm:$0xff]  }
0x122d   : > { %7643 = vmatprep.subr.bf16.mxu1 %v11680_v7  ;;  %7684 = vmatprep.subr.bf16.mxu0 %v11682_v8  ;;  %v6859_v7 = vld [vmem:[#allocation29 + $0x3f0] sm:$0xff]  ;;  %v6856_v8 = vld [vmem:[#allocation29 + $0x3d8] sm:$0xff] }
0x122e   : > { %v11736_v14 = vcombine.high %v6855_v39, %v6859_v7  ;;  %v14144_v58 = vld [vmem:[#allocation31 + $0x124] ss:$16 sps:$4 sm:$0xff]  }
0x1230   : > { %7644 = vmatpush1.bf16.msra.mxu1 %v11679_v16  ;;  %7685 = vmatpush1.bf16.msra.mxu0 %v11681_v18  ;;  %v11738_v16 = vcombine.high %v6856_v8, %v6860_v9  ;;  %v11735_v18 = vcombine.low %v6855_v39, %v6859_v7  ;;  %v14148_v39 = vld [vmem:[#allocation31 + $0x140] ss:$16 sps:$4 sm:$0xff]   ;;  %v14151_v7 = vld [vmem:[#allocation31 + $0x148] ss:$16 sps:$4 sm:$0xff]  }
0x1231   : > { %7645 = vmatprep.subr.bf16.mxu1 %v11688_v19  ;;  %7686 = vmatprep.subr.bf16.mxu0 %v11690_v15  ;;  %v11737_v19 = vcombine.low %v6856_v8, %v6860_v9  ;;  %v14090_v15 = vld [vmem:[#allocation31 + $0x4] ss:$16 sps:$4 sm:$0xff]   ;;  %v14159_v9 = vld [vmem:[#allocation31 + $0x16c] ss:$16 sps:$4 sm:$0xff]  }
0x1232   : > { %v14156_v8 = vld [vmem:[#allocation31 + $0x164] ss:$16 sps:$4 sm:$0xff]  }
0x1234   : > { %7646 = vmatpush1.bf16.msra.mxu1 %v11687_v25  ;;  %7687 = vmatpush1.bf16.msra.mxu0 %v11689_v12  ;;  %v14099_v25 = vld [vmem:[#allocation31 + $0x2c] ss:$16 sps:$4 sm:$0xff]   ;;  %v14094_v12 = vld [vmem:[#allocation31 + $0x20] ss:$16 sps:$4 sm:$0xff]  }
0x1235   : > { %7647 = vmatprep.subr.bf16.mxu1 %v11696_v27  ;;  %7688 = vmatprep.subr.bf16.mxu0 %v11698_v28  ;;  %v14097_v27 = vld [vmem:[#allocation31 + $0x28] ss:$16 sps:$4 sm:$0xff]   ;;  %v14102_v28 = vld [vmem:[#allocation31 + $0x44] ss:$16 sps:$4 sm:$0xff]  }
0x1238   : > { %7648 = vmatpush1.bf16.msra.mxu1 %v11695_v36  ;;  %7689 = vmatpush1.bf16.msra.mxu0 %v11697_v17  ;;  %v14111_v36 = vld [vmem:[#allocation31 + $0x6c] ss:$16 sps:$4 sm:$0xff]   ;;  %v14106_v17 = vld [vmem:[#allocation31 + $0x60] ss:$16 sps:$4 sm:$0xff]  }
0x1239   : > { %7649 = vmatprep.subr.bf16.mxu1 %v11704_v62  ;;  %7690 = vmatprep.subr.bf16.mxu0 %v11706_v5  ;;  %v14114_v62 = vld [vmem:[#allocation31 + $0x84] ss:$16 sps:$4 sm:$0xff]   ;;  %v14117_v5 = vld [vmem:[#allocation31 + $0x8c] ss:$16 sps:$4 sm:$0xff]  }
0x123c   : > { %7650 = vmatpush1.bf16.msra.mxu1 %v11703_v41  ;;  %7691 = vmatpush1.bf16.msra.mxu0 %v11705_v42  ;;  %v14118_v41 = vld [vmem:[#allocation31 + $0xa0] ss:$16 sps:$4 sm:$0xff]   ;;  %v14121_v42 = vld [vmem:[#allocation31 + $0xa8] ss:$16 sps:$4 sm:$0xff]  }
0x123d   : > { %7651 = vmatprep.subr.bf16.mxu1 %v11712_v44  ;;  %7692 = vmatprep.subr.bf16.mxu0 %v11714_v47  ;;  %v14126_v44 = vld [vmem:[#allocation31 + $0xc4] ss:$16 sps:$4 sm:$0xff]   ;;  %v14129_v47 = vld [vmem:[#allocation31 + $0xcc] ss:$16 sps:$4 sm:$0xff]  }
0x1240   : > { %7652 = vmatpush1.bf16.msra.mxu1 %v11711_v53  ;;  %7693 = vmatpush1.bf16.msra.mxu0 %v11713_v54  ;;  %v14130_v53 = vld [vmem:[#allocation31 + $0xe0] ss:$16 sps:$4 sm:$0xff]   ;;  %v14133_v54 = vld [vmem:[#allocation31 + $0xe8] ss:$16 sps:$4 sm:$0xff]  }
0x1241   : > { %7653 = vmatprep.subr.bf16.mxu1 %v11720_v55  ;;  %7694 = vmatprep.subr.bf16.mxu0 %v11722_v11  ;;  %v14138_v55 = vld [vmem:[#allocation31 + $0x104] ss:$16 sps:$4 sm:$0xff]   ;;  %v14141_v11 = vld [vmem:[#allocation31 + $0x10c] ss:$16 sps:$4 sm:$0xff]  }
0x1244   : > { %7654 = vmatpush1.bf16.msra.mxu1 %v11719_v61  ;;  %7695 = vmatpush1.bf16.msra.mxu0 %v11721_v63  ;;  %v14142_v61 = vld [vmem:[#allocation31 + $0x120] ss:$16 sps:$4 sm:$0xff]   ;;  %v14145_v63 = vld [vmem:[#allocation31 + $0x128] ss:$16 sps:$4 sm:$0xff]  }
0x1245   : > { %7655 = vmatprep.subr.bf16.mxu1 %v11728_v3  ;;  %7696 = vmatprep.subr.bf16.mxu0 %v11730_v49  ;;  %v14150_v3 = vld [vmem:[#allocation31 + $0x144] ss:$16 sps:$4 sm:$0xff]   ;;  %v14153_v49 = vld [vmem:[#allocation31 + $0x14c] ss:$16 sps:$4 sm:$0xff]  }
0x1248   : > { %7656 = vmatpush1.bf16.msra.mxu1 %v11727_v10  ;;  %7697 = vmatpush1.bf16.msra.mxu0 %v11729_v13  ;;  %v14154_v10 = vld [vmem:[#allocation31 + $0x160] ss:$16 sps:$4 sm:$0xff]   ;;  %v14157_v13 = vld [vmem:[#allocation31 + $0x168] ss:$16 sps:$4 sm:$0xff]  }
0x1249   : > { %7657 = vmatprep.subr.bf16.mxu1 %v11736_v14  ;;  %7698 = vmatprep.subr.bf16.mxu0 %v11738_v16  ;;  %v14162_v14 = vld [vmem:[#allocation31 + $0x184] ss:$16 sps:$4 sm:$0xff]   ;;  %v14165_v16 = vld [vmem:[#allocation31 + $0x18c] ss:$16 sps:$4 sm:$0xff]  }
0x124c   : > { %7658 = vmatpush1.bf16.msra.mxu1 %v11735_v18  ;;  %7699 = vmatpush1.bf16.msra.mxu0 %v11737_v19  ;;  %v14160_v18 = vld [vmem:[#allocation31 + $0x180] ss:$16 sps:$4 sm:$0xff]   ;;  %v14163_v19 = vld [vmem:[#allocation31 + $0x188] ss:$16 sps:$4 sm:$0xff]  }
0x124d   : > { %9331 = vmatprep.subr.bf16.mxu1 %v14090_v15  ;;  %9495 = vmatprep.subr.bf16.mxu0 %v14093_v20  ;;  %v14168_v15 = vld [vmem:[#allocation31 + $0x1a4] ss:$16 sps:$4 sm:$0xff]   ;;  %v14171_v20 = vld [vmem:[#allocation31 + $0x1ac] ss:$16 sps:$4 sm:$0xff]  }
0x124f   : > { %7660 = vmatmul.mubr.bf16.vlgmr.msra.gmra.mrb[36].mxu1 %v16383_v60  ;;  %7701 = vmatmul.mubr.bf16.vlgmr.msra.gmra.mrb[32].mxu0 %v16383_v60  ;;  %v14109_v60 = vld [vmem:[#allocation31 + $0x68] ss:$16 sps:$4 sm:$0xff]  }
0x1250   : > { %9332 = vmatpush1.bf16.msra.mxu1 %v14088_v33  ;;  %9496 = vmatpush1.bf16.msra.mxu0 %v14091_v23  ;;  %v14166_v33 = vld [vmem:[#allocation31 + $0x1a0] ss:$16 sps:$4 sm:$0xff]   ;;  %v14169_v23 = vld [vmem:[#allocation31 + $0x1a8] ss:$16 sps:$4 sm:$0xff]  }
0x1251   : > { %9333 = vmatprep.subr.bf16.mxu1 %v14096_v24  ;;  %9497 = vmatprep.subr.bf16.mxu0 %v14099_v25  ;;  %v14174_v24 = vld [vmem:[#allocation31 + $0x1c4] ss:$16 sps:$4 sm:$0xff]   ;;  %v14177_v25 = vld [vmem:[#allocation31 + $0x1cc] ss:$16 sps:$4 sm:$0xff]  }
0x1254   : > { %9334 = vmatpush1.bf16.msra.mxu1 %v14094_v12  ;;  %9498 = vmatpush1.bf16.msra.mxu0 %v14097_v27  ;;  %v14172_v12 = vld [vmem:[#allocation31 + $0x1c0] ss:$16 sps:$4 sm:$0xff]   ;;  %v14175_v27 = vld [vmem:[#allocation31 + $0x1c8] ss:$16 sps:$4 sm:$0xff]  }
0x1255   : > { %9335 = vmatprep.subr.bf16.mxu1 %v14102_v28  ;;  %9499 = vmatprep.subr.bf16.mxu0 %v14105_v29  ;;  %v14180_v28 = vld [vmem:[#allocation31 + $0x1e4] ss:$16 sps:$4 sm:$0xff]   ;;  %v14183_v29 = vld [vmem:[#allocation31 + $0x1ec] ss:$16 sps:$4 sm:$0xff]  }
0x1258   : > { %9336 = vmatpush1.bf16.msra.mxu1 %v14100_v31  ;;  %9500 = vmatpush1.bf16.msra.mxu0 %v14103_v32  ;;  %v14178_v31 = vld [vmem:[#allocation31 + $0x1e0] ss:$16 sps:$4 sm:$0xff]   ;;  %v14181_v32 = vld [vmem:[#allocation31 + $0x1e8] ss:$16 sps:$4 sm:$0xff]  }
0x1259   : > { %9337 = vmatprep.subr.bf16.mxu1 %v14108_v35  ;;  %9501 = vmatprep.subr.bf16.mxu0 %v14111_v36  ;;  %v14186_v35 = vld [vmem:[#allocation31 + $0x204] ss:$16 sps:$4 sm:$0xff]   ;;  %v14189_v36 = vld [vmem:[#allocation31 + $0x20c] ss:$16 sps:$4 sm:$0xff]  }
0x125c   : > { %9338 = vmatpush1.bf16.msra.mxu1 %v14106_v17  ;;  %9502 = vmatpush1.bf16.msra.mxu0 %v14109_v60  ;;  %v16390_v17 = vld [vmem:[%s16714_s15] sm:$0xff]  ;;  %s15197_s15 = scalar_lea.vmem %s16512_s6, 16 }
0x125d   : > { %9339 = vmatprep.subr.bf16.mxu1 %v14114_v62  ;;  %9503 = vmatprep.subr.bf16.mxu0 %v14117_v5  ;;  %v6868_v60 = vrot.slane %v16390_v17, %v16131_v46  ;;  %v6872_v62 = vrot.slane %v16390_v17, %v16135_v52  ;;  %v6880_v5 = vrot.slane %v16390_v17, %v16149_v34  ;;  %p15198_p13 = scmp.ne.s32.totalorder %s16512_s6, %s15197_s15 }
0x125f   : > { %p15199_p4 = pnand %p15198_p13, %p16719_p2 }
0x1260   : > { %9340 = vmatpush1.bf16.msra.mxu1 %v14112_v37  ;;  %9504 = vmatpush1.bf16.msra.mxu0 %v14115_v38 }
0x1261   : > { %9341 = vmatprep.subr.bf16.mxu1 %v14120_v22  ;;  %9505 = vmatprep.subr.bf16.mxu0 %v14123_v40  ;;  %p15200_p6 = pneg %p15199_p4 }
0x1264   : > { %9342 = vmatpush1.bf16.msra.mxu1 %v14118_v41  ;;  %9506 = vmatpush1.bf16.msra.mxu0 %v14121_v42 }
0x1265   : > { %9343 = vmatprep.subr.bf16.mxu1 %v14126_v44  ;;  %9507 = vmatprep.subr.bf16.mxu0 %v14129_v47 }
0x1268   : > { %9344 = vmatpush1.bf16.msra.mxu1 %v14124_v48  ;;  %9508 = vmatpush1.bf16.msra.mxu0 %v14127_v50 }
0x1269   : > { %9345 = vmatprep.subr.bf16.mxu1 %v14132_v51  ;;  %9509 = vmatprep.subr.bf16.mxu0 %v14135_v43 }
0x126c   : > { %9346 = vmatpush1.bf16.msra.mxu1 %v14130_v53  ;;  %9510 = vmatpush1.bf16.msra.mxu0 %v14133_v54 }
0x126d   : > { %9347 = vmatprep.subr.bf16.mxu1 %v14138_v55  ;;  %9511 = vmatprep.subr.bf16.mxu0 %v14141_v11 }
0x1270   : > { %9348 = vmatpush1.bf16.msra.mxu1 %v14136_v56  ;;  %9512 = vmatpush1.bf16.msra.mxu0 %v14139_v57 }
0x1271   : > { %9349 = vmatprep.subr.bf16.mxu1 %v14144_v58  ;;  %9513 = vmatprep.subr.bf16.mxu0 %v14147_v59 }
0x1274   : > { %9350 = vmatpush1.bf16.msra.mxu1 %v14142_v61  ;;  %9514 = vmatpush1.bf16.msra.mxu0 %v14145_v63 }
0x1275   : > { %9351 = vmatprep.subr.bf16.mxu1 %v14150_v3  ;;  %9515 = vmatprep.subr.bf16.mxu0 %v14153_v49 }
0x1278   : > { %9352 = vmatpush1.bf16.msra.mxu1 %v14148_v39  ;;  %9516 = vmatpush1.bf16.msra.mxu0 %v14151_v7 }
0x1279   : > { %9353 = vmatprep.subr.bf16.mxu1 %v14156_v8  ;;  %9517 = vmatprep.subr.bf16.mxu0 %v14159_v9 }
0x127c   : > { %9354 = vmatpush1.bf16.msra.mxu1 %v14154_v10  ;;  %9518 = vmatpush1.bf16.msra.mxu0 %v14157_v13 }
0x127d   : > { %9355 = vmatprep.subr.bf16.mxu1 %v14162_v14  ;;  %9519 = vmatprep.subr.bf16.mxu0 %v14165_v16 }
0x1280   : > { %9356 = vmatpush1.bf16.msra.mxu1 %v14160_v18  ;;  %9520 = vmatpush1.bf16.msra.mxu0 %v14163_v19  ;;  %v14184_v19 = vld [vmem:[#allocation31 + $0x200] ss:$16 sps:$4 sm:$0xff]  }
0x1281   : > { %9357 = vmatprep.subr.bf16.mxu1 %v14168_v15  ;;  %9521 = vmatprep.subr.bf16.mxu0 %v14171_v20  ;;  %v14187_v15 = vld [vmem:[#allocation31 + $0x208] ss:$16 sps:$4 sm:$0xff]  }
0x1284   : > { %9358 = vmatpush1.bf16.msra.mxu1 %v14166_v33  ;;  %9522 = vmatpush1.bf16.msra.mxu0 %v14169_v23  ;;  %v14192_v33 = vld [vmem:[#allocation31 + $0x224] ss:$16 sps:$4 sm:$0xff]   ;;  %v14195_v23 = vld [vmem:[#allocation31 + $0x22c] ss:$16 sps:$4 sm:$0xff]  }
0x1285   : > { %9359 = vmatprep.subr.bf16.mxu1 %v14174_v24  ;;  %9523 = vmatprep.subr.bf16.mxu0 %v14177_v25  ;;  %v14190_v25 = vld [vmem:[#allocation31 + $0x220] ss:$16 sps:$4 sm:$0xff]  }
0x1288   : > { %9360 = vmatpush1.bf16.msra.mxu1 %v14172_v12  ;;  %9524 = vmatpush1.bf16.msra.mxu0 %v14175_v27  ;;  %v14193_v12 = vld [vmem:[#allocation31 + $0x228] ss:$16 sps:$4 sm:$0xff]   ;;  %v14198_v27 = vld [vmem:[#allocation31 + $0x244] ss:$16 sps:$4 sm:$0xff]  }
0x1289   : > { %9361 = vmatprep.subr.bf16.mxu1 %v14180_v28  ;;  %9525 = vmatprep.subr.bf16.mxu0 %v14183_v29  ;;  %v14201_v28 = vld [vmem:[#allocation31 + $0x24c] ss:$16 sps:$4 sm:$0xff]   ;;  %v14196_v29 = vld [vmem:[#allocation31 + $0x240] ss:$16 sps:$4 sm:$0xff]  }
0x128c   : > { %9362 = vmatpush1.bf16.msra.mxu1 %v14178_v31  ;;  %9526 = vmatpush1.bf16.msra.mxu0 %v14181_v32  ;;  %v14199_v31 = vld [vmem:[#allocation31 + $0x248] ss:$16 sps:$4 sm:$0xff]   ;;  %v14204_v32 = vld [vmem:[#allocation31 + $0x264] ss:$16 sps:$4 sm:$0xff]  }
0x128d   : > { %9372 = vmatprep.subr.bf16.mxu1 %v14186_v35  ;;  %9536 = vmatprep.subr.bf16.mxu0 %v14189_v36  ;;  %v14207_v35 = vld [vmem:[#allocation31 + $0x26c] ss:$16 sps:$4 sm:$0xff]   ;;  %v14202_v36 = vld [vmem:[#allocation31 + $0x260] ss:$16 sps:$4 sm:$0xff]  }
0x12e2   : > { %v7579_v37 = vpop.f32.mrb[32].mxu1  ;;  %v16398_v38 = vpop.f32.mrb[28].mxu0 }
0x12e3   : > { %v7580_v22 = vadd.f32 %v7579_v37, %v6868_v60  ;;  %v7581_v40 = vpop.f32.mrb[33].mxu1  ;;  %v7622_v41 = vpop.f32.mrb[29].mxu0  ;;  %v14205_v60 = vld [vmem:[#allocation31 + $0x268] ss:$16 sps:$4 sm:$0xff]   ;;  %v14208_v37 = vld [vmem:[#allocation31 + $0x280] ss:$16 sps:$4 sm:$0xff]  }
0x12e4   : > { %v7582_v42 = vadd.f32 %v7581_v40, %v6872_v62  ;;  %v7623_v44 = vadd.f32 %v7622_v41, %v6880_v5  ;;  %v7583_v47 = vpop.f32.mrb[34].mxu1  ;;  %v7624_v48 = vpop.f32.mrb[30].mxu0  ;;  %v14210_v62 = vld [vmem:[#allocation31 + $0x284] ss:$16 sps:$4 sm:$0xff]   ;;  %v14213_v5 = vld [vmem:[#allocation31 + $0x28c] ss:$16 sps:$4 sm:$0xff]  }
0x12e5   : > { %v7709_v50 = vsel %vm5904_vm5, %v7580_v22, -inf  ;;  %v7584_v51 = vpop.f32.mrb[35].mxu1  ;;  %v7625_v43 = vpop.f32.mrb[31].mxu0  ;;  %v14211_v22 = vld [vmem:[#allocation31 + $0x288] ss:$16 sps:$4 sm:$0xff]  }
0x12e6   : > { %v7710_v53 = vrot.slane %v7709_v50, 4  ;;  %v7716_v54 = vsel %vm5904_vm5, %v7582_v42, -inf  ;;  %v7730_v55 = vsel %vm5904_vm5, %v7623_v44, -inf  ;;  %v14216_v40 = vld [vmem:[#allocation31 + $0x2a4] ss:$16 sps:$4 sm:$0xff]  }
0x12e7   : > { %v7717_v11 = vrot.slane %v7716_v54, 4  ;;  %v7731_v56 = vrot.slane %v7730_v55, 4  ;;  %v14219_v41 = vld [vmem:[#allocation31 + $0x2ac] ss:$16 sps:$4 sm:$0xff]   ;;  %v14214_v42 = vld [vmem:[#allocation31 + $0x2a0] ss:$16 sps:$4 sm:$0xff]  }
0x12e8   : > { %v7711_v57 = vmax.f32 %v7709_v50, %v7710_v53  ;;  %v14217_v44 = vld [vmem:[#allocation31 + $0x2a8] ss:$16 sps:$4 sm:$0xff]   ;;  %v14222_v47 = vld [vmem:[#allocation31 + $0x2c4] ss:$16 sps:$4 sm:$0xff]   ;;  %v14225_v48 = vld [vmem:[#allocation31 + $0x2cc] ss:$16 sps:$4 sm:$0xff]  }
0x12e9   : > { %v7718_v58 = vmax.f32 %v7716_v54, %v7717_v11  ;;  %v7732_v59 = vmax.f32 %v7730_v55, %v7731_v56  ;;  %v14220_v50 = vld [vmem:[#allocation31 + $0x2c0] ss:$16 sps:$4 sm:$0xff]   ;;  %v14223_v51 = vld [vmem:[#allocation31 + $0x2c8] ss:$16 sps:$4 sm:$0xff]   ;;  %v14228_v43 = vld [vmem:[#allocation31 + $0x2e4] ss:$16 sps:$4 sm:$0xff]  }
0x12ea   : > { %v7712_v61 = vrot.slane %v7711_v57, 2  ;;  %v14231_v53 = vld [vmem:[#allocation31 + $0x2ec] ss:$16 sps:$4 sm:$0xff]   ;;  %v14226_v54 = vld [vmem:[#allocation31 + $0x2e0] ss:$16 sps:$4 sm:$0xff]  }
0x12eb   : > { %v7719_v63 = vrot.slane %v7718_v58, 2  ;;  %v7733_v3 = vrot.slane %v7732_v59, 2  ;;  %v14229_v55 = vld [vmem:[#allocation31 + $0x2e8] ss:$16 sps:$4 sm:$0xff]   ;;  %v14234_v11 = vld [vmem:[#allocation31 + $0x304] ss:$16 sps:$4 sm:$0xff]  }
0x12ec   : > { %v7713_v49 = vmax.f32 %v7711_v57, %v7712_v61  ;;  %v14237_v56 = vld [vmem:[#allocation31 + $0x30c] ss:$16 sps:$4 sm:$0xff]   ;;  %v6876_v57 = vrot.slane %v16390_v17, %v16160_v45  ;;  %v14240_v61 = vld [vmem:[#allocation31 + $0x324] ss:$16 sps:$4 sm:$0xff]  }
0x12ed   : > { %v7720_v39 = vmax.f32 %v7718_v58, %v7719_v63  ;;  %v7734_v7 = vmax.f32 %v7732_v59, %v7733_v3  ;;  %v14232_v58 = vld [vmem:[#allocation31 + $0x300] ss:$16 sps:$4 sm:$0xff]   ;;  %v14235_v59 = vld [vmem:[#allocation31 + $0x308] ss:$16 sps:$4 sm:$0xff]   ;;  %v14243_v63 = vld [vmem:[#allocation31 + $0x32c] ss:$16 sps:$4 sm:$0xff]  }
0x12ee   : > { %v7714_v8 = vrot.slane %v7713_v49, 1  ;;  %v7621_v3 = vadd.f32 %v16398_v38, %v6876_v57  ;;  %v14250_v38 = vld [vmem:[#allocation31 + $0x360] ss:$16 sps:$4 sm:$0xff]   ;;  %v14277_v57 = vld [vmem:[#allocation31 + $0x3e8] ss:$16 sps:$4 sm:$0xff]  }
0x12ef   : > { %v7721_v9 = vrot.slane %v7720_v39, 1  ;;  %v7735_v10 = vrot.slane %v7734_v7, 1 }
0x12f0   : > { %v7715_v13 = vmax.f32 %v7713_v49, %v7714_v8  ;;  %v14238_v49 = vld [vmem:[#allocation31 + $0x320] ss:$16 sps:$4 sm:$0xff]   ;;  %v14249_v8 = vld [vmem:[#allocation31 + $0x34c] ss:$16 sps:$4 sm:$0xff]  }
0x12f1   : > { %v7722_v14 = vmax.f32 %v7720_v39, %v7721_v9  ;;  %v7736_v16 = vmax.f32 %v7734_v7, %v7735_v10  ;;  %v14241_v39 = vld [vmem:[#allocation31 + $0x328] ss:$16 sps:$4 sm:$0xff]   ;;  %v14246_v7 = vld [vmem:[#allocation31 + $0x344] ss:$16 sps:$4 sm:$0xff]   ;;  %v7723_v9 = vsel %vm5904_vm5, %v7621_v3, -inf }
0x12f2   : > { %v8021_v20 = vpack.c.bf16 %v7715_v13, %v7715_v13  ;;  %v14244_v10 = vld [vmem:[#allocation31 + $0x340] ss:$16 sps:$4 sm:$0xff]   ;;  %v14247_v13 = vld [vmem:[#allocation31 + $0x348] ss:$16 sps:$4 sm:$0xff]  }
0x12f3   : > { %v8022_v18 = vpack.c.bf16 %v7722_v14, %v7722_v14  ;;  %v8024_v24 = vpack.c.bf16 %v7736_v16, %v7736_v16  ;;  %v7724_v14 = vrot.slane %v7723_v9, 4  ;;  %v14252_v16 = vld [vmem:[#allocation31 + $0x364] ss:$16 sps:$4 sm:$0xff]  }
0x12f5   : > { %9363 = vmatprep.mubr.bf16.mxu1 %v8022_v18  ;;  %9527 = vmatprep.mubr.bf16.mxu0 %v8022_v18  ;;  %v14255_v18 = vld [vmem:[#allocation31 + $0x36c] ss:$16 sps:$4 sm:$0xff]  }
0x12f6   : > { %9364 = vmatmul.mubr.bf16.vlgmr.msra.gmra.mrb[40].mxu1 %v8021_v20  ;;  %9528 = vmatmul.mubr.bf16.vlgmr.msra.gmra.mrb[36].mxu0 %v8021_v20  ;;  %v6888_v20 = vrot.slane %v16390_v17, %v2159_v4  ;;  %v14267_v4 = vld [vmem:[#allocation31 + $0x3ac] ss:$16 sps:$4 sm:$0xff]  }
0x12f7   : > { %9373 = vmatpush1.bf16.msra.mxu1 %v14184_v19  ;;  %9537 = vmatpush1.bf16.msra.mxu0 %v14187_v15  ;;  %v14253_v19 = vld [vmem:[#allocation31 + $0x368] ss:$16 sps:$4 sm:$0xff]   ;;  %v7725_v15 = vmax.f32 %v7723_v9, %v7724_v14  ;;  %v14288_v9 = vld [vmem:[#allocation31 + $0x424] ss:$16 sps:$4 sm:$0xff]  }
0x12f8   : > { %9404 = vmatprep.mubr.bf16.mxu1 %v8024_v24  ;;  %9568 = vmatprep.mubr.bf16.mxu0 %v8024_v24  ;;  %v14289_v14 = vld [vmem:[#allocation31 + $0x428] ss:$16 sps:$4 sm:$0xff]  }
0x12f9   : > { %9374 = vmatprep.subr.bf16.mxu1 %v14192_v33  ;;  %9538 = vmatprep.subr.bf16.mxu0 %v14195_v23  ;;  %v14258_v33 = vld [vmem:[#allocation31 + $0x384] ss:$16 sps:$4 sm:$0xff]   ;;  %v14261_v23 = vld [vmem:[#allocation31 + $0x38c] ss:$16 sps:$4 sm:$0xff]  }
0x12fb   : > { %9375 = vmatpush1.bf16.msra.mxu1 %v14190_v25  ;;  %9539 = vmatpush1.bf16.msra.mxu0 %v14193_v12  ;;  %v14256_v12 = vld [vmem:[#allocation31 + $0x380] ss:$16 sps:$4 sm:$0xff]  }
0x12fc   : > { %9376 = vmatprep.subr.bf16.mxu1 %v14198_v27  ;;  %9540 = vmatprep.subr.bf16.mxu0 %v14201_v28 }
0x12ff   : > { %9377 = vmatpush1.bf16.msra.mxu1 %v14196_v29  ;;  %9541 = vmatpush1.bf16.msra.mxu0 %v14199_v31  ;;  %v14259_v29 = vld [vmem:[#allocation31 + $0x388] ss:$16 sps:$4 sm:$0xff]   ;;  %v14264_v31 = vld [vmem:[#allocation31 + $0x3a4] ss:$16 sps:$4 sm:$0xff]  }
0x1300   : > { %9378 = vmatprep.subr.bf16.mxu1 %v14204_v32  ;;  %9542 = vmatprep.subr.bf16.mxu0 %v14207_v35  ;;  %v7726_v32 = vrot.slane %v7725_v15, 2 }
0x1303   : > { %9379 = vmatpush1.bf16.msra.mxu1 %v14202_v36  ;;  %9543 = vmatpush1.bf16.msra.mxu0 %v14205_v60 }
0x1304   : > { %9380 = vmatprep.subr.bf16.mxu1 %v14210_v62  ;;  %9544 = vmatprep.subr.bf16.mxu0 %v14213_v5 }
0x1307   : > { %9381 = vmatpush1.bf16.msra.mxu1 %v14208_v37  ;;  %9545 = vmatpush1.bf16.msra.mxu0 %v14211_v22 }
0x1308   : > { %9382 = vmatprep.subr.bf16.mxu1 %v14216_v40  ;;  %9546 = vmatprep.subr.bf16.mxu0 %v14219_v41  ;;  %v14262_v40 = vld [vmem:[#allocation31 + $0x3a0] ss:$16 sps:$4 sm:$0xff]   ;;  %v14265_v41 = vld [vmem:[#allocation31 + $0x3a8] ss:$16 sps:$4 sm:$0xff]  }
0x130b   : > { %9383 = vmatpush1.bf16.msra.mxu1 %v14214_v42  ;;  %9547 = vmatpush1.bf16.msra.mxu0 %v14217_v44  ;;  %v7727_v42 = vmax.f32 %v7725_v15, %v7726_v32  ;;  %v14270_v44 = vld [vmem:[#allocation31 + $0x3c4] ss:$16 sps:$4 sm:$0xff]  }
0x130c   : > { %9384 = vmatprep.subr.bf16.mxu1 %v14222_v47  ;;  %9548 = vmatprep.subr.bf16.mxu0 %v14225_v48  ;;  %v14273_v47 = vld [vmem:[#allocation31 + $0x3cc] ss:$16 sps:$4 sm:$0xff]   ;;  %v14300_v15 = vld [vmem:[#allocation31 + $0x464] ss:$16 sps:$4 sm:$0xff]  }
0x130d   : > { %v14312_v32 = vld [vmem:[#allocation31 + $0x4a4] ss:$16 sps:$4 sm:$0xff]  }
0x130f   : > { %9385 = vmatpush1.bf16.msra.mxu1 %v14220_v50  ;;  %9549 = vmatpush1.bf16.msra.mxu0 %v14223_v51  ;;  %v14268_v51 = vld [vmem:[#allocation31 + $0x3c0] ss:$16 sps:$4 sm:$0xff]  }
0x1310   : > { %9386 = vmatprep.subr.bf16.mxu1 %v14228_v43  ;;  %9550 = vmatprep.subr.bf16.mxu0 %v14231_v53  ;;  %v14271_v43 = vld [vmem:[#allocation31 + $0x3c8] ss:$16 sps:$4 sm:$0xff]   ;;  %v7728_v53 = vrot.slane %v7727_v42, 1 }
0x1313   : > { %9387 = vmatpush1.bf16.msra.mxu1 %v14226_v54  ;;  %9551 = vmatpush1.bf16.msra.mxu0 %v14229_v55  ;;  %v14276_v54 = vld [vmem:[#allocation31 + $0x3e4] ss:$16 sps:$4 sm:$0xff]   ;;  %v14279_v55 = vld [vmem:[#allocation31 + $0x3ec] ss:$16 sps:$4 sm:$0xff]  }
0x1314   : > { %9388 = vmatprep.subr.bf16.mxu1 %v14234_v11  ;;  %9552 = vmatprep.subr.bf16.mxu0 %v14237_v56  ;;  %v14274_v56 = vld [vmem:[#allocation31 + $0x3e0] ss:$16 sps:$4 sm:$0xff]  }
0x1317   : > { %9389 = vmatpush1.bf16.msra.mxu1 %v14232_v58  ;;  %9553 = vmatpush1.bf16.msra.mxu0 %v14235_v59  ;;  %v7729_v59 = vmax.f32 %v7727_v42, %v7728_v53  ;;  %v14325_v42 = vld [vmem:[#allocation31 + $0x4e8] ss:$16 sps:$4 sm:$0xff]   ;;  %v14336_v53 = vld [vmem:[#allocation31 + $0x524] ss:$16 sps:$4 sm:$0xff]  }
0x1318   : > { %9390 = vmatprep.subr.bf16.mxu1 %v14240_v61  ;;  %9554 = vmatprep.subr.bf16.mxu0 %v14243_v63  ;;  %v14282_v61 = vld [vmem:[#allocation31 + $0x404] ss:$16 sps:$4 sm:$0xff]   ;;  %v14285_v63 = vld [vmem:[#allocation31 + $0x40c] ss:$16 sps:$4 sm:$0xff]  }
0x131b   : > { %9391 = vmatpush1.bf16.msra.mxu1 %v14238_v49  ;;  %9555 = vmatpush1.bf16.msra.mxu0 %v14241_v39  ;;  %v14280_v49 = vld [vmem:[#allocation31 + $0x400] ss:$16 sps:$4 sm:$0xff]   ;;  %v8023_v39 = vpack.c.bf16 %v7729_v59, %v7729_v59 }
0x131c   : > { %9392 = vmatprep.subr.bf16.mxu1 %v14246_v7  ;;  %9556 = vmatprep.subr.bf16.mxu0 %v14249_v8  ;;  %v14283_v7 = vld [vmem:[#allocation31 + $0x408] ss:$16 sps:$4 sm:$0xff]  }
0x131f   : > { %9393 = vmatpush1.bf16.msra.mxu1 %v14244_v10  ;;  %9557 = vmatpush1.bf16.msra.mxu0 %v14247_v13  ;;  %v14291_v10 = vld [vmem:[#allocation31 + $0x42c] ss:$16 sps:$4 sm:$0xff]   ;;  %v14286_v13 = vld [vmem:[#allocation31 + $0x420] ss:$16 sps:$4 sm:$0xff]  }
0x1320   : > { %9394 = vmatprep.subr.bf16.mxu1 %v14252_v16  ;;  %9558 = vmatprep.subr.bf16.mxu0 %v14255_v18  ;;  %v14294_v16 = vld [vmem:[#allocation31 + $0x444] ss:$16 sps:$4 sm:$0xff]   ;;  %v14297_v18 = vld [vmem:[#allocation31 + $0x44c] ss:$16 sps:$4 sm:$0xff]  }
0x1322   : > { %v16410_v24 = vpop.f32.mrb[36].mxu1  ;;  %v16412_v25 = vpop.f32.mrb[32].mxu0 }
0x1323   : > { %v7663_v27 = vpop.f32.mrb[37].mxu1  ;;  %v16414_v28 = vpop.f32.mrb[33].mxu0  ;;  %9395 = vmatpush1.bf16.msra.mxu1 %v14250_v38  ;;  %9559 = vmatpush1.bf16.msra.mxu0 %v14253_v19  ;;  %v14292_v38 = vld [vmem:[#allocation31 + $0x440] ss:$16 sps:$4 sm:$0xff]   ;;  %v14295_v19 = vld [vmem:[#allocation31 + $0x448] ss:$16 sps:$4 sm:$0xff]  }
0x1324   : > { %v7664_v35 = vadd.f32 %v7663_v27, %v6888_v20  ;;  %v7665_v36 = vpop.f32.mrb[38].mxu1  ;;  %v7706_v60 = vpop.f32.mrb[34].mxu0  ;;  %9396 = vmatprep.subr.bf16.mxu1 %v14258_v33  ;;  %9560 = vmatprep.subr.bf16.mxu0 %v14261_v23  ;;  %v14303_v20 = vld [vmem:[#allocation31 + $0x46c] ss:$16 sps:$4 sm:$0xff]   ;;  %v14298_v33 = vld [vmem:[#allocation31 + $0x460] ss:$16 sps:$4 sm:$0xff]  }
0x1325   : > { %v7666_v62 = vpop.f32.mrb[39].mxu1  ;;  %v7707_v5 = vpop.f32.mrb[35].mxu0  ;;  %v14301_v23 = vld [vmem:[#allocation31 + $0x468] ss:$16 sps:$4 sm:$0xff]   ;;  %v14309_v27 = vld [vmem:[#allocation31 + $0x48c] ss:$16 sps:$4 sm:$0xff]  }
0x1326   : > { %v7744_v37 = vsel %vm5904_vm5, %v7664_v35, -inf  ;;  %v14315_v35 = vld [vmem:[#allocation31 + $0x4ac] ss:$16 sps:$4 sm:$0xff]   ;;  %v14310_v36 = vld [vmem:[#allocation31 + $0x4a0] ss:$16 sps:$4 sm:$0xff]  }
0x1327   : > { %v7745_v22 = vrot.slane %v7744_v37, 4  ;;  %9397 = vmatpush1.bf16.msra.mxu1 %v14256_v12  ;;  %9561 = vmatpush1.bf16.msra.mxu0 %v14259_v29  ;;  %v14306_v12 = vld [vmem:[#allocation31 + $0x484] ss:$16 sps:$4 sm:$0xff]   ;;  %v14304_v29 = vld [vmem:[#allocation31 + $0x480] ss:$16 sps:$4 sm:$0xff]  }
0x1328   : > { %9398 = vmatprep.subr.bf16.mxu1 %v14264_v31  ;;  %9562 = vmatprep.subr.bf16.mxu0 %v14267_v4  ;;  %v14307_v31 = vld [vmem:[#allocation31 + $0x488] ss:$16 sps:$4 sm:$0xff]   ;;  %v14318_v4 = vld [vmem:[#allocation31 + $0x4c4] ss:$16 sps:$4 sm:$0xff]   ;;  %v14321_v62 = vld [vmem:[#allocation31 + $0x4cc] ss:$16 sps:$4 sm:$0xff]  }
0x1329   : > { %v7746_v48 = vmax.f32 %v7744_v37, %v7745_v22  ;;  %v14313_v60 = vld [vmem:[#allocation31 + $0x4a8] ss:$16 sps:$4 sm:$0xff]   ;;  %v14316_v5 = vld [vmem:[#allocation31 + $0x4c0] ss:$16 sps:$4 sm:$0xff]   ;;  %v14324_v22 = vld [vmem:[#allocation31 + $0x4e4] ss:$16 sps:$4 sm:$0xff]  }
0x132a   : > { %v14319_v37 = vld [vmem:[#allocation31 + $0x4c8] ss:$16 sps:$4 sm:$0xff]  }
0x132b   : > { %v7747_v50 = vrot.slane %v7746_v48, 2  ;;  %9399 = vmatpush1.bf16.msra.mxu1 %v14262_v40  ;;  %9563 = vmatpush1.bf16.msra.mxu0 %v14265_v41  ;;  %v14327_v40 = vld [vmem:[#allocation31 + $0x4ec] ss:$16 sps:$4 sm:$0xff]   ;;  %v14322_v41 = vld [vmem:[#allocation31 + $0x4e0] ss:$16 sps:$4 sm:$0xff]  }
0x132c   : > { %9400 = vmatprep.subr.bf16.mxu1 %v14270_v44  ;;  %9564 = vmatprep.subr.bf16.mxu0 %v14273_v47  ;;  %v14330_v44 = vld [vmem:[#allocation31 + $0x504] ss:$16 sps:$4 sm:$0xff]   ;;  %v6884_v47 = vrot.slane %v16390_v17, %v2155_v26  ;;  %v14334_v26 = vld [vmem:[#allocation31 + $0x520] ss:$16 sps:$4 sm:$0xff]  }
0x132d   : > { %v7748_v11 = vmax.f32 %v7746_v48, %v7747_v50  ;;  %v14333_v48 = vld [vmem:[#allocation31 + $0x50c] ss:$16 sps:$4 sm:$0xff]   ;;  %v6896_v50 = vrot.slane %v16390_v17, %v2167_v30 }
0x132f   : > { %9401 = vmatpush1.bf16.msra.mxu1 %v14268_v51  ;;  %9565 = vmatpush1.bf16.msra.mxu0 %v14271_v43  ;;  %v7749_v58 = vrot.slane %v7748_v11, 1  ;;  %v14328_v51 = vld [vmem:[#allocation31 + $0x500] ss:$16 sps:$4 sm:$0xff]   ;;  %v14331_v43 = vld [vmem:[#allocation31 + $0x508] ss:$16 sps:$4 sm:$0xff]  }
0x1330   : > { %9402 = vmatprep.subr.bf16.mxu1 %v14276_v54  ;;  %9566 = vmatprep.subr.bf16.mxu0 %v14279_v55  ;;  %v7662_v54 = vadd.f32 %v16410_v24, %v6884_v47  ;;  %v14339_v55 = vld [vmem:[#allocation31 + $0x52c] ss:$16 sps:$4 sm:$0xff]   ;;  %v14343_v24 = vld [vmem:[#allocation31 + $0x548] ss:$16 sps:$4 sm:$0xff]  }
0x1331   : > { %v7750_v3 = vmax.f32 %v7748_v11, %v7749_v58  ;;  %v7705_v11 = vadd.f32 %v16414_v28, %v6896_v50  ;;  %v14345_v58 = vld [vmem:[#allocation31 + $0x54c] ss:$16 sps:$4 sm:$0xff]   ;;  %v14379_v47 = vld [vmem:[#allocation31 + $0x608] ss:$16 sps:$4 sm:$0xff]  }
0x1332   : > { %v7737_v30 = vsel %vm5904_vm5, %v7662_v54, -inf  ;;  %v14351_v28 = vld [vmem:[#allocation31 + $0x56c] ss:$16 sps:$4 sm:$0xff]   ;;  %v14390_v54 = vld [vmem:[#allocation31 + $0x644] ss:$16 sps:$4 sm:$0xff]  }
0x1333   : > { %9403 = vmatpush1.bf16.msra.mxu1 %v14274_v56  ;;  %9567 = vmatpush1.bf16.msra.mxu0 %v14277_v57  ;;  %v8026_v8 = vpack.c.bf16 %v7750_v3, %v7750_v3  ;;  %v14337_v56 = vld [vmem:[#allocation31 + $0x528] ss:$16 sps:$4 sm:$0xff]   ;;  %v14342_v57 = vld [vmem:[#allocation31 + $0x544] ss:$16 sps:$4 sm:$0xff]   ;;  %v7758_v59 = vsel %vm5904_vm5, %v7705_v11, -inf }
0x1334   : > { %9413 = vmatprep.subr.bf16.mxu1 %v14282_v61  ;;  %9577 = vmatprep.subr.bf16.mxu0 %v14285_v63  ;;  %v14340_v61 = vld [vmem:[#allocation31 + $0x540] ss:$16 sps:$4 sm:$0xff]   ;;  %v7738_v63 = vrot.slane %v7737_v30, 4  ;;  %v14348_v3 = vld [vmem:[#allocation31 + $0x564] ss:$16 sps:$4 sm:$0xff]  }
0x1335   : > { %v14388_v11 = vld [vmem:[#allocation31 + $0x640] ss:$16 sps:$4 sm:$0xff]  }
0x1336   : > { %9405 = vmatmul.mubr.bf16.vlgmr.msra.gmra.mrb[40].mxu1 %v8023_v39  ;;  %9569 = vmatmul.mubr.bf16.vlgmr.msra.gmra.mrb[36].mxu0 %v8023_v39  ;;  %v14346_v39 = vld [vmem:[#allocation31 + $0x560] ss:$16 sps:$4 sm:$0xff]  }
0x1337   : > { %9414 = vmatpush1.bf16.msra.mxu1 %v14280_v49  ;;  %9445 = vmatprep.mubr.bf16.mxu1 %v8026_v8  ;;  %v7759_v49 = vrot.slane %v7758_v59, 4 }
0x1338   : > { %9578 = vmatpush1.bf16.msra.mxu0 %v14283_v7  ;;  %9609 = vmatprep.mubr.bf16.mxu0 %v8026_v8  ;;  %v7739_v7 = vmax.f32 %v7737_v30, %v7738_v63  ;;  %v14349_v8 = vld [vmem:[#allocation31 + $0x568] ss:$16 sps:$4 sm:$0xff]   ;;  %v14394_v30 = vld [vmem:[#allocation31 + $0x660] ss:$16 sps:$4 sm:$0xff]  }
0x1339   : > { %9415 = vmatprep.subr.bf16.mxu1 %v14288_v9  ;;  %9579 = vmatprep.subr.bf16.mxu0 %v14291_v10  ;;  %v14354_v9 = vld [vmem:[#allocation31 + $0x584] ss:$16 sps:$4 sm:$0xff]   ;;  %v14357_v10 = vld [vmem:[#allocation31 + $0x58c] ss:$16 sps:$4 sm:$0xff]   ;;  %v14400_v63 = vld [vmem:[#allocation31 + $0x680] ss:$16 sps:$4 sm:$0xff]  }
0x133b   : > { %9416 = vmatpush1.bf16.msra.mxu1 %v14286_v13  ;;  %v7760_v13 = vmax.f32 %v7758_v59, %v7759_v49  ;;  %v14402_v59 = vld [vmem:[#allocation31 + $0x684] ss:$16 sps:$4 sm:$0xff]   ;;  %v14406_v49 = vld [vmem:[#allocation31 + $0x6a0] ss:$16 sps:$4 sm:$0xff]  }
0x133c   : > { %9580 = vmatpush1.bf16.msra.mxu0 %v14289_v14  ;;  %9417 = vmatprep.subr.bf16.mxu1 %v14294_v16  ;;  %v14352_v14 = vld [vmem:[#allocation31 + $0x580] ss:$16 sps:$4 sm:$0xff]   ;;  %v7740_v16 = vrot.slane %v7739_v7, 2 }
0x133d   : > { %9581 = vmatprep.subr.bf16.mxu0 %v14297_v18  ;;  %v14355_v18 = vld [vmem:[#allocation31 + $0x588] ss:$16 sps:$4 sm:$0xff]  }
0x133f   : > { %9418 = vmatpush1.bf16.msra.mxu1 %v14292_v38  ;;  %v14360_v38 = vld [vmem:[#allocation31 + $0x5a4] ss:$16 sps:$4 sm:$0xff]  }
0x1340   : > { %9582 = vmatpush1.bf16.msra.mxu0 %v14295_v19  ;;  %9419 = vmatprep.subr.bf16.mxu1 %v14300_v15  ;;  %v14363_v19 = vld [vmem:[#allocation31 + $0x5ac] ss:$16 sps:$4 sm:$0xff]   ;;  %v7761_v15 = vrot.slane %v7760_v13, 2 }
0x1341   : > { %9583 = vmatprep.subr.bf16.mxu0 %v14303_v20  ;;  %v14358_v20 = vld [vmem:[#allocation31 + $0x5a0] ss:$16 sps:$4 sm:$0xff]  }
0x1343   : > { %9420 = vmatpush1.bf16.msra.mxu1 %v14298_v33  ;;  %v7741_v33 = vmax.f32 %v7739_v7, %v7740_v16  ;;  %v14414_v7 = vld [vmem:[#allocation31 + $0x6c4] ss:$16 sps:$4 sm:$0xff]   ;;  %v14418_v16 = vld [vmem:[#allocation31 + $0x6e0] ss:$16 sps:$4 sm:$0xff]  }
0x1344   : > { %9584 = vmatpush1.bf16.msra.mxu0 %v14301_v23  ;;  %9421 = vmatprep.subr.bf16.mxu1 %v14306_v12  ;;  %v14361_v23 = vld [vmem:[#allocation31 + $0x5a8] ss:$16 sps:$4 sm:$0xff]   ;;  %v14366_v12 = vld [vmem:[#allocation31 + $0x5c4] ss:$16 sps:$4 sm:$0xff]  }
0x1345   : > { %9585 = vmatprep.subr.bf16.mxu0 %v14309_v27  ;;  %v14369_v27 = vld [vmem:[#allocation31 + $0x5cc] ss:$16 sps:$4 sm:$0xff]  }
0x1347   : > { %9422 = vmatpush1.bf16.msra.mxu1 %v14304_v29  ;;  %v7762_v29 = vmax.f32 %v7760_v13, %v7761_v15  ;;  %v14420_v13 = vld [vmem:[#allocation31 + $0x6e4] ss:$16 sps:$4 sm:$0xff]   ;;  %v14429_v15 = vld [vmem:[#allocation31 + $0x70c] ss:$16 sps:$4 sm:$0xff]  }
0x1348   : > { %9586 = vmatpush1.bf16.msra.mxu0 %v14307_v31  ;;  %9423 = vmatprep.subr.bf16.mxu1 %v14312_v32  ;;  %v14364_v31 = vld [vmem:[#allocation31 + $0x5c0] ss:$16 sps:$4 sm:$0xff]   ;;  %v7742_v32 = vrot.slane %v7741_v33, 1 }
0x1349   : > { %9587 = vmatprep.subr.bf16.mxu0 %v14315_v35  ;;  %v14367_v35 = vld [vmem:[#allocation31 + $0x5c8] ss:$16 sps:$4 sm:$0xff]  }
0x134b   : > { %9424 = vmatpush1.bf16.msra.mxu1 %v14310_v36  ;;  %v14372_v36 = vld [vmem:[#allocation31 + $0x5e4] ss:$16 sps:$4 sm:$0xff]  }
0x134c   : > { %9588 = vmatpush1.bf16.msra.mxu0 %v14313_v60  ;;  %9425 = vmatprep.subr.bf16.mxu1 %v14318_v4  ;;  %v14375_v60 = vld [vmem:[#allocation31 + $0x5ec] ss:$16 sps:$4 sm:$0xff]   ;;  %v7763_v4 = vrot.slane %v7762_v29, 1 }
0x134d   : > { %9589 = vmatprep.subr.bf16.mxu0 %v14321_v62  ;;  %v14370_v62 = vld [vmem:[#allocation31 + $0x5e0] ss:$16 sps:$4 sm:$0xff]  }
0x134f   : > { %9426 = vmatpush1.bf16.msra.mxu1 %v14316_v5  ;;  %v7743_v5 = vmax.f32 %v7741_v33, %v7742_v32  ;;  %v14427_v33 = vld [vmem:[#allocation31 + $0x708] ss:$16 sps:$4 sm:$0xff]   ;;  %v14436_v32 = vld [vmem:[#allocation31 + $0x740] ss:$16 sps:$4 sm:$0xff]  }
0x1350   : > { %9590 = vmatpush1.bf16.msra.mxu0 %v14319_v37  ;;  %9427 = vmatprep.subr.bf16.mxu1 %v14324_v22  ;;  %v14373_v37 = vld [vmem:[#allocation31 + $0x5e8] ss:$16 sps:$4 sm:$0xff]   ;;  %v14378_v22 = vld [vmem:[#allocation31 + $0x604] ss:$16 sps:$4 sm:$0xff]  }
0x1351   : > { %9591 = vmatprep.subr.bf16.mxu0 %v14327_v40  ;;  %v14381_v40 = vld [vmem:[#allocation31 + $0x60c] ss:$16 sps:$4 sm:$0xff]  }
0x1353   : > { %9428 = vmatpush1.bf16.msra.mxu1 %v14322_v41  ;;  %v7764_v41 = vmax.f32 %v7762_v29, %v7763_v4  ;;  %v14430_v29 = vld [vmem:[#allocation31 + $0x720] ss:$16 sps:$4 sm:$0xff]  }
0x1354   : > { %9592 = vmatpush1.bf16.msra.mxu0 %v14325_v42  ;;  %9429 = vmatprep.subr.bf16.mxu1 %v14330_v44  ;;  %v14376_v42 = vld [vmem:[#allocation31 + $0x600] ss:$16 sps:$4 sm:$0xff]   ;;  %v8025_v44 = vpack.c.bf16 %v7743_v5, %v7743_v5  ;;  %v14445_v5 = vld [vmem:[#allocation31 + $0x768] ss:$16 sps:$4 sm:$0xff]  }
0x1355   : > { %9593 = vmatprep.subr.bf16.mxu0 %v14333_v48  ;;  %v14384_v48 = vld [vmem:[#allocation31 + $0x624] ss:$16 sps:$4 sm:$0xff]   ;;  %v8028_v50 = vpack.c.bf16 %v7764_v41, %v7764_v41  ;;  %v14442_v4 = vld [vmem:[#allocation31 + $0x760] ss:$16 sps:$4 sm:$0xff]  }
0x1357   : > { %9430 = vmatpush1.bf16.msra.mxu1 %v14328_v51  ;;  %v14387_v51 = vld [vmem:[#allocation31 + $0x62c] ss:$16 sps:$4 sm:$0xff]  }
0x1358   : > { %9594 = vmatpush1.bf16.msra.mxu0 %v14331_v43  ;;  %9431 = vmatprep.subr.bf16.mxu1 %v14336_v53  ;;  %v14382_v43 = vld [vmem:[#allocation31 + $0x620] ss:$16 sps:$4 sm:$0xff]   ;;  %v14385_v53 = vld [vmem:[#allocation31 + $0x628] ss:$16 sps:$4 sm:$0xff]  }
0x1359   : > { %9595 = vmatprep.subr.bf16.mxu0 %v14339_v55  ;;  %v14393_v55 = vld [vmem:[#allocation31 + $0x64c] ss:$16 sps:$4 sm:$0xff]  }
0x135b   : > { %9432 = vmatpush1.bf16.msra.mxu1 %v14334_v26  ;;  %v14391_v26 = vld [vmem:[#allocation31 + $0x648] ss:$16 sps:$4 sm:$0xff]  }
0x135c   : > { %9596 = vmatpush1.bf16.msra.mxu0 %v14337_v56  ;;  %9433 = vmatprep.subr.bf16.mxu1 %v14342_v57  ;;  %v14396_v56 = vld [vmem:[#allocation31 + $0x664] ss:$16 sps:$4 sm:$0xff]   ;;  %v14399_v57 = vld [vmem:[#allocation31 + $0x66c] ss:$16 sps:$4 sm:$0xff]  }
0x135d   : > { %9597 = vmatprep.subr.bf16.mxu0 %v14345_v58  ;;  %v14397_v58 = vld [vmem:[#allocation31 + $0x668] ss:$16 sps:$4 sm:$0xff]  }
0x135f   : > { %9434 = vmatpush1.bf16.msra.mxu1 %v14340_v61  ;;  %v14405_v61 = vld [vmem:[#allocation31 + $0x68c] ss:$16 sps:$4 sm:$0xff]  }
0x1360   : > { %9598 = vmatpush1.bf16.msra.mxu0 %v14343_v24  ;;  %9435 = vmatprep.subr.bf16.mxu1 %v14348_v3  ;;  %v14403_v24 = vld [vmem:[#allocation31 + $0x688] ss:$16 sps:$4 sm:$0xff]   ;;  %v14408_v3 = vld [vmem:[#allocation31 + $0x6a4] ss:$16 sps:$4 sm:$0xff]  }
0x1361   : > { %9599 = vmatprep.subr.bf16.mxu0 %v14351_v28  ;;  %v14411_v28 = vld [vmem:[#allocation31 + $0x6ac] ss:$16 sps:$4 sm:$0xff]  }
0x1363   : > { %9436 = vmatpush1.bf16.msra.mxu1 %v14346_v39  ;;  %v14409_v39 = vld [vmem:[#allocation31 + $0x6a8] ss:$16 sps:$4 sm:$0xff]  }
0x1364   : > { %9600 = vmatpush1.bf16.msra.mxu0 %v14349_v8  ;;  %9437 = vmatprep.subr.bf16.mxu1 %v14354_v9  ;;  %v14417_v8 = vld [vmem:[#allocation31 + $0x6cc] ss:$16 sps:$4 sm:$0xff]   ;;  %v14412_v9 = vld [vmem:[#allocation31 + $0x6c0] ss:$16 sps:$4 sm:$0xff]  }
0x1365   : > { %9601 = vmatprep.subr.bf16.mxu0 %v14357_v10  ;;  %v14415_v10 = vld [vmem:[#allocation31 + $0x6c8] ss:$16 sps:$4 sm:$0xff]  }
0x1367   : > { %9438 = vmatpush1.bf16.msra.mxu1 %v14352_v14  ;;  %v14423_v14 = vld [vmem:[#allocation31 + $0x6ec] ss:$16 sps:$4 sm:$0xff]  }
0x1368   : > { %9602 = vmatpush1.bf16.msra.mxu0 %v14355_v18  ;;  %9439 = vmatprep.subr.bf16.mxu1 %v14360_v38  ;;  %v14421_v18 = vld [vmem:[#allocation31 + $0x6e8] ss:$16 sps:$4 sm:$0xff]   ;;  %v14426_v38 = vld [vmem:[#allocation31 + $0x704] ss:$16 sps:$4 sm:$0xff]  }
0x1369   : > { %9603 = vmatprep.subr.bf16.mxu0 %v14363_v19  ;;  %v6892_v19 = vrot.slane %v16390_v17, %v2163_v2  ;;  %v14441_v17 = vld [vmem:[#allocation31 + $0x74c] ss:$16 sps:$4 sm:$0xff]  }
0x136b   : > { %9440 = vmatpush1.bf16.msra.mxu1 %v14358_v20  ;;  %v14424_v20 = vld [vmem:[#allocation31 + $0x700] ss:$16 sps:$4 sm:$0xff]  }
0x136c   : > { %9604 = vmatpush1.bf16.msra.mxu0 %v14361_v23  ;;  %9441 = vmatprep.subr.bf16.mxu1 %v14366_v12  ;;  %v14432_v23 = vld [vmem:[#allocation31 + $0x724] ss:$16 sps:$4 sm:$0xff]   ;;  %v7703_v12 = vadd.f32 %v16412_v25, %v6892_v19  ;;  %v14447_v25 = vld [vmem:[#allocation31 + $0x76c] ss:$16 sps:$4 sm:$0xff]  }
0x136d   : > { %9605 = vmatprep.subr.bf16.mxu0 %v14369_v27  ;;  %v14435_v27 = vld [vmem:[#allocation31 + $0x72c] ss:$16 sps:$4 sm:$0xff]  }
0x136e   : > { %v7751_v2 = vsel %vm5904_vm5, %v7703_v12, -inf  ;;  %v14498_v19 = vld [vmem:[#allocation32 + $0x84] ss:$8 sps:$4 sm:$0xff]   ;;  %v14502_v12 = vld [vmem:[#allocation32 + $0xa0] ss:$8 sps:$4 sm:$0xff]  }
0x136f   : > { %9442 = vmatpush1.bf16.msra.mxu1 %v14364_v31  ;;  %v14433_v31 = vld [vmem:[#allocation31 + $0x728] ss:$16 sps:$4 sm:$0xff]  }
0x1370   : > { %9606 = vmatpush1.bf16.msra.mxu0 %v14367_v35  ;;  %9443 = vmatprep.subr.bf16.mxu1 %v14372_v36  ;;  %v7752_v35 = vrot.slane %v7751_v2, 4  ;;  %v14439_v36 = vld [vmem:[#allocation31 + $0x748] ss:$16 sps:$4 sm:$0xff]  }
0x1371   : > { %9607 = vmatprep.subr.bf16.mxu0 %v14375_v60  ;;  %v14444_v60 = vld [vmem:[#allocation31 + $0x764] ss:$16 sps:$4 sm:$0xff]  }
0x1373   : > { %9444 = vmatpush1.bf16.msra.mxu1 %v14370_v62  ;;  %v7753_v62 = vmax.f32 %v7751_v2, %v7752_v35  ;;  %v14513_v2 = vld [vmem:[#allocation32 + $0xd4] ss:$8 sps:$4 sm:$0xff]   ;;  %v14514_v35 = vld [vmem:[#allocation32 + $0xe0] ss:$8 sps:$4 sm:$0xff]  }
0x1374   : > { %9608 = vmatpush1.bf16.msra.mxu0 %v14373_v37  ;;  %9454 = vmatprep.subr.bf16.mxu1 %v14378_v22  ;;  %v14450_v37 = vld [vmem:[#allocation31 + $0x784] ss:$16 sps:$4 sm:$0xff]   ;;  %v14453_v22 = vld [vmem:[#allocation31 + $0x78c] ss:$16 sps:$4 sm:$0xff]  }
0x1375   : > { %9618 = vmatprep.subr.bf16.mxu0 %v14381_v40  ;;  %v14448_v40 = vld [vmem:[#allocation31 + $0x780] ss:$16 sps:$4 sm:$0xff]   ;;  %v7754_v41 = vrot.slane %v7753_v62, 2 }
0x1376   : > { %9446 = vmatmul.mubr.bf16.vlgmr.msra.gmra.mrb[40].mxu1 %v8025_v44 }
0x1377   : > { %9610 = vmatmul.mubr.bf16.vlgmr.msra.gmra.mrb[36].mxu0 %v8025_v44  ;;  %9455 = vmatpush1.bf16.msra.mxu1 %v14376_v42  ;;  %v14451_v42 = vld [vmem:[#allocation31 + $0x788] ss:$16 sps:$4 sm:$0xff]   ;;  %v14456_v44 = vld [vmem:[#allocation31 + $0x7a4] ss:$16 sps:$4 sm:$0xff]  }
0x1378   : > { %9486 = vmatprep.mubr.bf16.mxu1 %v8028_v50  ;;  %9619 = vmatpush1.bf16.msra.mxu0 %v14379_v47  ;;  %v14459_v47 = vld [vmem:[#allocation31 + $0x7ac] ss:$16 sps:$4 sm:$0xff]  }
0x1379   : > { %9650 = vmatprep.mubr.bf16.mxu0 %v8028_v50  ;;  %9456 = vmatprep.subr.bf16.mxu1 %v14384_v48  ;;  %v14454_v48 = vld [vmem:[#allocation31 + $0x7a0] ss:$16 sps:$4 sm:$0xff]   ;;  %v7755_v50 = vmax.f32 %v7753_v62, %v7754_v41  ;;  %v10150_v62 = vld [vmem:[#allocation34 + $0x18] sm:$0xff] }
0x137a   : > { %9620 = vmatprep.subr.bf16.mxu0 %v14387_v51  ;;  %v14457_v51 = vld [vmem:[#allocation31 + $0x7a8] ss:$16 sps:$4 sm:$0xff]  }
0x137b   : > { %9457 = vmatpush1.bf16.msra.mxu1 %v14382_v43  ;;  %v14462_v43 = vld [vmem:[#allocation31 + $0x7c4] ss:$16 sps:$4 sm:$0xff]   ;;  %v10154_v41 = vld [vmem:[#allocation34 + $0x38] sm:$0xff] }
0x137c   : > { %9621 = vmatpush1.bf16.msra.mxu0 %v14385_v53  ;;  %9458 = vmatprep.subr.bf16.mxu1 %v14390_v54  ;;  %v14465_v53 = vld [vmem:[#allocation31 + $0x7cc] ss:$16 sps:$4 sm:$0xff]   ;;  %v14460_v54 = vld [vmem:[#allocation31 + $0x7c0] ss:$16 sps:$4 sm:$0xff]  }
0x137d   : > { %9622 = vmatprep.subr.bf16.mxu0 %v14393_v55  ;;  %v7756_v55 = vrot.slane %v7755_v50, 1 }
0x137f   : > { %9459 = vmatpush1.bf16.msra.mxu1 %v14388_v11  ;;  %v14463_v11 = vld [vmem:[#allocation31 + $0x7c8] ss:$16 sps:$4 sm:$0xff]  }
0x1380   : > { %9623 = vmatpush1.bf16.msra.mxu0 %v14391_v26  ;;  %9460 = vmatprep.subr.bf16.mxu1 %v14396_v56  ;;  %v14468_v26 = vld [vmem:[#allocation31 + $0x7e4] ss:$16 sps:$4 sm:$0xff]   ;;  %v14471_v56 = vld [vmem:[#allocation31 + $0x7ec] ss:$16 sps:$4 sm:$0xff]  }
0x1381   : > { %9624 = vmatprep.subr.bf16.mxu0 %v14399_v57  ;;  %v14466_v57 = vld [vmem:[#allocation31 + $0x7e0] ss:$16 sps:$4 sm:$0xff]  }
0x1383   : > { %9461 = vmatpush1.bf16.msra.mxu1 %v14394_v30  ;;  %v7757_v30 = vmax.f32 %v7755_v50, %v7756_v55  ;;  %v10156_v50 = vld [vmem:[#allocation34 + $0x48] sm:$0xff]  ;;  %v10157_v55 = vld [vmem:[#allocation34 + $0x50] sm:$0xff] }
0x1384   : > { %9625 = vmatpush1.bf16.msra.mxu0 %v14397_v58  ;;  %9462 = vmatprep.subr.bf16.mxu1 %v14402_v59  ;;  %v14469_v58 = vld [vmem:[#allocation31 + $0x7e8] ss:$16 sps:$4 sm:$0xff]   ;;  %v14474_v59 = vld [vmem:[#allocation32 + $0x4] ss:$8 sps:$4 sm:$0xff]  }
0x1385   : > { %9626 = vmatprep.subr.bf16.mxu0 %v14405_v61  ;;  %v14472_v61 = vld [vmem:[#allocation32] ss:$8 sps:$4 sm:$0xff]  }
0x1387   : > { %9463 = vmatpush1.bf16.msra.mxu1 %v14400_v63  ;;  %v8027_v63 = vpack.c.bf16 %v7757_v30, %v7757_v30  ;;  %v10159_v30 = vld [vmem:[#allocation34 + $0x60] sm:$0xff] }
0x1388   : > { %9627 = vmatpush1.bf16.msra.mxu0 %v14403_v24  ;;  %9464 = vmatprep.subr.bf16.mxu1 %v14408_v3  ;;  %v14477_v24 = vld [vmem:[#allocation32 + $0x14] ss:$8 sps:$4 sm:$0xff]   ;;  %v14475_v3 = vld [vmem:[#allocation32 + $0x10] ss:$8 sps:$4 sm:$0xff]  }
0x1389   : > { %9628 = vmatprep.subr.bf16.mxu0 %v14411_v28  ;;  %v14480_v28 = vld [vmem:[#allocation32 + $0x24] ss:$8 sps:$4 sm:$0xff]  }
0x138b   : > { %9465 = vmatpush1.bf16.msra.mxu1 %v14406_v49  ;;  %v14478_v49 = vld [vmem:[#allocation32 + $0x20] ss:$8 sps:$4 sm:$0xff]  }
0x138c   : > { %9629 = vmatpush1.bf16.msra.mxu0 %v14409_v39  ;;  %9466 = vmatprep.subr.bf16.mxu1 %v14414_v7  ;;  %v14483_v39 = vld [vmem:[#allocation32 + $0x34] ss:$8 sps:$4 sm:$0xff]   ;;  %v14481_v7 = vld [vmem:[#allocation32 + $0x30] ss:$8 sps:$4 sm:$0xff]  }
0x138d   : > { %9630 = vmatprep.subr.bf16.mxu0 %v14417_v8  ;;  %v14486_v8 = vld [vmem:[#allocation32 + $0x44] ss:$8 sps:$4 sm:$0xff]  }
0x138f   : > { %9467 = vmatpush1.bf16.msra.mxu1 %v14412_v9  ;;  %v14484_v9 = vld [vmem:[#allocation32 + $0x40] ss:$8 sps:$4 sm:$0xff]  }
0x1390   : > { %9631 = vmatpush1.bf16.msra.mxu0 %v14415_v10  ;;  %9468 = vmatprep.subr.bf16.mxu1 %v14420_v13  ;;  %v14489_v10 = vld [vmem:[#allocation32 + $0x54] ss:$8 sps:$4 sm:$0xff]   ;;  %v14487_v13 = vld [vmem:[#allocation32 + $0x50] ss:$8 sps:$4 sm:$0xff]  }
0x1391   : > { %9632 = vmatprep.subr.bf16.mxu0 %v14423_v14  ;;  %v14492_v14 = vld [vmem:[#allocation32 + $0x64] ss:$8 sps:$4 sm:$0xff]  }
0x1393   : > { %9469 = vmatpush1.bf16.msra.mxu1 %v14418_v16  ;;  %v14490_v16 = vld [vmem:[#allocation32 + $0x60] ss:$8 sps:$4 sm:$0xff]  }
0x1394   : > { %9633 = vmatpush1.bf16.msra.mxu0 %v14421_v18  ;;  %9470 = vmatprep.subr.bf16.mxu1 %v14426_v38  ;;  %v14495_v18 = vld [vmem:[#allocation32 + $0x74] ss:$8 sps:$4 sm:$0xff]   ;;  %v14493_v38 = vld [vmem:[#allocation32 + $0x70] ss:$8 sps:$4 sm:$0xff]  }
0x1395   : > { %9634 = vmatprep.subr.bf16.mxu0 %v14429_v15  ;;  %v14496_v15 = vld [vmem:[#allocation32 + $0x80] ss:$8 sps:$4 sm:$0xff]  }
0x1397   : > { %9471 = vmatpush1.bf16.msra.mxu1 %v14424_v20  ;;  %v14501_v20 = vld [vmem:[#allocation32 + $0x94] ss:$8 sps:$4 sm:$0xff]  }
0x1398   : > { %9635 = vmatpush1.bf16.msra.mxu0 %v14427_v33  ;;  %9472 = vmatprep.subr.bf16.mxu1 %v14432_v23  ;;  %v14499_v33 = vld [vmem:[#allocation32 + $0x90] ss:$8 sps:$4 sm:$0xff]   ;;  %v14504_v23 = vld [vmem:[#allocation32 + $0xa4] ss:$8 sps:$4 sm:$0xff]  }
0x1399   : > { %9636 = vmatprep.subr.bf16.mxu0 %v14435_v27  ;;  %v14507_v27 = vld [vmem:[#allocation32 + $0xb4] ss:$8 sps:$4 sm:$0xff]  }
0x139b   : > { %9473 = vmatpush1.bf16.msra.mxu1 %v14430_v29  ;;  %v14505_v29 = vld [vmem:[#allocation32 + $0xb0] ss:$8 sps:$4 sm:$0xff]  }
0x139c   : > { %9637 = vmatpush1.bf16.msra.mxu0 %v14433_v31  ;;  %9474 = vmatprep.subr.bf16.mxu1 %v14438_v6  ;;  %v14510_v31 = vld [vmem:[#allocation32 + $0xc4] ss:$8 sps:$4 sm:$0xff]   ;;  %v14508_v6 = vld [vmem:[#allocation32 + $0xc0] ss:$8 sps:$4 sm:$0xff]  }
0x139d   : > { %9638 = vmatprep.subr.bf16.mxu0 %v14441_v17  ;;  %v14511_v17 = vld [vmem:[#allocation32 + $0xd0] ss:$8 sps:$4 sm:$0xff]  }
0x139f   : > { %9475 = vmatpush1.bf16.msra.mxu1 %v14436_v32  ;;  %v14516_v32 = vld [vmem:[#allocation32 + $0xe4] ss:$8 sps:$4 sm:$0xff]  }
0x13a0   : > { %9639 = vmatpush1.bf16.msra.mxu0 %v14439_v36  ;;  %9476 = vmatprep.subr.bf16.mxu1 %v14444_v60  ;;  %v14519_v36 = vld [vmem:[#allocation32 + $0xf4] ss:$8 sps:$4 sm:$0xff]   ;;  %v14517_v60 = vld [vmem:[#allocation32 + $0xf0] ss:$8 sps:$4 sm:$0xff]  }
0x13a1   : > { %9640 = vmatprep.subr.bf16.mxu0 %v14447_v25  ;;  %v14522_v25 = vld [vmem:[#allocation32 + $0x104] ss:$8 sps:$4 sm:$0xff]  }
0x13a3   : > { %9477 = vmatpush1.bf16.msra.mxu1 %v14442_v4  ;;  %v10148_v4 = vld [vmem:[#allocation34 + $0x8] sm:$0xff] }
0x13a4   : > { %9641 = vmatpush1.bf16.msra.mxu0 %v14445_v5  ;;  %9478 = vmatprep.subr.bf16.mxu1 %v14450_v37  ;;  %v10147_v5 = vld [vmem:[#allocation34] sm:$0xff]  ;;  %v13013_v37 = vpack.c.bf16 %v10150_v62, %v10148_v4  ;;  %v10185_v62 = vld [vmem:[#allocation34 + $0x130] sm:$0xff] }
0x13a5   : > { %9642 = vmatprep.subr.bf16.mxu0 %v14453_v22  ;;  %v10149_v22 = vld [vmem:[#allocation34 + $0x10] sm:$0xff]  ;;  %v10183_v4 = vld [vmem:[#allocation34 + $0x120] sm:$0xff] }
0x13a7   : > { %9479 = vmatpush1.bf16.msra.mxu1 %v14448_v40  ;;  %v10152_v40 = vld [vmem:[#allocation34 + $0x28] sm:$0xff] }
0x13a8   : > { %9643 = vmatpush1.bf16.msra.mxu0 %v14451_v42  ;;  %9480 = vmatprep.subr.bf16.mxu1 %v14456_v44  ;;  %v13015_v42 = vpack.c.bf16 %v10149_v22, %v10147_v5  ;;  %v13017_v44 = vpack.c.bf16 %v10154_v41, %v10152_v40  ;;  %v10188_v5 = vld [vmem:[#allocation34 + $0x148] sm:$0xff]  ;;  %v13051_v22 = vpack.c.bf16 %v10185_v62, %v10183_v4  ;;  %v10187_v41 = vld [vmem:[#allocation34 + $0x140] sm:$0xff] }
0x13a9   : > { %9644 = vmatprep.subr.bf16.mxu0 %v14459_v47  ;;  %v10151_v47 = vld [vmem:[#allocation34 + $0x20] sm:$0xff] }
0x13aa   : > { %v14534_v4 = vld [vmem:[#allocation32 + $0x144] ss:$8 sps:$4 sm:$0xff]   ;;  %v14532_v62 = vld [vmem:[#allocation32 + $0x140] ss:$8 sps:$4 sm:$0xff]  }
0x13ab   : > { %9481 = vmatpush1.bf16.msra.mxu1 %v14454_v48  ;;  %v10153_v48 = vld [vmem:[#allocation34 + $0x30] sm:$0xff] }
0x13ac   : > { %9645 = vmatpush1.bf16.msra.mxu0 %v14457_v51  ;;  %9482 = vmatprep.subr.bf16.mxu1 %v14462_v43  ;;  %v10158_v51 = vld [vmem:[#allocation34 + $0x58] sm:$0xff]  ;;  %v13019_v43 = vpack.c.bf16 %v10153_v48, %v10151_v47 }
0x13ad   : > { %9646 = vmatprep.subr.bf16.mxu0 %v14465_v53  ;;  %v13021_v53 = vpack.c.bf16 %v10158_v51, %v10156_v50  ;;  %v10194_v47 = vld [vmem:[#allocation34 + $0x178] sm:$0xff]  ;;  %v10191_v51 = vld [vmem:[#allocation34 + $0x160] sm:$0xff] }
0x13af   : > { %9483 = vmatpush1.bf16.msra.mxu1 %v14460_v54  ;;  %v10155_v54 = vld [vmem:[#allocation34 + $0x40] sm:$0xff] }
0x13b0   : > { %9647 = vmatpush1.bf16.msra.mxu0 %v14463_v11  ;;  %9484 = vmatprep.subr.bf16.mxu1 %v14468_v26  ;;  %v10160_v11 = vld [vmem:[#allocation34 + $0x68] sm:$0xff]  ;;  %v10162_v26 = vld [vmem:[#allocation34 + $0x78] sm:$0xff] }
0x13b1   : > { %9648 = vmatprep.subr.bf16.mxu0 %v14471_v56  ;;  %v13023_v56 = vpack.c.bf16 %v10157_v55, %v10155_v54  ;;  %v10198_v54 = vld [vmem:[#allocation34 + $0x198] sm:$0xff] }
0x13b3   : > { %9485 = vmatpush1.bf16.msra.mxu1 %v14466_v57  ;;  %v13025_v57 = vpack.c.bf16 %v10162_v26, %v10160_v11  ;;  %v10195_v26 = vld [vmem:[#allocation34 + $0x180] sm:$0xff] }
0x13b4   : > { %9649 = vmatpush1.bf16.msra.mxu0 %v14469_v58  ;;  %10063 = vmatprep.subr.bf16.mxu1 %v14474_v59  ;;  %v10161_v58 = vld [vmem:[#allocation34 + $0x70] sm:$0xff]  ;;  %v10164_v59 = vld [vmem:[#allocation34 + $0x88] sm:$0xff] }
0x13b5   : > { %13014 = vmatprep.subr.bf16.mxu0 %v13013_v37  ;;  %v10190_v37 = vld [vmem:[#allocation34 + $0x158] sm:$0xff] }
0x13b6   : > { %9487 = vmatmul.mubr.bf16.vlgmr.msra.gmra.mrb[40].mxu1 %v8027_v63  ;;  %v13053_v40 = vpack.c.bf16 %v10190_v37, %v10188_v5  ;;  %v14537_v5 = vld [vmem:[#allocation32 + $0x154] ss:$8 sps:$4 sm:$0xff]   ;;  %v14535_v37 = vld [vmem:[#allocation32 + $0x150] ss:$8 sps:$4 sm:$0xff]  }
0x13b7   : > { %9651 = vmatmul.mubr.bf16.vlgmr.msra.gmra.mrb[36].mxu0 %v8027_v63  ;;  %10064 = vmatpush1.bf16.msra.mxu1 %v14472_v61  ;;  %v10166_v61 = vld [vmem:[#allocation34 + $0x98] sm:$0xff]  ;;  %v13027_v63 = vpack.c.bf16 %v10161_v58, %v10159_v30 }
0x13b8   : > { %10065 = vmatprep.subr.bf16.mxu1 %v14477_v24  ;;  %13016 = vmatpush1.bf16.msra.mxu0 %v13015_v42  ;;  %v13029_v24 = vpack.c.bf16 %v10166_v61, %v10164_v59  ;;  %v10189_v42 = vld [vmem:[#allocation34 + $0x150] sm:$0xff]  ;;  %v10202_v30 = vld [vmem:[#allocation34 + $0x1b8] sm:$0xff] }
0x13b9   : > { %13018 = vmatprep.subr.bf16.mxu0 %v13017_v44  ;;  %v10192_v44 = vld [vmem:[#allocation34 + $0x168] sm:$0xff]  ;;  %v13055_v48 = vpack.c.bf16 %v10189_v42, %v10187_v41  ;;  %v16433_v59 = vld [vmem:[%s16715_s22] sm:$0xf]  ;;  %v14543_v41 = vld [vmem:[#allocation32 + $0x174] ss:$8 sps:$4 sm:$0xff]   ;;  %s15201_s22 = sshll.u32 %s15417_s18, 4  ;;  %s15202_s22 = int_to_ptr.vmem [resolvable:$false] %s15201_s22 }
0x13ba   : > { %v13057_v50 = vpack.c.bf16 %v10194_v47, %v10192_v44  ;;  %v14541_v42 = vld [vmem:[#allocation32 + $0x170] ss:$8 sps:$4 sm:$0xff]   ;;  %v14546_v44 = vld [vmem:[#allocation32 + $0x184] ss:$8 sps:$4 sm:$0xff]   ;;  %v14544_v47 = vld [vmem:[#allocation32 + $0x180] ss:$8 sps:$4 sm:$0xff]   ;;  %p15204_p5 = scmp.lt.s32.totalorder %s16512_s6, %s15202_s22 }
0x13bb   : > { %10066 = vmatpush1.bf16.msra.mxu1 %v14475_v3  ;;  %v10163_v3 = vld [vmem:[#allocation34 + $0x80] sm:$0xff] }
0x13bc   : > { %10067 = vmatprep.subr.bf16.mxu1 %v14480_v28  ;;  %13020 = vmatpush1.bf16.msra.mxu0 %v13019_v43  ;;  %v10165_v28 = vld [vmem:[#allocation34 + $0x90] sm:$0xff] }
0x13bd   : > { %13022 = vmatprep.subr.bf16.mxu0 %v13021_v53  ;;  %v10193_v43 = vld [vmem:[#allocation34 + $0x170] sm:$0xff]  ;;  %v10196_v53 = vld [vmem:[#allocation34 + $0x188] sm:$0xff] }
0x13be   : > { %v13059_v55 = vpack.c.bf16 %v10193_v43, %v10191_v51  ;;  %v13061_v11 = vpack.c.bf16 %v10198_v54, %v10196_v53  ;;  %v14552_v51 = vld [vmem:[#allocation32 + $0x1a4] ss:$8 sps:$4 sm:$0xff]   ;;  %v14550_v43 = vld [vmem:[#allocation32 + $0x1a0] ss:$8 sps:$4 sm:$0xff]   ;;  %v14555_v53 = vld [vmem:[#allocation32 + $0x1b4] ss:$8 sps:$4 sm:$0xff]  }
0x13bf   : > { %10068 = vmatpush1.bf16.msra.mxu1 %v14478_v49  ;;  %v10168_v49 = vld [vmem:[#allocation34 + $0xa8] sm:$0xff]  ;;  %v14553_v54 = vld [vmem:[#allocation32 + $0x1b0] ss:$8 sps:$4 sm:$0xff]  }
0x13c0   : > { %10069 = vmatprep.subr.bf16.mxu1 %v14483_v39  ;;  %13024 = vmatpush1.bf16.msra.mxu0 %v13023_v56  ;;  %v10170_v39 = vld [vmem:[#allocation34 + $0xb8] sm:$0xff]  ;;  %v10197_v56 = vld [vmem:[#allocation34 + $0x190] sm:$0xff] }
0x13c1   : > { %13026 = vmatprep.subr.bf16.mxu0 %v13025_v57  ;;  %v10200_v57 = vld [vmem:[#allocation34 + $0x1a8] sm:$0xff]  ;;  %v13063_v58 = vpack.c.bf16 %v10197_v56, %v10195_v26  ;;  %v14561_v26 = vld [vmem:[#allocation32 + $0x1d4] ss:$8 sps:$4 sm:$0xff]   ;;  %v14559_v56 = vld [vmem:[#allocation32 + $0x1d0] ss:$8 sps:$4 sm:$0xff]  }
0x13c2   : > { %v13065_v61 = vpack.c.bf16 %v10202_v30, %v10200_v57  ;;  %v9322_v57 = vrot.slane %v16433_v59, %v16160_v45  ;;  %v14564_v30 = vld [vmem:[#allocation32 + $0x1e4] ss:$8 sps:$4 sm:$0xff]  }
0x13c3   : > { %10070 = vmatpush1.bf16.msra.mxu1 %v14481_v7  ;;  %v13031_v7 = vpack.c.bf16 %v10165_v28, %v10163_v3  ;;  %v10204_v3 = vld [vmem:[#allocation34 + $0x1c8] sm:$0xff]  ;;  %v10206_v28 = vld [vmem:[#allocation34 + $0x1d8] sm:$0xff]  ;;  %v10203_v45 = vld [vmem:[#allocation34 + $0x1c0] sm:$0xff] }
0x13c4   : > { %10071 = vmatprep.subr.bf16.mxu1 %v14486_v8  ;;  %13028 = vmatpush1.bf16.msra.mxu0 %v13027_v63  ;;  %v13033_v8 = vpack.c.bf16 %v10170_v39, %v10168_v49  ;;  %v10199_v63 = vld [vmem:[#allocation34 + $0x1a0] sm:$0xff]  ;;  %v9314_v49 = vrot.slane %v16433_v59, %v16131_v46 }
0x13c5   : > { %13030 = vmatprep.subr.bf16.mxu0 %v13029_v24  ;;  %v10201_v24 = vld [vmem:[#allocation34 + $0x1b0] sm:$0xff] }
0x13c6   : > { %v13067_v39 = vpack.c.bf16 %v10201_v24, %v10199_v63  ;;  %v14567_v63 = vld [vmem:[#allocation32 + $0x1f4] ss:$8 sps:$4 sm:$0xff]   ;;  %v14565_v24 = vld [vmem:[#allocation32 + $0x1f0] ss:$8 sps:$4 sm:$0xff]  }
0x13c7   : > { %10072 = vmatpush1.bf16.msra.mxu1 %v14484_v9  ;;  %v10167_v9 = vld [vmem:[#allocation34 + $0xa0] sm:$0xff] }
0x13c8   : > { %10073 = vmatprep.subr.bf16.mxu1 %v14489_v10  ;;  %v10169_v10 = vld [vmem:[#allocation34 + $0xb0] sm:$0xff]  ;;  %13032 = vmatpush1.bf16.msra.mxu0 %v13031_v7  ;;  %v9318_v7 = vrot.slane %v16433_v59, %v16135_v52 }
0x13c9   : > { %13034 = vmatprep.subr.bf16.mxu0 %v13033_v8  ;;  %v13069_v8 = vpack.c.bf16 %v10206_v28, %v10204_v3 }
0x13cb   : > { %10074 = vmatpush1.bf16.msra.mxu1 %v14487_v13  ;;  %v10172_v13 = vld [vmem:[#allocation34 + $0xc8] sm:$0xff] }
0x13cc   : > { %10075 = vmatprep.subr.bf16.mxu1 %v14492_v14  ;;  %v10174_v14 = vld [vmem:[#allocation34 + $0xd8] sm:$0xff] }
0x13cf   : > { %10076 = vmatpush1.bf16.msra.mxu1 %v14490_v16  ;;  %v13035_v16 = vpack.c.bf16 %v10169_v10, %v10167_v9  ;;  %v9326_v9 = vrot.slane %v16433_v59, %v16149_v34  ;;  %v10205_v59 = vld [vmem:[#allocation34 + $0x1d0] sm:$0xff] }
0x13d0   : > { %10077 = vmatprep.subr.bf16.mxu1 %v14495_v18  ;;  %v13037_v18 = vpack.c.bf16 %v10174_v14, %v10172_v13 }
0x13d1   : > { %13036 = vmatpush1.bf16.msra.mxu0 %v13035_v16 }
0x13d2   : > { %13038 = vmatprep.subr.bf16.mxu0 %v13037_v18 }
0x13d3   : > { %10078 = vmatpush1.bf16.msra.mxu1 %v14493_v38  ;;  %v10171_v38 = vld [vmem:[#allocation34 + $0xc0] sm:$0xff] }
0x13d4   : > { %10079 = vmatprep.subr.bf16.mxu1 %v14498_v19  ;;  %v10173_v19 = vld [vmem:[#allocation34 + $0xd0] sm:$0xff] }
0x13d7   : > { %10080 = vmatpush1.bf16.msra.mxu1 %v14496_v15  ;;  %v10176_v15 = vld [vmem:[#allocation34 + $0xe8] sm:$0xff] }
0x13d8   : > { %10081 = vmatprep.subr.bf16.mxu1 %v14501_v20  ;;  %v10178_v20 = vld [vmem:[#allocation34 + $0xf8] sm:$0xff] }
0x13db   : > { %10082 = vmatpush1.bf16.msra.mxu1 %v14499_v33  ;;  %v13039_v33 = vpack.c.bf16 %v10173_v19, %v10171_v38 }
0x13dc   : > { %10083 = vmatprep.subr.bf16.mxu1 %v14504_v23  ;;  %v13041_v23 = vpack.c.bf16 %v10178_v20, %v10176_v15 }
0x13dd   : > { %13040 = vmatpush1.bf16.msra.mxu0 %v13039_v33 }
0x13de   : > { %13042 = vmatprep.subr.bf16.mxu0 %v13041_v23 }
0x13df   : > { %10084 = vmatpush1.bf16.msra.mxu1 %v14502_v12  ;;  %v10175_v12 = vld [vmem:[#allocation34 + $0xe0] sm:$0xff] }
0x13e0   : > { %10085 = vmatprep.subr.bf16.mxu1 %v14507_v27  ;;  %v10177_v27 = vld [vmem:[#allocation34 + $0xf0] sm:$0xff] }
0x13e3   : > { %10086 = vmatpush1.bf16.msra.mxu1 %v14505_v29  ;;  %v10180_v29 = vld [vmem:[#allocation34 + $0x108] sm:$0xff] }
0x13e4   : > { %10087 = vmatprep.subr.bf16.mxu1 %v14510_v31  ;;  %v10182_v31 = vld [vmem:[#allocation34 + $0x118] sm:$0xff] }
0x13e7   : > { %10088 = vmatpush1.bf16.msra.mxu1 %v14508_v6  ;;  %v13043_v6 = vpack.c.bf16 %v10177_v27, %v10175_v12 }
0x13e8   : > { %10089 = vmatprep.subr.bf16.mxu1 %v14513_v2  ;;  %v13045_v2 = vpack.c.bf16 %v10182_v31, %v10180_v29 }
0x13e9   : > { %13044 = vmatpush1.bf16.msra.mxu0 %v13043_v6  ;;  %v14520_v6 = vld [vmem:[#allocation32 + $0x100] ss:$8 sps:$4 sm:$0xff]  }
0x13ea   : > { %13046 = vmatprep.subr.bf16.mxu0 %v13045_v2  ;;  %v14525_v2 = vld [vmem:[#allocation32 + $0x114] ss:$8 sps:$4 sm:$0xff]  }
0x13eb   : > { %10090 = vmatpush1.bf16.msra.mxu1 %v14511_v17  ;;  %v10179_v17 = vld [vmem:[#allocation34 + $0x100] sm:$0xff] }
0x13ec   : > { %10091 = vmatprep.subr.bf16.mxu1 %v14516_v32  ;;  %v10181_v32 = vld [vmem:[#allocation34 + $0x110] sm:$0xff] }
0x13ef   : > { %10092 = vmatpush1.bf16.msra.mxu1 %v14514_v35  ;;  %v10184_v35 = vld [vmem:[#allocation34 + $0x128] sm:$0xff] }
0x13f0   : > { %10093 = vmatprep.subr.bf16.mxu1 %v14519_v36  ;;  %v10186_v36 = vld [vmem:[#allocation34 + $0x138] sm:$0xff] }
0x13f3   : > { %10094 = vmatpush1.bf16.msra.mxu1 %v14517_v60  ;;  %v13047_v60 = vpack.c.bf16 %v10181_v32, %v10179_v17  ;;  %v14523_v32 = vld [vmem:[#allocation32 + $0x110] ss:$8 sps:$4 sm:$0xff]  }
0x13f4   : > { %10104 = vmatprep.subr.bf16.mxu1 %v14522_v25  ;;  %v13049_v25 = vpack.c.bf16 %v10186_v36, %v10184_v35  ;;  %v14528_v35 = vld [vmem:[#allocation32 + $0x124] ss:$8 sps:$4 sm:$0xff]   ;;  %v14526_v36 = vld [vmem:[#allocation32 + $0x120] ss:$8 sps:$4 sm:$0xff]  }
0x13f5   : > { %13048 = vmatpush1.bf16.msra.mxu0 %v13047_v60  ;;  %v14531_v60 = vld [vmem:[#allocation32 + $0x134] ss:$8 sps:$4 sm:$0xff]  }
0x13f6   : > { %13050 = vmatprep.subr.bf16.mxu0 %v13049_v25  ;;  %v14529_v25 = vld [vmem:[#allocation32 + $0x130] ss:$8 sps:$4 sm:$0xff]  }
0x13f9   : > { %13052 = vmatpush1.bf16.msra.mxu0 %v13051_v22  ;;  %v14540_v22 = vld [vmem:[#allocation32 + $0x164] ss:$8 sps:$4 sm:$0xff]  }
0x13fa   : > { %13054 = vmatprep.subr.bf16.mxu0 %v13053_v40  ;;  %v14538_v40 = vld [vmem:[#allocation32 + $0x160] ss:$8 sps:$4 sm:$0xff]  }
0x13fd   : > { %13056 = vmatpush1.bf16.msra.mxu0 %v13055_v48  ;;  %v14549_v48 = vld [vmem:[#allocation32 + $0x194] ss:$8 sps:$4 sm:$0xff]  }
0x13fe   : > { %13058 = vmatprep.subr.bf16.mxu0 %v13057_v50  ;;  %v14547_v50 = vld [vmem:[#allocation32 + $0x190] ss:$8 sps:$4 sm:$0xff]  }
0x1401   : > { %13060 = vmatpush1.bf16.msra.mxu0 %v13059_v55  ;;  %v14558_v55 = vld [vmem:[#allocation32 + $0x1c4] ss:$8 sps:$4 sm:$0xff]  }
0x1402   : > { %13062 = vmatprep.subr.bf16.mxu0 %v13061_v11  ;;  %v14556_v11 = vld [vmem:[#allocation32 + $0x1c0] ss:$8 sps:$4 sm:$0xff]  }
0x1405   : > { %13064 = vmatpush1.bf16.msra.mxu0 %v13063_v58  ;;  %v14562_v58 = vld [vmem:[#allocation32 + $0x1e0] ss:$8 sps:$4 sm:$0xff]  }
0x1406   : > { %13066 = vmatprep.subr.bf16.mxu0 %v13065_v61 }
0x1409   : > { %13068 = vmatpush1.bf16.msra.mxu0 %v13067_v39  ;;  %v10208_v39 = vld [vmem:[#allocation34 + $0x1e8] sm:$0xff] }
0x140a   : > { %13070 = vmatprep.subr.bf16.mxu0 %v13069_v8 }
0x1489   : > { %v9488_v10 = vpop.f32.mrb[40].mxu1 }
0x148a   : > { %v13134_v13 = vadd.f32 %v9488_v10, %v9314_v49  ;;  %v16441_v14 = vpop.f32.mrb[36].mxu0  ;;  %v9490_v16 = vpop.f32.mrb[41].mxu1  ;;  %v13071_v49 = vpack.c.bf16 %v10205_v59, %v10203_v45  ;;  %v10209_v10 = vld [vmem:[#allocation34 + $0x1f0] sm:$0xff]  ;;  %v10541_v45 = vld [vmem:[#allocation37 + $0x8] sm:$0xff] }
0x148b   : > { %v13135_v18 = vadd.f32 %v9490_v16, %v9318_v7  ;;  %v9654_v38 = vpop.f32.mrb[37].mxu0  ;;  %v9492_v19 = vpop.f32.mrb[42].mxu1  ;;  %v13136_v61 = vadd.f32 %v16441_v14, %v9322_v57  ;;  %v10210_v7 = vld [vmem:[#allocation34 + $0x1f8] sm:$0xff]  ;;  %v10542_v59 = vld [vmem:[#allocation37 + $0x10] sm:$0xff] }
0x148c   : > { %v9659_v15 = vmax.f32 %v13134_v13, 0.0  ;;  %v13137_v20 = vadd.f32 %v9654_v38, %v9326_v9  ;;  %v9656_v33 = vpop.f32.mrb[38].mxu0  ;;  %v9493_v23 = vpop.f32.mrb[43].mxu1  ;;  %13072 = vmatpush1.bf16.msra.mxu0 %v13071_v49  ;;  %v13073_v8 = vpack.c.bf16 %v10210_v7, %v10208_v39  ;;  %v10207_v9 = vld [vmem:[#allocation34 + $0x1e0] sm:$0xff]  ;;  %v9731_v14 = vld [vmem:[%s16716_s7] sm:$0x3] }
0x148d   : > { %v9660_v12 = vmax.f32 %v13135_v18, 0.0  ;;  %v9657_v27 = vpop.f32.mrb[39].mxu0  ;;  %v9661_v3 = vmax.f32 %v13136_v61, 0.0  ;;  %v13075_v13 = vpack.c.bf16 %v10209_v10, %v10207_v9  ;;  %v10056_v16 = vrot.slane %v9731_v14, %v16131_v46  ;;  %v10455_v61 = vld [vmem:[#allocation35 + $0x8] sm:$0xff]  ;;  %v10543_v39 = vld [vmem:[#allocation37 + $0x18] sm:$0xff]  ;;  %s15203_s7 = scalar_lea.vmem %s15202_s22, 32 }
0x148e   : > { %v9662_v29 = vmax.f32 %v13137_v20, 0.0  ;;  %v9727_v34 = vpack.c.bf16 %v9659_v15, %v9659_v15  ;;  %13074 = vmatprep.subr.bf16.mxu0 %v13073_v8  ;;  %v10060_v18 = vrot.slane %v9731_v14, %v16135_v52  ;;  %v13084_v7 = vpack.c.bf16 %v10543_v39, %v10542_v59  ;;  %v10544_v8 = vld [vmem:[#allocation37 + $0x20] sm:$0xff]  ;;  %v10545_v9 = vld [vmem:[#allocation37 + $0x28] sm:$0xff]  ;;  %v10547_v14 = vld [vmem:[#allocation37 + $0x38] sm:$0xff]  ;;  %p15205_p11 = scmp.lt.s32.totalorder %s15203_s7, %s15197_s15 }
0x148f   : > { %v9728_v31 = vpack.c.bf16 %v9660_v12, %v9660_v12  ;;  %v9729_v28 = vpack.c.bf16 %v9661_v3, %v9661_v3  ;;  %v13087_v10 = vpack.c.bf16 %v10545_v9, %v10544_v8  ;;  %v10640_v39 = vld [vmem:[#allocation38 + $0x18] sm:$0xff]  ;;  %v10641_v9 = vld [vmem:[#allocation38 + $0x20] sm:$0xff] }
0x1490   : > { %v9730_v17 = vpack.c.bf16 %v9662_v29, %v9662_v29  ;;  %13076 = vmatpush1.bf16.msra.mxu0 %v13075_v13  ;;  %v15409_v29 = vmov 8   ;;  %v10546_v13 = vld [vmem:[#allocation37 + $0x30] sm:$0xff]  ;;  %p15206_p10 = por %p15205_p11, %p15204_p5 }
0x1491   : > { %10095 = vmatprep.mubr.bf16.mxu1 %v9728_v31  ;;  %13080 = vmatprep.subr.bf16.mxu0 %v15389_v0  ;;  %v10316_v31 = vpop.permute.xlu1 %10315 }
0x1492   : > { %10096 = vmatmul.mubr.bf16.vlgmr.msra.gmra.mrb[44].mxu1 %v9727_v34  ;;  %13558 = vset.pattern.permute.xlu1 %v15409_v29  ;;  %v10211_v34 = vld [vmem:[%s16717_s26] sm:$0x3]  ;;  %p15207_p0 = pnand %p15206_p10, %p15200_p6 }
0x1493   : > { %10105 = vmatpush1.bf16.msra.mxu1 %v14520_v6  ;;  %10136 = vmatprep.mubr.bf16.mxu1 %v9730_v17  ;;  %v10216_v17 = vrot.slane %v10211_v34, %v16131_v46 }
0x1494   : > { %10106 = vmatprep.subr.bf16.mxu1 %v14525_v2 }
0x1495   : > { %v10326_v6 = vpop.permute.xlu1 %10325 }
0x1497   : > { %10107 = vmatpush1.bf16.msra.mxu1 %v14523_v32 }
0x1498   : > { %10108 = vmatprep.subr.bf16.mxu1 %v14528_v35 }
0x1499   : > { %v10346_v2 = vpop.permute.xlu1 %10345 }
0x149b   : > { %10109 = vmatpush1.bf16.msra.mxu1 %v14526_v36 }
0x149c   : > { %10110 = vmatprep.subr.bf16.mxu1 %v14531_v60 }
0x149d   : > { %v10356_v60 = vpop.permute.xlu1 %10355 }
0x149f   : > { %10111 = vmatpush1.bf16.msra.mxu1 %v14529_v25 }
0x14a0   : > { %10112 = vmatprep.subr.bf16.mxu1 %v14534_v4  ;;  %v10306_v4 = vpop.permute.xlu0 %10305 }
0x14a3   : > { %10113 = vmatpush1.bf16.msra.mxu1 %v14532_v62 }
0x14a4   : > { %10114 = vmatprep.subr.bf16.mxu1 %v14537_v5 }
0x14a7   : > { %10115 = vmatpush1.bf16.msra.mxu1 %v14535_v37  ;;  %v10386_v37 = vpop.permute.xlu1 %10385 }
0x14a8   : > { %10116 = vmatprep.subr.bf16.mxu1 %v14540_v22  ;;  %v10220_v22 = vrot.slane %v10211_v34, %v16135_v52 }
0x14ab   : > { %10117 = vmatpush1.bf16.msra.mxu1 %v14538_v40 }
0x14ac   : > { %10118 = vmatprep.subr.bf16.mxu1 %v14543_v41  ;;  %v10336_v41 = vpop.permute.xlu0 %10335 }
0x14af   : > { %10119 = vmatpush1.bf16.msra.mxu1 %v14541_v42 }
0x14b0   : > { %10120 = vmatprep.subr.bf16.mxu1 %v14546_v44 }
0x14b3   : > { %10121 = vmatpush1.bf16.msra.mxu1 %v14544_v47 }
0x14b4   : > { %10122 = vmatprep.subr.bf16.mxu1 %v14549_v48  ;;  %v10396_v48 = vpop.permute.xlu1 %10395 }
0x14b7   : > { %10123 = vmatpush1.bf16.msra.mxu1 %v14547_v50  ;;  %v10366_v50 = vpop.permute.xlu0 %10365 }
0x14b8   : > { %10124 = vmatprep.subr.bf16.mxu1 %v14552_v51 }
0x14bb   : > { %10125 = vmatpush1.bf16.msra.mxu1 %v14550_v43  ;;  %v10416_v43 = vpop.permute.xlu1 %10415 }
0x14bc   : > { %10126 = vmatprep.subr.bf16.mxu1 %v14555_v53 }
0x14bf   : > { %10127 = vmatpush1.bf16.msra.mxu1 %v14553_v54 }
0x14c0   : > { %10128 = vmatprep.subr.bf16.mxu1 %v14558_v55  ;;  %v10406_v55 = vpop.permute.xlu0 %10405 }
0x14c3   : > { %10129 = vmatpush1.bf16.msra.mxu1 %v14556_v11 }
0x14c4   : > { %10130 = vmatprep.subr.bf16.mxu1 %v14561_v26  ;;  %v10426_v26 = vpop.permute.xlu1 %10425 }
0x14c7   : > { %10131 = vmatpush1.bf16.msra.mxu1 %v14559_v56  ;;  %v10436_v56 = vpop.permute.xlu0 %10435 }
0x14c8   : > { %10132 = vmatprep.subr.bf16.mxu1 %v14564_v30 }
0x14cb   : > { %10133 = vmatpush1.bf16.msra.mxu1 %v14562_v58  ;;  %v10454_v58 = vld [vmem:[#allocation35] sm:$0xff] }
0x14cc   : > { %10134 = vmatprep.subr.bf16.mxu1 %v14567_v63  ;;  %v13078_v63 = vpack.c.bf16 %v10455_v61, %v10454_v58  ;;  %v12059_v58 = vld [vmem:[%s16718_s16] ss:$0 sm:$0xff] }
0x14cf   : > { %10135 = vmatpush1.bf16.msra.mxu1 %v14565_v24  ;;  %v10446_v24 = vpop.permute.xlu1 %10445 }
0x14d0   : > { %13077 = vmatprep.subr.bf16.mxu1 %v15389_v0 }
0x14d2   : > { %10137 = vmatmul.mubr.bf16.vlgmr.msra.gmra.mrb[44].mxu1 %v9729_v28  ;;  %v10540_v28 = vld [vmem:[#allocation37] sm:$0xff] }
0x14d3   : > { %12668 = vmatprep.mubr.msk.f32.mxu1 %vm15390_vm0, %v15391_v1  ;;  %13079 = vmatpush3.bf16.msra.mxu1 %v13078_v63  ;;  %v13081_v49 = vpack.c.bf16 %v10541_v45, %v10540_v28  ;;  %v10637_v63 = vld [vmem:[#allocation38] sm:$0xff] }
0x15a5   : > { %v10138_v38 = vpop.f32.mrb[44].mxu1 }
0x15a6   : > { %v13138_v19 = vadd.f32 %v10138_v38, %v10056_v16  ;;  %v10140_v15 = vpop.f32.mrb[45].mxu1  ;;  %v13090_v16 = vpack.c.bf16 %v10547_v14, %v10546_v13  ;;  %v10549_v38 = vld [vmem:[#allocation37 + $0x48] sm:$0xff]  ;;  %v10643_v14 = vld [vmem:[#allocation38 + $0x30] sm:$0xff] }
0x15a7   : > { %v13139_v20 = vadd.f32 %v10140_v15, %v10060_v18  ;;  %v10142_v33 = vpop.f32.mrb[46].mxu1  ;;  %v10548_v18 = vld [vmem:[#allocation37 + $0x40] sm:$0xff]  ;;  %v10550_v15 = vld [vmem:[#allocation37 + $0x50] sm:$0xff] }
0x15a8   : > { %v10143_v23 = vpop.f32.mrb[47].mxu1  ;;  %v10145_v27 = vmax.f32 %v13138_v19, 0.0  ;;  %v13093_v19 = vpack.c.bf16 %v10549_v38, %v10548_v18  ;;  %v10645_v38 = vld [vmem:[#allocation38 + $0x40] sm:$0xff] }
0x15a9   : > { %v10146_v12 = vmax.f32 %v13139_v20, 0.0  ;;  %v10551_v20 = vld [vmem:[#allocation37 + $0x58] sm:$0xff]  ;;  %v10552_v23 = vld [vmem:[#allocation37 + $0x60] sm:$0xff] }
0x15aa   : > { %v13096_v33 = vpack.c.bf16 %v10551_v20, %v10550_v15  ;;  %v10648_v20 = vld [vmem:[#allocation38 + $0x58] sm:$0xff] }
0x15ab   : > { %10287 = vmatprep.mubr.f32.mxu0 %v10146_v12  ;;  %v10553_v12 = vld [vmem:[#allocation37 + $0x68] sm:$0xff] }
0x15ac   : > { %10288 = vmatmul.mubr.f32.vlgmr.msra.gmra.mrb[40].mxu0 %v10145_v27  ;;  %v13099_v27 = vpack.c.bf16 %v10553_v12, %v10552_v23  ;;  %v10649_v23 = vld [vmem:[#allocation38 + $0x60] sm:$0xff]  ;;  %v10650_v12 = vld [vmem:[#allocation38 + $0x68] sm:$0xff] }
0x15ad   : > { %12703 = vmatprep.mubr.msk.f32.mxu0 %vm15390_vm0, %v15391_v1  ;;  %13082 = vmatpush3.bf16.msra.mxu0 %v13081_v49  ;;  %v10639_v49 = vld [vmem:[#allocation38 + $0x10] sm:$0xff] }
0x15ae   : > { %13083 = vmatprep.subr.bf16.mxu0 %v15389_v0  ;;  %v13108_v8 = vpack.c.bf16 %v10640_v39, %v10639_v49 }
0x15b1   : > { %13085 = vmatpush3.bf16.msra.mxu0 %v13084_v7 }
0x15b2   : > { %13086 = vmatprep.subr.bf16.mxu0 %v15389_v0 }
0x15b5   : > { %13088 = vmatpush3.bf16.msra.mxu0 %v13087_v10  ;;  %v10642_v10 = vld [vmem:[#allocation38 + $0x28] sm:$0xff] }
0x15b6   : > { %13089 = vmatprep.subr.bf16.mxu0 %v15389_v0  ;;  %v13111_v13 = vpack.c.bf16 %v10642_v10, %v10641_v9 }
0x15b9   : > { %13091 = vmatpush3.bf16.msra.mxu0 %v13090_v16  ;;  %v10644_v16 = vld [vmem:[#allocation38 + $0x38] sm:$0xff] }
0x15ba   : > { %13092 = vmatprep.subr.bf16.mxu0 %v15389_v0  ;;  %v13114_v18 = vpack.c.bf16 %v10644_v16, %v10643_v14 }
0x15bd   : > { %13094 = vmatpush3.bf16.msra.mxu0 %v13093_v19  ;;  %v10646_v19 = vld [vmem:[#allocation38 + $0x48] sm:$0xff] }
0x15be   : > { %13095 = vmatprep.subr.bf16.mxu0 %v15389_v0  ;;  %v13117_v15 = vpack.c.bf16 %v10646_v19, %v10645_v38 }
0x15c1   : > { %13097 = vmatpush3.bf16.msra.mxu0 %v13096_v33 }
0x15c2   : > { %13098 = vmatprep.subr.bf16.mxu0 %v15389_v0 }
0x15c5   : > { %13100 = vmatpush3.bf16.msra.mxu0 %v13099_v27  ;;  %v13123_v27 = vpack.c.bf16 %v10650_v12, %v10649_v23 }
0x15c6   : > { %13101 = vmatprep.subr.bf16.mxu0 %v15389_v0 }
0x167f   : > { %v10289_v32 = vpop.f32.mrb[40].mxu0 }
0x1680   : > { %v10290_v35 = vadd.f32 %v10289_v32, %v10216_v17  ;;  %v10291_v36 = vpop.f32.mrb[41].mxu0 }
0x1681   : > { %v10292_v42 = vadd.f32 %v10291_v36, %v10220_v22 }
0x1682   : > { %v16458_v25 = vrot.slane %v10290_v35, %v16131_v46 }
0x1683   : > { %v16471_v52 = vrot.slane %v10292_v42, %v16131_v46 }
0x1684   : > { %v10318_v62 = vmul.f32 %v10316_v31, %v16458_v25  ;;  %v10308_v5 = vmul.f32 %v10306_v4, %v16458_v25  ;;  %v10328_v40 = vmul.f32 %v10326_v6, %v16458_v25  ;;  %v10348_v44 = vmul.f32 %v10346_v2, %v16458_v25  ;;  %v10297_v6 = vpop.permute.xlu1 %10296 }
0x1685   : > { %v10338_v47 = vmul.f32 %v10336_v41, %v16458_v25  ;;  %v10368_v51 = vmul.f32 %v10366_v50, %v16458_v25  ;;  %v10398_v53 = vmul.f32 %v10396_v48, %v16471_v52  ;;  %v10388_v54 = vmul.f32 %v10386_v37, %v16471_v52 }
0x1686   : > { %10320 = vrot.lane.b32.xlu1 %v10318_v62, %s15410_s9  ;;  %10310 = vrot.lane.b32.xlu0 %v10308_v5, %s15411_s8  ;;  %v10418_v46 = vmul.f32 %v10416_v43, %v16471_v52  ;;  %v10408_v11 = vmul.f32 %v10406_v55, %v16471_v52  ;;  %v10438_v57 = vmul.f32 %v10436_v56, %v16471_v52 }
0x1687   : > { %v10428_v30 = vmul.f32 %v10426_v26, %v16471_v52  ;;  %v10448_v3 = vmul.f32 %v10446_v24, %v16471_v52  ;;  %v10303_v34 = vmul.f32 %v16458_v25, %v10297_v6  ;;  %v10638_v24 = vld [vmem:[#allocation38 + $0x8] sm:$0xff] }
0x1688   : > { %v13105_v59 = vpack.c.bf16 %v10638_v24, %v10637_v63 }
0x168a   : > { %10375 = vperm.xlu1 %13558, %v16349_v21   ;;  %10330 = vrot.lane.b32.xlu0 %v10328_v40, %s15412_s28  ;;  %v10358_v21 = vmul.f32 %v10356_v60, %v16458_v25 }
0x168e   : > { %10350 = vrot.lane.b32.xlu1 %v10348_v44, %s15413_s4  ;;  %10340 = vrot.lane.b32.xlu0 %v10338_v47, %s15414_s3 }
0x1692   : > { %10370 = vrot.lane.b32.xlu1 %v10368_v51, %s15415_s19  ;;  %10360 = vrot.lane.b32.xlu0 %v10358_v21, %s15416_s11 }
0x1696   : > { %10400 = vrot.lane.b32.xlu1 %v10398_v53, %s15410_s9  ;;  %10390 = vrot.lane.b32.xlu0 %v10388_v54, %s15411_s8 }
0x169a   : > { %10420 = vrot.lane.b32.xlu1 %v10418_v46, %s15414_s3  ;;  %10410 = vrot.lane.b32.xlu0 %v10408_v11, %s15412_s28 }
0x169e   : > { %10440 = vrot.lane.b32.xlu1 %v10438_v57, %s15416_s11  ;;  %10430 = vrot.lane.b32.xlu0 %v10428_v30, %s15413_s4  ;;  %v10554_v57 = vld [vmem:[#allocation37 + $0x70] sm:$0xff] }
0x16a2   : > { %10450 = vrot.lane.b32.xlu0 %v10448_v3, %s15415_s19 }
0x16f8   : > { %v10311_v29 = vpop.permute.xlu0 %10310  ;;  %v10321_v32 = vpop.permute.xlu1 %10320 }
0x16f9   : > { %v10313_v2 = vadd.f32 %v10311_v29, %v10303_v34  ;;  %v10651_v29 = vld [vmem:[#allocation38 + $0x70] sm:$0xff]  ;;  %v12061_v34 = vld [vmem:[%s15656_s24] ss:$0 sm:$0xff] }
0x16fb   : > { %v10323_v35 = vadd.f32 %v10321_v32, %v10313_v2 }
0x16fc   : > { %v10331_v31 = vpop.permute.xlu0 %10330 }
0x16fd   : > { %v10333_v4 = vadd.f32 %v10331_v31, %v10323_v35  ;;  %v10652_v31 = vld [vmem:[#allocation38 + $0x78] sm:$0xff] }
0x16fe   : > { %v13126_v6 = vpack.c.bf16 %v10652_v31, %v10651_v29 }
0x1700   : > { %v10341_v17 = vpop.permute.xlu0 %10340 }
0x1701   : > { %v10343_v62 = vadd.f32 %v10341_v17, %v10333_v4 }
0x1704   : > { %v10361_v36 = vpop.permute.xlu0 %10360 }
0x1708   : > { %v10391_v22 = vpop.permute.xlu0 %10390 }
0x1709   : > { %v10376_v60 = vpop.permute.xlu1 %10375 }
0x170a   : > { %v10382_v42 = vmul.f32 %v16471_v52, %v10376_v60  ;;  %v10555_v52 = vld [vmem:[#allocation37 + $0x78] sm:$0xff] }
0x170b   : > { %v13102_v30 = vpack.c.bf16 %v10555_v52, %v10554_v57  ;;  %v10653_v60 = vld [vmem:[%s15666_s1] sm:$0x1] }
0x170c   : > { %v10411_v48 = vpop.permute.xlu0 %10410 }
0x170d   : > { %v10351_v5 = vpop.permute.xlu1 %10350  ;;  %13103 = vmatpush3.bf16.msra.mxu0 %v13102_v30 }
0x170e   : > { %v10353_v37 = vadd.f32 %v10351_v5, %v10343_v62  ;;  %13104 = vmatprep.subr.bf16.mxu0 %v15389_v0 }
0x1710   : > { %v10363_v40 = vadd.f32 %v10361_v36, %v10353_v37  ;;  %v10431_v53 = vpop.permute.xlu0 %10430 }
0x1711   : > { %v10371_v41 = vpop.permute.xlu1 %10370 }
0x1712   : > { %v10373_v44 = vadd.f32 %v10371_v41, %v10363_v40 }
0x1714   : > { %v10383_v47 = vadd.f32 %v10382_v42, %v10373_v44  ;;  %v10451_v26 = vpop.permute.xlu0 %10450 }
0x1715   : > { %v10401_v50 = vpop.permute.xlu1 %10400 }
0x1716   : > { %v10393_v25 = vadd.f32 %v10391_v22, %v10383_v47 }
0x1718   : > { %v10403_v51 = vadd.f32 %v10401_v50, %v10393_v25 }
0x1719   : > { %v10421_v21 = vpop.permute.xlu1 %10420 }
0x171a   : > { %v10413_v43 = vadd.f32 %v10411_v48, %v10403_v51 }
0x171c   : > { %v10423_v54 = vadd.f32 %v10421_v21, %v10413_v43 }
0x171d   : > { %v10441_v46 = vpop.permute.xlu1 %10440 }
0x171e   : > { %v10433_v55 = vadd.f32 %v10431_v53, %v10423_v54 }
0x1720   : > { %v10443_v11 = vadd.f32 %v10441_v46, %v10433_v55 }
0x1722   : > { %v10453_v56 = vadd.f32 %v10451_v26, %v10443_v11 }
0x1724   : > { %12669 = vmatmul.mubr.msk.f32.vlgmr.msra.gmra.mrb[48].mxu1 %vm10463_vm12, %v10453_v56 }
0x17f7   : > { %v10533_v61 = vpop.f32.mrb[48].mxu1 }
0x17f8   : > { %v10534_v3 = vadd.f32 %v12059_v58, %v10533_v61  ;;  %v12670_v28 = vpop.f32.mrb[49].mxu1 }
0x17fa   : > { %vm10537_vm13 = vcmp.gt.f32.partialorder %v10534_v3, 0.0  ;;  %v10538_v45 = vmul.f32 0.25, %v10534_v3 }
0x17fc   : > { %v10539_v7 = vsel %vm10537_vm13, %v10534_v3, %v10538_v45 }
0x17fd   : > { %12704 = vmatmul.mubr.f32.vlgmr.msra.gmra.mrb[42].mxu0 %v10539_v7 }
0x17fe   : > { %13106 = vmatpush3.bf16.msra.mxu0 %v13105_v59  ;;  %12738 = vmatprep.mubr.msk.f32.mxu0 %vm15390_vm0, %v15391_v1  ;;  %v10647_v1 = vld [vmem:[#allocation38 + $0x50] sm:$0xff] }
0x17ff   : > { %13107 = vmatprep.subr.bf16.mxu0 %v15389_v0  ;;  %v13120_v33 = vpack.c.bf16 %v10648_v20, %v10647_v1 }
0x1802   : > { %13109 = vmatpush3.bf16.msra.mxu0 %v13108_v8 }
0x1803   : > { %13110 = vmatprep.subr.bf16.mxu0 %v15389_v0 }
0x1806   : > { %13112 = vmatpush3.bf16.msra.mxu0 %v13111_v13 }
0x1807   : > { %13113 = vmatprep.subr.bf16.mxu0 %v15389_v0 }
0x180a   : > { %13115 = vmatpush3.bf16.msra.mxu0 %v13114_v18 }
0x180b   : > { %13116 = vmatprep.subr.bf16.mxu0 %v15389_v0 }
0x180e   : > { %13118 = vmatpush3.bf16.msra.mxu0 %v13117_v15 }
0x180f   : > { %13119 = vmatprep.subr.bf16.mxu0 %v15389_v0 }
0x1812   : > { %13121 = vmatpush3.bf16.msra.mxu0 %v13120_v33 }
0x1813   : > { %13122 = vmatprep.subr.bf16.mxu0 %v15389_v0 }
0x1816   : > { %13124 = vmatpush3.bf16.msra.mxu0 %v13123_v27 }
0x1817   : > { %13125 = vmatprep.subr.bf16.mxu0 %v15389_v0 }
0x181a   : > { %13127 = vmatpush3.bf16.msra.mxu0 %v13126_v6 }
0x18d0   : > { %v10629_v2 = vpop.f32.mrb[42].mxu0 }
0x18d1   : > { %v10630_v17 = vadd.f32 %v12061_v34, %v10629_v2  ;;  %v12705_v32 = vpop.f32.mrb[43].mxu0 }
0x18d3   : > { %v10634_v35 = vrot.slane %v10630_v17, 1 }
0x18d5   : > { %v10636_v36 = vmax.f32 %v10630_v17, %v10634_v35 }
0x18d7   : > { %12739 = vmatmul.mubr.f32.vlgmr.msra.gmra.mrb[44].mxu0 %v10636_v36 }
0x19aa   : > { %v10720_v4 = vpop.f32.mrb[44].mxu0 }
0x19ab   : > { %v10721_v0 = vadd.f32 %v10720_v4, %v10653_v60  ;;  %v12740_v62 = vpop.f32.mrb[45].mxu0 }
0x19ad   : > { %10724 = vst [vmem:[%s1752_s17] sm:$0x1] %v10721_v0 }
0x19ae   : > { %15210 = shalt.err (!%p15207_p0)
}
0x19af   : > { %s15211_s26 = scalar_lea.hbm %s16510_s0, 16  ;;  %s15215_s9 = scalar_lea.hbm %s15671_s10, 32 }
0x19b0   : > { %p15212_p3 = scmp.ne.s32.totalorder %s16510_s0, %s15211_s26  ;;  %p15216_p8 = scmp.lt.u32.totalorder %s16510_s0, %s15671_s10 }
0x19b1   : > { %p15217_p9 = scmp.lt.u32.totalorder %s15215_s9, %s15211_s26  ;;  %p15219_p13 = scmp.lt.u32.totalorder %s15211_s26, %s16510_s0 }
0x19b2   : > { %p15213_p1 = pnand %p15212_p3, %p16719_p2 }
0x19b3   : > { %p15218_p12 = por %p15217_p9, %p15216_p8 }
0x19b4   : > { %p15214_p7 = pneg %p15213_p1 }
0x19b5   : > { %p15220_p4 = por %p15219_p13, %p15218_p12 }
0x19b7   : > { %p15221_p6 = pnand %p15220_p4, %p15214_p7 }
0x19b9   : > { %15224 = shalt.err (!%p15221_p6)
}
0x19ba   : > { %13284 = dma.vmem_to_hbm [thread:$0]  (%p16719_p2), %s16512_s6, 16, %s16510_s0, %s10726_s12  }
0x19bb PF: > { %s16720_s8 = sld [smem:[#allocation98_spill]]  ;;  %s16721_s28 = sld [smem:[#allocation96_spill]] }
0x19bc   : > { %s16722_s4 = sld [smem:[#allocation101_spill]] }
0x19c1   : > { %p13401_p5 = scmp.ge.s32.totalorder %s16720_s8, 2  ;;  %s10750_s3 = sand.u32 1, %s16721_s28  }
0x19c2   : > { %p16723_p11 = scmp.ne.s32.totalorder %s16722_s4, 0  ;;  %s10751_s19 = scalar_lea.sflag [#allocation7], %s10750_s3 }
0x19c4   : > { %p13354_p10 = pnand %p13401_p5, %p16723_p11 }
0x19c6   : > { %15292 = dma.done.wait (!%p13354_p10), %s10751_s19, 16  }
0x19c7   : > { %15294 = vsyncadd (!%p13354_p10), %s10751_s19, 4294967280  ;;  %s16724_s15 = sld [smem:[#allocation99_spill]]  ;;  %s16725_s11 = sld [smem:[#allocation97_spill]] }
0x19c8   : > { %s16726_s6 = sld [smem:[#allocation100_spill]]  ;;  %s16727_s0 = smov %s15301_s5 }
0x19cd   : > { %p127_p0 = scmp.ge.s32.totalorder %s16724_s15, 4   ;;  %s16728_s5 = smov %s16725_s11 }
0x19cf   :  { %129 = sbr.rel (!%p127_p0) target bundleno = 114 (0x72), region = 400 }
0x19d6   :  { %10755 = vsyncpa [#allocation6], 1 }
0x19d7   :  { %10757 = vsyncpa [#allocation6 + $0x1], 1 }
0x19d8   :  { %10758 = vsyncpa [#allocation9], 1 }
0x19d9   :  { %10759 = vsyncpa [#allocation12], 1 }
0x19da   :  { %10760 = vsyncpa [#allocation15], 1 }
0x19db   :  { %10761 = vsyncpa [#allocation18], 1 }
0x19dc   :  { %10762 = vsyncpa [#allocation21], 1 }
0x19dd   :  { %10763 = vsyncpa [#allocation24], 1 }
0x19de   :  { %10764 = vsyncpa [#allocation27], 1 }
0x19df   :  { %10765 = vsyncpa [#allocation30], 1 }
0x19e0   :  { %10766 = vsyncpa [#allocation33], 1 }
0x19e1   :  { %10767 = vsyncpa [#allocation36], 1 }
0x19e2   :  { %10768 = vsyncpa [#allocation39], 1 }
0x19e3   :  { %10769 = vsyncpa [#allocation7], 1 }
0x19e4   :  { %10771 = vsyncpa [#allocation7 + $0x1], 1 }

</bundles_post_ra>
